<compile_context>
chip_gen: v5e
topology: v5e:2x2
jax: 0.10.0
libtpu: 0.0.40
codegen_flags: <defaults>
</compile_context>

<pallas_src>
import functools

import numpy as np

import jax
import jax.numpy as jnp
from jax.experimental import pallas as pl
from jax.experimental.pallas import tpu as pltpu

_CP = 128  # channel / lane padding grain (one vreg lane tile)


def _round_up(x, m):
    return (x + m - 1) // m * m


# ----------------------------------------------------------------------------
# Fused Pallas kernel (whole forward pass)
# ----------------------------------------------------------------------------

def _disc_fused_kernel(
    p1_ref, w1_ref,
    g2_ref, w2_ref, bn2g_ref, bn2b_ref,
    g3_ref, w3_ref, bn3g_ref, bn3b_ref,
    g4_ref, w4_ref, bn4g_ref, bn4b_ref,
    wfc_ref, ssel_ref, fcb_ref,
    out_ref,
    patch_ref,                      # VMEM scratch [mp_max, 9*128] f32
    *, m_valid,
):
    f32 = jnp.float32
    bf16 = jnp.bfloat16

    # ---- Conv2d(1, 32, 3, s=2, p=1) + LeakyReLU(0.2): ONE MXU matmul -----------
    # Taps sit on the K axis (zero-padded 9->16); output channels zero-padded to 128.
    y1 = jnp.dot(p1_ref[...], w1_ref[...], preferred_element_type=f32)    # [M1, 128]
    act = jnp.maximum(y1, 0.2 * y1)

    def conv_bn_lrelu(x, g_ref, w_ref, gamma_ref, beta_ref, mv):
        """3x3 conv (2 MXU matmuls) + BatchNorm (batch stats) + LeakyReLU(0.2)."""
        mp = g_ref.shape[0] // 9
        # (1) all nine taps gathered with ONE matmul; G is exact 0/1 so bf16 is exact.
        ybig = jnp.dot(g_ref[...], x.astype(bf16),
                       preferred_element_type=f32)                        # [9*mp, 128]
        # (2) patch matrix [mp, 9*128] via 128-lane-aligned scratch stores (layout only).
        for t in range(9):
            patch_ref[0:mp, t * _CP:(t + 1) * _CP] = ybig[t * mp:(t + 1) * mp, :]
        patches = patch_ref[0:mp, :]
        # (3) one weight matmul, K = 9*128 = 1152 (128-grain aligned), f32 accumulate.
        acc = jnp.dot(patches.astype(bf16), w_ref[...],
                      preferred_element_type=f32)                         # [mp, Cout_p]
        # (4) BatchNorm2d (training-mode batch stats, biased var, eps=1e-5), single pass.
        #     Padded rows / channels of `acc` are exactly zero, so the sums are exact
        #     when divided by the true element count mv.
        inv_m = 1.0 / mv
        mean = jnp.sum(acc, axis=0, keepdims=True) * inv_m
        ex2 = jnp.sum(acc * acc, axis=0, keepdims=True) * inv_m
        var = ex2 - mean * mean
        scale = jax.lax.rsqrt(var + 1e-5) * gamma_ref[...]
        z = (acc - mean) * scale + beta_ref[...]
        return jnp.maximum(z, 0.2 * z)

    act = conv_bn_lrelu(act, g2_ref, w2_ref, bn2g_ref, bn2b_ref, m_valid[0])   # [mp2, 128]
    act = conv_bn_lrelu(act, g3_ref, w3_ref, bn3g_ref, bn3b_ref, m_valid[1])   # [mp3, 128]
    act = conv_bn_lrelu(act, g4_ref, w4_ref, bn4g_ref, bn4b_ref, m_valid[2])   # [mp4, 256]

    # ---- Flatten + Linear(4096, 1) + Sigmoid (lane-dense) ----------------------
    # fc weight is pre-permuted (host-side) into the kernel's (h, w, c) row order and
    # tiled/padded to [mp4, 256]: elementwise multiply + per-sample group-sum matmul.
    z = act * wfc_ref[...]                                                # [mp4, 256]
    per_sample = jnp.dot(ssel_ref[...], z, preferred_element_type=f32)    # [N, 256]
    logits = jnp.sum(per_sample, axis=1, keepdims=True) + fcb_ref[...]    # [N, 1]
    out_ref[...] = jax.nn.sigmoid(logits)


# ----------------------------------------------------------------------------
# Trace-time constants & weight re-layout (host / plain JAX)
# ----------------------------------------------------------------------------

@functools.lru_cache(maxsize=None)
def _gather_big(n, hi, wi, stride, m_in_rows, m_out_rows):
    """Stacked 0/1 tap-gather matrix [9*m_out_rows, m_in_rows] for a 3x3, pad=1 conv.

    Row t*m_out_rows + r maps output position r (ordered (n, oh, ow)-major) to the tap-t
    input position (ordered (n, ih, iw)-major).  All-zero rows encode the implicit conv
    zero padding and the sublane row padding; padded input rows are never referenced.
    """
    ho = (hi + 2 - 3) // stride + 1
    wo = (wi + 2 - 3) // stride + 1
    g = np.zeros((9 * m_out_rows, m_in_rows), np.float32)
    for t in range(9):
        ki, kj = divmod(t, 3)
        for b in range(n):
            for oh in range(ho):
                ih = stride * oh + ki - 1
                if not (0 <= ih < hi):
                    continue
                for ow in range(wo):
                    iw = stride * ow + kj - 1
                    if 0 <= iw < wi:
                        g[t * m_out_rows + (b * ho + oh) * wo + ow,
                          (b * hi + ih) * wi + iw] = 1.0
    return g


def _conv1_im2col(x_nchw, k_pad=16):
    """[N,1,28,28] -> conv1 patches [N*196, 16]; rows (n,oh,ow)-major, cols t=i*3+j (+zeros)."""
    n = x_nchw.shape[0]
    x = x_nchw[:, 0]                                     # [N, 28, 28]
    xp = jnp.pad(x, ((0, 0), (1, 1), (1, 1)))
    taps = [xp[:, i:i + 28:2, j:j + 28:2] for i in range(3) for j in range(3)]
    p = jnp.stack(taps, axis=-1).reshape(n * 14 * 14, 9)
    return jnp.pad(p, ((0, 0), (0, k_pad - 9)))


def _conv1_w(w_oihw, k_pad=16, cout_pad=_CP):
    """conv1 weight [32,1,3,3] -> [16, 128] (taps on rows, zero-padded channels)."""
    cout = w_oihw.shape[0]
    w = jnp.transpose(w_oihw, (2, 3, 1, 0)).reshape(9, cout)   # [9, 32]
    return jnp.pad(w, ((0, k_pad - 9), (0, cout_pad - cout)))


def _stack_conv_w(w_oihw, cin_pad, cout_pad):
    """PyTorch conv weight [Cout,Cin,3,3] -> stacked [9*cin_pad, cout_pad] (zero padded)."""
    cout, cin, kh, kw = w_oihw.shape
    w = jnp.transpose(w_oihw, (2, 3, 1, 0))                    # [3, 3, Cin, Cout]
    w = jnp.pad(w, ((0, 0), (0, 0), (0, cin_pad - cin), (0, cout_pad - cout)))
    return w.reshape(kh * kw * cin_pad, cout_pad)


def _pad_bn(v, cp, fill):
    return jnp.pad(v, ((0, 0), (0, cp - v.shape[1])), constant_values=fill)


# ----------------------------------------------------------------------------
# Parameters (deterministic, shapes match the PyTorch module)
# ----------------------------------------------------------------------------

def init_params(key):
    k = jax.random.split(key, 6)
    scale = 0.05
    return {
        "conv1_w": jax.random.normal(k[0], (32, 1, 3, 3), jnp.float32) * scale,
        "conv2_w": jax.random.normal(k[1], (64, 32, 3, 3), jnp.float32) * scale,
        "conv3_w": jax.random.normal(k[2], (128, 64, 3, 3), jnp.float32) * scale,
        "conv4_w": jax.random.normal(k[3], (256, 128, 3, 3), jnp.float32) * scale,
        "bn2_gamma": jnp.ones((1, 64), jnp.float32), "bn2_beta": jnp.zeros((1, 64), jnp.float32),
        "bn3_gamma": jnp.ones((1, 128), jnp.float32), "bn3_beta": jnp.zeros((1, 128), jnp.float32),
        "bn4_gamma": jnp.ones((1, 256), jnp.float32), "bn4_beta": jnp.zeros((1, 256), jnp.float32),
        "fc_w": jax.random.normal(k[4], (1, 256 * 4 * 4), jnp.float32) * scale,  # PyTorch [out, in]
        "fc_b": jax.random.normal(k[5], (1,), jnp.float32) * scale,
    }


# ----------------------------------------------------------------------------
# Forward pass
# ----------------------------------------------------------------------------

@jax.jit
def discriminator_forward(x_nchw, params):
    n = x_nchw.shape[0]
    f32, bf16 = jnp.float32, jnp.bfloat16
    x = x_nchw.astype(f32)

    # Row counts per layer; output rows padded to sublane multiples of 8.
    m1 = n * 14 * 14
    m2v, mp2 = n * 7 * 7, _round_up(n * 7 * 7, 8)
    m3v, mp3 = n * 4 * 4, _round_up(n * 4 * 4, 8)
    m4v, mp4 = n * 4 * 4, _round_up(n * 4 * 4, 8)
    mp_max = max(mp2, mp3, mp4)

    # conv1 im2col (raw ~3 KB image) - the only out-of-kernel data glue.
    p1 = _conv1_im2col(x).astype(bf16)                              # [m1, 16]
    w1 = _conv1_w(params["conv1_w"]).astype(bf16)                   # [16, 128]

    # Stacked tap weights (K = 9*128) and stacked 0/1 gather constants (bf16-exact).
    w2 = _stack_conv_w(params["conv2_w"], _CP, _CP).astype(bf16)    # [1152, 128]
    w3 = _stack_conv_w(params["conv3_w"], _CP, _CP).astype(bf16)    # [1152, 128]
    w4 = _stack_conv_w(params["conv4_w"], _CP, 256).astype(bf16)    # [1152, 256]
    g2 = jnp.asarray(_gather_big(n, 14, 14, 2, m1, mp2), bf16)      # [9*mp2, m1]
    g3 = jnp.asarray(_gather_big(n, 7, 7, 2, mp2, mp3), bf16)       # [9*mp3, mp2]
    g4 = jnp.asarray(_gather_big(n, 4, 4, 1, mp3, mp4), bf16)       # [9*mp4, mp3]

    bn2g = _pad_bn(params["bn2_gamma"], _CP, 1.0)
    bn2b = _pad_bn(params["bn2_beta"], _CP, 0.0)
    bn3g = _pad_bn(params["bn3_gamma"], _CP, 1.0)
    bn3b = _pad_bn(params["bn3_beta"], _CP, 0.0)
    bn4g = params["bn4_gamma"]
    bn4b = params["bn4_beta"]

    # FC weight permuted once from PyTorch (c,h,w) flatten order to (h,w,c) row order,
    # tiled per sample and zero-padded to the padded conv4 row count.
    wfc = jnp.transpose(params["fc_w"].reshape(256, 4, 4), (1, 2, 0)).reshape(16, 256)
    wfc_t = jnp.pad(jnp.tile(wfc, (n, 1)), ((0, mp4 - m4v), (0, 0)))     # [mp4, 256]
    ssel_np = np.zeros((n, mp4), np.float32)                             # per-sample group-sum
    for b in range(n):
        ssel_np[b, b * 16:(b + 1) * 16] = 1.0
    ssel = jnp.asarray(ssel_np)
    fcb = params["fc_b"].reshape(1, 1)

    args = (p1, w1,
            g2, w2, bn2g, bn2b,
            g3, w3, bn3g, bn3b,
            g4, w4, bn4g, bn4b,
            wfc_t, ssel, fcb)

    kernel = functools.partial(_disc_fused_kernel, m_valid=(m2v, m3v, m4v))
    return pl.pallas_call(
        kernel,
        out_shape=jax.ShapeDtypeStruct((n, 1), jnp.float32),
        in_specs=[pl.BlockSpec(memory_space=pltpu.MemorySpace.VMEM)] * len(args),
        out_specs=pl.BlockSpec(memory_space=pltpu.MemorySpace.VMEM),
        scratch_shapes=[pltpu.VMEM((mp_max, 9 * _CP), jnp.float32)],
    )(*args)


# ----------------------------------------------------------------------------
# Main
# ----------------------------------------------------------------------------

if __name__ == "__main__":
    key = jax.random.PRNGKey(0)
    k_p, k_x = jax.random.split(key)
    params = init_params(k_p)
    # MNIST-like input (28x28 is required by the Linear(256*4*4, 1) layer).
    x = jax.random.normal(k_x, (2, 1, 28, 28), jnp.float32)

    out = discriminator_forward(x, params)
    out = jax.block_until_ready(out)
    assert out.shape == (2, 1), out.shape
    assert bool(jnp.all((out >= 0.0) & (out <= 1.0)))
    print("KERNEL_OK")
</pallas_src>

<mosaic_0001>
module attributes {stable_mosaic.version = 11 : i64} {
  func.func @_disc_fused_kernel(%arg0: memref<392x16xbf16, #tpu.memory_space<vmem>>, %arg1: memref<16x128xbf16, #tpu.memory_space<vmem>>, %arg2: memref<936x392xbf16, #tpu.memory_space<vmem>>, %arg3: memref<1152x128xbf16, #tpu.memory_space<vmem>>, %arg4: memref<1x128xf32, #tpu.memory_space<vmem>>, %arg5: memref<1x128xf32, #tpu.memory_space<vmem>>, %arg6: memref<288x104xbf16, #tpu.memory_space<vmem>>, %arg7: memref<1152x128xbf16, #tpu.memory_space<vmem>>, %arg8: memref<1x128xf32, #tpu.memory_space<vmem>>, %arg9: memref<1x128xf32, #tpu.memory_space<vmem>>, %arg10: memref<288x32xbf16, #tpu.memory_space<vmem>>, %arg11: memref<1152x256xbf16, #tpu.memory_space<vmem>>, %arg12: memref<1x256xf32, #tpu.memory_space<vmem>>, %arg13: memref<1x256xf32, #tpu.memory_space<vmem>>, %arg14: memref<32x256xf32, #tpu.memory_space<vmem>>, %arg15: memref<2x32xf32, #tpu.memory_space<vmem>>, %arg16: memref<1x1xf32, #tpu.memory_space<vmem>>, %arg17: memref<2x1xf32, #tpu.memory_space<vmem>>, %arg18: memref<104x1152xf32, #tpu.memory_space<vmem>>) attributes {dimension_semantics = [], scalar_prefetch = 0 : i64, scratch_operands = 1 : i64, tpu.core_type = #tpu.core_type<tc>} {
    %c0 = arith.constant 0 : index
    %c0_0 = arith.constant 0 : index
    %0 = vector.load %arg0[%c0, %c0_0] : memref<392x16xbf16, #tpu.memory_space<vmem>>, vector<392x16xbf16>
    %c0_1 = arith.constant 0 : index
    %c0_2 = arith.constant 0 : index
    %1 = vector.load %arg1[%c0_1, %c0_2] : memref<16x128xbf16, #tpu.memory_space<vmem>>, vector<16x128xbf16>
    %cst = arith.constant dense<0.000000e+00> : vector<392x128xf32>
    %2 = tpu.matmul %0, %1, %cst {dimension_numbers = #tpu.dot_dimension_numbers<[1], [0], [0], [1], [0, 0, 1, 1], [], []>} : vector<392x16xbf16>, vector<16x128xbf16>, vector<392x128xf32> -> vector<392x128xf32>
    %cst_3 = arith.constant 2.000000e-01 : f32
    %3 = vector.broadcast %cst_3 : f32 to vector<392x128xf32>
    %4 = arith.mulf %3, %2 : vector<392x128xf32>
    %5 = arith.maximumf %2, %4 : vector<392x128xf32>
    %c0_4 = arith.constant 0 : index
    %c0_5 = arith.constant 0 : index
    %6 = vector.load %arg2[%c0_4, %c0_5] : memref<936x392xbf16, #tpu.memory_space<vmem>>, vector<936x392xbf16>
    %7 = arith.truncf %5 : vector<392x128xf32> to vector<392x128xbf16>
    %cst_6 = arith.constant dense<0.000000e+00> : vector<936x128xf32>
    %8 = tpu.matmul %6, %7, %cst_6 {dimension_numbers = #tpu.dot_dimension_numbers<[1], [0], [0], [1], [0, 0, 1, 1], [], []>} : vector<936x392xbf16>, vector<392x128xbf16>, vector<936x128xf32> -> vector<936x128xf32>
    %9 = vector.extract_strided_slice %8 {offsets = [0, 0], sizes = [104, 128], strides = [1, 1]} : vector<936x128xf32> to vector<104x128xf32>
    %c0_7 = arith.constant 0 : index
    %c0_8 = arith.constant 0 : index
    %10 = vector.load %arg18[%c0_7, %c0_8] : memref<104x1152xf32, #tpu.memory_space<vmem>>, vector<104x128xf32>
    tpu.vector_store %arg18[%c0_7, %c0_8], %9 {strides = array<i32>} : memref<104x1152xf32, #tpu.memory_space<vmem>>, vector<104x128xf32>,
    %11 = vector.extract_strided_slice %8 {offsets = [104, 0], sizes = [104, 128], strides = [1, 1]} : vector<936x128xf32> to vector<104x128xf32>
    %c0_9 = arith.constant 0 : index
    %c128 = arith.constant 128 : index
    %12 = vector.load %arg18[%c0_9, %c128] : memref<104x1152xf32, #tpu.memory_space<vmem>>, vector<104x128xf32>
    tpu.vector_store %arg18[%c0_9, %c128], %11 {strides = array<i32>} : memref<104x1152xf32, #tpu.memory_space<vmem>>, vector<104x128xf32>,
    %13 = vector.extract_strided_slice %8 {offsets = [208, 0], sizes = [104, 128], strides = [1, 1]} : vector<936x128xf32> to vector<104x128xf32>
    %c0_10 = arith.constant 0 : index
    %c256 = arith.constant 256 : index
    %14 = vector.load %arg18[%c0_10, %c256] : memref<104x1152xf32, #tpu.memory_space<vmem>>, vector<104x128xf32>
    tpu.vector_store %arg18[%c0_10, %c256], %13 {strides = array<i32>} : memref<104x1152xf32, #tpu.memory_space<vmem>>, vector<104x128xf32>,
    %15 = vector.extract_strided_slice %8 {offsets = [312, 0], sizes = [104, 128], strides = [1, 1]} : vector<936x128xf32> to vector<104x128xf32>
    %c0_11 = arith.constant 0 : index
    %c384 = arith.constant 384 : index
    %16 = vector.load %arg18[%c0_11, %c384] : memref<104x1152xf32, #tpu.memory_space<vmem>>, vector<104x128xf32>
    tpu.vector_store %arg18[%c0_11, %c384], %15 {strides = array<i32>} : memref<104x1152xf32, #tpu.memory_space<vmem>>, vector<104x128xf32>,
    %17 = vector.extract_strided_slice %8 {offsets = [416, 0], sizes = [104, 128], strides = [1, 1]} : vector<936x128xf32> to vector<104x128xf32>
    %c0_12 = arith.constant 0 : index
    %c512 = arith.constant 512 : index
    %18 = vector.load %arg18[%c0_12, %c512] : memref<104x1152xf32, #tpu.memory_space<vmem>>, vector<104x128xf32>
    tpu.vector_store %arg18[%c0_12, %c512], %17 {strides = array<i32>} : memref<104x1152xf32, #tpu.memory_space<vmem>>, vector<104x128xf32>,
    %19 = vector.extract_strided_slice %8 {offsets = [520, 0], sizes = [104, 128], strides = [1, 1]} : vector<936x128xf32> to vector<104x128xf32>
    %c0_13 = arith.constant 0 : index
    %c640 = arith.constant 640 : index
    %20 = vector.load %arg18[%c0_13, %c640] : memref<104x1152xf32, #tpu.memory_space<vmem>>, vector<104x128xf32>
    tpu.vector_store %arg18[%c0_13, %c640], %19 {strides = array<i32>} : memref<104x1152xf32, #tpu.memory_space<vmem>>, vector<104x128xf32>,
    %21 = vector.extract_strided_slice %8 {offsets = [624, 0], sizes = [104, 128], strides = [1, 1]} : vector<936x128xf32> to vector<104x128xf32>
    %c0_14 = arith.constant 0 : index
    %c768 = arith.constant 768 : index
    %22 = vector.load %arg18[%c0_14, %c768] : memref<104x1152xf32, #tpu.memory_space<vmem>>, vector<104x128xf32>
    tpu.vector_store %arg18[%c0_14, %c768], %21 {strides = array<i32>} : memref<104x1152xf32, #tpu.memory_space<vmem>>, vector<104x128xf32>,
    %23 = vector.extract_strided_slice %8 {offsets = [728, 0], sizes = [104, 128], strides = [1, 1]} : vector<936x128xf32> to vector<104x128xf32>
    %c0_15 = arith.constant 0 : index
    %c896 = arith.constant 896 : index
    %24 = vector.load %arg18[%c0_15, %c896] : memref<104x1152xf32, #tpu.memory_space<vmem>>, vector<104x128xf32>
    tpu.vector_store %arg18[%c0_15, %c896], %23 {strides = array<i32>} : memref<104x1152xf32, #tpu.memory_space<vmem>>, vector<104x128xf32>,
    %25 = vector.extract_strided_slice %8 {offsets = [832, 0], sizes = [104, 128], strides = [1, 1]} : vector<936x128xf32> to vector<104x128xf32>
    %c0_16 = arith.constant 0 : index
    %c1024 = arith.constant 1024 : index
    %26 = vector.load %arg18[%c0_16, %c1024] : memref<104x1152xf32, #tpu.memory_space<vmem>>, vector<104x128xf32>
    tpu.vector_store %arg18[%c0_16, %c1024], %25 {strides = array<i32>} : memref<104x1152xf32, #tpu.memory_space<vmem>>, vector<104x128xf32>,
    %c0_17 = arith.constant 0 : index
    %c0_18 = arith.constant 0 : index
    %27 = vector.load %arg18[%c0_17, %c0_18] : memref<104x1152xf32, #tpu.memory_space<vmem>>, vector<104x1152xf32>
    %28 = arith.truncf %27 : vector<104x1152xf32> to vector<104x1152xbf16>
    %c0_19 = arith.constant 0 : index
    %c0_20 = arith.constant 0 : index
    %29 = vector.load %arg3[%c0_19, %c0_20] : memref<1152x128xbf16, #tpu.memory_space<vmem>>, vector<1152x128xbf16>
    %cst_21 = arith.constant dense<0.000000e+00> : vector<104x128xf32>
    %30 = tpu.matmul %28, %29, %cst_21 {dimension_numbers = #tpu.dot_dimension_numbers<[1], [0], [0], [1], [0, 0, 1, 1], [], []>} : vector<104x1152xbf16>, vector<1152x128xbf16>, vector<104x128xf32> -> vector<104x128xf32>
    %cst_22 = arith.constant dense<0.000000e+00> : vector<128xf32>
    %31 = vector.multi_reduction <add>, %30, %cst_22 [0] : vector<104x128xf32> to vector<128xf32>
    %32 = vector.shape_cast %31 : vector<128xf32> to vector<1x128xf32>
    %cst_23 = arith.constant 0.0102040814 : f32
    %33 = vector.broadcast %cst_23 : f32 to vector<1x128xf32>
    %34 = arith.mulf %32, %33 : vector<1x128xf32>
    %35 = arith.mulf %30, %30 : vector<104x128xf32>
    %cst_24 = arith.constant dense<0.000000e+00> : vector<128xf32>
    %36 = vector.multi_reduction <add>, %35, %cst_24 [0] : vector<104x128xf32> to vector<128xf32>
    %37 = vector.shape_cast %36 : vector<128xf32> to vector<1x128xf32>
    %cst_25 = arith.constant 0.0102040814 : f32
    %38 = vector.broadcast %cst_25 : f32 to vector<1x128xf32>
    %39 = arith.mulf %37, %38 : vector<1x128xf32>
    %40 = arith.mulf %34, %34 : vector<1x128xf32>
    %41 = arith.subf %39, %40 : vector<1x128xf32>
    %cst_26 = arith.constant 9.99999974E-6 : f32
    %42 = vector.broadcast %cst_26 : f32 to vector<1x128xf32>
    %43 = arith.addf %41, %42 : vector<1x128xf32>
    %44 = math.rsqrt %43 : vector<1x128xf32>
    %c0_27 = arith.constant 0 : index
    %c0_28 = arith.constant 0 : index
    %45 = vector.load %arg4[%c0_27, %c0_28] : memref<1x128xf32, #tpu.memory_space<vmem>>, vector<1x128xf32>
    %46 = arith.mulf %44, %45 : vector<1x128xf32>
    %47 = vector.broadcast %34 : vector<1x128xf32> to vector<104x128xf32>
    %48 = arith.subf %30, %47 : vector<104x128xf32>
    %49 = vector.broadcast %46 : vector<1x128xf32> to vector<104x128xf32>
    %50 = arith.mulf %48, %49 : vector<104x128xf32>
    %c0_29 = arith.constant 0 : index
    %c0_30 = arith.constant 0 : index
    %51 = vector.load %arg5[%c0_29, %c0_30] : memref<1x128xf32, #tpu.memory_space<vmem>>, vector<1x128xf32>
    %52 = vector.broadcast %51 : vector<1x128xf32> to vector<104x128xf32>
    %53 = arith.addf %50, %52 : vector<104x128xf32>
    %cst_31 = arith.constant 2.000000e-01 : f32
    %54 = vector.broadcast %cst_31 : f32 to vector<104x128xf32>
    %55 = arith.mulf %54, %53 : vector<104x128xf32>
    %56 = arith.maximumf %53, %55 : vector<104x128xf32>
    %c0_32 = arith.constant 0 : index
    %c0_33 = arith.constant 0 : index
    %57 = vector.load %arg6[%c0_32, %c0_33] : memref<288x104xbf16, #tpu.memory_space<vmem>>, vector<288x104xbf16>
    %58 = arith.truncf %56 : vector<104x128xf32> to vector<104x128xbf16>
    %cst_34 = arith.constant dense<0.000000e+00> : vector<288x128xf32>
    %59 = tpu.matmul %57, %58, %cst_34 {dimension_numbers = #tpu.dot_dimension_numbers<[1], [0], [0], [1], [0, 0, 1, 1], [], []>} : vector<288x104xbf16>, vector<104x128xbf16>, vector<288x128xf32> -> vector<288x128xf32>
    %60 = vector.extract_strided_slice %59 {offsets = [0, 0], sizes = [32, 128], strides = [1, 1]} : vector<288x128xf32> to vector<32x128xf32>
    %c0_35 = arith.constant 0 : index
    %c0_36 = arith.constant 0 : index
    %61 = vector.load %arg18[%c0_35, %c0_36] : memref<104x1152xf32, #tpu.memory_space<vmem>>, vector<32x128xf32>
    tpu.vector_store %arg18[%c0_35, %c0_36], %60 {strides = array<i32>} : memref<104x1152xf32, #tpu.memory_space<vmem>>, vector<32x128xf32>,
    %62 = vector.extract_strided_slice %59 {offsets = [32, 0], sizes = [32, 128], strides = [1, 1]} : vector<288x128xf32> to vector<32x128xf32>
    %c0_37 = arith.constant 0 : index
    %c128_38 = arith.constant 128 : index
    %63 = vector.load %arg18[%c0_37, %c128_38] : memref<104x1152xf32, #tpu.memory_space<vmem>>, vector<32x128xf32>
    tpu.vector_store %arg18[%c0_37, %c128_38], %62 {strides = array<i32>} : memref<104x1152xf32, #tpu.memory_space<vmem>>, vector<32x128xf32>,
    %64 = vector.extract_strided_slice %59 {offsets = [64, 0], sizes = [32, 128], strides = [1, 1]} : vector<288x128xf32> to vector<32x128xf32>
    %c0_39 = arith.constant 0 : index
    %c256_40 = arith.constant 256 : index
    %65 = vector.load %arg18[%c0_39, %c256_40] : memref<104x1152xf32, #tpu.memory_space<vmem>>, vector<32x128xf32>
    tpu.vector_store %arg18[%c0_39, %c256_40], %64 {strides = array<i32>} : memref<104x1152xf32, #tpu.memory_space<vmem>>, vector<32x128xf32>,
    %66 = vector.extract_strided_slice %59 {offsets = [96, 0], sizes = [32, 128], strides = [1, 1]} : vector<288x128xf32> to vector<32x128xf32>
    %c0_41 = arith.constant 0 : index
    %c384_42 = arith.constant 384 : index
    %67 = vector.load %arg18[%c0_41, %c384_42] : memref<104x1152xf32, #tpu.memory_space<vmem>>, vector<32x128xf32>
    tpu.vector_store %arg18[%c0_41, %c384_42], %66 {strides = array<i32>} : memref<104x1152xf32, #tpu.memory_space<vmem>>, vector<32x128xf32>,
    %68 = vector.extract_strided_slice %59 {offsets = [128, 0], sizes = [32, 128], strides = [1, 1]} : vector<288x128xf32> to vector<32x128xf32>
    %c0_43 = arith.constant 0 : index
    %c512_44 = arith.constant 512 : index
    %69 = vector.load %arg18[%c0_43, %c512_44] : memref<104x1152xf32, #tpu.memory_space<vmem>>, vector<32x128xf32>
    tpu.vector_store %arg18[%c0_43, %c512_44], %68 {strides = array<i32>} : memref<104x1152xf32, #tpu.memory_space<vmem>>, vector<32x128xf32>,
    %70 = vector.extract_strided_slice %59 {offsets = [160, 0], sizes = [32, 128], strides = [1, 1]} : vector<288x128xf32> to vector<32x128xf32>
    %c0_45 = arith.constant 0 : index
    %c640_46 = arith.constant 640 : index
    %71 = vector.load %arg18[%c0_45, %c640_46] : memref<104x1152xf32, #tpu.memory_space<vmem>>, vector<32x128xf32>
    tpu.vector_store %arg18[%c0_45, %c640_46], %70 {strides = array<i32>} : memref<104x1152xf32, #tpu.memory_space<vmem>>, vector<32x128xf32>,
    %72 = vector.extract_strided_slice %59 {offsets = [192, 0], sizes = [32, 128], strides = [1, 1]} : vector<288x128xf32> to vector<32x128xf32>
    %c0_47 = arith.constant 0 : index
    %c768_48 = arith.constant 768 : index
    %73 = vector.load %arg18[%c0_47, %c768_48] : memref<104x1152xf32, #tpu.memory_space<vmem>>, vector<32x128xf32>
    tpu.vector_store %arg18[%c0_47, %c768_48], %72 {strides = array<i32>} : memref<104x1152xf32, #tpu.memory_space<vmem>>, vector<32x128xf32>,
    %74 = vector.extract_strided_slice %59 {offsets = [224, 0], sizes = [32, 128], strides = [1, 1]} : vector<288x128xf32> to vector<32x128xf32>
    %c0_49 = arith.constant 0 : index
    %c896_50 = arith.constant 896 : index
    %75 = vector.load %arg18[%c0_49, %c896_50] : memref<104x1152xf32, #tpu.memory_space<vmem>>, vector<32x128xf32>
    tpu.vector_store %arg18[%c0_49, %c896_50], %74 {strides = array<i32>} : memref<104x1152xf32, #tpu.memory_space<vmem>>, vector<32x128xf32>,
    %76 = vector.extract_strided_slice %59 {offsets = [256, 0], sizes = [32, 128], strides = [1, 1]} : vector<288x128xf32> to vector<32x128xf32>
    %c0_51 = arith.constant 0 : index
    %c1024_52 = arith.constant 1024 : index
    %77 = vector.load %arg18[%c0_51, %c1024_52] : memref<104x1152xf32, #tpu.memory_space<vmem>>, vector<32x128xf32>
    tpu.vector_store %arg18[%c0_51, %c1024_52], %76 {strides = array<i32>} : memref<104x1152xf32, #tpu.memory_space<vmem>>, vector<32x128xf32>,
    %c0_53 = arith.constant 0 : index
    %c0_54 = arith.constant 0 : index
    %78 = vector.load %arg18[%c0_53, %c0_54] : memref<104x1152xf32, #tpu.memory_space<vmem>>, vector<32x1152xf32>
    %79 = arith.truncf %78 : vector<32x1152xf32> to vector<32x1152xbf16>
    %c0_55 = arith.constant 0 : index
    %c0_56 = arith.constant 0 : index
    %80 = vector.load %arg7[%c0_55, %c0_56] : memref<1152x128xbf16, #tpu.memory_space<vmem>>, vector<1152x128xbf16>
    %cst_57 = arith.constant dense<0.000000e+00> : vector<32x128xf32>
    %81 = tpu.matmul %79, %80, %cst_57 {dimension_numbers = #tpu.dot_dimension_numbers<[1], [0], [0], [1], [0, 0, 1, 1], [], []>} : vector<32x1152xbf16>, vector<1152x128xbf16>, vector<32x128xf32> -> vector<32x128xf32>
    %cst_58 = arith.constant dense<0.000000e+00> : vector<128xf32>
    %82 = vector.multi_reduction <add>, %81, %cst_58 [0] : vector<32x128xf32> to vector<128xf32>
    %83 = vector.shape_cast %82 : vector<128xf32> to vector<1x128xf32>
    %cst_59 = arith.constant 3.125000e-02 : f32
    %84 = vector.broadcast %cst_59 : f32 to vector<1x128xf32>
    %85 = arith.mulf %83, %84 : vector<1x128xf32>
    %86 = arith.mulf %81, %81 : vector<32x128xf32>
    %cst_60 = arith.constant dense<0.000000e+00> : vector<128xf32>
    %87 = vector.multi_reduction <add>, %86, %cst_60 [0] : vector<32x128xf32> to vector<128xf32>
    %88 = vector.shape_cast %87 : vector<128xf32> to vector<1x128xf32>
    %cst_61 = arith.constant 3.125000e-02 : f32
    %89 = vector.broadcast %cst_61 : f32 to vector<1x128xf32>
    %90 = arith.mulf %88, %89 : vector<1x128xf32>
    %91 = arith.mulf %85, %85 : vector<1x128xf32>
    %92 = arith.subf %90, %91 : vector<1x128xf32>
    %cst_62 = arith.constant 9.99999974E-6 : f32
    %93 = vector.broadcast %cst_62 : f32 to vector<1x128xf32>
    %94 = arith.addf %92, %93 : vector<1x128xf32>
    %95 = math.rsqrt %94 : vector<1x128xf32>
    %c0_63 = arith.constant 0 : index
    %c0_64 = arith.constant 0 : index
    %96 = vector.load %arg8[%c0_63, %c0_64] : memref<1x128xf32, #tpu.memory_space<vmem>>, vector<1x128xf32>
    %97 = arith.mulf %95, %96 : vector<1x128xf32>
    %98 = vector.broadcast %85 : vector<1x128xf32> to vector<32x128xf32>
    %99 = arith.subf %81, %98 : vector<32x128xf32>
    %100 = vector.broadcast %97 : vector<1x128xf32> to vector<32x128xf32>
    %101 = arith.mulf %99, %100 : vector<32x128xf32>
    %c0_65 = arith.constant 0 : index
    %c0_66 = arith.constant 0 : index
    %102 = vector.load %arg9[%c0_65, %c0_66] : memref<1x128xf32, #tpu.memory_space<vmem>>, vector<1x128xf32>
    %103 = vector.broadcast %102 : vector<1x128xf32> to vector<32x128xf32>
    %104 = arith.addf %101, %103 : vector<32x128xf32>
    %cst_67 = arith.constant 2.000000e-01 : f32
    %105 = vector.broadcast %cst_67 : f32 to vector<32x128xf32>
    %106 = arith.mulf %105, %104 : vector<32x128xf32>
    %107 = arith.maximumf %104, %106 : vector<32x128xf32>
    %c0_68 = arith.constant 0 : index
    %c0_69 = arith.constant 0 : index
    %108 = vector.load %arg10[%c0_68, %c0_69] : memref<288x32xbf16, #tpu.memory_space<vmem>>, vector<288x32xbf16>
    %109 = arith.truncf %107 : vector<32x128xf32> to vector<32x128xbf16>
    %cst_70 = arith.constant dense<0.000000e+00> : vector<288x128xf32>
    %110 = tpu.matmul %108, %109, %cst_70 {dimension_numbers = #tpu.dot_dimension_numbers<[1], [0], [0], [1], [0, 0, 1, 1], [], []>} : vector<288x32xbf16>, vector<32x128xbf16>, vector<288x128xf32> -> vector<288x128xf32>
    %111 = vector.extract_strided_slice %110 {offsets = [0, 0], sizes = [32, 128], strides = [1, 1]} : vector<288x128xf32> to vector<32x128xf32>
    %c0_71 = arith.constant 0 : index
    %c0_72 = arith.constant 0 : index
    %112 = vector.load %arg18[%c0_71, %c0_72] : memref<104x1152xf32, #tpu.memory_space<vmem>>, vector<32x128xf32>
    tpu.vector_store %arg18[%c0_71, %c0_72], %111 {strides = array<i32>} : memref<104x1152xf32, #tpu.memory_space<vmem>>, vector<32x128xf32>,
    %113 = vector.extract_strided_slice %110 {offsets = [32, 0], sizes = [32, 128], strides = [1, 1]} : vector<288x128xf32> to vector<32x128xf32>
    %c0_73 = arith.constant 0 : index
    %c128_74 = arith.constant 128 : index
    %114 = vector.load %arg18[%c0_73, %c128_74] : memref<104x1152xf32, #tpu.memory_space<vmem>>, vector<32x128xf32>
    tpu.vector_store %arg18[%c0_73, %c128_74], %113 {strides = array<i32>} : memref<104x1152xf32, #tpu.memory_space<vmem>>, vector<32x128xf32>,
    %115 = vector.extract_strided_slice %110 {offsets = [64, 0], sizes = [32, 128], strides = [1, 1]} : vector<288x128xf32> to vector<32x128xf32>
    %c0_75 = arith.constant 0 : index
    %c256_76 = arith.constant 256 : index
    %116 = vector.load %arg18[%c0_75, %c256_76] : memref<104x1152xf32, #tpu.memory_space<vmem>>, vector<32x128xf32>
    tpu.vector_store %arg18[%c0_75, %c256_76], %115 {strides = array<i32>} : memref<104x1152xf32, #tpu.memory_space<vmem>>, vector<32x128xf32>,
    %117 = vector.extract_strided_slice %110 {offsets = [96, 0], sizes = [32, 128], strides = [1, 1]} : vector<288x128xf32> to vector<32x128xf32>
    %c0_77 = arith.constant 0 : index
    %c384_78 = arith.constant 384 : index
    %118 = vector.load %arg18[%c0_77, %c384_78] : memref<104x1152xf32, #tpu.memory_space<vmem>>, vector<32x128xf32>
    tpu.vector_store %arg18[%c0_77, %c384_78], %117 {strides = array<i32>} : memref<104x1152xf32, #tpu.memory_space<vmem>>, vector<32x128xf32>,
    %119 = vector.extract_strided_slice %110 {offsets = [128, 0], sizes = [32, 128], strides = [1, 1]} : vector<288x128xf32> to vector<32x128xf32>
    %c0_79 = arith.constant 0 : index
    %c512_80 = arith.constant 512 : index
    %120 = vector.load %arg18[%c0_79, %c512_80] : memref<104x1152xf32, #tpu.memory_space<vmem>>, vector<32x128xf32>
    tpu.vector_store %arg18[%c0_79, %c512_80], %119 {strides = array<i32>} : memref<104x1152xf32, #tpu.memory_space<vmem>>, vector<32x128xf32>,
    %121 = vector.extract_strided_slice %110 {offsets = [160, 0], sizes = [32, 128], strides = [1, 1]} : vector<288x128xf32> to vector<32x128xf32>
    %c0_81 = arith.constant 0 : index
    %c640_82 = arith.constant 640 : index
    %122 = vector.load %arg18[%c0_81, %c640_82] : memref<104x1152xf32, #tpu.memory_space<vmem>>, vector<32x128xf32>
    tpu.vector_store %arg18[%c0_81, %c640_82], %121 {strides = array<i32>} : memref<104x1152xf32, #tpu.memory_space<vmem>>, vector<32x128xf32>,
    %123 = vector.extract_strided_slice %110 {offsets = [192, 0], sizes = [32, 128], strides = [1, 1]} : vector<288x128xf32> to vector<32x128xf32>
    %c0_83 = arith.constant 0 : index
    %c768_84 = arith.constant 768 : index
    %124 = vector.load %arg18[%c0_83, %c768_84] : memref<104x1152xf32, #tpu.memory_space<vmem>>, vector<32x128xf32>
    tpu.vector_store %arg18[%c0_83, %c768_84], %123 {strides = array<i32>} : memref<104x1152xf32, #tpu.memory_space<vmem>>, vector<32x128xf32>,
    %125 = vector.extract_strided_slice %110 {offsets = [224, 0], sizes = [32, 128], strides = [1, 1]} : vector<288x128xf32> to vector<32x128xf32>
    %c0_85 = arith.constant 0 : index
    %c896_86 = arith.constant 896 : index
    %126 = vector.load %arg18[%c0_85, %c896_86] : memref<104x1152xf32, #tpu.memory_space<vmem>>, vector<32x128xf32>
    tpu.vector_store %arg18[%c0_85, %c896_86], %125 {strides = array<i32>} : memref<104x1152xf32, #tpu.memory_space<vmem>>, vector<32x128xf32>,
    %127 = vector.extract_strided_slice %110 {offsets = [256, 0], sizes = [32, 128], strides = [1, 1]} : vector<288x128xf32> to vector<32x128xf32>
    %c0_87 = arith.constant 0 : index
    %c1024_88 = arith.constant 1024 : index
    %128 = vector.load %arg18[%c0_87, %c1024_88] : memref<104x1152xf32, #tpu.memory_space<vmem>>, vector<32x128xf32>
    tpu.vector_store %arg18[%c0_87, %c1024_88], %127 {strides = array<i32>} : memref<104x1152xf32, #tpu.memory_space<vmem>>, vector<32x128xf32>,
    %c0_89 = arith.constant 0 : index
    %c0_90 = arith.constant 0 : index
    %129 = vector.load %arg18[%c0_89, %c0_90] : memref<104x1152xf32, #tpu.memory_space<vmem>>, vector<32x1152xf32>
    %130 = arith.truncf %129 : vector<32x1152xf32> to vector<32x1152xbf16>
    %c0_91 = arith.constant 0 : index
    %c0_92 = arith.constant 0 : index
    %131 = vector.load %arg11[%c0_91, %c0_92] : memref<1152x256xbf16, #tpu.memory_space<vmem>>, vector<1152x256xbf16>
    %cst_93 = arith.constant dense<0.000000e+00> : vector<32x256xf32>
    %132 = tpu.matmul %130, %131, %cst_93 {dimension_numbers = #tpu.dot_dimension_numbers<[1], [0], [0], [1], [0, 0, 1, 1], [], []>} : vector<32x1152xbf16>, vector<1152x256xbf16>, vector<32x256xf32> -> vector<32x256xf32>
    %cst_94 = arith.constant dense<0.000000e+00> : vector<256xf32>
    %133 = vector.multi_reduction <add>, %132, %cst_94 [0] : vector<32x256xf32> to vector<256xf32>
    %134 = vector.shape_cast %133 : vector<256xf32> to vector<1x256xf32>
    %cst_95 = arith.constant 3.125000e-02 : f32
    %135 = vector.broadcast %cst_95 : f32 to vector<1x256xf32>
    %136 = arith.mulf %134, %135 : vector<1x256xf32>
    %137 = arith.mulf %132, %132 : vector<32x256xf32>
    %cst_96 = arith.constant dense<0.000000e+00> : vector<256xf32>
    %138 = vector.multi_reduction <add>, %137, %cst_96 [0] : vector<32x256xf32> to vector<256xf32>
    %139 = vector.shape_cast %138 : vector<256xf32> to vector<1x256xf32>
    %cst_97 = arith.constant 3.125000e-02 : f32
    %140 = vector.broadcast %cst_97 : f32 to vector<1x256xf32>
    %141 = arith.mulf %139, %140 : vector<1x256xf32>
    %142 = arith.mulf %136, %136 : vector<1x256xf32>
    %143 = arith.subf %141, %142 : vector<1x256xf32>
    %cst_98 = arith.constant 9.99999974E-6 : f32
    %144 = vector.broadcast %cst_98 : f32 to vector<1x256xf32>
    %145 = arith.addf %143, %144 : vector<1x256xf32>
    %146 = math.rsqrt %145 : vector<1x256xf32>
    %c0_99 = arith.constant 0 : index
    %c0_100 = arith.constant 0 : index
    %147 = vector.load %arg12[%c0_99, %c0_100] : memref<1x256xf32, #tpu.memory_space<vmem>>, vector<1x256xf32>
    %148 = arith.mulf %146, %147 : vector<1x256xf32>
    %149 = vector.broadcast %136 : vector<1x256xf32> to vector<32x256xf32>
    %150 = arith.subf %132, %149 : vector<32x256xf32>
    %151 = vector.broadcast %148 : vector<1x256xf32> to vector<32x256xf32>
    %152 = arith.mulf %150, %151 : vector<32x256xf32>
    %c0_101 = arith.constant 0 : index
    %c0_102 = arith.constant 0 : index
    %153 = vector.load %arg13[%c0_101, %c0_102] : memref<1x256xf32, #tpu.memory_space<vmem>>, vector<1x256xf32>
    %154 = vector.broadcast %153 : vector<1x256xf32> to vector<32x256xf32>
    %155 = arith.addf %152, %154 : vector<32x256xf32>
    %cst_103 = arith.constant 2.000000e-01 : f32
    %156 = vector.broadcast %cst_103 : f32 to vector<32x256xf32>
    %157 = arith.mulf %156, %155 : vector<32x256xf32>
    %158 = arith.maximumf %155, %157 : vector<32x256xf32>
    %c0_104 = arith.constant 0 : index
    %c0_105 = arith.constant 0 : index
    %159 = vector.load %arg14[%c0_104, %c0_105] : memref<32x256xf32, #tpu.memory_space<vmem>>, vector<32x256xf32>
    %160 = arith.mulf %158, %159 : vector<32x256xf32>
    %c0_106 = arith.constant 0 : index
    %c0_107 = arith.constant 0 : index
    %161 = vector.load %arg15[%c0_106, %c0_107] : memref<2x32xf32, #tpu.memory_space<vmem>>, vector<2x32xf32>
    %cst_108 = arith.constant dense<0.000000e+00> : vector<2x256xf32>
    %162 = tpu.matmul %161, %160, %cst_108 {dimension_numbers = #tpu.dot_dimension_numbers<[1], [0], [0], [1], [0, 0, 1, 1], [], []>} : vector<2x32xf32>, vector<32x256xf32>, vector<2x256xf32> -> vector<2x256xf32>
    %cst_109 = arith.constant dense<0.000000e+00> : vector<2xf32>
    %163 = vector.multi_reduction <add>, %162, %cst_109 [1] : vector<2x256xf32> to vector<2xf32>
    %164 = vector.shape_cast %163 : vector<2xf32> to vector<2x1xf32>
    %c0_110 = arith.constant 0 : index
    %c0_111 = arith.constant 0 : index
    %165 = vector.load %arg16[%c0_110, %c0_111] : memref<1x1xf32, #tpu.memory_space<vmem>>, vector<1x1xf32>
    %166 = vector.broadcast %165 : vector<1x1xf32> to vector<2x1xf32>
    %167 = arith.addf %164, %166 : vector<2x1xf32>
    %168 = arith.negf %167 : vector<2x1xf32>
    %169 = math.exp %168 : vector<2x1xf32>
    %cst_112 = arith.constant 1.000000e+00 : f32
    %170 = vector.broadcast %cst_112 : f32 to vector<2x1xf32>
    %171 = arith.addf %170, %169 : vector<2x1xf32>
    %172 = arith.divf %170, %171 : vector<2x1xf32>
    %c0_113 = arith.constant 0 : index
    %c0_114 = arith.constant 0 : index
    %173 = vector.load %arg17[%c0_113, %c0_114] : memref<2x1xf32, #tpu.memory_space<vmem>>, vector<2x1xf32>
    tpu.vector_store %arg17[%c0_113, %c0_114], %172 {strides = array<i32>} : memref<2x1xf32, #tpu.memory_space<vmem>>, vector<2x1xf32>,
    return
  }
}

</mosaic_0001>

<bundles_post_ra>
// kernel: discriminator_forward.1
= control target key start
LH: loop header
LB: loop body
LE: loop exit
PB: predicated region body
PF: predicated region fallthrough
CT: control target
= control target key end

     0   :  { %vm239_vm0 = vcmask 130048   ;;  %vm2098_vm1 = vcmask 1043456   ;;  %vm1920_vm2 = vcmask 64512   ;;  %vm4843_vm6 = vcmask 850944   ;;  %s15803_s1 = inlined_call_operand.vmem [shape: bf16[16,128], index: 1, kind: input, shape index: {}]   ;;  %s15804_s0 = inlined_call_operand.vmem [shape: bf16[392,16], index: 0, kind: input, shape index: {}]   ;;  %s15805_s2 = inlined_call_operand.vmem [shape: bf16[936,392], index: 2, kind: input, shape index: {}]   ;;  %s15806_s3 = inlined_call_operand.vmem [shape: bf16[1152,128], index: 3, kind: input, shape index: {}]   ;;  %s15807_s7 = inlined_call_operand.vmem [shape: bf16[1152,128], index: 7, kind: input, shape index: {}]   ;;  %s15808_s5 = inlined_call_operand.vmem [shape: f32[1,128], index: 5, kind: input, shape index: {}]   ;;  %s15809_s4 = inlined_call_operand.vmem [shape: f32[1,128], index: 4, kind: input, shape index: {}]   ;;  %s15810_s6 = inlined_call_operand.vmem [shape: bf16[288,104], index: 6, kind: input, shape index: {}]   ;;  %s15811_s9 = inlined_call_operand.vmem [shape: f32[1,128], index: 9, kind: input, shape index: {}]   ;;  %s15812_s8 = inlined_call_operand.vmem [shape: f32[1,128], index: 8, kind: input, shape index: {}]   ;;  %s15813_s10 = inlined_call_operand.vmem [shape: bf16[288,32], index: 10, kind: input, shape index: {}]   ;;  %s15814_s11 = inlined_call_operand.vmem [shape: bf16[1152,256], index: 11, kind: input, shape index: {}]   ;;  %s15815_s12 = inlined_call_operand.vmem [shape: f32[1,256], index: 12, kind: input, shape index: {}]   ;;  %s15816_s13 = inlined_call_operand.vmem [shape: f32[1,256], index: 13, kind: input, shape index: {}]   ;;  %s15817_s14 = inlined_call_operand.vmem [shape: f32[32,256], index: 14, kind: input, shape index: {}]   ;;  %s15818_s15 = inlined_call_operand.vmem [shape: f32[2,32], index: 15, kind: input, shape index: {}]   ;;  %s15819_s16 = inlined_call_operand.<no memory space> [shape: f32[1,1], index: 16, kind: input, shape index: {}]   ;;  %s15820_s17 = inlined_call_operand.vmem [shape: f32[2,1], index: 17, kind: output, shape index: {}]  }
   0x1   :  { %15896 = sst [smem:[#allocation81_spill]] %s15803_s1  ;;  %vm6029_vm10 = vcmask 261120  }
   0x2   :  { %15897 = sst [smem:[#allocation82_spill]] %s15804_s0 }
   0x3   :  { %15898 = sst [smem:[#allocation83_spill]] %s15815_s12 }
   0x4   :  { %s15899_s26 = sld [smem:[#allocation81_spill]] }
   0x5   :  { %s15900_s12 = sld [smem:[#allocation82_spill]] }
   0xa   :  { %v10176_v0 = vld [vmem:[%s15899_s26] sm:$0xff] }
   0xb   :  { %v10152_v1 = vld [vmem:[%s15900_s12] sm:$0xff]  ;;  %322 = vmatpush.bf16.msra.mxu0 %v10176_v0  ;;  %v10153_v2 = vld [vmem:[%s15900_s12 + $0x8] sm:$0xff]  ;;  %v10154_v3 = vld [vmem:[%s15900_s12 + $0x10] sm:$0xff] }
   0xc   :  { %v10155_v4 = vld [vmem:[%s15900_s12 + $0x18] sm:$0xff]  ;;  %v10156_v5 = vld [vmem:[%s15900_s12 + $0x20] sm:$0xff]  ;;  %v10157_v6 = vld [vmem:[%s15900_s12 + $0x28] sm:$0xff] }
   0xd   :  { %v10158_v7 = vld [vmem:[%s15900_s12 + $0x30] sm:$0xff]  ;;  %v10159_v8 = vld [vmem:[%s15900_s12 + $0x38] sm:$0xff]  ;;  %v10160_v9 = vld [vmem:[%s15900_s12 + $0x40] sm:$0xff] }
   0xe   :  { %7805 = vmatmul.msk.bf16.vlgmr.msra.gmra.mxu0 %vm239_vm0, %v10152_v1  ;;  %v10161_v17 = vld [vmem:[%s15900_s12 + $0x48] sm:$0xff]  ;;  %v10162_v25 = vld [vmem:[%s15900_s12 + $0x50] sm:$0xff]  ;;  %v10163_v33 = vld [vmem:[%s15900_s12 + $0x58] sm:$0xff] }
   0xf   :  { %v10164_v41 = vld [vmem:[%s15900_s12 + $0x60] sm:$0xff]  ;;  %v10165_v44 = vld [vmem:[%s15900_s12 + $0x68] sm:$0xff]  ;;  %v10166_v47 = vld [vmem:[%s15900_s12 + $0x70] sm:$0xff] }
  0x10   :  { %v10167_v50 = vld [vmem:[%s15900_s12 + $0x78] sm:$0xff]  ;;  %v10168_v0 = vld [vmem:[%s15900_s12 + $0x80] sm:$0xff] }
  0x1e   :  { %7806 = vmatmul.msk.bf16.gmra.mxu0 %vm239_vm0, %v10153_v2 }
  0x2e   :  { %7807 = vmatmul.msk.bf16.gmra.mxu0 %vm239_vm0, %v10154_v3 }
  0x3e   :  { %7808 = vmatmul.msk.bf16.gmra.mxu0 %vm239_vm0, %v10155_v4 }
  0x4e   :  { %7809 = vmatmul.msk.bf16.gmra.mxu0 %vm239_vm0, %v10156_v5 }
  0x5e   :  { %7810 = vmatmul.msk.bf16.gmra.mxu0 %vm239_vm0, %v10157_v6 }
  0x6e   :  { %7811 = vmatmul.msk.bf16.gmra.mxu0 %vm239_vm0, %v10158_v7 }
  0x7e   :  { %7812 = vmatmul.msk.bf16.gmra.mxu0 %vm239_vm0, %v10159_v8 }
  0x8b   :  { %v324_v10 = vpop.f32.mrf.mxu0 }
  0x8c   :  { %v448_v11 = vmul.f32 0.2, %v324_v10 }
  0x8e   :  { %7813 = vmatmul.msk.bf16.gmra.mxu0 %vm239_vm0, %v10160_v9  ;;  %v497_v14 = vmax.f32 %v324_v10, %v448_v11 }
  0x93   :  { %v326_v12 = vpop.f32.mrf.mxu0 }
  0x94   :  { %v449_v13 = vmul.f32 0.2, %v326_v12 }
  0x96   :  { %v498_v15 = vmax.f32 %v326_v12, %v449_v13 }
  0x98   :  { %v10885_v16 = vpack.c.bf16 %v498_v15, %v497_v14 }
  0x9b   :  { %v329_v18 = vpop.f32.mrf.mxu0 }
  0x9c   :  { %v450_v19 = vmul.f32 0.2, %v329_v18 }
  0x9e   :  { %7814 = vmatmul.msk.bf16.gmra.mxu0 %vm239_vm0, %v10161_v17  ;;  %v499_v22 = vmax.f32 %v329_v18, %v450_v19  ;;  %v10169_v18 = vld [vmem:[%s15900_s12 + $0x88] sm:$0xff] }
  0xa3   :  { %v331_v20 = vpop.f32.mrf.mxu0 }
  0xa4   :  { %v451_v21 = vmul.f32 0.2, %v331_v20 }
  0xa6   :  { %v500_v23 = vmax.f32 %v331_v20, %v451_v21  ;;  %v7832_v21 = vld [vmem:[%s15805_s2] sm:$0xf] }
  0xa8   :  { %v10891_v24 = vpack.c.bf16 %v500_v23, %v499_v22  ;;  %v10179_v22 = vld [vmem:[%s15805_s2 + $0xc] sm:$0xf0] }
  0xab   :  { %v334_v26 = vpop.f32.mrf.mxu0 }
  0xac   :  { %v452_v27 = vmul.f32 0.2, %v334_v26 }
  0xae   :  { %7815 = vmatmul.msk.bf16.gmra.mxu0 %vm239_vm0, %v10162_v25  ;;  %v501_v30 = vmax.f32 %v334_v26, %v452_v27  ;;  %v7833_v26 = vor.u32 %v10179_v22, %v7832_v21 }
  0xb3   :  { %v336_v28 = vpop.f32.mrf.mxu0 }
  0xb4   :  { %v453_v29 = vmul.f32 0.2, %v336_v28 }
  0xb6   :  { %v502_v31 = vmax.f32 %v336_v28, %v453_v29 }
  0xb8   :  { %v10897_v32 = vpack.c.bf16 %v502_v31, %v501_v30 }
  0xbb   :  { %v339_v34 = vpop.f32.mrf.mxu0 }
  0xbc   :  { %v454_v35 = vmul.f32 0.2, %v339_v34 }
  0xbe   :  { %7816 = vmatmul.msk.bf16.gmra.mxu0 %vm239_vm0, %v10163_v33  ;;  %v503_v38 = vmax.f32 %v339_v34, %v454_v35 }
  0xc3   :  { %v341_v36 = vpop.f32.mrf.mxu0 }
  0xc4   :  { %v455_v37 = vmul.f32 0.2, %v341_v36 }
  0xc6   :  { %v504_v39 = vmax.f32 %v341_v36, %v455_v37 }
  0xc8   :  { %v783_v40 = vpack.c.bf16 %v504_v39, %v503_v38  ;;  %v10171_v39 = vld [vmem:[%s15900_s12 + $0x98] sm:$0xff] }
  0xcb   :  { %v344_v42 = vpop.f32.mrf.mxu0 }
  0xcc   :  { %v456_v5 = vmul.f32 0.2, %v344_v42 }
  0xce   :  { %7817 = vmatmul.msk.bf16.gmra.mxu0 %vm239_vm0, %v10164_v41  ;;  %v505_v9 = vmax.f32 %v344_v42, %v456_v5  ;;  %v7864_v42 = vld [vmem:[%s15805_s2 + $0x40] sm:$0xf] }
  0xd3   :  { %v346_v43 = vpop.f32.mrf.mxu0 }
  0xd4   :  { %v457_v2 = vmul.f32 0.2, %v346_v43 }
  0xd6   :  { %v506_v8 = vmax.f32 %v346_v43, %v457_v2  ;;  %v10187_v43 = vld [vmem:[%s15805_s2 + $0x4c] sm:$0xf0] }
  0xd8   :  { %v784_v13 = vpack.c.bf16 %v506_v8, %v505_v9  ;;  %v10203_v8 = vld [vmem:[%s15805_s2 + $0xcc] sm:$0xf0] }
  0xdb   :  { %v349_v45 = vpop.f32.mrf.mxu0 }
  0xdc   :  { %v458_v62 = vmul.f32 0.2, %v349_v45 }
  0xde   :  { %7818 = vmatmul.msk.bf16.gmra.mxu0 %vm239_vm0, %v10165_v44  ;;  %v507_v6 = vmax.f32 %v349_v45, %v458_v62  ;;  %v10174_v62 = vld [vmem:[%s15900_s12 + $0xb0] sm:$0xff] }
  0xe3   :  { %v351_v46 = vpop.f32.mrf.mxu0 }
  0xe4   :  { %v459_v59 = vmul.f32 0.2, %v351_v46 }
  0xe6   :  { %v508_v4 = vmax.f32 %v351_v46, %v459_v59  ;;  %v7865_v46 = vor.u32 %v10187_v43, %v7864_v42  ;;  %v10195_v59 = vld [vmem:[%s15805_s2 + $0x8c] sm:$0xf0]  ;;  %v7960_v42 = vld [vmem:[%s15805_s2 + $0x100] sm:$0xf] }
  0xe7   :  { %v10211_v43 = vld [vmem:[%s15805_s2 + $0x10c] sm:$0xf0] }
  0xe8   :  { %v785_v7 = vpack.c.bf16 %v508_v4, %v507_v6  ;;  %v10175_v4 = vld [vmem:[%s15900_s12 + $0xb8] sm:$0xff] }
  0xeb   :  { %v354_v48 = vpop.f32.mrf.mxu0 }
  0xec   :  { %v460_v56 = vmul.f32 0.2, %v354_v48 }
  0xee   :  { %7819 = vmatmul.msk.bf16.gmra.mxu0 %vm239_vm0, %v10166_v47  ;;  %v509_v63 = vmax.f32 %v354_v48, %v460_v56  ;;  %v10173_v56 = vld [vmem:[%s15900_s12 + $0xa8] sm:$0xff] }
  0xf3   :  { %v356_v49 = vpop.f32.mrf.mxu0 }
  0xf4   :  { %v461_v54 = vmul.f32 0.2, %v356_v49 }
  0xf6   :  { %v510_v61 = vmax.f32 %v356_v49, %v461_v54 }
  0xf8   :  { %v786_v3 = vpack.c.bf16 %v510_v61, %v509_v63 }
  0xfb   :  { %v359_v51 = vpop.f32.mrf.mxu0 }
  0xfc   :  { %v462_v52 = vmul.f32 0.2, %v359_v51 }
  0xfe   :  { %7820 = vmatmul.msk.bf16.gmra.mxu0 %vm239_vm0, %v10167_v50  ;;  %v511_v57 = vmax.f32 %v359_v51, %v462_v52  ;;  %v10172_v50 = vld [vmem:[%s15900_s12 + $0xa0] sm:$0xff] }
  0xff   :  { %v7880_v52 = vld [vmem:[%s15805_s2 + $0x60] sm:$0xf] }
 0x103   :  { %v361_v53 = vpop.f32.mrf.mxu0 }
 0x104   :  { %v463_v55 = vmul.f32 0.2, %v361_v53 }
 0x106   :  { %v512_v58 = vmax.f32 %v361_v53, %v463_v55  ;;  %v10191_v53 = vld [vmem:[%s15805_s2 + $0x6c] sm:$0xf0] }
 0x107   :  { %v7881_v55 = vor.u32 %v10191_v53, %v7880_v52  ;;  %v10181_v52 = vld [vmem:[%s15805_s2 + $0x24] sm:$0xf] }
 0x108   :  { %v787_v60 = vpack.c.bf16 %v512_v58, %v511_v57  ;;  %v7896_v58 = vld [vmem:[%s15805_s2 + $0x80] sm:$0xf] }
 0x109   :  { %v7897_v61 = vor.u32 %v10195_v59, %v7896_v58  ;;  %v7992_v59 = vld [vmem:[%s15805_s2 + $0x140] sm:$0xf] }
 0x10a   :  { %2102 = vmatpush.bf16.msra.mxu1 %v787_v60 }
 0x10b   :  { %v364_v1 = vpop.f32.mrf.mxu0 }
 0x10c   :  { %v464_v10 = vmul.f32 0.2, %v364_v1 }
 0x10e   :  { %7821 = vmatmul.msk.bf16.gmra.mxu0 %vm239_vm0, %v10168_v0  ;;  %2103 = vmatpush.bf16.msra.mxu1 %v786_v3  ;;  %v513_v14 = vmax.f32 %v364_v1, %v464_v10  ;;  %v7912_v0 = vld [vmem:[%s15805_s2 + $0xa0] sm:$0xf]  ;;  %v10199_v1 = vld [vmem:[%s15805_s2 + $0xac] sm:$0xf0] }
 0x10f   :  { %v7913_v3 = vor.u32 %v10199_v1, %v7912_v0  ;;  %v107_v10 = vld [vmem:[%s15900_s12 + $0xc0] sm:$0xf] }
 0x112   :  { %2104 = vmatpush.bf16.msra.mxu1 %v785_v7  ;;  %v7928_v7 = vld [vmem:[%s15805_s2 + $0xc0] sm:$0xf] }
 0x113   :  { %v366_v11 = vpop.f32.mrf.mxu0 }
 0x114   :  { %v465_v12 = vmul.f32 0.2, %v366_v11 }
 0x116   :  { %2105 = vmatpush.bf16.msra.mxu1 %v784_v13  ;;  %v514_v15 = vmax.f32 %v366_v11, %v465_v12  ;;  %v7929_v13 = vor.u32 %v10203_v8, %v7928_v7  ;;  %v10189_v7 = vld [vmem:[%s15805_s2 + $0x64] sm:$0xf]  ;;  %v7882_v8 = vld [vmem:[%s15805_s2 + $0x70] sm:$0xf0] }
 0x118   :  { %v10923_v17 = vpack.c.bf16 %v514_v15, %v513_v14 }
 0x11a   :  { %2106 = vmatpush.bf16.msra.mxu1 %v783_v40 }
 0x11b   :  { %v369_v19 = vpop.f32.mrf.mxu0 }
 0x11c   :  { %v466_v20 = vmul.f32 0.2, %v369_v19 }
 0x11e   :  { %7822 = vmatmul.msk.bf16.gmra.mxu0 %vm239_vm0, %v10169_v18  ;;  %2107 = vmatpush.bf16.msra.mxu1 %v10897_v32  ;;  %v515_v27 = vmax.f32 %v369_v19, %v466_v20  ;;  %v7848_v32 = vld [vmem:[%s15805_s2 + $0x20] sm:$0xf]  ;;  %v207_v19 = vunpack.c.l.b16 %v107_v10 }
 0x122   :  { %2108 = vmatpush.bf16.msra.mxu1 %v10891_v24  ;;  %v10170_v24 = vld [vmem:[%s15900_s12 + $0x90] sm:$0xff] }
 0x123   :  { %v371_v23 = vpop.f32.mrf.mxu0 }
 0x124   :  { %v467_v25 = vmul.f32 0.2, %v371_v23 }
 0x126   :  { %2109 = vmatpush.bf16.msra.mxu1 %v10885_v16  ;;  %v516_v28 = vmax.f32 %v371_v23, %v467_v25  ;;  %v10183_v16 = vld [vmem:[%s15805_s2 + $0x2c] sm:$0xf0] }
 0x127   :  { %v7849_v35 = vor.u32 %v10183_v16, %v7848_v32 }
 0x128   :  { %v10938_v29 = vpack.c.bf16 %v516_v28, %v515_v27 }
 0x129   :  { %2110 = vmatmul.bf16.vlgmr.msra.gmra.mxu1 %v7833_v26  ;;  %v232_v26 = vpack.c.b16 %v207_v19, %v207_v19  ;;  %v10193_v19 = vld [vmem:[%s15805_s2 + $0x84] sm:$0xf] }
 0x12b   :  { %v374_v30 = vpop.f32.mrf.mxu0 }
 0x12c   :  { %v468_v31 = vmul.f32 0.2, %v374_v30 }
 0x12e   :  { %7823 = vmatmul.msk.bf16.gmra.mxu0 %vm239_vm0, %v10170_v24  ;;  %v517_v36 = vmax.f32 %v374_v30, %v468_v31 }
 0x133   :  { %v376_v33 = vpop.f32.mrf.mxu0 }
 0x134   :  { %v469_v34 = vmul.f32 0.2, %v376_v33 }
 0x136   :  { %v518_v37 = vmax.f32 %v376_v33, %v469_v34 }
 0x138   :  { %v10950_v38 = vpack.c.bf16 %v518_v37, %v517_v36  ;;  %v10207_v36 = vld [vmem:[%s15805_s2 + $0xec] sm:$0xf0] }
 0x139   :  { %2115 = vmatmul.bf16.gmra.mxu1 %v7849_v35  ;;  %v7944_v35 = vld [vmem:[%s15805_s2 + $0xe0] sm:$0xf] }
 0x13b   :  { %v379_v40 = vpop.f32.mrf.mxu0 }
 0x13c   :  { %v470_v41 = vmul.f32 0.2, %v379_v40 }
 0x13e   :  { %7824 = vmatmul.msk.bf16.gmra.mxu0 %vm239_vm0, %v10171_v39  ;;  %v519_v47 = vmax.f32 %v379_v40, %v470_v41  ;;  %v7945_v40 = vor.u32 %v10207_v36, %v7944_v35 }
 0x143   :  { %v381_v44 = vpop.f32.mrf.mxu0 }
 0x144   :  { %v471_v45 = vmul.f32 0.2, %v381_v44 }
 0x146   :  { %v520_v48 = vmax.f32 %v381_v44, %v471_v45  ;;  %v10177_v44 = vld [vmem:[%s15805_s2 + $0x4] sm:$0xf]  ;;  %v7834_v45 = vld [vmem:[%s15805_s2 + $0x10] sm:$0xf0] }
 0x148   :  { %v10962_v49 = vpack.c.bf16 %v520_v48, %v519_v47  ;;  %v7837_v47 = vor.u32 %v10177_v44, %v7834_v45  ;;  %v10201_v44 = vld [vmem:[%s15805_s2 + $0xc4] sm:$0xf]  ;;  %v7930_v45 = vld [vmem:[%s15805_s2 + $0xd0] sm:$0xf0] }
 0x149   :  { %2120 = vmatmul.bf16.gmra.mxu1 %v7865_v46 }
 0x14b   :  { %v384_v51 = vpop.f32.mrf.mxu0 }
 0x14c   :  { %v472_v31 = vmul.f32 0.2, %v384_v51 }
 0x14e   :  { %7825 = vmatmul.msk.bf16.gmra.mxu0 %vm239_vm0, %v10172_v50  ;;  %v521_v34 = vmax.f32 %v384_v51, %v472_v31  ;;  %v7976_v50 = vld [vmem:[%s15805_s2 + $0x120] sm:$0xf]  ;;  %v10215_v51 = vld [vmem:[%s15805_s2 + $0x12c] sm:$0xf0]  ;;  %v10197_v31 = vld [vmem:[%s15805_s2 + $0xa4] sm:$0xf] }
 0x153   :  { %v386_v54 = vpop.f32.mrf.mxu0 }
 0x154   :  { %v473_v28 = vmul.f32 0.2, %v386_v54 }
 0x156   :  { %v522_v33 = vmax.f32 %v386_v54, %v473_v28  ;;  %v7977_v54 = vor.u32 %v10215_v51, %v7976_v50 }
 0x158   :  { %v792_v39 = vpack.c.bf16 %v522_v33, %v521_v34 }
 0x159   :  { %2125 = vmatmul.bf16.gmra.mxu1 %v7881_v55 }
 0x15b   :  { %v389_v57 = vpop.f32.mrf.mxu0 }
 0x15c   :  { %v474_v23 = vmul.f32 0.2, %v389_v57 }
 0x15e   :  { %7826 = vmatmul.msk.bf16.gmra.mxu0 %vm239_vm0, %v10173_v56  ;;  %v523_v32 = vmax.f32 %v389_v57, %v474_v23 }
 0x163   :  { %v391_v60 = vpop.f32.mrf.mxu0 }
 0x164   :  { %v475_v20 = vmul.f32 0.2, %v391_v60 }
 0x166   :  { %v524_v30 = vmax.f32 %v391_v60, %v475_v20  ;;  %v10219_v60 = vld [vmem:[%s15805_s2 + $0x14c] sm:$0xf0]  ;;  %v7898_v20 = vld [vmem:[%s15805_s2 + $0x90] sm:$0xf0] }
 0x167   :  { %v7993_v0 = vor.u32 %v10219_v60, %v7992_v59  ;;  %v7901_v23 = vor.u32 %v10193_v19, %v7898_v20  ;;  %v10178_v20 = vld [vmem:[%s15805_s2 + $0xc] sm:$0xf] }
 0x168   :  { %v793_v16 = vpack.c.bf16 %v524_v30, %v523_v32  ;;  %v10231_v30 = vld [vmem:[%s15805_s2 + $0x1ac] sm:$0xf0]  ;;  %v7914_v32 = vld [vmem:[%s15805_s2 + $0xb0] sm:$0xf0] }
 0x169   :  { %2130 = vmatmul.bf16.gmra.mxu1 %v7897_v61  ;;  %v10185_v61 = vld [vmem:[%s15805_s2 + $0x44] sm:$0xf]  ;;  %v7917_v34 = vor.u32 %v10197_v31, %v7914_v32  ;;  %v10239_v31 = vld [vmem:[%s15805_s2 + $0x1ec] sm:$0xf0] }
 0x16b   :  { %v394_v63 = vpop.f32.mrf.mxu0 }
 0x16c   :  { %v476_v14 = vmul.f32 0.2, %v394_v63 }
 0x16e   :  { %7827 = vmatmul.msk.bf16.gmra.mxu0 %vm239_vm0, %v10174_v62  ;;  %v525_v25 = vmax.f32 %v394_v63, %v476_v14  ;;  %v7866_v62 = vld [vmem:[%s15805_s2 + $0x50] sm:$0xf0] }
 0x16f   :  { %v7869_v1 = vor.u32 %v10185_v61, %v7866_v62 }
 0x173   :  { %v396_v2 = vpop.f32.mrf.mxu0 }
 0x174   :  { %v477_v11 = vmul.f32 0.2, %v396_v2 }
 0x176   :  { %v526_v22 = vmax.f32 %v396_v2, %v477_v11  ;;  %v7885_v11 = vor.u32 %v10189_v7, %v7882_v8 }
 0x178   :  { %v794_v24 = vpack.c.bf16 %v526_v22, %v525_v25 }
 0x179   :  { %2135 = vmatmul.bf16.gmra.mxu1 %v7913_v3 }
 0x17b   :  { %v399_v5 = vpop.f32.mrf.mxu0 }
 0x17c   :  { %v478_v6 = vmul.f32 0.2, %v399_v5 }
 0x17e   :  { %7828 = vmatmul.msk.bf16.gmra.mxu0 %vm239_vm0, %v10175_v4  ;;  %v527_v15 = vmax.f32 %v399_v5, %v478_v6  ;;  %v8008_v5 = vld [vmem:[%s15805_s2 + $0x160] sm:$0xf]  ;;  %v10223_v6 = vld [vmem:[%s15805_s2 + $0x16c] sm:$0xf0] }
 0x17f   :  { %v8009_v10 = vor.u32 %v10223_v6, %v8008_v5 }
 0x183   :  { %v401_v9 = vpop.f32.mrf.mxu0 }
 0x184   :  { %v479_v12 = vmul.f32 0.2, %v401_v9 }
 0x186   :  { %v528_v18 = vmax.f32 %v401_v9, %v479_v12 }
 0x188   :  { %v795_v21 = vpack.c.bf16 %v528_v18, %v527_v15  ;;  %v8024_v15 = vld [vmem:[%s15805_s2 + $0x180] sm:$0xf]  ;;  %v10227_v18 = vld [vmem:[%s15805_s2 + $0x18c] sm:$0xf0] }
 0x189   :  { %2140 = vmatmul.bf16.gmra.mxu1 %v7929_v13  ;;  %v8025_v22 = vor.u32 %v10227_v18, %v8024_v15 }
 0x18a   :  { %2405 = vmatpush.bf16.msra.mxu2 %v795_v21 }
 0x18b   :  { %v11007_v27 = vpop.f32.mrf.mxu0 }
 0x18e   :  { %7829 = vmatmul.msk.bf16.gmra.mxu0 %vm239_vm0, %v232_v26  ;;  %2406 = vmatpush.bf16.msra.mxu2 %v794_v24  ;;  %v8040_v24 = vld [vmem:[%s15805_s2 + $0x1a0] sm:$0xf] }
 0x18f   :  { %v8041_v33 = vor.u32 %v10231_v30, %v8040_v24  ;;  %v8072_v30 = vld [vmem:[%s15805_s2 + $0x1e0] sm:$0xf] }
 0x192   :  { %2407 = vmatpush.bf16.msra.mxu2 %v793_v16 }
 0x193   :  { %v11016_v37 = vpop.f32.mrf.mxu0 }
 0x196   :  { %2408 = vmatpush.bf16.msra.mxu2 %v792_v39 }
 0x199   :  { %2145 = vmatmul.bf16.gmra.mxu1 %v7945_v40  ;;  %v8056_v40 = vld [vmem:[%s15805_s2 + $0x1c0] sm:$0xf] }
 0x19a   :  { %2409 = vmatpush.bf16.msra.mxu2 %v10962_v49 }
 0x19b   :  { %v11019_v41 = vpop.f32.mrf.mxu0 }
 0x19e   :  { %2410 = vmatpush.bf16.msra.mxu2 %v10950_v38  ;;  %v7961_v38 = vor.u32 %v10211_v43, %v7960_v42  ;;  %v10235_v42 = vld [vmem:[%s15805_s2 + $0x1cc] sm:$0xf0] }
 0x19f   :  { %v8057_v51 = vor.u32 %v10235_v42, %v8056_v40 }
 0x1a2   :  { %2411 = vmatpush.bf16.msra.mxu2 %v10938_v29 }
 0x1a3   :  { %v11035_v46 = vpop.f32.mrf.mxu0 }
 0x1a6   :  { %v11037_v48 = vpop.f32.mrf.mxu1  ;;  %2412 = vmatpush.bf16.msra.mxu2 %v10923_v17  ;;  %v7850_v17 = vld [vmem:[%s15805_s2 + $0x30] sm:$0xf0] }
 0x1a7   :  { %v7853_v55 = vor.u32 %v10181_v52, %v7850_v17  ;;  %v7933_v52 = vor.u32 %v10201_v44, %v7930_v45 }
 0x1a9   :  { %2150 = vmatmul.bf16.gmra.mxu1 %v7961_v38  ;;  %2413 = vmatmul.bf16.vlgmr.msra.gmra.mxu2 %v7837_v47 }
 0x1ab   :  { %v11040_v29 = vpop.f32.mrf.mxu0 }
 0x1ac   :  { %v484_v45 = vmul.f32 0.2, %v11040_v29 }
 0x1ae   :  { %v11042_v49 = vpop.f32.mrf.mxu1 }
 0x1b3   :  { %v11056_v53 = vpop.f32.mrf.mxu0 }
 0x1b4   :  { %v485_v40 = vmul.f32 0.2, %v11056_v53 }
 0x1b6   :  { %v11058_v56 = vpop.f32.mrf.mxu1 }
 0x1b9   :  { %2155 = vmatmul.bf16.gmra.mxu1 %v7977_v54  ;;  %2418 = vmatmul.bf16.gmra.mxu2 %v7853_v55 }
 0x1bb   :  { %v11060_v57 = vpop.f32.mrf.mxu0 }
 0x1be   :  { %v11062_v58 = vpop.f32.mrf.mxu1 }
 0x1c3   :  { %v11076_v63 = vpop.f32.mrf.mxu0 }
 0x1c6   :  { %v11078_v2 = vpop.f32.mrf.mxu1 }
 0x1c9   :  { %2160 = vmatmul.bf16.gmra.mxu1 %v7993_v0  ;;  %2423 = vmatmul.bf16.gmra.mxu2 %v7869_v1 }
 0x1cb   :  { %v11080_v3 = vpop.f32.mrf.mxu0 }
 0x1ce   :  { %v11082_v4 = vpop.f32.mrf.mxu1 }
 0x1d3   :  { %v11096_v9 = vpop.f32.mrf.mxu0 }
 0x1d4   :  { %v489_v6 = vmul.f32 0.2, %v11096_v9 }
 0x1d6   :  { %v11098_v12 = vpop.f32.mrf.mxu1  ;;  %v538_v24 = vmax.f32 %v11096_v9, %v489_v6  ;;  %v7946_v9 = vld [vmem:[%s15805_s2 + $0xf0] sm:$0xf0]  ;;  %v10209_v6 = vld [vmem:[%s15805_s2 + $0x104] sm:$0xf] }
 0x1d9   :  { %2165 = vmatmul.bf16.gmra.mxu1 %v8009_v10  ;;  %2428 = vmatmul.bf16.gmra.mxu2 %v7885_v11  ;;  %v488_v11 = vmul.f32 0.2, %v11080_v3 }
 0x1db   :  { %v11100_v13 = vpop.f32.mrf.mxu0  ;;  %v537_v32 = vmax.f32 %v11080_v3, %v488_v11 }
 0x1dc   :  { %v490_v0 = vmul.f32 0.2, %v11100_v13 }
 0x1dd   :  { %v800_v42 = vpack.c.bf16 %v538_v24, %v537_v32  ;;  %v8104_v24 = vld [vmem:[%s15805_s2 + $0x220] sm:$0xf] }
 0x1de   :  { %v11102_v14 = vpop.f32.mrf.mxu1  ;;  %v539_v15 = vmax.f32 %v11100_v13, %v490_v0  ;;  %v486_v13 = vmul.f32 0.2, %v11060_v57 }
 0x1e3   :  { %v431_v21 = vpop.f32.mrf.mxu0 }
 0x1e4   :  { %v491_v60 = vmul.f32 0.2, %v431_v21 }
 0x1e6   :  { %v11116_v25 = vpop.f32.mrf.mxu1  ;;  %v540_v10 = vmax.f32 %v431_v21, %v491_v60  ;;  %v480_v60 = vmul.f32 0.2, %v11007_v27 }
 0x1e9   :  { %2170 = vmatmul.bf16.gmra.mxu1 %v8025_v22  ;;  %2433 = vmatmul.bf16.gmra.mxu2 %v7901_v23  ;;  %v7842_v22 = vld [vmem:[%s15805_s2 + $0x18] sm:$0xf0]  ;;  %v487_v23 = vmul.f32 0.2, %v11076_v63 }
 0x1eb   :  { %v434_v26 = vpop.f32.mrf.mxu0  ;;  %v536_v3 = vmax.f32 %v11076_v63, %v487_v23  ;;  %v482_v63 = vmul.f32 0.2, %v11019_v41 }
 0x1ec   :  { %v492_v17 = vmul.f32 0.2, %v434_v26 }
 0x1ee   :  { %v11118_v28 = vpop.f32.mrf.mxu1  ;;  %v541_v1 = vmax.f32 %v434_v26, %v492_v17  ;;  %v801_v26 = vpack.c.bf16 %v540_v10, %v539_v15  ;;  %v533_v17 = vmax.f32 %v11040_v29, %v484_v45  ;;  %v7858_v29 = vld [vmem:[%s15805_s2 + $0x38] sm:$0xf0] }
 0x1ef   :  { %v7890_v45 = vld [vmem:[%s15805_s2 + $0x78] sm:$0xf0] }
 0x1f3   :  { %v436_v16 = vpop.f32.mrf.mxu0 }
 0x1f4   :  { %v493_v47 = vmul.f32 0.2, %v436_v16 }
 0x1f6   :  { %v11132_v35 = vpop.f32.mrf.mxu1  ;;  %v542_v62 = vmax.f32 %v436_v16, %v493_v47 }
 0x1f8   :  { %v802_v8 = vpack.c.bf16 %v542_v62, %v541_v1 }
 0x1f9   :  { %2175 = vmatmul.bf16.gmra.mxu1 %v8041_v33  ;;  %2438 = vmatmul.bf16.gmra.mxu2 %v7917_v34  ;;  %v10205_v33 = vld [vmem:[%s15805_s2 + $0xe4] sm:$0xf]  ;;  %v7845_v34 = vor.u32 %v10178_v20, %v7842_v22 }
 0x1fa   :  { %v7949_v44 = vor.u32 %v10205_v33, %v7946_v9  ;;  %v10184_v33 = vld [vmem:[%s15805_s2 + $0x34] sm:$0xf0] }
 0x1fb   :  { %v439_v36 = vpop.f32.mrf.mxu0 }
 0x1fc   :  { %v494_v43 = vmul.f32 0.2, %v439_v36 }
 0x1fe   :  { %v11134_v39 = vpop.f32.mrf.mxu1  ;;  %v543_v54 = vmax.f32 %v439_v36, %v494_v43  ;;  %v8073_v43 = vor.u32 %v10239_v31, %v8072_v30  ;;  %v10213_v30 = vld [vmem:[%s15805_s2 + $0x124] sm:$0xf]  ;;  %v7978_v31 = vld [vmem:[%s15805_s2 + $0x130] sm:$0xf0] }
 0x203   :  { %v441_v38 = vpop.f32.mrf.mxu0 }
 0x204   :  { %v495_v50 = vmul.f32 0.2, %v441_v38 }
 0x206   :  { %v11148_v55 = vpop.f32.mrf.mxu1  ;;  %v544_v59 = vmax.f32 %v441_v38, %v495_v50  ;;  %v535_v38 = vmax.f32 %v11060_v57, %v486_v13  ;;  %v483_v50 = vmul.f32 0.2, %v11035_v46  ;;  %v10247_v13 = vld [vmem:[%s15805_s2 + $0x22c] sm:$0xf0] }
 0x208   :  { %v803_v61 = vpack.c.bf16 %v544_v59, %v543_v54  ;;  %v481_v54 = vmul.f32 0.2, %v11016_v37  ;;  %v532_v59 = vmax.f32 %v11035_v46, %v483_v50  ;;  %v8088_v46 = vld [vmem:[%s15805_s2 + $0x200] sm:$0xf]  ;;  %v10251_v50 = vld [vmem:[%s15805_s2 + $0x24c] sm:$0xf0] }
 0x209   :  { %2180 = vmatmul.bf16.gmra.mxu1 %v8057_v51  ;;  %2443 = vmatmul.bf16.gmra.mxu2 %v7933_v52  ;;  %v799_v51 = vpack.c.bf16 %v536_v3, %v535_v38  ;;  %v534_v52 = vmax.f32 %v11056_v53, %v485_v40  ;;  %v10182_v53 = vld [vmem:[%s15805_s2 + $0x2c] sm:$0xf]  ;;  %v8120_v38 = vld [vmem:[%s15805_s2 + $0x240] sm:$0xf] }
 0x20a   :  { %2708 = vmatpush.bf16.msra.mxu3 %v803_v61  ;;  %v531_v61 = vmax.f32 %v11019_v41, %v482_v63  ;;  %v530_v1 = vmax.f32 %v11016_v37, %v481_v54  ;;  %v529_v41 = vmax.f32 %v11007_v27, %v480_v60  ;;  %v7861_v37 = vor.u32 %v10182_v53, %v7858_v29  ;;  %v10180_v27 = vld [vmem:[%s15805_s2 + $0x14] sm:$0xf0] }
 0x20b   :  { %v444_v5 = vpop.f32.mrf.mxu0  ;;  %v798_v57 = vpack.c.bf16 %v534_v52, %v533_v17  ;;  %v7994_v52 = vld [vmem:[%s15805_s2 + $0x150] sm:$0xf0]  ;;  %v7872_v17 = vld [vmem:[%s15805_s2 + $0x48] sm:$0xf]  ;;  %v10188_v54 = vld [vmem:[%s15805_s2 + $0x54] sm:$0xf0] }
 0x20c   :  { %v496_v7 = vmul.f32 0.2, %v444_v5  ;;  %v797_v0 = vpack.c.bf16 %v532_v59, %v531_v61  ;;  %v796_v10 = vpack.c.bf16 %v530_v1, %v529_v41  ;;  %v8121_v59 = vor.u32 %v10251_v50, %v8120_v38  ;;  %v10194_v1 = vld [vmem:[%s15805_s2 + $0x8c] sm:$0xf]  ;;  %v8136_v41 = vld [vmem:[%s15805_s2 + $0x260] sm:$0xf] }
 0x20d   :  { %v7873_v53 = vor.u32 %v10188_v54, %v7872_v17  ;;  %v10202_v17 = vld [vmem:[%s15805_s2 + $0xcc] sm:$0xf]  ;;  %v7938_v54 = vld [vmem:[%s15805_s2 + $0xd8] sm:$0xf0] }
 0x20e   :  { %v545_v18 = vmax.f32 %v444_v5, %v496_v7  ;;  %v11154_v19 = vpop.f32.mrf.mxu1  ;;  %2709 = vmatpush.bf16.msra.mxu3 %v802_v8  ;;  %v10243_v5 = vld [vmem:[%s15805_s2 + $0x20c] sm:$0xf0]  ;;  %v7962_v7 = vld [vmem:[%s15805_s2 + $0x110] sm:$0xf0]  ;;  %v7840_v8 = vld [vmem:[%s15805_s2 + $0x8] sm:$0xf] }
 0x20f   :  { %v8089_v11 = vor.u32 %v10243_v5, %v8088_v46  ;;  %v7965_v15 = vor.u32 %v10209_v6, %v7962_v7  ;;  %v7841_v20 = vor.u32 %v10180_v27, %v7840_v8  ;;  %v7906_v46 = vld [vmem:[%s15805_s2 + $0x98] sm:$0xf0]  ;;  %v10255_v5 = vld [vmem:[%s15805_s2 + $0x26c] sm:$0xf0]  ;;  %v10221_v6 = vld [vmem:[%s15805_s2 + $0x164] sm:$0xf] }
 0x210   :  { %v804_v21 = vpack.c.bf16 %v545_v18, %v545_v18  ;;  %v8010_v7 = vld [vmem:[%s15805_s2 + $0x170] sm:$0xf0]  ;;  %v7888_v8 = vld [vmem:[%s15805_s2 + $0x68] sm:$0xf]  ;;  %v10192_v27 = vld [vmem:[%s15805_s2 + $0x74] sm:$0xf0] }
 0x212   :  { %2710 = vmatpush.bf16.msra.mxu3 %v801_v26  ;;  %v2100_v16 = vsel %vm2098_vm1, %v804_v21, 0  ;;  %v10186_v21 = vld [vmem:[%s15805_s2 + $0x4c] sm:$0xf]  ;;  %v7874_v26 = vld [vmem:[%s15805_s2 + $0x58] sm:$0xf0] }
 0x213   :  { %v446_v36 = vpop.f32.mrf.mxu0  ;;  %3018 = vmatpush.bf16.msrb.mxu0 %v2100_v16  ;;  %v7877_v32 = vor.u32 %v10186_v21, %v7874_v26  ;;  %v7856_v16 = vld [vmem:[%s15805_s2 + $0x28] sm:$0xf]  ;;  %v7889_v21 = vor.u32 %v10192_v27, %v7888_v8 }
 0x214   :  { %v7981_v36 = vor.u32 %v10213_v30, %v7978_v31  ;;  %v7922_v30 = vld [vmem:[%s15805_s2 + $0xb8] sm:$0xf0]  ;;  %v8152_v31 = vld [vmem:[%s15805_s2 + $0x280] sm:$0xf] }
 0x216   :  { %v11183_v47 = vpop.f32.mrf.mxu1  ;;  %2711 = vmatpush.bf16.msra.mxu3 %v800_v42  ;;  %8758 = vmatmul.msk.bf16.vlgmr.msrb.gmra.mxu0 %vm1920_vm2, %v7845_v34  ;;  %v8105_v34 = vor.u32 %v10247_v13, %v8104_v24  ;;  %v7857_v42 = vor.u32 %v10184_v33, %v7856_v16  ;;  %v10198_v13 = vld [vmem:[%s15805_s2 + $0xac] sm:$0xf]  ;;  %v10225_v16 = vld [vmem:[%s15805_s2 + $0x184] sm:$0xf]  ;;  %v8026_v33 = vld [vmem:[%s15805_s2 + $0x190] sm:$0xf0] }
 0x217   :  { %v8029_v38 = vor.u32 %v10225_v16, %v8026_v33  ;;  %v8058_v16 = vld [vmem:[%s15805_s2 + $0x1d0] sm:$0xf0] }
 0x219   :  { %2185 = vmatmul.bf16.gmra.mxu1 %v8073_v43  ;;  %2448 = vmatmul.bf16.gmra.mxu2 %v7949_v44  ;;  %v10190_v44 = vld [vmem:[%s15805_s2 + $0x6c] sm:$0xf] }
 0x21a   :  { %2712 = vmatpush.bf16.msra.mxu3 %v799_v51  ;;  %v10217_v51 = vld [vmem:[%s15805_s2 + $0x144] sm:$0xf]  ;;  %v7893_v63 = vor.u32 %v10190_v44, %v7890_v45 }
 0x21b   :  { %v7997_v60 = vor.u32 %v10217_v51, %v7994_v52 }
 0x21e   :  { %v11194_v62 = vpop.f32.mrf.mxu1  ;;  %2713 = vmatpush.bf16.msra.mxu3 %v798_v57 }
 0x222   :  { %2714 = vmatpush.bf16.msra.mxu3 %v797_v0 }
 0x226   :  { %v11222_v18 = vpop.f32.mrf.mxu1  ;;  %2715 = vmatpush.bf16.msra.mxu3 %v796_v10  ;;  %8759 = vmatmul.msk.bf16.gmra.mxu0 %vm1920_vm2, %v7861_v37  ;;  %v7909_v37 = vor.u32 %v10194_v1, %v7906_v46  ;;  %v8042_v1 = vld [vmem:[%s15805_s2 + $0x1b0] sm:$0xf0]  ;;  %v7941_v46 = vor.u32 %v10202_v17, %v7938_v54 }
 0x229   :  { %2190 = vmatmul.bf16.gmra.mxu1 %v8089_v11  ;;  %2453 = vmatmul.bf16.gmra.mxu2 %v7965_v15  ;;  %v8137_v11 = vor.u32 %v10255_v5, %v8136_v41  ;;  %v8013_v15 = vor.u32 %v10221_v6, %v8010_v7  ;;  %v7920_v41 = vld [vmem:[%s15805_s2 + $0xa8] sm:$0xf]  ;;  %v10200_v5 = vld [vmem:[%s15805_s2 + $0xb4] sm:$0xf0] }
 0x22a   :  { %2716 = vmatmul.bf16.vlgmr.msra.gmra.mxu3 %v7841_v20  ;;  %v7921_v27 = vor.u32 %v10200_v5, %v7920_v41  ;;  %v10237_v41 = vld [vmem:[%s15805_s2 + $0x1e4] sm:$0xf]  ;;  %v8074_v5 = vld [vmem:[%s15805_s2 + $0x1f0] sm:$0xf0] }
 0x22c   :  { %v11225_v22 = vpop.f32.mrf.mxu2 }
 0x22e   :  { %v11227_v23 = vpop.f32.mrf.mxu1 }
 0x234   :  { %v11253_v9 = vpop.f32.mrf.mxu2 }
 0x236   :  { %v11255_v40 = vpop.f32.mrf.mxu1  ;;  %8760 = vmatmul.msk.bf16.gmra.mxu0 %vm1920_vm2, %v7877_v32  ;;  %v10259_v32 = vld [vmem:[%s15805_s2 + $0x28c] sm:$0xf0] }
 0x237   :  { %v8153_v45 = vor.u32 %v10259_v32, %v8152_v31  ;;  %v10267_v31 = vld [vmem:[%s15805_s2 + $0x2cc] sm:$0xf0]  ;;  %v10233_v32 = vld [vmem:[%s15805_s2 + $0x1c4] sm:$0xf] }
 0x239   :  { %2195 = vmatmul.bf16.gmra.mxu1 %v8105_v34  ;;  %2458 = vmatmul.bf16.gmra.mxu2 %v7981_v36  ;;  %v7925_v34 = vor.u32 %v10198_v13, %v7922_v30  ;;  %v7904_v36 = vld [vmem:[%s15805_s2 + $0x88] sm:$0xf]  ;;  %v7954_v13 = vld [vmem:[%s15805_s2 + $0xf8] sm:$0xf0]  ;;  %v8184_v30 = vld [vmem:[%s15805_s2 + $0x2c0] sm:$0xf] }
 0x23a   :  { %2721 = vmatmul.bf16.gmra.mxu3 %v7857_v42  ;;  %v10196_v42 = vld [vmem:[%s15805_s2 + $0x94] sm:$0xf0] }
 0x23b   :  { %v7905_v51 = vor.u32 %v10196_v42, %v7904_v36  ;;  %v10204_v36 = vld [vmem:[%s15805_s2 + $0xd4] sm:$0xf0] }
 0x23c   :  { %v11258_v3 = vpop.f32.mrf.mxu2 }
 0x23e   :  { %v11260_v43 = vpop.f32.mrf.mxu1 }
 0x244   :  { %v11286_v57 = vpop.f32.mrf.mxu2 }
 0x246   :  { %v11288_v61 = vpop.f32.mrf.mxu1  ;;  %8761 = vmatmul.msk.bf16.gmra.mxu0 %vm1920_vm2, %v7893_v63 }
 0x249   :  { %2200 = vmatmul.bf16.gmra.mxu1 %v8121_v59  ;;  %2463 = vmatmul.bf16.gmra.mxu2 %v7997_v60  ;;  %v8168_v59 = vld [vmem:[%s15805_s2 + $0x2a0] sm:$0xf]  ;;  %v10263_v60 = vld [vmem:[%s15805_s2 + $0x2ac] sm:$0xf0] }
 0x24a   :  { %2726 = vmatmul.bf16.gmra.mxu3 %v7873_v53  ;;  %v10229_v53 = vld [vmem:[%s15805_s2 + $0x1a4] sm:$0xf]  ;;  %v8169_v7 = vor.u32 %v10263_v60, %v8168_v59  ;;  %v10210_v60 = vld [vmem:[%s15805_s2 + $0x10c] sm:$0xf] }
 0x24c   :  { %v11291_v29 = vpop.f32.mrf.mxu2 }
 0x24e   :  { %v11293_v0 = vpop.f32.mrf.mxu1 }
 0x254   :  { %v11319_v10 = vpop.f32.mrf.mxu2 }
 0x256   :  { %v11321_v20 = vpop.f32.mrf.mxu1  ;;  %8762 = vmatmul.msk.bf16.gmra.mxu0 %vm1920_vm2, %v7909_v37  ;;  %v8045_v37 = vor.u32 %v10229_v53, %v8042_v1  ;;  %v7970_v53 = vld [vmem:[%s15805_s2 + $0x118] sm:$0xf0]  ;;  %v8200_v1 = vld [vmem:[%s15805_s2 + $0x2e0] sm:$0xf] }
 0x259   :  { %2205 = vmatmul.bf16.gmra.mxu1 %v8137_v11  ;;  %2468 = vmatmul.bf16.gmra.mxu2 %v8013_v15 }
 0x25a   :  { %2731 = vmatmul.bf16.gmra.mxu3 %v7889_v21  ;;  %v10206_v21 = vld [vmem:[%s15805_s2 + $0xec] sm:$0xf] }
 0x25b   :  { %v7957_v33 = vor.u32 %v10206_v21, %v7954_v13 }
 0x25c   :  { %v11324_v26 = vpop.f32.mrf.mxu2 }
 0x25e   :  { %v11326_v24 = vpop.f32.mrf.mxu1 }
 0x264   :  { %v11352_v44 = vpop.f32.mrf.mxu2 }
 0x266   :  { %v11354_v50 = vpop.f32.mrf.mxu1  ;;  %8763 = vmatmul.msk.bf16.gmra.mxu0 %vm1920_vm2, %v7925_v34  ;;  %v7936_v34 = vld [vmem:[%s15805_s2 + $0xc8] sm:$0xf] }
 0x267   :  { %v7937_v17 = vor.u32 %v10204_v36, %v7936_v34 }
 0x269   :  { %2210 = vmatmul.bf16.gmra.mxu1 %v8153_v45  ;;  %2473 = vmatmul.bf16.gmra.mxu2 %v8029_v38  ;;  %v8185_v45 = vor.u32 %v10267_v31, %v8184_v30  ;;  %v8061_v38 = vor.u32 %v10233_v32, %v8058_v16  ;;  %v8077_v31 = vor.u32 %v10237_v41, %v8074_v5  ;;  %v7968_v41 = vld [vmem:[%s15805_s2 + $0x108] sm:$0xf]  ;;  %v10212_v5 = vld [vmem:[%s15805_s2 + $0x114] sm:$0xf0] }
 0x26a   :  { %2736 = vmatmul.bf16.gmra.mxu3 %v7905_v51 }
 0x26c   :  { %v11357_v52 = vpop.f32.mrf.mxu2 }
 0x26e   :  { %v11359_v63 = vpop.f32.mrf.mxu1 }
 0x274   :  { %v11385_v6 = vpop.f32.mrf.mxu2 }
 0x276   :  { %v11387_v8 = vpop.f32.mrf.mxu1  ;;  %8764 = vmatmul.msk.bf16.gmra.mxu0 %vm1920_vm2, %v7941_v46  ;;  %v10271_v46 = vld [vmem:[%s15805_s2 + $0x2ec] sm:$0xf0] }
 0x277   :  { %v8201_v30 = vor.u32 %v10271_v46, %v8200_v1  ;;  %v8090_v1 = vld [vmem:[%s15805_s2 + $0x210] sm:$0xf0] }
 0x279   :  { %2215 = vmatmul.bf16.gmra.mxu1 %v8169_v7  ;;  %2478 = vmatmul.bf16.gmra.mxu2 %v8045_v37  ;;  %v7973_v7 = vor.u32 %v10210_v60, %v7970_v53  ;;  %v7952_v37 = vld [vmem:[%s15805_s2 + $0xe8] sm:$0xf]  ;;  %v10275_v60 = vld [vmem:[%s15805_s2 + $0x30c] sm:$0xf0]  ;;  %v10241_v53 = vld [vmem:[%s15805_s2 + $0x204] sm:$0xf] }
 0x27a   :  { %2741 = vmatmul.bf16.gmra.mxu3 %v7921_v27  ;;  %v10208_v27 = vld [vmem:[%s15805_s2 + $0xf4] sm:$0xf0] }
 0x27b   :  { %v7953_v16 = vor.u32 %v10208_v27, %v7952_v37 }
 0x27c   :  { %v11390_v11 = vpop.f32.mrf.mxu2 }
 0x27e   :  { %v11392_v15 = vpop.f32.mrf.mxu1 }
 0x284   :  { %v11418_v42 = vpop.f32.mrf.mxu2 }
 0x286   :  { %v11420_v51 = vpop.f32.mrf.mxu1  ;;  %8765 = vmatmul.msk.bf16.gmra.mxu0 %vm1920_vm2, %v7957_v33 }
 0x287   :  { %15901 = vst [vmem:[#allocation4_spill] sm:$0xff] %v11420_v51 }
 0x289   :  { %2220 = vmatmul.bf16.gmra.mxu1 %v8185_v45  ;;  %2483 = vmatmul.bf16.gmra.mxu2 %v8061_v38  ;;  %v10214_v45 = vld [vmem:[%s15805_s2 + $0x12c] sm:$0xf]  ;;  %v7986_v38 = vld [vmem:[%s15805_s2 + $0x138] sm:$0xf0] }
 0x28a   :  { %2746 = vmatmul.bf16.gmra.mxu3 %v7937_v17  ;;  %v8216_v17 = vld [vmem:[%s15805_s2 + $0x300] sm:$0xf]  ;;  %v7989_v46 = vor.u32 %v10214_v45, %v7986_v38  ;;  %v2415_v38 = vadd.f32 %v11225_v22, %v11037_v48  ;;  %v10279_v22 = vld [vmem:[%s15805_s2 + $0x32c] sm:$0xf0] }
 0x28b   :  { %v8217_v27 = vor.u32 %v10275_v60, %v8216_v17  ;;  %v10218_v17 = vld [vmem:[%s15805_s2 + $0x14c] sm:$0xf]  ;;  %v8002_v60 = vld [vmem:[%s15805_s2 + $0x158] sm:$0xf0]  ;;  %v8232_v48 = vld [vmem:[%s15805_s2 + $0x320] sm:$0xf] }
 0x28c   :  { %v11423_v54 = vpop.f32.mrf.mxu2 }
 0x28e   :  { %v11425_v59 = vpop.f32.mrf.mxu1 }
 0x28f   :  { %15902 = vst [vmem:[#allocation5_spill] sm:$0xff] %v11425_v59 }
 0x293   :  { %v3020_v21 = vpop.f32.mrf.mxu0 }
 0x294   :  { %v11451_v13 = vpop.f32.mrf.mxu2 }
 0x296   :  { %v11453_v32 = vpop.f32.mrf.mxu1  ;;  %8766 = vmatmul.msk.bf16.gmra.mxu0 %vm1920_vm2, %v7973_v7 }
 0x297   :  { %15903 = vst [vmem:[#allocation6_spill] sm:$0xff] %v11453_v32 }
 0x299   :  { %2225 = vmatmul.bf16.gmra.mxu1 %v8201_v30  ;;  %2488 = vmatmul.bf16.gmra.mxu2 %v8077_v31  ;;  %v8093_v30 = vor.u32 %v10241_v53, %v8090_v1  ;;  %v8106_v1 = vld [vmem:[%s15805_s2 + $0x230] sm:$0xf0] }
 0x29a   :  { %2751 = vmatmul.bf16.gmra.mxu3 %v7953_v16  ;;  %v7969_v16 = vor.u32 %v10212_v5, %v7968_v41  ;;  %v2417_v5 = vadd.f32 %v11253_v9, %v11042_v49  ;;  %v10424_v49 = vld [vmem:[%s15806_s3 + $0x78] sm:$0xff] }
 0x29b   :  { %v3022_v33 = vpop.f32.mrf.mxu0  ;;  %4230 = vmatpush.bf16.msrb.mxu2 %v10424_v49  ;;  %v10220_v49 = vld [vmem:[%s15805_s2 + $0x154] sm:$0xf0] }
 0x29c   :  { %v11456_v34 = vpop.f32.mrf.mxu2 }
 0x29e   :  { %v11458_v36 = vpop.f32.mrf.mxu1 }
 0x29f   :  { %15904 = vst [vmem:[#allocation7_spill] sm:$0xff] %v11458_v36 }
 0x2a3   :  { %v3025_v7 = vpop.f32.mrf.mxu0 }
 0x2a4   :  { %v11484_v37 = vpop.f32.mrf.mxu2 }
 0x2a6   :  { %v11486_v31 = vpop.f32.mrf.mxu1  ;;  %8767 = vmatmul.msk.bf16.gmra.mxu0 %vm1920_vm2, %v7989_v46  ;;  %v8005_v46 = vor.u32 %v10218_v17, %v8002_v60 }
 0x2a7   :  { %15905 = vst [vmem:[#allocation8_spill] sm:$0xff] %v11486_v31 }
 0x2a9   :  { %2230 = vmatmul.bf16.gmra.mxu1 %v8217_v27  ;;  %2493 = vmatmul.bf16.gmra.mxu2 %v8093_v30 }
 0x2aa   :  { %2756 = vmatmul.bf16.gmra.mxu3 %v7969_v16  ;;  %v8233_v16 = vor.u32 %v10279_v22, %v8232_v48  ;;  %v2420_v22 = vadd.f32 %v11258_v3, %v11058_v56  ;;  %v8018_v56 = vld [vmem:[%s15805_s2 + $0x178] sm:$0xf0] }
 0x2ab   :  { %v11489_v45 = vpop.f32.mrf.mxu0 }
 0x2ac   :  { %v11493_v36 = vpop.f32.mrf.mxu2 }
 0x2ad   :  { %v2717_v32 = vpop.f32.mrf.mxu3 }
 0x2ae   :  { %v2718_v59 = vadd.f32 %v2717_v32, %v2415_v38  ;;  %v11495_v51 = vpop.f32.mrf.mxu1  ;;  %v10245_v32 = vld [vmem:[%s15805_s2 + $0x224] sm:$0xf] }
 0x2af   :  { %15906 = vst [vmem:[#allocation9_spill] sm:$0xff] %v11495_v51  ;;  %v8109_v38 = vor.u32 %v10245_v32, %v8106_v1 }
 0x2b0   :  { %v11503_v53 = vadd.f32 %v3020_v21, %v2718_v59  ;;  %v7984_v59 = vld [vmem:[%s15805_s2 + $0x128] sm:$0xf]  ;;  %v10216_v21 = vld [vmem:[%s15805_s2 + $0x134] sm:$0xf0] }
 0x2b1   :  { %v7985_v17 = vor.u32 %v10216_v21, %v7984_v59  ;;  %v10416_v59 = vld [vmem:[%s15806_s3 + $0x38] sm:$0xff]  ;;  %v10222_v21 = vld [vmem:[%s15805_s2 + $0x16c] sm:$0xf] }
 0x2b2   :  { %15907 = vst [vmem:[#allocation10_spill] sm:$0xff] %v11503_v53  ;;  %4187 = vmatpush.bf16.msrb.mxu1 %v10416_v59 }
 0x2b3   :  { %v3030_v41 = vpop.f32.mrf.mxu0 }
 0x2b4   :  { %v11525_v27 = vpop.f32.mrf.mxu2 }
 0x2b5   :  { %v2719_v30 = vpop.f32.mrf.mxu3 }
 0x2b6   :  { %v2720_v51 = vadd.f32 %v2719_v30, %v2417_v5  ;;  %v11527_v31 = vpop.f32.mrf.mxu1  ;;  %8768 = vmatmul.msk.bf16.gmra.mxu0 %vm1920_vm2, %v8005_v46  ;;  %v10432_v46 = vld [vmem:[%s15806_s3 + $0xb8] sm:$0xff]  ;;  %v8248_v5 = vld [vmem:[%s15805_s2 + $0x340] sm:$0xf]  ;;  %v10283_v30 = vld [vmem:[%s15805_s2 + $0x34c] sm:$0xf0] }
 0x2b7   :  { %4273 = vmatpush.bf16.msrb.mxu3 %v10432_v46  ;;  %v8249_v59 = vor.u32 %v10283_v30, %v8248_v5  ;;  %v2425_v5 = vadd.f32 %v11291_v29, %v11078_v2  ;;  %v8264_v2 = vld [vmem:[%s15805_s2 + $0x360] sm:$0xf]  ;;  %v10287_v29 = vld [vmem:[%s15805_s2 + $0x36c] sm:$0xf0] }
 0x2b8   :  { %v11530_v60 = vadd.f32 %v3022_v33, %v2720_v51 }
 0x2b9   :  { %2235 = vmatmul.bf16.gmra.mxu1 %v8233_v16  ;;  %2498 = vmatmul.bf16.gmra.mxu2 %v8109_v38  ;;  %v10249_v16 = vld [vmem:[%s15805_s2 + $0x244] sm:$0xf]  ;;  %v8122_v38 = vld [vmem:[%s15805_s2 + $0x250] sm:$0xf0] }
 0x2ba   :  { %15908 = vst [vmem:[#allocation11_spill] sm:$0xff] %v11530_v60  ;;  %2761 = vmatmul.bf16.gmra.mxu3 %v7985_v17  ;;  %v8021_v17 = vor.u32 %v10222_v21, %v8018_v56  ;;  %v8125_v9 = vor.u32 %v10249_v16, %v8122_v38 }
 0x2bb   :  { %v3032_v48 = vpop.f32.mrf.mxu0 }
 0x2bc   :  { %v11539_v32 = vpop.f32.mrf.mxu2 }
 0x2bd   :  { %v2722_v1 = vpop.f32.mrf.mxu3 }
 0x2be   :  { %v2723_v51 = vadd.f32 %v2722_v1, %v2420_v22  ;;  %v11541_v33 = vpop.f32.mrf.mxu1  ;;  %v2422_v1 = vadd.f32 %v11286_v57, %v11062_v58 }
 0x2c0   :  { %v11555_v3 = vadd.f32 %v3025_v7, %v2723_v51  ;;  %v8000_v7 = vld [vmem:[%s15805_s2 + $0x148] sm:$0xf] }
 0x2c1   :  { %v8001_v21 = vor.u32 %v10220_v49, %v8000_v7  ;;  %v8138_v49 = vld [vmem:[%s15805_s2 + $0x270] sm:$0xf0] }
 0x2c2   :  { %15909 = vst [vmem:[#allocation12_spill] sm:$0xff] %v11555_v3 }
 0x2c3   :  { %v3035_v22 = vpop.f32.mrf.mxu0 }
 0x2c4   :  { %v11577_v51 = vpop.f32.mrf.mxu2 }
 0x2c5   :  { %v2724_v46 = vpop.f32.mrf.mxu3 }
 0x2c6   :  { %v2725_v53 = vadd.f32 %v2724_v46, %v2422_v1  ;;  %v11579_v60 = vpop.f32.mrf.mxu1  ;;  %8769 = vmatmul.msk.bf16.gmra.mxu0 %vm1920_vm2, %v8021_v17  ;;  %v10253_v17 = vld [vmem:[%s15805_s2 + $0x264] sm:$0xf]  ;;  %v10224_v46 = vld [vmem:[%s15805_s2 + $0x174] sm:$0xf0] }
 0x2c7   :  { %v8141_v58 = vor.u32 %v10253_v17, %v8138_v49 }
 0x2c8   :  { %v11583_v56 = vadd.f32 %v11489_v45, %v2725_v53  ;;  %v10226_v45 = vld [vmem:[%s15805_s2 + $0x18c] sm:$0xf]  ;;  %v8034_v53 = vld [vmem:[%s15805_s2 + $0x198] sm:$0xf0] }
 0x2c9   :  { %2240 = vmatmul.bf16.gmra.mxu1 %v8249_v59  ;;  %2503 = vmatmul.bf16.gmra.mxu2 %v8125_v9  ;;  %v8037_v1 = vor.u32 %v10226_v45, %v8034_v53 }
 0x2ca   :  { %15910 = vst [vmem:[#allocation13_spill] sm:$0xff] %v11583_v56  ;;  %2766 = vmatmul.bf16.gmra.mxu3 %v8001_v21  ;;  %v2427_v21 = vadd.f32 %v11319_v10, %v11082_v4  ;;  %v2430_v10 = vadd.f32 %v11324_v26, %v11098_v12  ;;  %v8280_v12 = vld [vmem:[%s15805_s2 + $0x380] sm:$0xf]  ;;  %v10291_v26 = vld [vmem:[%s15805_s2 + $0x38c] sm:$0xf0] }
 0x2cb   :  { %v3037_v57 = vpop.f32.mrf.mxu0 }
 0x2cc   :  { %v11589_v30 = vpop.f32.mrf.mxu2 }
 0x2cd   :  { %v2727_v16 = vpop.f32.mrf.mxu3 }
 0x2ce   :  { %v2728_v38 = vadd.f32 %v2727_v16, %v2425_v5  ;;  %v11591_v7 = vpop.f32.mrf.mxu1 }
 0x2cf   :  { %15911 = vst [vmem:[#allocation14_spill] sm:$0xff] %v11591_v7 }
 0x2d0   :  { %v11599_v9 = vadd.f32 %v3030_v41, %v2728_v38  ;;  %v8016_v41 = vld [vmem:[%s15805_s2 + $0x168] sm:$0xf]  ;;  %v8265_v38 = vor.u32 %v10287_v29, %v8264_v2 }
 0x2d1   :  { %v8017_v45 = vor.u32 %v10224_v46, %v8016_v41  ;;  %v8154_v41 = vld [vmem:[%s15805_s2 + $0x290] sm:$0xf0] }
 0x2d2   :  { %15912 = vst [vmem:[#allocation15_spill] sm:$0xff] %v11599_v9 }
 0x2d3   :  { %v3040_v59 = vpop.f32.mrf.mxu0 }
 0x2d4   :  { %v11621_v5 = vpop.f32.mrf.mxu2 }
 0x2d5   :  { %v2729_v16 = vpop.f32.mrf.mxu3 }
 0x2d6   :  { %v2730_v3 = vadd.f32 %v2729_v16, %v2427_v21  ;;  %v11623_v56 = vpop.f32.mrf.mxu1  ;;  %8770 = vmatmul.msk.bf16.gmra.mxu0 %vm1920_vm2, %v8037_v1  ;;  %v10257_v1 = vld [vmem:[%s15805_s2 + $0x284] sm:$0xf]  ;;  %v10228_v21 = vld [vmem:[%s15805_s2 + $0x194] sm:$0xf0] }
 0x2d8   :  { %v11626_v53 = vadd.f32 %v3032_v48, %v2730_v3  ;;  %v10230_v48 = vld [vmem:[%s15805_s2 + $0x1ac] sm:$0xf]  ;;  %v8050_v3 = vld [vmem:[%s15805_s2 + $0x1b8] sm:$0xf0] }
 0x2d9   :  { %2245 = vmatmul.bf16.gmra.mxu1 %v8265_v38  ;;  %2508 = vmatmul.bf16.gmra.mxu2 %v8141_v58  ;;  %v8053_v46 = vor.u32 %v10230_v48, %v8050_v3  ;;  %v2432_v38 = vadd.f32 %v11352_v44, %v11102_v14  ;;  %v2435_v44 = vadd.f32 %v11357_v52, %v11116_v25  ;;  %v8296_v25 = vld [vmem:[%s15805_s2 + $0x3a0] sm:$0xf]  ;;  %v10295_v52 = vld [vmem:[%s15805_s2 + $0x3ac] sm:$0xf0] }
 0x2da   :  { %15913 = vst [vmem:[#allocation16_spill] sm:$0xff] %v11626_v53  ;;  %2771 = vmatmul.bf16.gmra.mxu3 %v8017_v45 }
 0x2db   :  { %v3042_v4 = vpop.f32.mrf.mxu0 }
 0x2dc   :  { %v11632_v2 = vpop.f32.mrf.mxu2 }
 0x2dd   :  { %v2732_v29 = vpop.f32.mrf.mxu3 }
 0x2de   :  { %v2733_v17 = vadd.f32 %v2732_v29, %v2430_v10  ;;  %v11634_v49 = vpop.f32.mrf.mxu1  ;;  %v8281_v29 = vor.u32 %v10291_v26, %v8280_v12 }
 0x2e0   :  { %v11642_v58 = vadd.f32 %v3035_v22, %v2733_v17  ;;  %v8032_v22 = vld [vmem:[%s15805_s2 + $0x188] sm:$0xf]  ;;  %v8157_v17 = vor.u32 %v10257_v1, %v8154_v41 }
 0x2e1   :  { %v8033_v48 = vor.u32 %v10228_v21, %v8032_v22  ;;  %v10261_v22 = vld [vmem:[%s15805_s2 + $0x2a4] sm:$0xf]  ;;  %v8170_v21 = vld [vmem:[%s15805_s2 + $0x2b0] sm:$0xf0] }
 0x2e2   :  { %15914 = vst [vmem:[#allocation17_spill] sm:$0xff] %v11642_v58 }
 0x2e3   :  { %v3045_v16 = vpop.f32.mrf.mxu0 }
 0x2e4   :  { %v11664_v45 = vpop.f32.mrf.mxu2 }
 0x2e5   :  { %v2734_v10 = vpop.f32.mrf.mxu3 }
 0x2e6   :  { %v2735_v7 = vadd.f32 %v2734_v10, %v2432_v38  ;;  %v11666_v9 = vpop.f32.mrf.mxu1  ;;  %8771 = vmatmul.msk.bf16.gmra.mxu0 %vm1920_vm2, %v8053_v46  ;;  %v10232_v10 = vld [vmem:[%s15805_s2 + $0x1b4] sm:$0xf0] }
 0x2e8   :  { %v11669_v3 = vadd.f32 %v3037_v57, %v2735_v7  ;;  %v10234_v57 = vld [vmem:[%s15805_s2 + $0x1cc] sm:$0xf]  ;;  %v8066_v7 = vld [vmem:[%s15805_s2 + $0x1d8] sm:$0xf0] }
 0x2e9   :  { %2250 = vmatmul.bf16.gmra.mxu1 %v8281_v29  ;;  %2513 = vmatmul.bf16.gmra.mxu2 %v8157_v17  ;;  %v8069_v38 = vor.u32 %v10234_v57, %v8066_v7  ;;  %v2437_v17 = vadd.f32 %v11385_v6, %v11118_v28  ;;  %v2440_v6 = vadd.f32 %v11390_v11, %v11132_v35  ;;  %v8312_v35 = vld [vmem:[%s15805_s2 + $0x3c0] sm:$0xf]  ;;  %v10299_v11 = vld [vmem:[%s15805_s2 + $0x3cc] sm:$0xf0] }
 0x2ea   :  { %15915 = vst [vmem:[#allocation18_spill] sm:$0xff] %v11669_v3  ;;  %2776 = vmatmul.bf16.gmra.mxu3 %v8033_v48 }
 0x2eb   :  { %v3047_v14 = vpop.f32.mrf.mxu0 }
 0x2ec   :  { %v11675_v12 = vpop.f32.mrf.mxu2 }
 0x2ed   :  { %v2737_v26 = vpop.f32.mrf.mxu3 }
 0x2ee   :  { %v2738_v1 = vadd.f32 %v2737_v26, %v2435_v44  ;;  %v11677_v41 = vpop.f32.mrf.mxu1  ;;  %v8297_v26 = vor.u32 %v10295_v52, %v8296_v25 }
 0x2f0   :  { %v11685_v46 = vadd.f32 %v3040_v59, %v2738_v1  ;;  %v8048_v59 = vld [vmem:[%s15805_s2 + $0x1a8] sm:$0xf]  ;;  %v8173_v1 = vor.u32 %v10261_v22, %v8170_v21 }
 0x2f1   :  { %v8049_v57 = vor.u32 %v10232_v10, %v8048_v59  ;;  %v10265_v59 = vld [vmem:[%s15805_s2 + $0x2c4] sm:$0xf]  ;;  %v8186_v10 = vld [vmem:[%s15805_s2 + $0x2d0] sm:$0xf0] }
 0x2f2   :  { %15916 = vst [vmem:[#allocation19_spill] sm:$0xff] %v11685_v46 }
 0x2f3   :  { %v3050_v29 = vpop.f32.mrf.mxu0 }
 0x2f4   :  { %v11707_v48 = vpop.f32.mrf.mxu2 }
 0x2f5   :  { %v2739_v44 = vpop.f32.mrf.mxu3 }
 0x2f6   :  { %v2740_v53 = vadd.f32 %v2739_v44, %v2437_v17  ;;  %v11709_v58 = vpop.f32.mrf.mxu1  ;;  %8772 = vmatmul.msk.bf16.gmra.mxu0 %vm1920_vm2, %v8069_v38  ;;  %v10236_v44 = vld [vmem:[%s15805_s2 + $0x1d4] sm:$0xf0] }
 0x2f8   :  { %v11712_v7 = vadd.f32 %v3042_v4, %v2740_v53  ;;  %v10238_v53 = vld [vmem:[%s15805_s2 + $0x1ec] sm:$0xf]  ;;  %v8082_v4 = vld [vmem:[%s15805_s2 + $0x1f8] sm:$0xf0] }
 0x2f9   :  { %2255 = vmatmul.bf16.gmra.mxu1 %v8297_v26  ;;  %2518 = vmatmul.bf16.gmra.mxu2 %v8173_v1  ;;  %v8085_v17 = vor.u32 %v10238_v53, %v8082_v4  ;;  %v2442_v1 = vadd.f32 %v11418_v42, %v11134_v39  ;;  %v2445_v42 = vadd.f32 %v11423_v54, %v11148_v55  ;;  %v8328_v55 = vld [vmem:[%s15805_s2 + $0x3e0] sm:$0xf]  ;;  %v10303_v54 = vld [vmem:[%s15805_s2 + $0x3ec] sm:$0xf0] }
 0x2fa   :  { %15917 = vst [vmem:[#allocation20_spill] sm:$0xff] %v11712_v7  ;;  %2781 = vmatmul.bf16.gmra.mxu3 %v8049_v57 }
 0x2fb   :  { %v3052_v28 = vpop.f32.mrf.mxu0 }
 0x2fc   :  { %v11718_v25 = vpop.f32.mrf.mxu2 }
 0x2fd   :  { %v2742_v52 = vpop.f32.mrf.mxu3 }
 0x2fe   :  { %v2743_v22 = vadd.f32 %v2742_v52, %v2440_v6  ;;  %v11720_v21 = vpop.f32.mrf.mxu1  ;;  %v8313_v52 = vor.u32 %v10299_v11, %v8312_v35 }
 0x300   :  { %v11728_v38 = vadd.f32 %v3045_v16, %v2743_v22  ;;  %v8064_v16 = vld [vmem:[%s15805_s2 + $0x1c8] sm:$0xf]  ;;  %v8189_v22 = vor.u32 %v10265_v59, %v8186_v10 }
 0x301   :  { %v8065_v53 = vor.u32 %v10236_v44, %v8064_v16  ;;  %v10269_v16 = vld [vmem:[%s15805_s2 + $0x2e4] sm:$0xf]  ;;  %v8202_v44 = vld [vmem:[%s15805_s2 + $0x2f0] sm:$0xf0] }
 0x302   :  { %15918 = vst [vmem:[#allocation21_spill] sm:$0xff] %v11728_v38 }
 0x303   :  { %v3055_v26 = vpop.f32.mrf.mxu0 }
 0x304   :  { %v11750_v57 = vpop.f32.mrf.mxu2 }
 0x305   :  { %v2744_v6 = vpop.f32.mrf.mxu3 }
 0x306   :  { %v2745_v3 = vadd.f32 %v2744_v6, %v2442_v1  ;;  %v11752_v46 = vpop.f32.mrf.mxu1  ;;  %8773 = vmatmul.msk.bf16.gmra.mxu0 %vm1920_vm2, %v8085_v17  ;;  %v10240_v6 = vld [vmem:[%s15805_s2 + $0x1f4] sm:$0xf0] }
 0x308   :  { %v11755_v4 = vadd.f32 %v3047_v14, %v2745_v3  ;;  %v10242_v3 = vld [vmem:[%s15805_s2 + $0x20c] sm:$0xf]  ;;  %v8098_v14 = vld [vmem:[%s15805_s2 + $0x218] sm:$0xf0] }
 0x309   :  { %2260 = vmatmul.bf16.gmra.mxu1 %v8313_v52  ;;  %2523 = vmatmul.bf16.gmra.mxu2 %v8189_v22  ;;  %v8101_v1 = vor.u32 %v10242_v3, %v8098_v14  ;;  %v2447_v22 = vadd.f32 %v11451_v13, %v11154_v19  ;;  %v2450_v19 = vadd.f32 %v11456_v34, %v11183_v47  ;;  %v8344_v47 = vld [vmem:[%s15805_s2 + $0x400] sm:$0xf]  ;;  %v10307_v34 = vld [vmem:[%s15805_s2 + $0x40c] sm:$0xf0] }
 0x30a   :  { %15919 = vst [vmem:[#allocation22_spill] sm:$0xff] %v11755_v4  ;;  %2786 = vmatmul.bf16.gmra.mxu3 %v8065_v53 }
 0x30b   :  { %v3057_v39 = vpop.f32.mrf.mxu0 }
 0x30c   :  { %v11761_v35 = vpop.f32.mrf.mxu2 }
 0x30d   :  { %v2747_v11 = vpop.f32.mrf.mxu3 }
 0x30e   :  { %v2748_v59 = vadd.f32 %v2747_v11, %v2445_v42  ;;  %v11763_v10 = vpop.f32.mrf.mxu1  ;;  %v8329_v11 = vor.u32 %v10303_v54, %v8328_v55 }
 0x310   :  { %v11771_v17 = vadd.f32 %v3050_v29, %v2748_v59  ;;  %v8080_v29 = vld [vmem:[%s15805_s2 + $0x1e8] sm:$0xf]  ;;  %v8205_v59 = vor.u32 %v10269_v16, %v8202_v44  ;;  %v10246_v44 = vld [vmem:[%s15805_s2 + $0x22c] sm:$0xf] }
 0x311   :  { %v8081_v3 = vor.u32 %v10240_v6, %v8080_v29  ;;  %v8218_v29 = vld [vmem:[%s15805_s2 + $0x310] sm:$0xf0] }
 0x312   :  { %15920 = vst [vmem:[#allocation23_spill] sm:$0xff] %v11771_v17 }
 0x313   :  { %v3060_v52 = vpop.f32.mrf.mxu0 }
 0x314   :  { %v11793_v53 = vpop.f32.mrf.mxu2 }
 0x315   :  { %v2749_v42 = vpop.f32.mrf.mxu3 }
 0x316   :  { %v2750_v7 = vadd.f32 %v2749_v42, %v2447_v22  ;;  %v11795_v17 = vpop.f32.mrf.mxu1  ;;  %8774 = vmatmul.msk.bf16.gmra.mxu0 %vm1920_vm2, %v8101_v1  ;;  %v10273_v1 = vld [vmem:[%s15805_s2 + $0x304] sm:$0xf]  ;;  %v8096_v22 = vld [vmem:[%s15805_s2 + $0x208] sm:$0xf]  ;;  %v10244_v42 = vld [vmem:[%s15805_s2 + $0x214] sm:$0xf0] }
 0x318   :  { %v11798_v14 = vadd.f32 %v3052_v28, %v2750_v7  ;;  %v8114_v7 = vld [vmem:[%s15805_s2 + $0x238] sm:$0xf0] }
 0x319   :  { %2265 = vmatmul.bf16.gmra.mxu1 %v8329_v11  ;;  %2528 = vmatmul.bf16.gmra.mxu2 %v8205_v59  ;;  %v8117_v6 = vor.u32 %v10246_v44, %v8114_v7  ;;  %v2452_v59 = vadd.f32 %v11484_v37, %v11194_v62  ;;  %v8097_v44 = vor.u32 %v10244_v42, %v8096_v22  ;;  %v10311_v22 = vld [vmem:[%s15805_s2 + $0x42c] sm:$0xf0]  ;;  %v10277_v42 = vld [vmem:[%s15805_s2 + $0x324] sm:$0xf] }
 0x31a   :  { %15921 = vst [vmem:[#allocation24_spill] sm:$0xff] %v11798_v14  ;;  %2791 = vmatmul.bf16.gmra.mxu3 %v8081_v3  ;;  %v2455_v62 = vadd.f32 %v11493_v36, %v11222_v18  ;;  %v8130_v18 = vld [vmem:[%s15805_s2 + $0x258] sm:$0xf0] }
 0x31b   :  { %v11800_v38 = vpop.f32.mrf.mxu0 }
 0x31c   :  { %v11804_v13 = vpop.f32.mrf.mxu2 }
 0x31d   :  { %v2752_v55 = vpop.f32.mrf.mxu3 }
 0x31e   :  { %v2753_v54 = vadd.f32 %v2752_v55, %v2450_v19  ;;  %v11806_v16 = vpop.f32.mrf.mxu1  ;;  %v8345_v55 = vor.u32 %v10307_v34, %v8344_v47 }
 0x320   :  { %v11814_v28 = vadd.f32 %v3055_v26, %v2753_v54  ;;  %v8221_v54 = vor.u32 %v10273_v1, %v8218_v29  ;;  %v10423_v29 = vld [vmem:[%s15806_s3 + $0x70] sm:$0xff] }
 0x321   :  { %4231 = vmatpush.bf16.msrb.mxu2 %v10423_v29 }
 0x322   :  { %15922 = vst [vmem:[#allocation25_spill] sm:$0xff] %v11814_v28 }
 0x323   :  { %v3065_v11 = vpop.f32.mrf.mxu0 }
 0x324   :  { %v11838_v3 = vpop.f32.mrf.mxu2 }
 0x325   :  { %v2754_v19 = vpop.f32.mrf.mxu3 }
 0x326   :  { %v2755_v4 = vadd.f32 %v2754_v19, %v2452_v59  ;;  %v11840_v26 = vpop.f32.mrf.mxu1  ;;  %8775 = vmatmul.msk.bf16.gmra.mxu0 %vm1920_vm2, %v8117_v6  ;;  %v8360_v6 = vld [vmem:[%s15805_s2 + $0x420] sm:$0xf]  ;;  %v8234_v59 = vld [vmem:[%s15805_s2 + $0x330] sm:$0xf0] }
 0x327   :  { %v8361_v29 = vor.u32 %v10311_v22, %v8360_v6 }
 0x328   :  { %v11843_v7 = vadd.f32 %v3057_v39, %v2755_v4  ;;  %v10431_v4 = vld [vmem:[%s15806_s3 + $0xb0] sm:$0xff]  ;;  %v10250_v39 = vld [vmem:[%s15805_s2 + $0x24c] sm:$0xf] }
 0x329   :  { %2270 = vmatmul.bf16.gmra.mxu1 %v8345_v55  ;;  %2533 = vmatmul.bf16.gmra.mxu2 %v8221_v54  ;;  %v8133_v19 = vor.u32 %v10250_v39, %v8130_v18  ;;  %v8112_v55 = vld [vmem:[%s15805_s2 + $0x228] sm:$0xf]  ;;  %v10248_v54 = vld [vmem:[%s15805_s2 + $0x234] sm:$0xf0]  ;;  %v10415_v18 = vld [vmem:[%s15806_s3 + $0x30] sm:$0xff] }
 0x32a   :  { %15923 = vst [vmem:[#allocation26_spill] sm:$0xff] %v11843_v7  ;;  %2796 = vmatmul.bf16.gmra.mxu3 %v8097_v44  ;;  %v8113_v39 = vor.u32 %v10248_v54, %v8112_v55  ;;  %4188 = vmatpush.bf16.msrb.mxu1 %v10415_v18  ;;  %v10281_v55 = vld [vmem:[%s15805_s2 + $0x344] sm:$0xf]  ;;  %v8250_v54 = vld [vmem:[%s15805_s2 + $0x350] sm:$0xf0] }
 0x32b   :  { %v11845_v14 = vpop.f32.mrf.mxu0  ;;  %4274 = vmatpush.bf16.msrb.mxu3 %v10431_v4  ;;  %v8237_v4 = vor.u32 %v10277_v42, %v8234_v59 }
 0x32c   :  { %v11849_v37 = vpop.f32.mrf.mxu2 }
 0x32d   :  { %v2757_v47 = vpop.f32.mrf.mxu3 }
 0x32e   :  { %v2758_v34 = vadd.f32 %v2757_v47, %v2455_v62  ;;  %v11851_v1 = vpop.f32.mrf.mxu1  ;;  %v2457_v62 = vadd.f32 %v11525_v27, %v11227_v23  ;;  %v2460_v27 = vadd.f32 %v11539_v32, %v11255_v40  ;;  %v8376_v40 = vld [vmem:[%s15805_s2 + $0x440] sm:$0xf]  ;;  %v10315_v32 = vld [vmem:[%s15805_s2 + $0x44c] sm:$0xf0] }
 0x330   :  { %v11865_v36 = vadd.f32 %v3060_v52, %v2758_v34 }
 0x332   :  { %15924 = vst [vmem:[#allocation27_spill] sm:$0xff] %v11865_v36 }
 0x333   :  { %v3070_v44 = vpop.f32.mrf.mxu0 }
 0x334   :  { %v11889_v47 = vpop.f32.mrf.mxu2 }
 0x335   :  { %v2759_v34 = vpop.f32.mrf.mxu3 }
 0x336   :  { %v2760_v28 = vadd.f32 %v2759_v34, %v2457_v62  ;;  %v11891_v52 = vpop.f32.mrf.mxu1  ;;  %8776 = vmatmul.msk.bf16.gmra.mxu0 %vm1920_vm2, %v8133_v19  ;;  %v10254_v19 = vld [vmem:[%s15805_s2 + $0x26c] sm:$0xf]  ;;  %v8128_v34 = vld [vmem:[%s15805_s2 + $0x248] sm:$0xf] }
 0x338   :  { %v11898_v7 = vadd.f32 %v11800_v38, %v2760_v28  ;;  %v8146_v38 = vld [vmem:[%s15805_s2 + $0x278] sm:$0xf0] }
 0x339   :  { %2275 = vmatmul.bf16.gmra.mxu1 %v8361_v29  ;;  %2538 = vmatmul.bf16.gmra.mxu2 %v8237_v4  ;;  %v8149_v62 = vor.u32 %v10254_v19, %v8146_v38  ;;  %v10252_v29 = vld [vmem:[%s15805_s2 + $0x254] sm:$0xf0] }
 0x33a   :  { %15925 = vst [vmem:[#allocation28_spill] sm:$0xff] %v11898_v7  ;;  %2801 = vmatmul.bf16.gmra.mxu3 %v8113_v39  ;;  %v2462_v39 = vadd.f32 %v11577_v51, %v11260_v43  ;;  %v8129_v19 = vor.u32 %v10252_v29, %v8128_v34  ;;  %v2465_v43 = vadd.f32 %v11589_v30, %v11288_v61  ;;  %v8392_v61 = vld [vmem:[%s15805_s2 + $0x460] sm:$0xf]  ;;  %v10319_v30 = vld [vmem:[%s15805_s2 + $0x46c] sm:$0xf0] }
 0x33b   :  { %v3072_v23 = vpop.f32.mrf.mxu0  ;;  %v8266_v34 = vld [vmem:[%s15805_s2 + $0x370] sm:$0xf0] }
 0x33c   :  { %v11902_v6 = vpop.f32.mrf.mxu2 }
 0x33d   :  { %v2762_v22 = vpop.f32.mrf.mxu3 }
 0x33e   :  { %v2763_v42 = vadd.f32 %v2762_v22, %v2460_v27  ;;  %v11904_v59 = vpop.f32.mrf.mxu1  ;;  %v8377_v22 = vor.u32 %v10315_v32, %v8376_v40 }
 0x340   :  { %v11912_v28 = vadd.f32 %v3065_v11, %v2763_v42  ;;  %v8253_v42 = vor.u32 %v10281_v55, %v8250_v54  ;;  %v10258_v54 = vld [vmem:[%s15805_s2 + $0x28c] sm:$0xf] }
 0x342   :  { %15926 = vst [vmem:[#allocation29_spill] sm:$0xff] %v11912_v28 }
 0x343   :  { %v3075_v4 = vpop.f32.mrf.mxu0 }
 0x344   :  { %v11936_v18 = vpop.f32.mrf.mxu2 }
 0x345   :  { %v2764_v27 = vpop.f32.mrf.mxu3 }
 0x346   :  { %v2765_v36 = vadd.f32 %v2764_v27, %v2462_v39  ;;  %v11938_v11 = vpop.f32.mrf.mxu1  ;;  %8777 = vmatmul.msk.bf16.gmra.mxu0 %vm1920_vm2, %v8149_v62  ;;  %v10285_v62 = vld [vmem:[%s15805_s2 + $0x364] sm:$0xf]  ;;  %v8144_v39 = vld [vmem:[%s15805_s2 + $0x268] sm:$0xf]  ;;  %v10256_v27 = vld [vmem:[%s15805_s2 + $0x274] sm:$0xf0] }
 0x348   :  { %v11942_v38 = vadd.f32 %v11845_v14, %v2765_v36  ;;  %v8162_v14 = vld [vmem:[%s15805_s2 + $0x298] sm:$0xf0] }
 0x349   :  { %2280 = vmatmul.bf16.gmra.mxu1 %v8377_v22  ;;  %2543 = vmatmul.bf16.gmra.mxu2 %v8253_v42  ;;  %v8165_v29 = vor.u32 %v10258_v54, %v8162_v14  ;;  %v2467_v42 = vadd.f32 %v11621_v5, %v11293_v0  ;;  %v8145_v54 = vor.u32 %v10256_v27, %v8144_v39  ;;  %v8160_v39 = vld [vmem:[%s15805_s2 + $0x288] sm:$0xf]  ;;  %v10260_v27 = vld [vmem:[%s15805_s2 + $0x294] sm:$0xf0] }
 0x34a   :  { %15927 = vst [vmem:[#allocation30_spill] sm:$0xff] %v11942_v38  ;;  %2806 = vmatmul.bf16.gmra.mxu3 %v8129_v19  ;;  %v2470_v0 = vadd.f32 %v11632_v2, %v11321_v20  ;;  %v8408_v20 = vld [vmem:[%s15805_s2 + $0x480] sm:$0xf]  ;;  %v10323_v2 = vld [vmem:[%s15805_s2 + $0x48c] sm:$0xf0] }
 0x34b   :  { %v3077_v7 = vpop.f32.mrf.mxu0 }
 0x34c   :  { %v11946_v51 = vpop.f32.mrf.mxu2 }
 0x34d   :  { %v2767_v40 = vpop.f32.mrf.mxu3 }
 0x34e   :  { %v2768_v32 = vadd.f32 %v2767_v40, %v2465_v43  ;;  %v11948_v55 = vpop.f32.mrf.mxu1  ;;  %v8393_v40 = vor.u32 %v10319_v30, %v8392_v61 }
 0x350   :  { %v11956_v36 = vadd.f32 %v3070_v44, %v2768_v32  ;;  %v8269_v32 = vor.u32 %v10285_v62, %v8266_v34  ;;  %v10262_v62 = vld [vmem:[%s15805_s2 + $0x2ac] sm:$0xf]  ;;  %v8282_v34 = vld [vmem:[%s15805_s2 + $0x390] sm:$0xf0] }
 0x352   :  { %15928 = vst [vmem:[#allocation31_spill] sm:$0xff] %v11956_v36 }
 0x353   :  { %v3080_v22 = vpop.f32.mrf.mxu0 }
 0x354   :  { %v11980_v19 = vpop.f32.mrf.mxu2 }
 0x355   :  { %v2769_v43 = vpop.f32.mrf.mxu3 }
 0x356   :  { %v2770_v28 = vadd.f32 %v2769_v43, %v2467_v42  ;;  %v11982_v44 = vpop.f32.mrf.mxu1  ;;  %8778 = vmatmul.msk.bf16.gmra.mxu0 %vm1920_vm2, %v8165_v29  ;;  %v2472_v43 = vadd.f32 %v11664_v45, %v11326_v24  ;;  %v2475_v24 = vadd.f32 %v11675_v12, %v11354_v50  ;;  %v8424_v50 = vld [vmem:[%s15805_s2 + $0x4a0] sm:$0xf]  ;;  %v10327_v12 = vld [vmem:[%s15805_s2 + $0x4ac] sm:$0xf0] }
 0x358   :  { %v11985_v14 = vadd.f32 %v3072_v23, %v2770_v28  ;;  %v8178_v23 = vld [vmem:[%s15805_s2 + $0x2b8] sm:$0xf0] }
 0x359   :  { %2285 = vmatmul.bf16.gmra.mxu1 %v8393_v40  ;;  %2548 = vmatmul.bf16.gmra.mxu2 %v8269_v32  ;;  %v8181_v29 = vor.u32 %v10262_v62, %v8178_v23  ;;  %v8161_v62 = vor.u32 %v10260_v27, %v8160_v39  ;;  %v8176_v27 = vld [vmem:[%s15805_s2 + $0x2a8] sm:$0xf] }
 0x35a   :  { %15929 = vst [vmem:[#allocation32_spill] sm:$0xff] %v11985_v14  ;;  %2811 = vmatmul.bf16.gmra.mxu3 %v8145_v54  ;;  %v8409_v54 = vor.u32 %v10323_v2, %v8408_v20 }
 0x35b   :  { %v3082_v38 = vpop.f32.mrf.mxu0 }
 0x35c   :  { %v11989_v5 = vpop.f32.mrf.mxu2 }
 0x35d   :  { %v2772_v36 = vpop.f32.mrf.mxu3 }
 0x35e   :  { %v2773_v61 = vadd.f32 %v2772_v36, %v2470_v0  ;;  %v11991_v30 = vpop.f32.mrf.mxu1  ;;  %v10289_v36 = vld [vmem:[%s15805_s2 + $0x384] sm:$0xf] }
 0x35f   :  { %v8285_v0 = vor.u32 %v10289_v36, %v8282_v34  ;;  %v10266_v36 = vld [vmem:[%s15805_s2 + $0x2cc] sm:$0xf] }
 0x360   :  { %v11999_v28 = vadd.f32 %v3075_v4, %v2773_v61 }
 0x362   :  { %15930 = vst [vmem:[#allocation33_spill] sm:$0xff] %v11999_v28 }
 0x363   :  { %v3085_v42 = vpop.f32.mrf.mxu0 }
 0x364   :  { %v12023_v40 = vpop.f32.mrf.mxu2 }
 0x365   :  { %v2774_v32 = vpop.f32.mrf.mxu3 }
 0x366   :  { %v2775_v61 = vadd.f32 %v2774_v32, %v2472_v43  ;;  %v12025_v4 = vpop.f32.mrf.mxu1  ;;  %8779 = vmatmul.msk.bf16.gmra.mxu0 %vm1920_vm2, %v8181_v29  ;;  %v8298_v29 = vld [vmem:[%s15805_s2 + $0x3b0] sm:$0xf0]  ;;  %v10264_v43 = vld [vmem:[%s15805_s2 + $0x2b4] sm:$0xf0] }
 0x368   :  { %v12028_v23 = vadd.f32 %v3077_v7, %v2775_v61  ;;  %v8194_v7 = vld [vmem:[%s15805_s2 + $0x2d8] sm:$0xf0] }
 0x369   :  { %2290 = vmatmul.bf16.gmra.mxu1 %v8409_v54  ;;  %2553 = vmatmul.bf16.gmra.mxu2 %v8285_v0  ;;  %v8197_v39 = vor.u32 %v10266_v36, %v8194_v7  ;;  %v2477_v54 = vadd.f32 %v11707_v48, %v11359_v63  ;;  %v8177_v36 = vor.u32 %v10264_v43, %v8176_v27  ;;  %v10268_v43 = vld [vmem:[%s15805_s2 + $0x2d4] sm:$0xf0] }
 0x36a   :  { %15931 = vst [vmem:[#allocation34_spill] sm:$0xff] %v12028_v23  ;;  %2816 = vmatmul.bf16.gmra.mxu3 %v8161_v62  ;;  %v8425_v62 = vor.u32 %v10327_v12, %v8424_v50  ;;  %v2480_v63 = vadd.f32 %v11718_v25, %v11387_v8  ;;  %v8440_v8 = vld [vmem:[%s15805_s2 + $0x4c0] sm:$0xf]  ;;  %v10331_v25 = vld [vmem:[%s15805_s2 + $0x4cc] sm:$0xf0] }
 0x36b   :  { %v3087_v14 = vpop.f32.mrf.mxu0 }
 0x36c   :  { %v12032_v45 = vpop.f32.mrf.mxu2 }
 0x36d   :  { %v2777_v28 = vpop.f32.mrf.mxu3 }
 0x36e   :  { %v2778_v20 = vadd.f32 %v2777_v28, %v2475_v24  ;;  %v12034_v2 = vpop.f32.mrf.mxu1  ;;  %v10293_v28 = vld [vmem:[%s15805_s2 + $0x3a4] sm:$0xf] }
 0x36f   :  { %v8301_v24 = vor.u32 %v10293_v28, %v8298_v29  ;;  %v10270_v28 = vld [vmem:[%s15805_s2 + $0x2ec] sm:$0xf] }
 0x370   :  { %v12042_v34 = vadd.f32 %v3080_v22, %v2778_v20 }
 0x372   :  { %15932 = vst [vmem:[#allocation35_spill] sm:$0xff] %v12042_v34 }
 0x373   :  { %v3090_v32 = vpop.f32.mrf.mxu0 }
 0x374   :  { %v12066_v0 = vpop.f32.mrf.mxu2 }
 0x375   :  { %v2779_v61 = vpop.f32.mrf.mxu3 }
 0x376   :  { %v2780_v20 = vadd.f32 %v2779_v61, %v2477_v54  ;;  %v12068_v22 = vpop.f32.mrf.mxu1  ;;  %8780 = vmatmul.msk.bf16.gmra.mxu0 %vm1920_vm2, %v8197_v39  ;;  %v8314_v39 = vld [vmem:[%s15805_s2 + $0x3d0] sm:$0xf0]  ;;  %v2482_v61 = vadd.f32 %v11750_v57, %v11392_v15  ;;  %v15937_v57 = vld [vmem:[#allocation4_spill] sm:$0xff] }
 0x378   :  { %v12071_v7 = vadd.f32 %v3082_v38, %v2780_v20  ;;  %v8210_v38 = vld [vmem:[%s15805_s2 + $0x2f8] sm:$0xf0]  ;;  %v8441_v20 = vor.u32 %v10331_v25, %v8440_v8 }
 0x379   :  { %2295 = vmatmul.bf16.gmra.mxu1 %v8425_v62  ;;  %2558 = vmatmul.bf16.gmra.mxu2 %v8301_v24  ;;  %v8213_v27 = vor.u32 %v10270_v28, %v8210_v38 }
 0x37a   :  { %15933 = vst [vmem:[#allocation36_spill] sm:$0xff] %v12071_v7  ;;  %2821 = vmatmul.bf16.gmra.mxu3 %v8177_v36 }
 0x37b   :  { %v3092_v23 = vpop.f32.mrf.mxu0 }
 0x37c   :  { %v12075_v48 = vpop.f32.mrf.mxu2 }
 0x37d   :  { %v2782_v34 = vpop.f32.mrf.mxu3 }
 0x37e   :  { %v2783_v50 = vadd.f32 %v2782_v34, %v2480_v63  ;;  %v12077_v12 = vpop.f32.mrf.mxu1  ;;  %v10297_v34 = vld [vmem:[%s15805_s2 + $0x3c4] sm:$0xf] }
 0x37f   :  { %15934 = vst [vmem:[#allocation37_spill] sm:$0xff] %v12077_v12  ;;  %v8317_v36 = vor.u32 %v10297_v34, %v8314_v39  ;;  %v2485_v12 = vadd.f32 %v11761_v35, %v15937_v57  ;;  %v8456_v35 = vld [vmem:[%s15805_s2 + $0x4e0] sm:$0xf] }
 0x380   :  { %v12085_v29 = vadd.f32 %v3085_v42, %v2783_v50  ;;  %v8192_v42 = vld [vmem:[%s15805_s2 + $0x2c8] sm:$0xf] }
 0x381   :  { %v8193_v28 = vor.u32 %v10268_v43, %v8192_v42  ;;  %v10301_v43 = vld [vmem:[%s15805_s2 + $0x3e4] sm:$0xf] }
 0x382   :  { %15935 = vst [vmem:[#allocation38_spill] sm:$0xff] %v12085_v29 }
 0x383   :  { %v3095_v54 = vpop.f32.mrf.mxu0 }
 0x384   :  { %v12107_v62 = vpop.f32.mrf.mxu2 }
 0x385   :  { %v2784_v24 = vpop.f32.mrf.mxu3 }
 0x386   :  { %v2785_v63 = vadd.f32 %v2784_v24, %v2482_v61  ;;  %v12109_v50 = vpop.f32.mrf.mxu1  ;;  %8781 = vmatmul.msk.bf16.gmra.mxu0 %vm1920_vm2, %v8213_v27  ;;  %v8226_v27 = vld [vmem:[%s15805_s2 + $0x318] sm:$0xf0]  ;;  %v8330_v61 = vld [vmem:[%s15805_s2 + $0x3f0] sm:$0xf0] }
 0x387   :  { %v8333_v7 = vor.u32 %v10301_v43, %v8330_v61 }
 0x388   :  { %v12112_v38 = vadd.f32 %v3087_v14, %v2785_v63  ;;  %v10274_v14 = vld [vmem:[%s15805_s2 + $0x30c] sm:$0xf] }
 0x389   :  { %2300 = vmatmul.bf16.gmra.mxu1 %v8441_v20  ;;  %2563 = vmatmul.bf16.gmra.mxu2 %v8317_v36  ;;  %v8229_v24 = vor.u32 %v10274_v14, %v8226_v27  ;;  %v10272_v20 = vld [vmem:[%s15805_s2 + $0x2f4] sm:$0xf0]  ;;  %v15940_v63 = vld [vmem:[#allocation5_spill] sm:$0xff] }
 0x38a   :  { %15936 = vst [vmem:[#allocation39_spill] sm:$0xff] %v12112_v38  ;;  %2826 = vmatmul.bf16.gmra.mxu3 %v8193_v28  ;;  %v2487_v28 = vadd.f32 %v11793_v53, %v15940_v63  ;;  %v15943_v63 = vld [vmem:[#allocation6_spill] sm:$0xff] }
 0x38b   :  { %v3097_v15 = vpop.f32.mrf.mxu0 }
 0x38c   :  { %v12118_v8 = vpop.f32.mrf.mxu2 }
 0x38d   :  { %v2787_v25 = vpop.f32.mrf.mxu3 }
 0x38e   :  { %v2788_v34 = vadd.f32 %v2787_v25, %v2485_v12  ;;  %v12120_v39 = vpop.f32.mrf.mxu1  ;;  %v10335_v12 = vld [vmem:[%s15805_s2 + $0x4ec] sm:$0xf0] }
 0x38f   :  { %15938 = vst [vmem:[#allocation4_spill] sm:$0xff] %v12120_v39 }
 0x390   :  { %v12128_v42 = vadd.f32 %v3090_v32, %v2788_v34  ;;  %v8208_v32 = vld [vmem:[%s15805_s2 + $0x2e8] sm:$0xf]  ;;  %v8457_v34 = vor.u32 %v10335_v12, %v8456_v35  ;;  %v2490_v35 = vadd.f32 %v11804_v13, %v15943_v63  ;;  %v8472_v13 = vld [vmem:[%s15805_s2 + $0x500] sm:$0xf] }
 0x391   :  { %v8209_v14 = vor.u32 %v10272_v20, %v8208_v32  ;;  %v10305_v20 = vld [vmem:[%s15805_s2 + $0x404] sm:$0xf]  ;;  %v15946_v63 = vld [vmem:[#allocation7_spill] sm:$0xff] }
 0x392   :  { %15939 = vst [vmem:[#allocation40_spill] sm:$0xff] %v12128_v42 }
 0x393   :  { %v3100_v36 = vpop.f32.mrf.mxu0 }
 0x394   :  { %v12150_v57 = vpop.f32.mrf.mxu2 }
 0x395   :  { %v2789_v25 = vpop.f32.mrf.mxu3 }
 0x396   :  { %v2790_v29 = vadd.f32 %v2789_v25, %v2487_v28  ;;  %v12152_v38 = vpop.f32.mrf.mxu1  ;;  %8782 = vmatmul.msk.bf16.gmra.mxu0 %vm1920_vm2, %v8229_v24  ;;  %v10339_v24 = vld [vmem:[%s15805_s2 + $0x50c] sm:$0xf0]  ;;  %v8346_v28 = vld [vmem:[%s15805_s2 + $0x410] sm:$0xf0] }
 0x397   :  { %15941 = vst [vmem:[#allocation5_spill] sm:$0xff] %v12152_v38  ;;  %v8473_v39 = vor.u32 %v10339_v24, %v8472_v13  ;;  %v8349_v42 = vor.u32 %v10305_v20, %v8346_v28  ;;  %v10414_v13 = vld [vmem:[%s15806_s3 + $0x28] sm:$0xff] }
 0x398   :  { %v12155_v27 = vadd.f32 %v3092_v23, %v2790_v29  ;;  %v10278_v23 = vld [vmem:[%s15805_s2 + $0x32c] sm:$0xf]  ;;  %v15948_v28 = vld [vmem:[#allocation8_spill] sm:$0xff]  ;;  %4189 = vmatpush.bf16.msrb.mxu1 %v10414_v13 }
 0x399   :  { %2305 = vmatmul.bf16.gmra.mxu1 %v8457_v34  ;;  %2568 = vmatmul.bf16.gmra.mxu2 %v8333_v7  ;;  %v8242_v7 = vld [vmem:[%s15805_s2 + $0x338] sm:$0xf0]  ;;  %v10276_v34 = vld [vmem:[%s15805_s2 + $0x314] sm:$0xf0] }
 0x39a   :  { %15942 = vst [vmem:[#allocation41_spill] sm:$0xff] %v12155_v27  ;;  %2831 = vmatmul.bf16.gmra.mxu3 %v8209_v14  ;;  %v8245_v25 = vor.u32 %v10278_v23, %v8242_v7  ;;  %v10422_v7 = vld [vmem:[%s15806_s3 + $0x68] sm:$0xff] }
 0x39b   :  { %v12159_v53 = vpop.f32.mrf.mxu0  ;;  %4232 = vmatpush.bf16.msrb.mxu2 %v10422_v7 }
 0x39c   :  { %v12163_v12 = vpop.f32.mrf.mxu2 }
 0x39d   :  { %v2792_v43 = vpop.f32.mrf.mxu3 }
 0x39e   :  { %v2793_v61 = vadd.f32 %v2792_v43, %v2490_v35  ;;  %v12165_v32 = vpop.f32.mrf.mxu1  ;;  %v2492_v35 = vadd.f32 %v11838_v3, %v15946_v63  ;;  %v10430_v3 = vld [vmem:[%s15806_s3 + $0xa8] sm:$0xff] }
 0x39f   :  { %15944 = vst [vmem:[#allocation6_spill] sm:$0xff] %v12165_v32  ;;  %4275 = vmatpush.bf16.msrb.mxu3 %v10430_v3  ;;  %v10280_v3 = vld [vmem:[%s15805_s2 + $0x334] sm:$0xf0] }
 0x3a0   :  { %v12173_v29 = vadd.f32 %v3095_v54, %v2793_v61  ;;  %v8224_v54 = vld [vmem:[%s15805_s2 + $0x308] sm:$0xf] }
 0x3a1   :  { %v8225_v23 = vor.u32 %v10276_v34, %v8224_v54  ;;  %v10282_v54 = vld [vmem:[%s15805_s2 + $0x34c] sm:$0xf]  ;;  %v8258_v34 = vld [vmem:[%s15805_s2 + $0x358] sm:$0xf0] }
 0x3a2   :  { %15945 = vst [vmem:[#allocation42_spill] sm:$0xff] %v12173_v29  ;;  %v8261_v7 = vor.u32 %v10282_v54, %v8258_v34 }
 0x3a3   :  { %v3105_v14 = vpop.f32.mrf.mxu0 }
 0x3a4   :  { %v12195_v43 = vpop.f32.mrf.mxu2 }
 0x3a5   :  { %v2794_v61 = vpop.f32.mrf.mxu3 }
 0x3a6   :  { %v2795_v27 = vadd.f32 %v2794_v61, %v2492_v35  ;;  %v12197_v32 = vpop.f32.mrf.mxu1  ;;  %8783 = vmatmul.msk.bf16.gmra.mxu0 %vm1920_vm2, %v8245_v25  ;;  %v2495_v25 = vadd.f32 %v11849_v37, %v15948_v28  ;;  %v8488_v37 = vld [vmem:[%s15805_s2 + $0x520] sm:$0xf]  ;;  %v10343_v35 = vld [vmem:[%s15805_s2 + $0x52c] sm:$0xf0]  ;;  %v10309_v61 = vld [vmem:[%s15805_s2 + $0x424] sm:$0xf] }
 0x3a7   :  { %v15951_v28 = vld [vmem:[#allocation9_spill] sm:$0xff]  ;;  %v8489_v24 = vor.u32 %v10343_v35, %v8488_v37  ;;  %v2500_v37 = vadd.f32 %v11902_v6, %v11527_v31  ;;  %v8504_v31 = vld [vmem:[%s15805_s2 + $0x540] sm:$0xf] }
 0x3a8   :  { %v12203_v38 = vadd.f32 %v3097_v15, %v2795_v27  ;;  %v10347_v6 = vld [vmem:[%s15805_s2 + $0x54c] sm:$0xf0] }
 0x3a9   :  { %2310 = vmatmul.bf16.gmra.mxu1 %v8473_v39  ;;  %2573 = vmatmul.bf16.gmra.mxu2 %v8349_v42 }
 0x3aa   :  { %15947 = vst [vmem:[#allocation7_spill] sm:$0xff] %v12203_v38  ;;  %2836 = vmatmul.bf16.gmra.mxu3 %v8225_v23  ;;  %v8362_v23 = vld [vmem:[%s15805_s2 + $0x430] sm:$0xf0] }
 0x3ab   :  { %v3107_v20 = vpop.f32.mrf.mxu0  ;;  %v8365_v29 = vor.u32 %v10309_v61, %v8362_v23 }
 0x3ac   :  { %v12215_v15 = vpop.f32.mrf.mxu2 }
 0x3ad   :  { %v2797_v39 = vpop.f32.mrf.mxu3 }
 0x3ae   :  { %v2798_v42 = vadd.f32 %v2797_v39, %v2495_v25  ;;  %v12217_v27 = vpop.f32.mrf.mxu1  ;;  %v2497_v25 = vadd.f32 %v11889_v47, %v15951_v28 }
 0x3af   :  { %15949 = vst [vmem:[#allocation8_spill] sm:$0xff] %v12217_v27 }
 0x3b0   :  { %v12225_v63 = vadd.f32 %v3100_v36, %v2798_v42  ;;  %v8240_v36 = vld [vmem:[%s15805_s2 + $0x328] sm:$0xf] }
 0x3b1   :  { %v8241_v54 = vor.u32 %v10280_v3, %v8240_v36 }
 0x3b2   :  { %15950 = vst [vmem:[#allocation43_spill] sm:$0xff] %v12225_v63 }
 0x3b3   :  { %v3110_v13 = vpop.f32.mrf.mxu0 }
 0x3b4   :  { %v12247_v39 = vpop.f32.mrf.mxu2 }
 0x3b5   :  { %v2799_v42 = vpop.f32.mrf.mxu3 }
 0x3b6   :  { %v2800_v38 = vadd.f32 %v2799_v42, %v2497_v25  ;;  %v12249_v27 = vpop.f32.mrf.mxu1  ;;  %8784 = vmatmul.msk.bf16.gmra.mxu0 %vm1920_vm2, %v8261_v7  ;;  %v8378_v7 = vld [vmem:[%s15805_s2 + $0x450] sm:$0xf0]  ;;  %v10284_v25 = vld [vmem:[%s15805_s2 + $0x354] sm:$0xf0] }
 0x3b8   :  { %v12253_v34 = vadd.f32 %v12159_v53, %v2800_v38  ;;  %v10286_v38 = vld [vmem:[%s15805_s2 + $0x36c] sm:$0xf]  ;;  %v8274_v53 = vld [vmem:[%s15805_s2 + $0x378] sm:$0xf0] }
 0x3b9   :  { %2315 = vmatmul.bf16.gmra.mxu1 %v8489_v24  ;;  %2578 = vmatmul.bf16.gmra.mxu2 %v8365_v29  ;;  %v10313_v24 = vld [vmem:[%s15805_s2 + $0x444] sm:$0xf]  ;;  %v8277_v3 = vor.u32 %v10286_v38, %v8274_v53 }
 0x3ba   :  { %15952 = vst [vmem:[#allocation9_spill] sm:$0xff] %v12253_v34  ;;  %2841 = vmatmul.bf16.gmra.mxu3 %v8241_v54  ;;  %v2502_v54 = vadd.f32 %v11936_v18, %v11541_v33  ;;  %v8381_v47 = vor.u32 %v10313_v24, %v8378_v7  ;;  %v2505_v18 = vadd.f32 %v11946_v51, %v11579_v60  ;;  %v8520_v60 = vld [vmem:[%s15805_s2 + $0x560] sm:$0xf]  ;;  %v10351_v51 = vld [vmem:[%s15805_s2 + $0x56c] sm:$0xf0] }
 0x3bb   :  { %v3112_v28 = vpop.f32.mrf.mxu0 }
 0x3bc   :  { %v12259_v35 = vpop.f32.mrf.mxu2 }
 0x3bd   :  { %v2802_v61 = vpop.f32.mrf.mxu3 }
 0x3be   :  { %v2803_v23 = vadd.f32 %v2802_v61, %v2500_v37  ;;  %v12261_v36 = vpop.f32.mrf.mxu1 }
 0x3bf   :  { %15953 = vst [vmem:[#allocation44_spill] sm:$0xff] %v12261_v36 }
 0x3c0   :  { %v12269_v29 = vadd.f32 %v3105_v14, %v2803_v23  ;;  %v8256_v14 = vld [vmem:[%s15805_s2 + $0x348] sm:$0xf]  ;;  %v8505_v23 = vor.u32 %v10347_v6, %v8504_v31 }
 0x3c1   :  { %v8257_v38 = vor.u32 %v10284_v25, %v8256_v14  ;;  %v8394_v14 = vld [vmem:[%s15805_s2 + $0x470] sm:$0xf0] }
 0x3c2   :  { %15954 = vst [vmem:[#allocation45_spill] sm:$0xff] %v12269_v29 }
 0x3c3   :  { %v3115_v42 = vpop.f32.mrf.mxu0 }
 0x3c4   :  { %v12291_v37 = vpop.f32.mrf.mxu2 }
 0x3c5   :  { %v2804_v61 = vpop.f32.mrf.mxu3 }
 0x3c6   :  { %v2805_v63 = vadd.f32 %v2804_v61, %v2502_v54  ;;  %v12293_v34 = vpop.f32.mrf.mxu1  ;;  %8785 = vmatmul.msk.bf16.gmra.mxu0 %vm1920_vm2, %v8277_v3  ;;  %v10317_v3 = vld [vmem:[%s15805_s2 + $0x464] sm:$0xf]  ;;  %v10288_v54 = vld [vmem:[%s15805_s2 + $0x374] sm:$0xf0] }
 0x3c7   :  { %v8397_v36 = vor.u32 %v10317_v3, %v8394_v14 }
 0x3c8   :  { %v12296_v53 = vadd.f32 %v3107_v20, %v2805_v63  ;;  %v10290_v20 = vld [vmem:[%s15805_s2 + $0x38c] sm:$0xf]  ;;  %v8290_v63 = vld [vmem:[%s15805_s2 + $0x398] sm:$0xf0] }
 0x3c9   :  { %2320 = vmatmul.bf16.gmra.mxu1 %v8505_v23  ;;  %2583 = vmatmul.bf16.gmra.mxu2 %v8381_v47  ;;  %v8293_v25 = vor.u32 %v10290_v20, %v8290_v63  ;;  %v15958_v23 = vld [vmem:[#allocation14_spill] sm:$0xff] }
 0x3ca   :  { %15955 = vst [vmem:[#allocation46_spill] sm:$0xff] %v12296_v53  ;;  %2846 = vmatmul.bf16.gmra.mxu3 %v8257_v38  ;;  %v2507_v38 = vadd.f32 %v11980_v19, %v15958_v23  ;;  %v2510_v23 = vadd.f32 %v11989_v5, %v11623_v56  ;;  %v8536_v56 = vld [vmem:[%s15805_s2 + $0x580] sm:$0xf]  ;;  %v10355_v5 = vld [vmem:[%s15805_s2 + $0x58c] sm:$0xf0] }
 0x3cb   :  { %v3117_v33 = vpop.f32.mrf.mxu0 }
 0x3cc   :  { %v12302_v31 = vpop.f32.mrf.mxu2 }
 0x3cd   :  { %v2807_v6 = vpop.f32.mrf.mxu3 }
 0x3ce   :  { %v2808_v24 = vadd.f32 %v2807_v6, %v2505_v18  ;;  %v12304_v7 = vpop.f32.mrf.mxu1 }
 0x3cf   :  { %15956 = vst [vmem:[#allocation47_spill] sm:$0xff] %v12304_v7 }
 0x3d0   :  { %v12312_v47 = vadd.f32 %v3110_v13, %v2808_v24  ;;  %v8272_v13 = vld [vmem:[%s15805_s2 + $0x368] sm:$0xf]  ;;  %v8521_v24 = vor.u32 %v10351_v51, %v8520_v60 }
 0x3d1   :  { %v8273_v20 = vor.u32 %v10288_v54, %v8272_v13  ;;  %v8410_v13 = vld [vmem:[%s15805_s2 + $0x490] sm:$0xf0] }
 0x3d2   :  { %15957 = vst [vmem:[#allocation48_spill] sm:$0xff] %v12312_v47 }
 0x3d3   :  { %v3120_v61 = vpop.f32.mrf.mxu0 }
 0x3d4   :  { %v12334_v18 = vpop.f32.mrf.mxu2 }
 0x3d5   :  { %v2809_v6 = vpop.f32.mrf.mxu3 }
 0x3d6   :  { %v2810_v29 = vadd.f32 %v2809_v6, %v2507_v38  ;;  %v12336_v53 = vpop.f32.mrf.mxu1  ;;  %8786 = vmatmul.msk.bf16.gmra.mxu0 %vm1920_vm2, %v8293_v25  ;;  %v10321_v25 = vld [vmem:[%s15805_s2 + $0x484] sm:$0xf]  ;;  %v10292_v38 = vld [vmem:[%s15805_s2 + $0x394] sm:$0xf0] }
 0x3d8   :  { %v12339_v63 = vadd.f32 %v3112_v28, %v2810_v29  ;;  %v10294_v28 = vld [vmem:[%s15805_s2 + $0x3ac] sm:$0xf] }
 0x3d9   :  { %2325 = vmatmul.bf16.gmra.mxu1 %v8521_v24  ;;  %2588 = vmatmul.bf16.gmra.mxu2 %v8397_v36  ;;  %v8306_v36 = vld [vmem:[%s15805_s2 + $0x3b8] sm:$0xf0]  ;;  %v2512_v24 = vadd.f32 %v12023_v40, %v11634_v49  ;;  %v2515_v49 = vadd.f32 %v12032_v45, %v11666_v9  ;;  %v8552_v9 = vld [vmem:[%s15805_s2 + $0x5a0] sm:$0xf]  ;;  %v10359_v45 = vld [vmem:[%s15805_s2 + $0x5ac] sm:$0xf0] }
 0x3da   :  { %15959 = vst [vmem:[#allocation14_spill] sm:$0xff] %v12339_v63  ;;  %2851 = vmatmul.bf16.gmra.mxu3 %v8273_v20  ;;  %v8309_v54 = vor.u32 %v10294_v28, %v8306_v36 }
 0x3db   :  { %v3122_v19 = vpop.f32.mrf.mxu0 }
 0x3dc   :  { %v12345_v60 = vpop.f32.mrf.mxu2 }
 0x3dd   :  { %v2812_v51 = vpop.f32.mrf.mxu3 }
 0x3de   :  { %v2813_v3 = vadd.f32 %v2812_v51, %v2510_v23  ;;  %v12347_v14 = vpop.f32.mrf.mxu1  ;;  %v8537_v51 = vor.u32 %v10355_v5, %v8536_v56 }
 0x3e0   :  { %v12355_v29 = vadd.f32 %v3115_v42, %v2813_v3  ;;  %v8288_v42 = vld [vmem:[%s15805_s2 + $0x388] sm:$0xf]  ;;  %v8413_v3 = vor.u32 %v10321_v25, %v8410_v13  ;;  %v10298_v25 = vld [vmem:[%s15805_s2 + $0x3cc] sm:$0xf]  ;;  %v8426_v13 = vld [vmem:[%s15805_s2 + $0x4b0] sm:$0xf0] }
 0x3e1   :  { %v8289_v28 = vor.u32 %v10292_v38, %v8288_v42  ;;  %v8304_v42 = vld [vmem:[%s15805_s2 + $0x3a8] sm:$0xf]  ;;  %v10296_v38 = vld [vmem:[%s15805_s2 + $0x3b4] sm:$0xf0] }
 0x3e2   :  { %15960 = vst [vmem:[#allocation49_spill] sm:$0xff] %v12355_v29 }
 0x3e3   :  { %v3125_v6 = vpop.f32.mrf.mxu0 }
 0x3e4   :  { %v12377_v20 = vpop.f32.mrf.mxu2 }
 0x3e5   :  { %v2814_v23 = vpop.f32.mrf.mxu3 }
 0x3e6   :  { %v2815_v7 = vadd.f32 %v2814_v23, %v2512_v24  ;;  %v12379_v29 = vpop.f32.mrf.mxu1  ;;  %8787 = vmatmul.msk.bf16.gmra.mxu0 %vm1920_vm2, %v8309_v54  ;;  %v2517_v23 = vadd.f32 %v12066_v0, %v11677_v41  ;;  %v2520_v41 = vadd.f32 %v12075_v48, %v11709_v58  ;;  %v8568_v58 = vld [vmem:[%s15805_s2 + $0x5c0] sm:$0xf]  ;;  %v10363_v48 = vld [vmem:[%s15805_s2 + $0x5cc] sm:$0xf0] }
 0x3e8   :  { %v12382_v36 = vadd.f32 %v3117_v33, %v2815_v7  ;;  %v8322_v33 = vld [vmem:[%s15805_s2 + $0x3d8] sm:$0xf0] }
 0x3e9   :  { %2330 = vmatmul.bf16.gmra.mxu1 %v8537_v51  ;;  %2593 = vmatmul.bf16.gmra.mxu2 %v8413_v3  ;;  %v8325_v54 = vor.u32 %v10298_v25, %v8322_v33  ;;  %v8305_v25 = vor.u32 %v10296_v38, %v8304_v42  ;;  %v8320_v38 = vld [vmem:[%s15805_s2 + $0x3c8] sm:$0xf] }
 0x3ea   :  { %15961 = vst [vmem:[#allocation50_spill] sm:$0xff] %v12382_v36  ;;  %2856 = vmatmul.bf16.gmra.mxu3 %v8289_v28  ;;  %v8553_v28 = vor.u32 %v10359_v45, %v8552_v9 }
 0x3eb   :  { %v3127_v47 = vpop.f32.mrf.mxu0 }
 0x3ec   :  { %v12386_v40 = vpop.f32.mrf.mxu2 }
 0x3ed   :  { %v2817_v63 = vpop.f32.mrf.mxu3 }
 0x3ee   :  { %v2818_v56 = vadd.f32 %v2817_v63, %v2515_v49  ;;  %v12388_v5 = vpop.f32.mrf.mxu1  ;;  %v10325_v63 = vld [vmem:[%s15805_s2 + $0x4a4] sm:$0xf] }
 0x3ef   :  { %v8429_v49 = vor.u32 %v10325_v63, %v8426_v13  ;;  %v10302_v63 = vld [vmem:[%s15805_s2 + $0x3ec] sm:$0xf] }
 0x3f0   :  { %v12396_v7 = vadd.f32 %v3120_v61, %v2818_v56 }
 0x3f2   :  { %15962 = vst [vmem:[#allocation51_spill] sm:$0xff] %v12396_v7 }
 0x3f3   :  { %v3130_v24 = vpop.f32.mrf.mxu0 }
 0x3f4   :  { %v12420_v51 = vpop.f32.mrf.mxu2 }
 0x3f5   :  { %v2819_v3 = vpop.f32.mrf.mxu3 }
 0x3f6   :  { %v2820_v56 = vadd.f32 %v2819_v3, %v2517_v23  ;;  %v12422_v61 = vpop.f32.mrf.mxu1  ;;  %8788 = vmatmul.msk.bf16.gmra.mxu0 %vm1920_vm2, %v8325_v54  ;;  %v8442_v54 = vld [vmem:[%s15805_s2 + $0x4d0] sm:$0xf0]  ;;  %v10300_v23 = vld [vmem:[%s15805_s2 + $0x3d4] sm:$0xf0] }
 0x3f8   :  { %v12425_v33 = vadd.f32 %v3122_v19, %v2820_v56  ;;  %v8338_v19 = vld [vmem:[%s15805_s2 + $0x3f8] sm:$0xf0] }
 0x3f9   :  { %2335 = vmatmul.bf16.gmra.mxu1 %v8553_v28  ;;  %2598 = vmatmul.bf16.gmra.mxu2 %v8429_v49  ;;  %v8341_v42 = vor.u32 %v10302_v63, %v8338_v19  ;;  %v2522_v28 = vadd.f32 %v12107_v62, %v11720_v21  ;;  %v8321_v63 = vor.u32 %v10300_v23, %v8320_v38  ;;  %v10333_v38 = vld [vmem:[%s15805_s2 + $0x4e4] sm:$0xf]  ;;  %v8458_v23 = vld [vmem:[%s15805_s2 + $0x4f0] sm:$0xf0] }
 0x3fa   :  { %15963 = vst [vmem:[#allocation52_spill] sm:$0xff] %v12425_v33  ;;  %2861 = vmatmul.bf16.gmra.mxu3 %v8305_v25  ;;  %v8569_v25 = vor.u32 %v10363_v48, %v8568_v58  ;;  %v2525_v21 = vadd.f32 %v12118_v8, %v11752_v46  ;;  %v8584_v46 = vld [vmem:[%s15805_s2 + $0x5e0] sm:$0xf]  ;;  %v10367_v8 = vld [vmem:[%s15805_s2 + $0x5ec] sm:$0xf0] }
 0x3fb   :  { %v3132_v36 = vpop.f32.mrf.mxu0 }
 0x3fc   :  { %v12429_v0 = vpop.f32.mrf.mxu2 }
 0x3fd   :  { %v2822_v7 = vpop.f32.mrf.mxu3 }
 0x3fe   :  { %v2823_v9 = vadd.f32 %v2822_v7, %v2520_v41  ;;  %v12431_v45 = vpop.f32.mrf.mxu1  ;;  %v10329_v7 = vld [vmem:[%s15805_s2 + $0x4c4] sm:$0xf] }
 0x3ff   :  { %v8445_v41 = vor.u32 %v10329_v7, %v8442_v54  ;;  %v10306_v54 = vld [vmem:[%s15805_s2 + $0x40c] sm:$0xf] }
 0x400   :  { %v12439_v13 = vadd.f32 %v3125_v6, %v2823_v9 }
 0x402   :  { %15964 = vst [vmem:[#allocation53_spill] sm:$0xff] %v12439_v13 }
 0x403   :  { %v3135_v3 = vpop.f32.mrf.mxu0 }
 0x404   :  { %v12463_v49 = vpop.f32.mrf.mxu2 }
 0x405   :  { %v2824_v56 = vpop.f32.mrf.mxu3 }
 0x406   :  { %v2825_v9 = vadd.f32 %v2824_v56, %v2522_v28  ;;  %v12465_v6 = vpop.f32.mrf.mxu1  ;;  %8789 = vmatmul.msk.bf16.gmra.mxu0 %vm1920_vm2, %v8341_v42  ;;  %v8336_v56 = vld [vmem:[%s15805_s2 + $0x3e8] sm:$0xf] }
 0x408   :  { %v12468_v19 = vadd.f32 %v3127_v47, %v2825_v9  ;;  %v8354_v47 = vld [vmem:[%s15805_s2 + $0x418] sm:$0xf0]  ;;  %v2527_v9 = vadd.f32 %v12150_v57, %v11763_v10  ;;  %v2530_v10 = vadd.f32 %v12163_v12, %v11795_v17  ;;  %v10310_v17 = vld [vmem:[%s15805_s2 + $0x42c] sm:$0xf] }
 0x409   :  { %2340 = vmatmul.bf16.gmra.mxu1 %v8569_v25  ;;  %2603 = vmatmul.bf16.gmra.mxu2 %v8445_v41  ;;  %v8357_v28 = vor.u32 %v10306_v54, %v8354_v47  ;;  %v10304_v25 = vld [vmem:[%s15805_s2 + $0x3f4] sm:$0xf0]  ;;  %v8370_v12 = vld [vmem:[%s15805_s2 + $0x438] sm:$0xf0] }
 0x40a   :  { %15965 = vst [vmem:[#allocation54_spill] sm:$0xff] %v12468_v19  ;;  %2866 = vmatmul.bf16.gmra.mxu3 %v8321_v63  ;;  %v8337_v54 = vor.u32 %v10304_v25, %v8336_v56  ;;  %v8600_v56 = vld [vmem:[%s15805_s2 + $0x600] sm:$0xf]  ;;  %v10371_v25 = vld [vmem:[%s15805_s2 + $0x60c] sm:$0xf0] }
 0x40b   :  { %v12470_v33 = vpop.f32.mrf.mxu0 }
 0x40c   :  { %v12474_v62 = vpop.f32.mrf.mxu2 }
 0x40d   :  { %v2827_v58 = vpop.f32.mrf.mxu3 }
 0x40e   :  { %v2828_v48 = vadd.f32 %v2827_v58, %v2525_v21  ;;  %v12476_v7 = vpop.f32.mrf.mxu1  ;;  %v8585_v58 = vor.u32 %v10367_v8, %v8584_v46 }
 0x410   :  { %v12484_v42 = vadd.f32 %v3130_v24, %v2828_v48  ;;  %v8461_v48 = vor.u32 %v10333_v38, %v8458_v23  ;;  %v10421_v23 = vld [vmem:[%s15806_s3 + $0x60] sm:$0xff] }
 0x411   :  { %4233 = vmatpush.bf16.msrb.mxu2 %v10421_v23 }
 0x412   :  { %15966 = vst [vmem:[#allocation55_spill] sm:$0xff] %v12484_v42 }
 0x413   :  { %v3140_v41 = vpop.f32.mrf.mxu0 }
 0x414   :  { %v12508_v63 = vpop.f32.mrf.mxu2 }
 0x415   :  { %v2829_v21 = vpop.f32.mrf.mxu3 }
 0x416   :  { %v2830_v13 = vadd.f32 %v2829_v21, %v2527_v9  ;;  %v12510_v24 = vpop.f32.mrf.mxu1  ;;  %8790 = vmatmul.msk.bf16.gmra.mxu0 %vm1920_vm2, %v8357_v28  ;;  %v10337_v9 = vld [vmem:[%s15805_s2 + $0x504] sm:$0xf]  ;;  %v8474_v21 = vld [vmem:[%s15805_s2 + $0x510] sm:$0xf0] }
 0x418   :  { %v12513_v47 = vadd.f32 %v3132_v36, %v2830_v13  ;;  %v10429_v36 = vld [vmem:[%s15806_s3 + $0xa0] sm:$0xff] }
 0x419   :  { %2345 = vmatmul.bf16.gmra.mxu1 %v8585_v58  ;;  %2608 = vmatmul.bf16.gmra.mxu2 %v8461_v48  ;;  %v10413_v13 = vld [vmem:[%s15806_s3 + $0x20] sm:$0xff]  ;;  %v8373_v58 = vor.u32 %v10310_v17, %v8370_v12  ;;  %v8352_v48 = vld [vmem:[%s15805_s2 + $0x408] sm:$0xf] }
 0x41a   :  { %15967 = vst [vmem:[#allocation56_spill] sm:$0xff] %v12513_v47  ;;  %2871 = vmatmul.bf16.gmra.mxu3 %v8337_v54  ;;  %4190 = vmatpush.bf16.msrb.mxu1 %v10413_v13  ;;  %v10308_v54 = vld [vmem:[%s15805_s2 + $0x414] sm:$0xf0]  ;;  %v8477_v13 = vor.u32 %v10337_v9, %v8474_v21  ;;  %v10314_v21 = vld [vmem:[%s15805_s2 + $0x44c] sm:$0xf] }
 0x41b   :  { %v12515_v19 = vpop.f32.mrf.mxu0  ;;  %4276 = vmatpush.bf16.msrb.mxu3 %v10429_v36  ;;  %v8601_v36 = vor.u32 %v10371_v25, %v8600_v56  ;;  %v8353_v17 = vor.u32 %v10308_v54, %v8352_v48  ;;  %v8490_v48 = vld [vmem:[%s15805_s2 + $0x530] sm:$0xf0] }
 0x41c   :  { %v12519_v57 = vpop.f32.mrf.mxu2 }
 0x41d   :  { %v2832_v46 = vpop.f32.mrf.mxu3 }
 0x41e   :  { %v2833_v8 = vadd.f32 %v2832_v46, %v2530_v10  ;;  %v12521_v38 = vpop.f32.mrf.mxu1  ;;  %v2532_v46 = vadd.f32 %v12195_v43, %v11806_v16  ;;  %v2535_v16 = vadd.f32 %v12215_v15, %v11840_v26  ;;  %v8616_v26 = vld [vmem:[%s15805_s2 + $0x620] sm:$0xf]  ;;  %v10375_v15 = vld [vmem:[%s15805_s2 + $0x62c] sm:$0xf0] }
 0x420   :  { %v12538_v28 = vadd.f32 %v3135_v3, %v2833_v8 }
 0x422   :  { %15968 = vst [vmem:[#allocation57_spill] sm:$0xff] %v12538_v28 }
 0x423   :  { %v3145_v10 = vpop.f32.mrf.mxu0 }
 0x424   :  { %v12562_v8 = vpop.f32.mrf.mxu2 }
 0x425   :  { %v2834_v23 = vpop.f32.mrf.mxu3 }
 0x426   :  { %v2835_v42 = vadd.f32 %v2834_v23, %v2532_v46  ;;  %v12564_v3 = vpop.f32.mrf.mxu1  ;;  %8791 = vmatmul.msk.bf16.gmra.mxu0 %vm1920_vm2, %v8373_v58  ;;  %v10341_v58 = vld [vmem:[%s15805_s2 + $0x524] sm:$0xf]  ;;  %v8368_v46 = vld [vmem:[%s15805_s2 + $0x428] sm:$0xf]  ;;  %v10312_v23 = vld [vmem:[%s15805_s2 + $0x434] sm:$0xf0] }
 0x428   :  { %v12568_v12 = vadd.f32 %v12470_v33, %v2835_v42  ;;  %v8386_v33 = vld [vmem:[%s15805_s2 + $0x458] sm:$0xf0] }
 0x429   :  { %2350 = vmatmul.bf16.gmra.mxu1 %v8601_v36  ;;  %2613 = vmatmul.bf16.gmra.mxu2 %v8477_v13  ;;  %v8389_v54 = vor.u32 %v10314_v21, %v8386_v33  ;;  %v2537_v13 = vadd.f32 %v12247_v39, %v11851_v1  ;;  %v8369_v21 = vor.u32 %v10312_v23, %v8368_v46  ;;  %v8506_v46 = vld [vmem:[%s15805_s2 + $0x550] sm:$0xf0] }
 0x42a   :  { %15969 = vst [vmem:[#allocation58_spill] sm:$0xff] %v12568_v12  ;;  %2876 = vmatmul.bf16.gmra.mxu3 %v8353_v17  ;;  %v2540_v1 = vadd.f32 %v12259_v35, %v11891_v52  ;;  %v8632_v52 = vld [vmem:[%s15805_s2 + $0x640] sm:$0xf]  ;;  %v10379_v35 = vld [vmem:[%s15805_s2 + $0x64c] sm:$0xf0] }
 0x42b   :  { %v3147_v47 = vpop.f32.mrf.mxu0 }
 0x42c   :  { %v12572_v43 = vpop.f32.mrf.mxu2 }
 0x42d   :  { %v2837_v56 = vpop.f32.mrf.mxu3 }
 0x42e   :  { %v2838_v25 = vadd.f32 %v2837_v56, %v2535_v16  ;;  %v12574_v9 = vpop.f32.mrf.mxu1  ;;  %v8617_v56 = vor.u32 %v10375_v15, %v8616_v26 }
 0x430   :  { %v12582_v42 = vadd.f32 %v3140_v41, %v2838_v25  ;;  %v8493_v25 = vor.u32 %v10341_v58, %v8490_v48  ;;  %v10318_v48 = vld [vmem:[%s15805_s2 + $0x46c] sm:$0xf] }
 0x432   :  { %15970 = vst [vmem:[#allocation59_spill] sm:$0xff] %v12582_v42 }
 0x433   :  { %v3150_v36 = vpop.f32.mrf.mxu0 }
 0x434   :  { %v12606_v17 = vpop.f32.mrf.mxu2 }
 0x435   :  { %v2839_v16 = vpop.f32.mrf.mxu3 }
 0x436   :  { %v2840_v28 = vadd.f32 %v2839_v16, %v2537_v13  ;;  %v12608_v41 = vpop.f32.mrf.mxu1  ;;  %8792 = vmatmul.msk.bf16.gmra.mxu0 %vm1920_vm2, %v8389_v54  ;;  %v10345_v54 = vld [vmem:[%s15805_s2 + $0x544] sm:$0xf]  ;;  %v8384_v13 = vld [vmem:[%s15805_s2 + $0x448] sm:$0xf]  ;;  %v10316_v16 = vld [vmem:[%s15805_s2 + $0x454] sm:$0xf0] }
 0x438   :  { %v12612_v33 = vadd.f32 %v12515_v19, %v2840_v28  ;;  %v8402_v19 = vld [vmem:[%s15805_s2 + $0x478] sm:$0xf0] }
 0x439   :  { %2355 = vmatmul.bf16.gmra.mxu1 %v8617_v56  ;;  %2618 = vmatmul.bf16.gmra.mxu2 %v8493_v25  ;;  %v8405_v23 = vor.u32 %v10318_v48, %v8402_v19  ;;  %v2542_v25 = vadd.f32 %v12291_v37, %v11904_v59  ;;  %v8385_v48 = vor.u32 %v10316_v16, %v8384_v13  ;;  %v10320_v13 = vld [vmem:[%s15805_s2 + $0x474] sm:$0xf0] }
 0x43a   :  { %15971 = vst [vmem:[#allocation60_spill] sm:$0xff] %v12612_v33  ;;  %2881 = vmatmul.bf16.gmra.mxu3 %v8369_v21  ;;  %v2545_v59 = vadd.f32 %v12302_v31, %v11938_v11  ;;  %v8648_v11 = vld [vmem:[%s15805_s2 + $0x660] sm:$0xf]  ;;  %v10383_v31 = vld [vmem:[%s15805_s2 + $0x66c] sm:$0xf0] }
 0x43b   :  { %v3152_v12 = vpop.f32.mrf.mxu0 }
 0x43c   :  { %v12616_v39 = vpop.f32.mrf.mxu2 }
 0x43d   :  { %v2842_v26 = vpop.f32.mrf.mxu3 }
 0x43e   :  { %v2843_v15 = vadd.f32 %v2842_v26, %v2540_v1  ;;  %v12618_v58 = vpop.f32.mrf.mxu1  ;;  %v8633_v26 = vor.u32 %v10379_v35, %v8632_v52 }
 0x440   :  { %v12626_v28 = vadd.f32 %v3145_v10, %v2843_v15  ;;  %v8509_v15 = vor.u32 %v10345_v54, %v8506_v46  ;;  %v10322_v54 = vld [vmem:[%s15805_s2 + $0x48c] sm:$0xf]  ;;  %v8522_v46 = vld [vmem:[%s15805_s2 + $0x570] sm:$0xf0] }
 0x442   :  { %15972 = vst [vmem:[#allocation61_spill] sm:$0xff] %v12626_v28 }
 0x443   :  { %v3155_v56 = vpop.f32.mrf.mxu0 }
 0x444   :  { %v12650_v21 = vpop.f32.mrf.mxu2 }
 0x445   :  { %v2844_v1 = vpop.f32.mrf.mxu3 }
 0x446   :  { %v2845_v42 = vadd.f32 %v2844_v1, %v2542_v25  ;;  %v12652_v10 = vpop.f32.mrf.mxu1  ;;  %8793 = vmatmul.msk.bf16.gmra.mxu0 %vm1920_vm2, %v8405_v23  ;;  %v2547_v25 = vadd.f32 %v12334_v18, %v11948_v55  ;;  %v2550_v18 = vadd.f32 %v12345_v60, %v11982_v44  ;;  %v8664_v44 = vld [vmem:[%s15805_s2 + $0x680] sm:$0xf]  ;;  %v10387_v60 = vld [vmem:[%s15805_s2 + $0x68c] sm:$0xf0] }
 0x448   :  { %v12655_v19 = vadd.f32 %v3147_v47, %v2845_v42  ;;  %v8418_v47 = vld [vmem:[%s15805_s2 + $0x498] sm:$0xf0] }
 0x449   :  { %2360 = vmatmul.bf16.gmra.mxu1 %v8633_v26  ;;  %2623 = vmatmul.bf16.gmra.mxu2 %v8509_v15  ;;  %v8421_v23 = vor.u32 %v10322_v54, %v8418_v47  ;;  %v8649_v15 = vor.u32 %v10383_v31, %v8648_v11 }
 0x44a   :  { %15973 = vst [vmem:[#allocation62_spill] sm:$0xff] %v12655_v19  ;;  %2886 = vmatmul.bf16.gmra.mxu3 %v8385_v48 }
 0x44b   :  { %v3157_v33 = vpop.f32.mrf.mxu0 }
 0x44c   :  { %v12659_v37 = vpop.f32.mrf.mxu2 }
 0x44d   :  { %v2847_v28 = vpop.f32.mrf.mxu3 }
 0x44e   :  { %v2848_v52 = vadd.f32 %v2847_v28, %v2545_v59  ;;  %v12661_v35 = vpop.f32.mrf.mxu1  ;;  %v10349_v28 = vld [vmem:[%s15805_s2 + $0x564] sm:$0xf] }
 0x44f   :  { %v8525_v48 = vor.u32 %v10349_v28, %v8522_v46 }
 0x450   :  { %v12669_v42 = vadd.f32 %v3150_v36, %v2848_v52  ;;  %v8400_v36 = vld [vmem:[%s15805_s2 + $0x468] sm:$0xf] }
 0x451   :  { %v8401_v54 = vor.u32 %v10320_v13, %v8400_v36  ;;  %v10353_v13 = vld [vmem:[%s15805_s2 + $0x584] sm:$0xf] }
 0x452   :  { %15974 = vst [vmem:[#allocation63_spill] sm:$0xff] %v12669_v42 }
 0x453   :  { %v3160_v16 = vpop.f32.mrf.mxu0 }
 0x454   :  { %v12691_v1 = vpop.f32.mrf.mxu2 }
 0x455   :  { %v2849_v26 = vpop.f32.mrf.mxu3 }
 0x456   :  { %v2850_v59 = vadd.f32 %v2849_v26, %v2547_v25  ;;  %v12693_v52 = vpop.f32.mrf.mxu1  ;;  %8794 = vmatmul.msk.bf16.gmra.mxu0 %vm1920_vm2, %v8421_v23  ;;  %v8434_v23 = vld [vmem:[%s15805_s2 + $0x4b8] sm:$0xf0]  ;;  %v8538_v25 = vld [vmem:[%s15805_s2 + $0x590] sm:$0xf0] }
 0x458   :  { %v12696_v47 = vadd.f32 %v3152_v12, %v2850_v59  ;;  %v10326_v12 = vld [vmem:[%s15805_s2 + $0x4ac] sm:$0xf]  ;;  %v2552_v59 = vadd.f32 %v12377_v20, %v11991_v30  ;;  %v2555_v20 = vadd.f32 %v12386_v40, %v12025_v4  ;;  %v8680_v4 = vld [vmem:[%s15805_s2 + $0x6a0] sm:$0xf]  ;;  %v10391_v40 = vld [vmem:[%s15805_s2 + $0x6ac] sm:$0xf0] }
 0x459   :  { %2365 = vmatmul.bf16.gmra.mxu1 %v8649_v15  ;;  %2628 = vmatmul.bf16.gmra.mxu2 %v8525_v48  ;;  %v8437_v26 = vor.u32 %v10326_v12, %v8434_v23  ;;  %v10324_v15 = vld [vmem:[%s15805_s2 + $0x494] sm:$0xf0] }
 0x45a   :  { %15975 = vst [vmem:[#allocation64_spill] sm:$0xff] %v12696_v47  ;;  %2891 = vmatmul.bf16.gmra.mxu3 %v8401_v54 }
 0x45b   :  { %v3162_v55 = vpop.f32.mrf.mxu0 }
 0x45c   :  { %v12702_v11 = vpop.f32.mrf.mxu2 }
 0x45d   :  { %v2852_v31 = vpop.f32.mrf.mxu3 }
 0x45e   :  { %v2853_v28 = vadd.f32 %v2852_v31, %v2550_v18  ;;  %v12704_v46 = vpop.f32.mrf.mxu1  ;;  %v8665_v31 = vor.u32 %v10387_v60, %v8664_v44 }
 0x460   :  { %v12712_v36 = vadd.f32 %v3155_v56, %v2853_v28  ;;  %v8416_v56 = vld [vmem:[%s15805_s2 + $0x488] sm:$0xf]  ;;  %v8541_v28 = vor.u32 %v10353_v13, %v8538_v25 }
 0x461   :  { %v8417_v12 = vor.u32 %v10324_v15, %v8416_v56  ;;  %v10357_v56 = vld [vmem:[%s15805_s2 + $0x5a4] sm:$0xf]  ;;  %v8554_v15 = vld [vmem:[%s15805_s2 + $0x5b0] sm:$0xf0] }
 0x462   :  { %15976 = vst [vmem:[#allocation65_spill] sm:$0xff] %v12712_v36 }
 0x463   :  { %v3165_v48 = vpop.f32.mrf.mxu0 }
 0x464   :  { %v12734_v54 = vpop.f32.mrf.mxu2 }
 0x465   :  { %v2854_v18 = vpop.f32.mrf.mxu3 }
 0x466   :  { %v2855_v19 = vadd.f32 %v2854_v18, %v2552_v59  ;;  %v12736_v42 = vpop.f32.mrf.mxu1  ;;  %8795 = vmatmul.msk.bf16.gmra.mxu0 %vm1920_vm2, %v8437_v26  ;;  %v10328_v18 = vld [vmem:[%s15805_s2 + $0x4b4] sm:$0xf0] }
 0x468   :  { %v12739_v23 = vadd.f32 %v3157_v33, %v2855_v19  ;;  %v10330_v33 = vld [vmem:[%s15805_s2 + $0x4cc] sm:$0xf]  ;;  %v8450_v19 = vld [vmem:[%s15805_s2 + $0x4d8] sm:$0xf0] }
 0x469   :  { %2370 = vmatmul.bf16.gmra.mxu1 %v8665_v31  ;;  %2633 = vmatmul.bf16.gmra.mxu2 %v8541_v28  ;;  %v8453_v59 = vor.u32 %v10330_v33, %v8450_v19  ;;  %v2557_v28 = vadd.f32 %v12420_v51, %v12034_v2  ;;  %v2560_v51 = vadd.f32 %v12429_v0, %v12068_v22  ;;  %v8696_v22 = vld [vmem:[%s15805_s2 + $0x6c0] sm:$0xf]  ;;  %v10395_v0 = vld [vmem:[%s15805_s2 + $0x6cc] sm:$0xf0] }
 0x46a   :  { %15977 = vst [vmem:[#allocation66_spill] sm:$0xff] %v12739_v23  ;;  %2896 = vmatmul.bf16.gmra.mxu3 %v8417_v12 }
 0x46b   :  { %v3167_v30 = vpop.f32.mrf.mxu0 }
 0x46c   :  { %v12745_v44 = vpop.f32.mrf.mxu2 }
 0x46d   :  { %v2857_v60 = vpop.f32.mrf.mxu3 }
 0x46e   :  { %v2858_v13 = vadd.f32 %v2857_v60, %v2555_v20  ;;  %v12747_v25 = vpop.f32.mrf.mxu1  ;;  %v8681_v60 = vor.u32 %v10391_v40, %v8680_v4 }
 0x470   :  { %v12755_v26 = vadd.f32 %v3160_v16, %v2858_v13  ;;  %v8432_v16 = vld [vmem:[%s15805_s2 + $0x4a8] sm:$0xf]  ;;  %v8557_v13 = vor.u32 %v10357_v56, %v8554_v15 }
 0x471   :  { %v8433_v33 = vor.u32 %v10328_v18, %v8432_v16  ;;  %v10361_v16 = vld [vmem:[%s15805_s2 + $0x5c4] sm:$0xf]  ;;  %v8570_v18 = vld [vmem:[%s15805_s2 + $0x5d0] sm:$0xf0] }
 0x472   :  { %15978 = vst [vmem:[#allocation67_spill] sm:$0xff] %v12755_v26  ;;  %v8573_v23 = vor.u32 %v10361_v16, %v8570_v18 }
 0x473   :  { %v3170_v31 = vpop.f32.mrf.mxu0 }
 0x474   :  { %v12777_v12 = vpop.f32.mrf.mxu2 }
 0x475   :  { %v2859_v20 = vpop.f32.mrf.mxu3 }
 0x476   :  { %v2860_v47 = vadd.f32 %v2859_v20, %v2557_v28  ;;  %v12779_v36 = vpop.f32.mrf.mxu1  ;;  %8796 = vmatmul.msk.bf16.gmra.mxu0 %vm1920_vm2, %v8453_v59  ;;  %v10332_v20 = vld [vmem:[%s15805_s2 + $0x4d4] sm:$0xf0] }
 0x478   :  { %v12782_v19 = vadd.f32 %v3162_v55, %v2860_v47  ;;  %v10334_v47 = vld [vmem:[%s15805_s2 + $0x4ec] sm:$0xf]  ;;  %v8466_v55 = vld [vmem:[%s15805_s2 + $0x4f8] sm:$0xf0] }
 0x479   :  { %2375 = vmatmul.bf16.gmra.mxu1 %v8681_v60  ;;  %2638 = vmatmul.bf16.gmra.mxu2 %v8557_v13  ;;  %v8469_v28 = vor.u32 %v10334_v47, %v8466_v55  ;;  %v15982_v13 = vld [vmem:[#allocation37_spill] sm:$0xff] }
 0x47a   :  { %15979 = vst [vmem:[#allocation68_spill] sm:$0xff] %v12782_v19  ;;  %2901 = vmatmul.bf16.gmra.mxu3 %v8433_v33  ;;  %v2562_v33 = vadd.f32 %v12463_v49, %v15982_v13  ;;  %v8586_v13 = vld [vmem:[%s15805_s2 + $0x5f0] sm:$0xf0] }
 0x47b   :  { %v12786_v2 = vpop.f32.mrf.mxu0 }
 0x47c   :  { %v12790_v4 = vpop.f32.mrf.mxu2 }
 0x47d   :  { %v2862_v40 = vpop.f32.mrf.mxu3 }
 0x47e   :  { %v2863_v56 = vadd.f32 %v2862_v40, %v2560_v51  ;;  %v12792_v15 = vpop.f32.mrf.mxu1 }
 0x47f   :  { %15980 = vst [vmem:[#allocation69_spill] sm:$0xff] %v12792_v15 }
 0x480   :  { %v12800_v59 = vadd.f32 %v3165_v48, %v2863_v56  ;;  %v8448_v48 = vld [vmem:[%s15805_s2 + $0x4c8] sm:$0xf]  ;;  %v8697_v56 = vor.u32 %v10395_v0, %v8696_v22  ;;  %v2565_v22 = vadd.f32 %v12474_v62, %v12109_v50  ;;  %v8712_v62 = vld [vmem:[%s15805_s2 + $0x6e0] sm:$0xf] }
 0x481   :  { %v8449_v47 = vor.u32 %v10332_v20, %v8448_v48  ;;  %v10365_v20 = vld [vmem:[%s15805_s2 + $0x5e4] sm:$0xf] }
 0x482   :  { %15981 = vst [vmem:[#allocation70_spill] sm:$0xff] %v12800_v59  ;;  %v8589_v15 = vor.u32 %v10365_v20, %v8586_v13  ;;  %v15988_v20 = vld [vmem:[#allocation5_spill] sm:$0xff] }
 0x483   :  { %v3175_v60 = vpop.f32.mrf.mxu0  ;;  %v2570_v13 = vadd.f32 %v12519_v57, %v15988_v20  ;;  %v8728_v57 = vld [vmem:[%s15805_s2 + $0x700] sm:$0xf]  ;;  %v15991_v20 = vld [vmem:[#allocation6_spill] sm:$0xff] }
 0x484   :  { %v12822_v51 = vpop.f32.mrf.mxu2 }
 0x485   :  { %v2864_v40 = vpop.f32.mrf.mxu3 }
 0x486   :  { %v2865_v26 = vadd.f32 %v2864_v40, %v2562_v33  ;;  %v12824_v19 = vpop.f32.mrf.mxu1  ;;  %8797 = vmatmul.msk.bf16.gmra.mxu0 %vm1920_vm2, %v8469_v28  ;;  %v10399_v28 = vld [vmem:[%s15805_s2 + $0x6ec] sm:$0xf0]  ;;  %v10336_v40 = vld [vmem:[%s15805_s2 + $0x4f4] sm:$0xf0] }
 0x488   :  { %v12827_v55 = vadd.f32 %v3167_v30, %v2865_v26  ;;  %v10420_v30 = vld [vmem:[%s15806_s3 + $0x58] sm:$0xff] }
 0x489   :  { %2380 = vmatmul.bf16.gmra.mxu1 %v8697_v56  ;;  %2643 = vmatmul.bf16.gmra.mxu2 %v8573_v23  ;;  %v10338_v23 = vld [vmem:[%s15805_s2 + $0x50c] sm:$0xf]  ;;  %v8482_v26 = vld [vmem:[%s15805_s2 + $0x518] sm:$0xf0] }
 0x48a   :  { %15983 = vst [vmem:[#allocation37_spill] sm:$0xff] %v12827_v55  ;;  %2906 = vmatmul.bf16.gmra.mxu3 %v8449_v47  ;;  %4234 = vmatpush.bf16.msrb.mxu2 %v10420_v30  ;;  %v8485_v33 = vor.u32 %v10338_v23, %v8482_v26  ;;  %v15986_v47 = vld [vmem:[#allocation4_spill] sm:$0xff]  ;;  %v8713_v30 = vor.u32 %v10399_v28, %v8712_v62  ;;  %v10428_v26 = vld [vmem:[%s15806_s3 + $0x98] sm:$0xff] }
 0x48b   :  { %v12831_v49 = vpop.f32.mrf.mxu0  ;;  %4277 = vmatpush.bf16.msrb.mxu3 %v10428_v26 }
 0x48c   :  { %v12835_v0 = vpop.f32.mrf.mxu2 }
 0x48d   :  { %v2867_v16 = vpop.f32.mrf.mxu3 }
 0x48e   :  { %v2868_v18 = vadd.f32 %v2867_v16, %v2565_v22  ;;  %v12837_v48 = vpop.f32.mrf.mxu1  ;;  %v2567_v22 = vadd.f32 %v12508_v63, %v15986_v47 }
 0x48f   :  { %15984 = vst [vmem:[#allocation71_spill] sm:$0xff] %v12837_v48  ;;  %v10412_v48 = vld [vmem:[%s15806_s3 + $0x18] sm:$0xff] }
 0x490   :  { %v12848_v50 = vadd.f32 %v3170_v31, %v2868_v18  ;;  %v8464_v31 = vld [vmem:[%s15805_s2 + $0x4e8] sm:$0xf]  ;;  %4191 = vmatpush.bf16.msrb.mxu1 %v10412_v48  ;;  %v10403_v48 = vld [vmem:[%s15805_s2 + $0x70c] sm:$0xf0] }
 0x491   :  { %v8465_v23 = vor.u32 %v10336_v40, %v8464_v31  ;;  %v8729_v62 = vor.u32 %v10403_v48, %v8728_v57  ;;  %v2575_v57 = vadd.f32 %v12572_v43, %v12197_v32  ;;  %v8514_v32 = vld [vmem:[%s15805_s2 + $0x558] sm:$0xf0] }
 0x492   :  { %15985 = vst [vmem:[#allocation72_spill] sm:$0xff] %v12848_v50 }
 0x493   :  { %v3180_v56 = vpop.f32.mrf.mxu0 }
 0x494   :  { %v12870_v16 = vpop.f32.mrf.mxu2 }
 0x495   :  { %v2869_v18 = vpop.f32.mrf.mxu3 }
 0x496   :  { %v2870_v59 = vadd.f32 %v2869_v18, %v2567_v22  ;;  %v12872_v55 = vpop.f32.mrf.mxu1  ;;  %8798 = vmatmul.msk.bf16.gmra.mxu0 %vm1920_vm2, %v8485_v33  ;;  %v10369_v22 = vld [vmem:[%s15805_s2 + $0x604] sm:$0xf]  ;;  %v8602_v18 = vld [vmem:[%s15805_s2 + $0x610] sm:$0xf0] }
 0x497   :  { %v8605_v50 = vor.u32 %v10369_v22, %v8602_v18  ;;  %v10411_v18 = vld [vmem:[%s15806_s3 + $0x10] sm:$0xff] }
 0x498   :  { %v12882_v63 = vadd.f32 %v12786_v2, %v2870_v59  ;;  %v10342_v2 = vld [vmem:[%s15805_s2 + $0x52c] sm:$0xf]  ;;  %4192 = vmatpush.bf16.msrb.mxu1 %v10411_v18 }
 0x499   :  { %2385 = vmatmul.bf16.gmra.mxu1 %v8713_v30  ;;  %2648 = vmatmul.bf16.gmra.mxu2 %v8589_v15  ;;  %v8498_v15 = vld [vmem:[%s15805_s2 + $0x538] sm:$0xf0] }
 0x49a   :  { %15987 = vst [vmem:[#allocation4_spill] sm:$0xff] %v12882_v63  ;;  %2911 = vmatmul.bf16.gmra.mxu3 %v8465_v23  ;;  %v8501_v30 = vor.u32 %v10342_v2, %v8498_v15  ;;  %v10340_v23 = vld [vmem:[%s15805_s2 + $0x514] sm:$0xf0] }
 0x49b   :  { %v12886_v28 = vpop.f32.mrf.mxu0 }
 0x49c   :  { %v12890_v31 = vpop.f32.mrf.mxu2 }
 0x49d   :  { %v2872_v40 = vpop.f32.mrf.mxu3 }
 0x49e   :  { %v2873_v33 = vadd.f32 %v2872_v40, %v2570_v13  ;;  %v12892_v47 = vpop.f32.mrf.mxu1  ;;  %v2572_v13 = vadd.f32 %v12562_v8, %v15991_v20 }
 0x49f   :  { %15989 = vst [vmem:[#allocation5_spill] sm:$0xff] %v12892_v47 }
 0x4a0   :  { %v12900_v59 = vadd.f32 %v3175_v60, %v2873_v33  ;;  %v8480_v60 = vld [vmem:[%s15805_s2 + $0x508] sm:$0xf] }
 0x4a1   :  { %v8481_v2 = vor.u32 %v10340_v23, %v8480_v60  ;;  %v10407_v60 = vld [vmem:[%s15805_s2 + $0x72c] sm:$0xf0]  ;;  %v10373_v23 = vld [vmem:[%s15805_s2 + $0x624] sm:$0xf] }
 0x4a2   :  { %15990 = vst [vmem:[#allocation73_spill] sm:$0xff] %v12900_v59 }
 0x4a3   :  { %v3185_v26 = vpop.f32.mrf.mxu0 }
 0x4a4   :  { %v12922_v40 = vpop.f32.mrf.mxu2 }
 0x4a5   :  { %v2874_v33 = vpop.f32.mrf.mxu3 }
 0x4a6   :  { %v2875_v63 = vadd.f32 %v2874_v33, %v2572_v13  ;;  %v12924_v47 = vpop.f32.mrf.mxu1  ;;  %8799 = vmatmul.msk.bf16.gmra.mxu0 %vm1920_vm2, %v8501_v30  ;;  %v8744_v30 = vld [vmem:[%s15805_s2 + $0x720] sm:$0xf]  ;;  %v8618_v13 = vld [vmem:[%s15805_s2 + $0x630] sm:$0xf0] }
 0x4a7   :  { %v8621_v59 = vor.u32 %v10373_v23, %v8618_v13 }
 0x4a8   :  { %v12928_v15 = vadd.f32 %v12831_v49, %v2875_v63 }
 0x4a9   :  { %2390 = vmatmul.bf16.gmra.mxu1 %v8729_v62  ;;  %2653 = vmatmul.bf16.gmra.mxu2 %v8605_v50  ;;  %v10410_v50 = vld [vmem:[%s15806_s3 + $0x8] sm:$0xff] }
 0x4aa   :  { %15992 = vst [vmem:[#allocation6_spill] sm:$0xff] %v12928_v15  ;;  %2916 = vmatmul.bf16.gmra.mxu3 %v8481_v2  ;;  %v10346_v62 = vld [vmem:[%s15805_s2 + $0x54c] sm:$0xf]  ;;  %v10344_v2 = vld [vmem:[%s15805_s2 + $0x534] sm:$0xf0]  ;;  %4193 = vmatpush.bf16.msrb.mxu1 %v10410_v50 }
 0x4ab   :  { %v12932_v20 = vpop.f32.mrf.mxu0  ;;  %v8517_v33 = vor.u32 %v10346_v62, %v8514_v32  ;;  %v10409_v62 = vld [vmem:[%s15806_s3] sm:$0xff] }
 0x4ac   :  { %v12936_v48 = vpop.f32.mrf.mxu2 }
 0x4ad   :  { %v2877_v22 = vpop.f32.mrf.mxu3 }
 0x4ae   :  { %v2878_v49 = vadd.f32 %v2877_v22, %v2575_v57  ;;  %v12941_v63 = vpop.f32.mrf.mxu1  ;;  %v15995_v22 = vld [vmem:[#allocation8_spill] sm:$0xff]  ;;  %4194 = vmatpush.bf16.msrb.mxu1 %v10409_v62 }
 0x4af   :  { %15993 = vst [vmem:[#allocation74_spill] sm:$0xff] %v12941_v63  ;;  %v2577_v18 = vadd.f32 %v12606_v17, %v15995_v22  ;;  %v8512_v22 = vld [vmem:[%s15805_s2 + $0x548] sm:$0xf] }
 0x4b0   :  { %v12952_v43 = vadd.f32 %v3180_v56, %v2878_v49  ;;  %v8496_v56 = vld [vmem:[%s15805_s2 + $0x528] sm:$0xf] }
 0x4b1   :  { %v8497_v63 = vor.u32 %v10344_v2, %v8496_v56  ;;  %v16000_v62 = vld [vmem:[#allocation44_spill] sm:$0xff] }
 0x4b2   :  { %15994 = vst [vmem:[#allocation75_spill] sm:$0xff] %v12952_v43  ;;  %v8745_v43 = vor.u32 %v10407_v60, %v8744_v30  ;;  %v2580_v30 = vadd.f32 %v12616_v39, %v12249_v27 }
 0x4b3   :  { %v3190_v57 = vpop.f32.mrf.mxu0 }
 0x4b4   :  { %v12974_v49 = vpop.f32.mrf.mxu2 }
 0x4b5   :  { %v2879_v8 = vpop.f32.mrf.mxu3 }
 0x4b6   :  { %v2880_v32 = vadd.f32 %v2879_v8, %v2577_v18  ;;  %v12979_v15 = vpop.f32.mrf.mxu1  ;;  %8800 = vmatmul.msk.bf16.gmra.mxu0 %vm1920_vm2, %v8517_v33  ;;  %v12994_v33 = vld [vmem:[%s15805_s2 + $0x740] sm:$0xff] }
 0x4b7   :  { %15996 = vst [vmem:[#allocation8_spill] sm:$0xff] %v12979_v15  ;;  %v1503_v39 = vunpack.c.l.b16 %v12994_v33 }
 0x4b8   :  { %v12983_v50 = vadd.f32 %v12886_v28, %v2880_v32  ;;  %v10350_v28 = vld [vmem:[%s15805_s2 + $0x56c] sm:$0xf]  ;;  %v2582_v32 = vadd.f32 %v12650_v21, %v16000_v62  ;;  %v2585_v21 = vadd.f32 %v12659_v37, %v12293_v34  ;;  %v10381_v34 = vld [vmem:[%s15805_s2 + $0x664] sm:$0xf]  ;;  %v8650_v37 = vld [vmem:[%s15805_s2 + $0x670] sm:$0xf0] }
 0x4b9   :  { %2395 = vmatmul.bf16.gmra.mxu1 %v8745_v43  ;;  %2658 = vmatmul.bf16.gmra.mxu2 %v8621_v59  ;;  %v8530_v59 = vld [vmem:[%s15805_s2 + $0x578] sm:$0xf0]  ;;  %v8634_v43 = vld [vmem:[%s15805_s2 + $0x650] sm:$0xf0] }
 0x4ba   :  { %15997 = vst [vmem:[#allocation76_spill] sm:$0xff] %v12983_v50  ;;  %2921 = vmatmul.bf16.gmra.mxu3 %v8497_v63  ;;  %v10377_v63 = vld [vmem:[%s15805_s2 + $0x644] sm:$0xf]  ;;  %v8533_v2 = vor.u32 %v10350_v28, %v8530_v59 }
 0x4bb   :  { %v3192_v17 = vpop.f32.mrf.mxu0 }
 0x4bc   :  { %v12987_v60 = vpop.f32.mrf.mxu2 }
 0x4bd   :  { %v2882_v23 = vpop.f32.mrf.mxu3 }
 0x4be   :  { %v2883_v8 = vadd.f32 %v2882_v23, %v2580_v30  ;;  %v12989_v13 = vpop.f32.mrf.mxu1 }
 0x4bf   :  { %15998 = vst [vmem:[#allocation77_spill] sm:$0xff] %v12989_v13  ;;  %v8637_v13 = vor.u32 %v10377_v63, %v8634_v43 }
 0x4c0   :  { %v13002_v27 = vadd.f32 %v3185_v26, %v2883_v8  ;;  %v10348_v26 = vld [vmem:[%s15805_s2 + $0x554] sm:$0xf0]  ;;  %v1739_v8 = vpack.c.b16 %v1503_v39, %v1503_v39 }
 0x4c1   :  { %v8513_v28 = vor.u32 %v10348_v26, %v8512_v22  ;;  %v8528_v26 = vld [vmem:[%s15805_s2 + $0x568] sm:$0xf] }
 0x4c2   :  { %15999 = vst [vmem:[#allocation78_spill] sm:$0xff] %v13002_v27 }
 0x4c3   :  { %v3195_v18 = vpop.f32.mrf.mxu0 }
 0x4c4   :  { %v13021_v30 = vpop.f32.mrf.mxu2 }
 0x4c5   :  { %v2884_v23 = vpop.f32.mrf.mxu3 }
 0x4c6   :  { %v2885_v15 = vadd.f32 %v2884_v23, %v2582_v32  ;;  %v13023_v56 = vpop.f32.mrf.mxu1  ;;  %8801 = vmatmul.msk.bf16.gmra.mxu0 %vm1920_vm2, %v8533_v2  ;;  %v10354_v2 = vld [vmem:[%s15805_s2 + $0x58c] sm:$0xf]  ;;  %v16004_v23 = vld [vmem:[#allocation47_spill] sm:$0xff] }
 0x4c8   :  { %v13027_v59 = vadd.f32 %v12932_v20, %v2885_v15  ;;  %v8546_v15 = vld [vmem:[%s15805_s2 + $0x598] sm:$0xf0] }
 0x4c9   :  { %2400 = vmatmul.bf16.gmra.mxu1 %v1739_v8  ;;  %2663 = vmatmul.bf16.gmra.mxu2 %v8637_v13  ;;  %v8549_v22 = vor.u32 %v10354_v2, %v8546_v15  ;;  %v2587_v8 = vadd.f32 %v12691_v1, %v16004_v23  ;;  %v16006_v13 = vld [vmem:[#allocation11_spill] sm:$0xff]  ;;  %v2590_v1 = vadd.f32 %v12702_v11, %v12336_v53  ;;  %v10385_v53 = vld [vmem:[%s15805_s2 + $0x684] sm:$0xf]  ;;  %v8666_v11 = vld [vmem:[%s15805_s2 + $0x690] sm:$0xf0] }
 0x4ca   :  { %16001 = vst [vmem:[#allocation44_spill] sm:$0xff] %v13027_v59  ;;  %2926 = vmatmul.bf16.gmra.mxu3 %v8513_v28  ;;  %v16007_v59 = vld [vmem:[#allocation10_spill] sm:$0xff] }
 0x4cb   :  { %v3197_v50 = vpop.f32.mrf.mxu0 }
 0x4cc   :  { %v13031_v62 = vpop.f32.mrf.mxu2 }
 0x4cd   :  { %v2887_v39 = vpop.f32.mrf.mxu3 }
 0x4ce   :  { %v2888_v63 = vadd.f32 %v2887_v39, %v2585_v21  ;;  %v13033_v43 = vpop.f32.mrf.mxu1  ;;  %v8653_v39 = vor.u32 %v10381_v34, %v8650_v37 }
 0x4cf   :  { %16002 = vst [vmem:[#allocation79_spill] sm:$0xff] %v13033_v43 }
 0x4d0   :  { %v13041_v20 = vadd.f32 %v3190_v57, %v2888_v63  ;;  %v10352_v57 = vld [vmem:[%s15805_s2 + $0x574] sm:$0xf0] }
 0x4d1   :  { %v8529_v2 = vor.u32 %v10352_v57, %v8528_v26  ;;  %v8544_v26 = vld [vmem:[%s15805_s2 + $0x588] sm:$0xf] }
 0x4d2   :  { %16003 = vst [vmem:[#allocation80_spill] sm:$0xff] %v13041_v20  ;;  %v16008_v20 = vpack.c.bf16 %v16006_v13, %v16007_v59  ;;  %v8562_v59 = vld [vmem:[%s15805_s2 + $0x5b8] sm:$0xf0]  ;;  %v16012_v13 = vld [vmem:[#allocation12_spill] sm:$0xff] }
 0x4d3   :  { %v3200_v32 = vpop.f32.mrf.mxu0 }
 0x4d4   :  { %v13059_v28 = vpop.f32.mrf.mxu2 }
 0x4d5   :  { %v2889_v21 = vpop.f32.mrf.mxu3 }
 0x4d6   :  { %v2890_v63 = vadd.f32 %v2889_v21, %v2587_v8  ;;  %v13061_v27 = vpop.f32.mrf.mxu1  ;;  %8802 = vmatmul.msk.bf16.gmra.mxu0 %vm1920_vm2, %v8549_v22  ;;  %v2592_v21 = vadd.f32 %v12734_v54, %v12347_v14  ;;  %v2595_v14 = vadd.f32 %v12745_v44, %v12379_v29  ;;  %v10389_v29 = vld [vmem:[%s15805_s2 + $0x6a4] sm:$0xf]  ;;  %v8682_v44 = vld [vmem:[%s15805_s2 + $0x6b0] sm:$0xf0] }
 0x4d8   :  { %v13064_v15 = vadd.f32 %v3192_v17, %v2890_v63  ;;  %v10358_v17 = vld [vmem:[%s15805_s2 + $0x5ac] sm:$0xf] }
 0x4d9   :  { %2668 = vmatmul.bf16.gmra.mxu2 %v8653_v39  ;;  %4195 = vmatmul.bf16.vlgmr.msrb.gmra.mxu1 %v16008_v20  ;;  %v8565_v22 = vor.u32 %v10358_v17, %v8562_v59  ;;  %v16011_v59 = vld [vmem:[#allocation13_spill] sm:$0xff] }
 0x4da   :  { %16005 = vst [vmem:[#allocation47_spill] sm:$0xff] %v13064_v15  ;;  %2931 = vmatmul.bf16.gmra.mxu3 %v8529_v2  ;;  %v8669_v2 = vor.u32 %v10385_v53, %v8666_v11  ;;  %v16013_v15 = vpack.c.bf16 %v16011_v59, %v16012_v13  ;;  %v8578_v13 = vld [vmem:[%s15805_s2 + $0x5d8] sm:$0xf0]  ;;  %v8685_v59 = vor.u32 %v10389_v29, %v8682_v44 }
 0x4db   :  { %v3202_v43 = vpop.f32.mrf.mxu0 }
 0x4dc   :  { %v13071_v23 = vpop.f32.mrf.mxu2 }
 0x4dd   :  { %v2892_v34 = vpop.f32.mrf.mxu3 }
 0x4de   :  { %v2893_v37 = vadd.f32 %v2892_v34, %v2590_v1  ;;  %v13073_v8 = vpop.f32.mrf.mxu1 }
 0x4e0   :  { %v13081_v20 = vadd.f32 %v3195_v18, %v2893_v37  ;;  %v10356_v18 = vld [vmem:[%s15805_s2 + $0x594] sm:$0xf0] }
 0x4e1   :  { %v8545_v37 = vor.u32 %v10356_v18, %v8544_v26  ;;  %v8560_v18 = vld [vmem:[%s15805_s2 + $0x5a8] sm:$0xf] }
 0x4e2   :  { %16009 = vst [vmem:[#allocation11_spill] sm:$0xff] %v13081_v20 }
 0x4e3   :  { %v3205_v57 = vpop.f32.mrf.mxu0 }
 0x4e4   :  { %v13099_v39 = vpop.f32.mrf.mxu2 }
 0x4e5   :  { %v2894_v63 = vpop.f32.mrf.mxu3 }
 0x4e6   :  { %v2895_v1 = vadd.f32 %v2894_v63, %v2592_v21  ;;  %v13101_v34 = vpop.f32.mrf.mxu1  ;;  %8803 = vmatmul.msk.bf16.gmra.mxu0 %vm1920_vm2, %v8565_v22  ;;  %v16017_v22 = vld [vmem:[#allocation15_spill] sm:$0xff] }
 0x4e8   :  { %v13104_v17 = vadd.f32 %v3197_v50, %v2895_v1  ;;  %v10362_v50 = vld [vmem:[%s15805_s2 + $0x5cc] sm:$0xf] }
 0x4e9   :  { %2673 = vmatmul.bf16.gmra.mxu2 %v8669_v2  ;;  %4200 = vmatmul.bf16.gmra.mxu1 %v16013_v15  ;;  %v8581_v26 = vor.u32 %v10362_v50, %v8578_v13  ;;  %v2597_v2 = vadd.f32 %v12777_v12, %v12388_v5  ;;  %v16016_v13 = vld [vmem:[#allocation16_spill] sm:$0xff]  ;;  %v2600_v5 = vadd.f32 %v12790_v4, %v12422_v61  ;;  %v8698_v4 = vld [vmem:[%s15805_s2 + $0x6d0] sm:$0xf0] }
 0x4ea   :  { %16010 = vst [vmem:[#allocation10_spill] sm:$0xff] %v13104_v17  ;;  %2936 = vmatmul.bf16.gmra.mxu3 %v8545_v37  ;;  %v16018_v17 = vpack.c.bf16 %v16016_v13, %v16017_v22  ;;  %v10393_v61 = vld [vmem:[%s15805_s2 + $0x6c4] sm:$0xf] }
 0x4eb   :  { %v3207_v20 = vpop.f32.mrf.mxu0  ;;  %v8701_v13 = vor.u32 %v10393_v61, %v8698_v4  ;;  %v10427_v61 = vld [vmem:[%s15806_s3 + $0x90] sm:$0xff]  ;;  %v2605_v4 = vadd.f32 %v12835_v0, %v12465_v6  ;;  %v10370_v6 = vld [vmem:[%s15805_s2 + $0x60c] sm:$0xf]  ;;  %v8610_v0 = vld [vmem:[%s15805_s2 + $0x618] sm:$0xf0] }
 0x4ec   :  { %v13111_v54 = vpop.f32.mrf.mxu2  ;;  %4278 = vmatpush.bf16.msrb.mxu3 %v10427_v61  ;;  %v2607_v61 = vadd.f32 %v12870_v16, %v12476_v7  ;;  %v16026_v7 = vld [vmem:[#allocation20_spill] sm:$0xff]  ;;  %v16027_v16 = vld [vmem:[#allocation19_spill] sm:$0xff] }
 0x4ed   :  { %v2897_v53 = vpop.f32.mrf.mxu3 }
 0x4ee   :  { %v2898_v11 = vadd.f32 %v2897_v53, %v2595_v14  ;;  %v13113_v21 = vpop.f32.mrf.mxu1 }
 0x4f0   :  { %v13121_v15 = vadd.f32 %v3200_v32, %v2898_v11  ;;  %v10360_v32 = vld [vmem:[%s15805_s2 + $0x5b4] sm:$0xf0] }
 0x4f1   :  { %v8561_v11 = vor.u32 %v10360_v32, %v8560_v18 }
 0x4f2   :  { %16014 = vst [vmem:[#allocation13_spill] sm:$0xff] %v13121_v15 }
 0x4f3   :  { %v3210_v63 = vpop.f32.mrf.mxu0 }
 0x4f4   :  { %v13139_v1 = vpop.f32.mrf.mxu2 }
 0x4f5   :  { %v2899_v37 = vpop.f32.mrf.mxu3 }
 0x4f6   :  { %v2900_v14 = vadd.f32 %v2899_v37, %v2597_v2  ;;  %v13141_v53 = vpop.f32.mrf.mxu1  ;;  %8804 = vmatmul.msk.bf16.gmra.mxu0 %vm1920_vm2, %v8581_v26  ;;  %v8576_v2 = vld [vmem:[%s15805_s2 + $0x5c8] sm:$0xf] }
 0x4f7   :  { %v16022_v26 = vld [vmem:[#allocation17_spill] sm:$0xff] }
 0x4f8   :  { %v13144_v50 = vadd.f32 %v3202_v43, %v2900_v14  ;;  %v10366_v43 = vld [vmem:[%s15805_s2 + $0x5ec] sm:$0xf] }
 0x4f9   :  { %2678 = vmatmul.bf16.gmra.mxu2 %v8685_v59  ;;  %4205 = vmatmul.bf16.gmra.mxu1 %v16018_v17  ;;  %v8594_v17 = vld [vmem:[%s15805_s2 + $0x5f8] sm:$0xf0]  ;;  %v2602_v59 = vadd.f32 %v12822_v51, %v12431_v45  ;;  %v10419_v51 = vld [vmem:[%s15806_s3 + $0x50] sm:$0xff] }
 0x4fa   :  { %16015 = vst [vmem:[#allocation12_spill] sm:$0xff] %v13144_v50  ;;  %2941 = vmatmul.bf16.gmra.mxu3 %v8561_v11  ;;  %v8597_v32 = vor.u32 %v10366_v43, %v8594_v17  ;;  %v16021_v17 = vld [vmem:[#allocation18_spill] sm:$0xff]  ;;  %4235 = vmatpush.bf16.msrb.mxu2 %v10419_v51 }
 0x4fb   :  { %v13149_v15 = vpop.f32.mrf.mxu0  ;;  %v16023_v50 = vpack.c.bf16 %v16021_v17, %v16022_v26  ;;  %v10440_v45 = vld [vmem:[%s15806_s3 + $0xf8] sm:$0xff]  ;;  %v8613_v17 = vor.u32 %v10370_v6, %v8610_v0 }
 0x4fc   :  { %v13153_v12 = vpop.f32.mrf.mxu2  ;;  %4316 = vmatpush.bf16.msra.mxu1 %v10440_v45  ;;  %v8592_v45 = vld [vmem:[%s15805_s2 + $0x5e8] sm:$0xf] }
 0x4fd   :  { %v2902_v29 = vpop.f32.mrf.mxu3 }
 0x4fe   :  { %v2903_v44 = vadd.f32 %v2902_v29, %v2600_v5  ;;  %v13155_v18 = vpop.f32.mrf.mxu1 }
 0x500   :  { %v13163_v22 = vadd.f32 %v3205_v57, %v2903_v44  ;;  %v10364_v57 = vld [vmem:[%s15805_s2 + $0x5d4] sm:$0xf0] }
 0x501   :  { %v8577_v44 = vor.u32 %v10364_v57, %v8576_v2 }
 0x502   :  { %16019 = vst [vmem:[#allocation16_spill] sm:$0xff] %v13163_v22  ;;  %v16035_v22 = vld [vmem:[#allocation23_spill] sm:$0xff] }
 0x503   :  { %v13179_v37 = vpop.f32.mrf.mxu0 }
 0x504   :  { %v13183_v14 = vpop.f32.mrf.mxu2 }
 0x505   :  { %v2904_v11 = vpop.f32.mrf.mxu3 }
 0x506   :  { %v2905_v5 = vadd.f32 %v2904_v11, %v2602_v59  ;;  %v13185_v29 = vpop.f32.mrf.mxu1  ;;  %8805 = vmatmul.msk.bf16.gmra.mxu0 %vm1920_vm2, %v8597_v32  ;;  %v10439_v32 = vld [vmem:[%s15806_s3 + $0xf0] sm:$0xff]  ;;  %v10438_v59 = vld [vmem:[%s15806_s3 + $0xe8] sm:$0xff] }
 0x507   :  { %4317 = vmatpush.bf16.msra.mxu1 %v10439_v32 }
 0x508   :  { %v13188_v43 = vadd.f32 %v3207_v20, %v2905_v5  ;;  %v8714_v5 = vld [vmem:[%s15805_s2 + $0x6f0] sm:$0xf0] }
 0x509   :  { %2683 = vmatmul.bf16.gmra.mxu2 %v8701_v13  ;;  %4210 = vmatmul.bf16.gmra.mxu1 %v16023_v50  ;;  %v10397_v13 = vld [vmem:[%s15805_s2 + $0x6e4] sm:$0xf] }
 0x50a   :  { %16020 = vst [vmem:[#allocation15_spill] sm:$0xff] %v13188_v43  ;;  %2946 = vmatmul.bf16.gmra.mxu3 %v8577_v44  ;;  %v8717_v32 = vor.u32 %v10397_v13, %v8714_v5  ;;  %v16028_v43 = vpack.c.bf16 %v16026_v7, %v16027_v16  ;;  %v10436_v13 = vld [vmem:[%s15806_s3 + $0xd8] sm:$0xff]  ;;  %v8608_v7 = vld [vmem:[%s15805_s2 + $0x608] sm:$0xf] }
 0x50b   :  { %v13202_v20 = vpop.f32.mrf.mxu0  ;;  %4318 = vmatpush.bf16.msra.mxu1 %v10438_v59  ;;  %v10372_v16 = vld [vmem:[%s15805_s2 + $0x614] sm:$0xf0] }
 0x50c   :  { %v13206_v50 = vpop.f32.mrf.mxu2 }
 0x50d   :  { %v2907_v26 = vpop.f32.mrf.mxu3 }
 0x50e   :  { %v2908_v2 = vadd.f32 %v2907_v26, %v2605_v4  ;;  %v13211_v57 = vpop.f32.mrf.mxu1 }
 0x510   :  { %v13222_v11 = vadd.f32 %v3210_v63, %v2908_v2  ;;  %v10368_v63 = vld [vmem:[%s15805_s2 + $0x5f4] sm:$0xf0]  ;;  %v10437_v2 = vld [vmem:[%s15806_s3 + $0xe0] sm:$0xff] }
 0x511   :  { %v8593_v44 = vor.u32 %v10368_v63, %v8592_v45  ;;  %4319 = vmatpush.bf16.msra.mxu1 %v10437_v2  ;;  %v2610_v45 = vadd.f32 %v12890_v31, %v12510_v24  ;;  %v8626_v24 = vld [vmem:[%s15805_s2 + $0x638] sm:$0xf0]  ;;  %v8730_v2 = vld [vmem:[%s15805_s2 + $0x710] sm:$0xf0] }
 0x512   :  { %16024 = vst [vmem:[#allocation18_spill] sm:$0xff] %v13222_v11 }
 0x513   :  { %v3220_v51 = vpop.f32.mrf.mxu0 }
 0x514   :  { %v13240_v4 = vpop.f32.mrf.mxu2 }
 0x515   :  { %v2909_v26 = vpop.f32.mrf.mxu3  ;;  %4320 = vmatpush.bf16.msra.mxu1 %v10436_v13  ;;  %v2612_v13 = vadd.f32 %v12922_v40, %v12521_v38  ;;  %v16030_v38 = vld [vmem:[#allocation22_spill] sm:$0xff]  ;;  %v16031_v40 = vld [vmem:[#allocation21_spill] sm:$0xff] }
 0x516   :  { %v2910_v6 = vadd.f32 %v2909_v26, %v2607_v61  ;;  %v13245_v0 = vpop.f32.mrf.mxu1  ;;  %8806 = vmatmul.msk.bf16.gmra.mxu0 %vm1920_vm2, %v8613_v17  ;;  %v16032_v11 = vpack.c.bf16 %v16030_v38, %v16031_v40  ;;  %v10376_v38 = vld [vmem:[%s15805_s2 + $0x634] sm:$0xf0] }
 0x518   :  { %v13249_v59 = vadd.f32 %v13149_v15, %v2910_v6  ;;  %v10435_v15 = vld [vmem:[%s15806_s3 + $0xd0] sm:$0xff] }
 0x519   :  { %2688 = vmatmul.bf16.gmra.mxu2 %v8717_v32  ;;  %4215 = vmatmul.bf16.gmra.mxu1 %v16028_v43  ;;  %v10434_v43 = vld [vmem:[%s15806_s3 + $0xc8] sm:$0xff]  ;;  %v10401_v32 = vld [vmem:[%s15805_s2 + $0x704] sm:$0xf] }
 0x51a   :  { %16025 = vst [vmem:[#allocation17_spill] sm:$0xff] %v13249_v59  ;;  %2951 = vmatmul.bf16.gmra.mxu3 %v8593_v44  ;;  %4321 = vmatpush.bf16.msra.mxu1 %v10435_v15  ;;  %v10374_v44 = vld [vmem:[%s15805_s2 + $0x62c] sm:$0xf]  ;;  %v8733_v15 = vor.u32 %v10401_v32, %v8730_v2  ;;  %v8609_v59 = vor.u32 %v10372_v16, %v8608_v7 }
 0x51b   :  { %v3222_v5 = vpop.f32.mrf.mxu0  ;;  %v8629_v6 = vor.u32 %v10374_v44, %v8626_v24 }
 0x51c   :  { %v13259_v17 = vpop.f32.mrf.mxu2 }
 0x51d   :  { %v2912_v63 = vpop.f32.mrf.mxu3 }
 0x51e   :  { %v2913_v61 = vadd.f32 %v2912_v63, %v2610_v45  ;;  %v13264_v26 = vpop.f32.mrf.mxu1  ;;  %4322 = vmatpush.bf16.msra.mxu1 %v10434_v43 }
 0x520   :  { %v13276_v31 = vadd.f32 %v13179_v37, %v2913_v61  ;;  %v10433_v61 = vld [vmem:[%s15806_s3 + $0xc0] sm:$0xff] }
 0x522   :  { %4323 = vmatpush.bf16.msra.mxu1 %v10433_v61 }
 0x523   :  { %v3225_v37 = vpop.f32.mrf.mxu0 }
 0x524   :  { %v13292_v45 = vpop.f32.mrf.mxu2 }
 0x525   :  { %v2914_v63 = vpop.f32.mrf.mxu3 }
 0x526   :  { %v2915_v44 = vadd.f32 %v2914_v63, %v2612_v13  ;;  %v13297_v24 = vpop.f32.mrf.mxu1  ;;  %8807 = vmatmul.msk.bf16.gmra.mxu0 %vm1920_vm2, %v8629_v6  ;;  %v2615_v13 = vadd.f32 %v12936_v48, %v12564_v3  ;;  %v10405_v48 = vld [vmem:[%s15805_s2 + $0x724] sm:$0xf] }
 0x527   :  { %16029 = vst [vmem:[#allocation20_spill] sm:$0xff] %v13297_v24 }
 0x528   :  { %v13301_v43 = vadd.f32 %v13202_v20, %v2915_v44  ;;  %v10418_v20 = vld [vmem:[%s15806_s3 + $0x48] sm:$0xff] }
 0x529   :  { %2693 = vmatmul.bf16.gmra.mxu2 %v8733_v15  ;;  %4220 = vmatmul.bf16.gmra.mxu1 %v16032_v11  ;;  %v10378_v11 = vld [vmem:[%s15805_s2 + $0x64c] sm:$0xf]  ;;  %v8746_v15 = vld [vmem:[%s15805_s2 + $0x730] sm:$0xf0]  ;;  %v8624_v44 = vld [vmem:[%s15805_s2 + $0x628] sm:$0xf] }
 0x52a   :  { %2956 = vmatmul.bf16.gmra.mxu3 %v8609_v59  ;;  %v8642_v59 = vld [vmem:[%s15805_s2 + $0x658] sm:$0xf0]  ;;  %4236 = vmatpush.bf16.msrb.mxu2 %v10418_v20  ;;  %v10417_v20 = vld [vmem:[%s15806_s3 + $0x40] sm:$0xff]  ;;  %v8625_v32 = vor.u32 %v10376_v38, %v8624_v44 }
 0x52b   :  { %v3227_v2 = vpop.f32.mrf.mxu0  ;;  %v8645_v61 = vor.u32 %v10378_v11, %v8642_v59 }
 0x52c   :  { %v13310_v7 = vpop.f32.mrf.mxu2 }
 0x52d   :  { %v2917_v6 = vpop.f32.mrf.mxu3 }
 0x52e   :  { %v2918_v16 = vadd.f32 %v2917_v6, %v2615_v13  ;;  %v13312_v63 = vpop.f32.mrf.mxu1  ;;  %4237 = vmatpush.bf16.msrb.mxu2 %v10417_v20 }
 0x52f   :  { %16033 = vst [vmem:[#allocation19_spill] sm:$0xff] %v13312_v63  ;;  %v3602_v63 = vpack.c.bf16 %v16035_v22, %v16035_v22  ;;  %v10382_v22 = vld [vmem:[%s15805_s2 + $0x66c] sm:$0xf] }
 0x530   :  { %v13323_v3 = vadd.f32 %v3220_v51, %v2918_v16  ;;  %v2617_v51 = vadd.f32 %v12974_v49, %v12574_v9  ;;  %v8749_v16 = vor.u32 %v10405_v48, %v8746_v15  ;;  %v2620_v48 = vadd.f32 %v12987_v60, %v12608_v41  ;;  %v8640_v41 = vld [vmem:[%s15805_s2 + $0x648] sm:$0xf]  ;;  %v10380_v60 = vld [vmem:[%s15805_s2 + $0x654] sm:$0xf0] }
 0x533   :  { %v3230_v40 = vpop.f32.mrf.mxu0 }
 0x534   :  { %v13339_v13 = vpop.f32.mrf.mxu2 }
 0x535   :  { %v2919_v6 = vpop.f32.mrf.mxu3 }
 0x536   :  { %v2920_v11 = vadd.f32 %v2919_v6, %v2617_v51  ;;  %v13344_v59 = vpop.f32.mrf.mxu1  ;;  %8808 = vmatmul.msk.bf16.gmra.mxu0 %vm1920_vm2, %v8645_v61 }
 0x537   :  { %16034 = vst [vmem:[#allocation22_spill] sm:$0xff] %v13344_v59  ;;  %v16081_v59 = vld [vmem:[#allocation60_spill] sm:$0xff] }
 0x538   :  { %v13349_v24 = vadd.f32 %v3222_v5, %v2920_v11  ;;  %v8658_v5 = vld [vmem:[%s15805_s2 + $0x678] sm:$0xf0] }
 0x539   :  { %2698 = vmatmul.bf16.gmra.mxu2 %v8749_v16  ;;  %4225 = vmatmul.bf16.gmra.mxu1 %v3602_v63  ;;  %v1504_v63 = vunpack.c.h.b16 %v12994_v33  ;;  %v8661_v51 = vor.u32 %v10382_v22, %v8658_v5  ;;  %v2622_v16 = vadd.f32 %v13021_v30, %v12618_v58  ;;  %v8641_v33 = vor.u32 %v10380_v60, %v8640_v41  ;;  %v16038_v22 = vld [vmem:[#allocation51_spill] sm:$0xff]  ;;  %v16039_v5 = vld [vmem:[#allocation50_spill] sm:$0xff]  ;;  %v16045_v58 = vld [vmem:[#allocation53_spill] sm:$0xff] }
 0x53a   :  { %2961 = vmatmul.bf16.gmra.mxu3 %v8625_v32  ;;  %v16040_v9 = vpack.c.bf16 %v16038_v22, %v16039_v5 }
 0x53b   :  { %v3232_v49 = vpop.f32.mrf.mxu0 }
 0x53c   :  { %v13355_v15 = vpop.f32.mrf.mxu2 }
 0x53d   :  { %v2922_v44 = vpop.f32.mrf.mxu3 }
 0x53e   :  { %v2923_v61 = vadd.f32 %v2922_v44, %v2620_v48  ;;  %v13357_v38 = vpop.f32.mrf.mxu1 }
 0x53f   :  { %16036 = vst [vmem:[#allocation21_spill] sm:$0xff] %v13357_v38 }
 0x540   :  { %v13365_v32 = vadd.f32 %v3225_v37, %v2923_v61  ;;  %v1740_v37 = vpack.c.b16 %v1504_v63, %v1504_v63  ;;  %v2625_v63 = vadd.f32 %v13031_v62, %v12652_v10  ;;  %v8656_v10 = vld [vmem:[%s15805_s2 + $0x668] sm:$0xf]  ;;  %v10384_v62 = vld [vmem:[%s15805_s2 + $0x674] sm:$0xf0] }
 0x543   :  { %v3235_v6 = vpop.f32.mrf.mxu0 }
 0x544   :  { %v13376_v20 = vpop.f32.mrf.mxu2 }
 0x545   :  { %v2924_v11 = vpop.f32.mrf.mxu3 }
 0x546   :  { %v2925_v48 = vadd.f32 %v2924_v11, %v2622_v16  ;;  %v13378_v44 = vpop.f32.mrf.mxu1  ;;  %8809 = vmatmul.msk.bf16.gmra.mxu0 %vm1920_vm2, %v8661_v51 }
 0x547   :  { %16037 = vst [vmem:[#allocation23_spill] sm:$0xff] %v13378_v44  ;;  %v16046_v44 = vld [vmem:[#allocation52_spill] sm:$0xff] }
 0x548   :  { %v13381_v61 = vadd.f32 %v3227_v2, %v2925_v48  ;;  %v10386_v2 = vld [vmem:[%s15805_s2 + $0x68c] sm:$0xf]  ;;  %v16047_v38 = vpack.c.bf16 %v16045_v58, %v16046_v44 }
 0x549   :  { %2703 = vmatmul.bf16.gmra.mxu2 %v1740_v37  ;;  %4324 = vmatmul.bf16.vlgmr.msra.gmra.mxu1 %v16040_v9  ;;  %v8674_v9 = vld [vmem:[%s15805_s2 + $0x698] sm:$0xf0] }
 0x54a   :  { %2966 = vmatmul.bf16.gmra.mxu3 %v8641_v33  ;;  %v8677_v37 = vor.u32 %v10386_v2, %v8674_v9  ;;  %v2627_v33 = vadd.f32 %v13059_v28, %v12661_v35  ;;  %v16043_v2 = vld [vmem:[#allocation24_spill] sm:$0xff]  ;;  %v16053_v35 = vld [vmem:[#allocation55_spill] sm:$0xff] }
 0x54b   :  { %v3237_v30 = vpop.f32.mrf.mxu0 }
 0x54c   :  { %v13390_v16 = vpop.f32.mrf.mxu2 }
 0x54d   :  { %v2927_v41 = vpop.f32.mrf.mxu3 }
 0x54e   :  { %v2928_v60 = vadd.f32 %v2927_v41, %v2625_v63  ;;  %v2403_v51 = vpop.f32.mrf.mxu1 }
 0x54f   :  { %v16042_v51 = vld [vmem:[#allocation25_spill] sm:$0xff] }
 0x550   :  { %v13398_v11 = vadd.f32 %v3230_v40, %v2928_v60  ;;  %v8657_v40 = vor.u32 %v10384_v62, %v8656_v10  ;;  %v16044_v9 = vpack.c.bf16 %v16042_v51, %v16043_v2  ;;  %v2630_v10 = vadd.f32 %v13071_v23, %v12693_v52  ;;  %v8672_v52 = vld [vmem:[%s15805_s2 + $0x688] sm:$0xf]  ;;  %v10388_v23 = vld [vmem:[%s15805_s2 + $0x694] sm:$0xf0] }
 0x553   :  { %v3240_v48 = vpop.f32.mrf.mxu0 }
 0x554   :  { %v13408_v22 = vpop.f32.mrf.mxu2 }
 0x555   :  { %v2929_v5 = vpop.f32.mrf.mxu3 }
 0x556   :  { %v2930_v63 = vadd.f32 %v2929_v5, %v2627_v33  ;;  %v13410_v41 = vpop.f32.mrf.mxu1  ;;  %8810 = vmatmul.msk.bf16.gmra.mxu0 %vm1920_vm2, %v8677_v37  ;;  %v10390_v5 = vld [vmem:[%s15805_s2 + $0x6ac] sm:$0xf] }
 0x557   :  { %16041 = vst [vmem:[#allocation51_spill] sm:$0xff] %v13410_v41 }
 0x558   :  { %v13413_v60 = vadd.f32 %v3232_v49, %v2930_v63 }
 0x559   :  { %4238 = vmatmul.bf16.vlgmr.msrb.gmra.mxu2 %v16044_v9  ;;  %4329 = vmatmul.bf16.gmra.mxu1 %v16047_v38  ;;  %v8690_v38 = vld [vmem:[%s15805_s2 + $0x6b8] sm:$0xf0] }
 0x55a   :  { %2971 = vmatmul.bf16.gmra.mxu3 %v8657_v40  ;;  %v8693_v58 = vor.u32 %v10390_v5, %v8690_v38  ;;  %v2632_v40 = vadd.f32 %v13099_v39, %v12704_v46  ;;  %v16051_v5 = vld [vmem:[#allocation26_spill] sm:$0xff]  ;;  %v16061_v46 = vld [vmem:[#allocation57_spill] sm:$0xff] }
 0x55b   :  { %v3242_v28 = vpop.f32.mrf.mxu0 }
 0x55c   :  { %v13425_v62 = vpop.f32.mrf.mxu2 }
 0x55d   :  { %v2932_v49 = vpop.f32.mrf.mxu3 }
 0x55e   :  { %v2933_v37 = vadd.f32 %v2932_v49, %v2630_v10  ;;  %v13427_v33 = vpop.f32.mrf.mxu1 }
 0x55f   :  { %16048 = vst [vmem:[#allocation50_spill] sm:$0xff] %v13427_v33  ;;  %v16054_v33 = vld [vmem:[#allocation54_spill] sm:$0xff] }
 0x560   :  { %v13435_v44 = vadd.f32 %v3235_v6, %v2933_v37  ;;  %v8673_v6 = vor.u32 %v10388_v23, %v8672_v52  ;;  %v16050_v37 = vld [vmem:[#allocation27_spill] sm:$0xff]  ;;  %v16055_v41 = vpack.c.bf16 %v16053_v35, %v16054_v33  ;;  %v2635_v52 = vadd.f32 %v13111_v54, %v12736_v42  ;;  %v8688_v42 = vld [vmem:[%s15805_s2 + $0x6a8] sm:$0xf] }
 0x561   :  { %v16052_v38 = vpack.c.bf16 %v16050_v37, %v16051_v5  ;;  %v10392_v54 = vld [vmem:[%s15805_s2 + $0x6b4] sm:$0xf0] }
 0x563   :  { %v3245_v63 = vpop.f32.mrf.mxu0 }
 0x564   :  { %v13445_v51 = vpop.f32.mrf.mxu2 }
 0x565   :  { %v2934_v2 = vpop.f32.mrf.mxu3 }
 0x566   :  { %v2935_v9 = vadd.f32 %v2934_v2, %v2632_v40  ;;  %v13447_v10 = vpop.f32.mrf.mxu1  ;;  %8811 = vmatmul.msk.bf16.gmra.mxu0 %vm1920_vm2, %v8693_v58  ;;  %v10394_v2 = vld [vmem:[%s15805_s2 + $0x6cc] sm:$0xf] }
 0x567   :  { %16049 = vst [vmem:[#allocation25_spill] sm:$0xff] %v13447_v10 }
 0x568   :  { %v13450_v49 = vadd.f32 %v3237_v30, %v2935_v9 }
 0x569   :  { %4243 = vmatmul.bf16.gmra.mxu2 %v16052_v38  ;;  %4334 = vmatmul.bf16.gmra.mxu1 %v16055_v41  ;;  %v8706_v41 = vld [vmem:[%s15805_s2 + $0x6d8] sm:$0xf0] }
 0x56a   :  { %2976 = vmatmul.bf16.gmra.mxu3 %v8673_v6  ;;  %v8709_v33 = vor.u32 %v10394_v2, %v8706_v41  ;;  %v2637_v6 = vadd.f32 %v13139_v1, %v12747_v25  ;;  %v16059_v2 = vld [vmem:[#allocation28_spill] sm:$0xff]  ;;  %v10464_v25 = vld [vmem:[%s15806_s3 + $0x1b8] sm:$0xff] }
 0x56b   :  { %v3247_v39 = vpop.f32.mrf.mxu0  ;;  %4445 = vmatpush.bf16.msrb.mxu1 %v10464_v25  ;;  %v16065_v25 = vld [vmem:[#allocation69_spill] sm:$0xff]  ;;  %v16069_v1 = vld [vmem:[#allocation30_spill] sm:$0xff] }
 0x56c   :  { %v13462_v23 = vpop.f32.mrf.mxu2 }
 0x56d   :  { %v2937_v30 = vpop.f32.mrf.mxu3 }
 0x56e   :  { %v2938_v58 = vadd.f32 %v2937_v30, %v2635_v52  ;;  %v13464_v40 = vpop.f32.mrf.mxu1  ;;  %v8689_v52 = vor.u32 %v10392_v54, %v8688_v42 }
 0x56f   :  { %16056 = vst [vmem:[#allocation24_spill] sm:$0xff] %v13464_v40  ;;  %v16062_v40 = vld [vmem:[#allocation56_spill] sm:$0xff] }
 0x570   :  { %v13472_v35 = vadd.f32 %v3240_v48, %v2938_v58  ;;  %v16058_v58 = vld [vmem:[#allocation29_spill] sm:$0xff]  ;;  %v16063_v10 = vpack.c.bf16 %v16061_v46, %v16062_v40 }
 0x571   :  { %v16060_v41 = vpack.c.bf16 %v16058_v58, %v16059_v2  ;;  %v8704_v58 = vld [vmem:[%s15805_s2 + $0x6c8] sm:$0xf]  ;;  %v10396_v2 = vld [vmem:[%s15805_s2 + $0x6d4] sm:$0xf0] }
 0x573   :  { %v13480_v9 = vpop.f32.mrf.mxu0 }
 0x574   :  { %v13484_v37 = vpop.f32.mrf.mxu2 }
 0x575   :  { %v2939_v5 = vpop.f32.mrf.mxu3 }
 0x576   :  { %v2940_v38 = vadd.f32 %v2939_v5, %v2637_v6  ;;  %v13486_v48 = vpop.f32.mrf.mxu1  ;;  %8812 = vmatmul.msk.bf16.gmra.mxu0 %vm1920_vm2, %v8709_v33  ;;  %v10426_v6 = vld [vmem:[%s15806_s3 + $0x88] sm:$0xff] }
 0x577   :  { %16057 = vst [vmem:[#allocation53_spill] sm:$0xff] %v13486_v48  ;;  %v10462_v5 = vld [vmem:[%s15806_s3 + $0x1a8] sm:$0xff]  ;;  %4279 = vmatpush.bf16.msrb.mxu3 %v10426_v6 }
 0x578   :  { %v13489_v30 = vadd.f32 %v3242_v28, %v2940_v38  ;;  %v2640_v28 = vadd.f32 %v13153_v12, %v12779_v36  ;;  %v10398_v36 = vld [vmem:[%s15805_s2 + $0x6ec] sm:$0xf]  ;;  %v8722_v12 = vld [vmem:[%s15805_s2 + $0x6f8] sm:$0xf0] }
 0x579   :  { %4248 = vmatmul.bf16.gmra.mxu2 %v16060_v41  ;;  %4339 = vmatmul.bf16.gmra.mxu1 %v16063_v10  ;;  %v10463_v10 = vld [vmem:[%s15806_s3 + $0x1b0] sm:$0xff] }
 0x57a   :  { %2981 = vmatmul.bf16.gmra.mxu3 %v8689_v52  ;;  %4446 = vmatpush.bf16.msrb.mxu1 %v10463_v10  ;;  %v8725_v52 = vor.u32 %v10398_v36, %v8722_v12  ;;  %v8705_v36 = vor.u32 %v10396_v2, %v8704_v58  ;;  %v16068_v12 = vld [vmem:[#allocation31_spill] sm:$0xff]  ;;  %v10459_v2 = vld [vmem:[%s15806_s3 + $0x190] sm:$0xff] }
 0x57b   :  { %v13502_v33 = vpop.f32.mrf.mxu0  ;;  %v10460_v58 = vld [vmem:[%s15806_s3 + $0x198] sm:$0xff] }
 0x57c   :  { %v13506_v42 = vpop.f32.mrf.mxu2 }
 0x57d   :  { %v2942_v54 = vpop.f32.mrf.mxu3 }
 0x57e   :  { %v2943_v46 = vadd.f32 %v2942_v54, %v2640_v28  ;;  %v13511_v40 = vpop.f32.mrf.mxu1  ;;  %4447 = vmatpush.bf16.msrb.mxu1 %v10462_v5  ;;  %v2642_v28 = vadd.f32 %v13183_v14, %v16065_v25  ;;  %v16071_v14 = vld [vmem:[#allocation59_spill] sm:$0xff]  ;;  %v16072_v25 = vld [vmem:[#allocation58_spill] sm:$0xff] }
 0x57f   :  { %16064 = vst [vmem:[#allocation52_spill] sm:$0xff] %v13511_v40  ;;  %v16070_v40 = vpack.c.bf16 %v16068_v12, %v16069_v1  ;;  %v16073_v48 = vpack.c.bf16 %v16071_v14, %v16072_v25  ;;  %v2645_v1 = vadd.f32 %v13206_v50, %v12824_v19  ;;  %v10458_v19 = vld [vmem:[%s15806_s3 + $0x188] sm:$0xff] }
 0x580   :  { %v13525_v38 = vadd.f32 %v3245_v63, %v2943_v46  ;;  %v10461_v63 = vld [vmem:[%s15806_s3 + $0x1a0] sm:$0xff]  ;;  %v10402_v50 = vld [vmem:[%s15805_s2 + $0x70c] sm:$0xf] }
 0x582   :  { %4448 = vmatpush.bf16.msrb.mxu1 %v10461_v63 }
 0x583   :  { %v13533_v41 = vpop.f32.mrf.mxu0 }
 0x584   :  { %v13537_v54 = vpop.f32.mrf.mxu2 }
 0x585   :  { %v2944_v10 = vpop.f32.mrf.mxu3 }
 0x586   :  { %v2945_v46 = vadd.f32 %v2944_v10, %v2642_v28  ;;  %v13542_v6 = vpop.f32.mrf.mxu1  ;;  %8813 = vmatmul.msk.bf16.gmra.mxu0 %vm1920_vm2, %v8725_v52  ;;  %v10448_v28 = vld [vmem:[%s15806_s3 + $0x138] sm:$0xff]  ;;  %4449 = vmatpush.bf16.msrb.mxu1 %v10460_v58 }
 0x587   :  { %16066 = vst [vmem:[#allocation27_spill] sm:$0xff] %v13542_v6  ;;  %4359 = vmatpush.bf16.msra.mxu2 %v10448_v28  ;;  %v8720_v28 = vld [vmem:[%s15805_s2 + $0x6e8] sm:$0xf]  ;;  %v10400_v58 = vld [vmem:[%s15805_s2 + $0x6f4] sm:$0xf0] }
 0x588   :  { %v13545_v5 = vadd.f32 %v3247_v39, %v2945_v46  ;;  %v10446_v46 = vld [vmem:[%s15806_s3 + $0x128] sm:$0xff] }
 0x589   :  { %4253 = vmatmul.bf16.gmra.mxu2 %v16070_v40  ;;  %4344 = vmatmul.bf16.gmra.mxu1 %v16073_v48  ;;  %v10447_v48 = vld [vmem:[%s15806_s3 + $0x130] sm:$0xff] }
 0x58a   :  { %16067 = vst [vmem:[#allocation26_spill] sm:$0xff] %v13545_v5  ;;  %2986 = vmatmul.bf16.gmra.mxu3 %v8705_v36  ;;  %4450 = vmatpush.bf16.msrb.mxu1 %v10459_v2  ;;  %v8738_v36 = vld [vmem:[%s15805_s2 + $0x718] sm:$0xf0]  ;;  %v16080_v6 = vld [vmem:[#allocation61_spill] sm:$0xff] }
 0x58b   :  { %v13559_v39 = vpop.f32.mrf.mxu0  ;;  %4360 = vmatpush.bf16.msra.mxu2 %v10447_v48  ;;  %v8741_v25 = vor.u32 %v10402_v50, %v8738_v36  ;;  %v10457_v50 = vld [vmem:[%s15806_s3 + $0x180] sm:$0xff]  ;;  %v16082_v5 = vpack.c.bf16 %v16080_v6, %v16081_v59 }
 0x58c   :  { %v13563_v40 = vpop.f32.mrf.mxu2 }
 0x58d   :  { %v2947_v52 = vpop.f32.mrf.mxu3 }
 0x58e   :  { %v2948_v10 = vadd.f32 %v2947_v52, %v2645_v1  ;;  %v13571_v63 = vpop.f32.mrf.mxu1  ;;  %4451 = vmatpush.bf16.msrb.mxu1 %v10458_v19  ;;  %v16075_v52 = vld [vmem:[#allocation71_spill] sm:$0xff]  ;;  %v16077_v19 = vld [vmem:[#allocation33_spill] sm:$0xff] }
 0x58f   :  { %16074 = vst [vmem:[#allocation55_spill] sm:$0xff] %v13571_v63  ;;  %4361 = vmatpush.bf16.msra.mxu2 %v10446_v46  ;;  %v2647_v48 = vadd.f32 %v13240_v4, %v16075_v52  ;;  %v8721_v46 = vor.u32 %v10400_v58, %v8720_v28  ;;  %v16078_v52 = vld [vmem:[#allocation32_spill] sm:$0xff] }
 0x590   :  { %v13586_v12 = vadd.f32 %v13480_v9, %v2948_v10  ;;  %v10445_v10 = vld [vmem:[%s15806_s3 + $0x120] sm:$0xff]  ;;  %v16079_v63 = vpack.c.bf16 %v16077_v19, %v16078_v52  ;;  %v16084_v52 = vld [vmem:[#allocation5_spill] sm:$0xff] }
 0x592   :  { %4452 = vmatpush.bf16.msrb.mxu1 %v10457_v50 }
 0x593   :  { %v3260_v1 = vpop.f32.mrf.mxu0  ;;  %4362 = vmatpush.bf16.msra.mxu2 %v10445_v10  ;;  %v16087_v10 = vld [vmem:[#allocation35_spill] sm:$0xff] }
 0x594   :  { %v13598_v9 = vpop.f32.mrf.mxu2 }
 0x595   :  { %v2949_v2 = vpop.f32.mrf.mxu3 }
 0x596   :  { %v2950_v36 = vadd.f32 %v2949_v2, %v2647_v48  ;;  %v13606_v14 = vpop.f32.mrf.mxu1  ;;  %8814 = vmatmul.msk.bf16.gmra.mxu0 %vm1920_vm2, %v8741_v25  ;;  %v10444_v48 = vld [vmem:[%s15806_s3 + $0x118] sm:$0xff]  ;;  %v10406_v2 = vld [vmem:[%s15805_s2 + $0x72c] sm:$0xf] }
 0x597   :  { %16076 = vst [vmem:[#allocation54_spill] sm:$0xff] %v13606_v14  ;;  %4363 = vmatpush.bf16.msra.mxu2 %v10444_v48  ;;  %v2652_v48 = vadd.f32 %v13292_v45, %v16084_v52  ;;  %v2655_v14 = vadd.f32 %v13310_v7, %v12924_v47  ;;  %v8752_v7 = vld [vmem:[%s15805_s2 + $0x728] sm:$0xf] }
 0x598   :  { %v13610_v4 = vadd.f32 %v13502_v33, %v2950_v36  ;;  %v2650_v33 = vadd.f32 %v13259_v17, %v12872_v55  ;;  %v8754_v55 = vld [vmem:[%s15805_s2 + $0x738] sm:$0xf0]  ;;  %v8736_v36 = vld [vmem:[%s15805_s2 + $0x708] sm:$0xf] }
 0x599   :  { %4258 = vmatmul.bf16.gmra.mxu2 %v16079_v63  ;;  %4349 = vmatmul.bf16.gmra.mxu1 %v16082_v5  ;;  %v10443_v63 = vld [vmem:[%s15806_s3 + $0x110] sm:$0xff]  ;;  %v10442_v5 = vld [vmem:[%s15806_s3 + $0x108] sm:$0xff]  ;;  %v8757_v50 = vor.u32 %v10406_v2, %v8754_v55 }
 0x59a   :  { %2991 = vmatmul.bf16.gmra.mxu3 %v8721_v46  ;;  %v10404_v46 = vld [vmem:[%s15805_s2 + $0x714] sm:$0xf0]  ;;  %v16094_v47 = vld [vmem:[#allocation36_spill] sm:$0xff] }
 0x59b   :  { %v13621_v25 = vpop.f32.mrf.mxu0  ;;  %4364 = vmatpush.bf16.msra.mxu2 %v10443_v63  ;;  %v8737_v2 = vor.u32 %v10404_v46, %v8736_v36  ;;  %v16086_v55 = vld [vmem:[#allocation62_spill] sm:$0xff] }
 0x59c   :  { %v13625_v28 = vpop.f32.mrf.mxu2 }
 0x59d   :  { %v2952_v58 = vpop.f32.mrf.mxu3 }
 0x59e   :  { %v2953_v59 = vadd.f32 %v2952_v58, %v2650_v33  ;;  %v13630_v6 = vpop.f32.mrf.mxu1  ;;  %v10441_v58 = vld [vmem:[%s15806_s3 + $0x100] sm:$0xff] }
 0x59f   :  { %16083 = vst [vmem:[#allocation29_spill] sm:$0xff] %v13630_v6  ;;  %4365 = vmatpush.bf16.msra.mxu2 %v10442_v5  ;;  %v3605_v5 = vpack.c.bf16 %v16086_v55, %v16086_v55  ;;  %v16088_v6 = vld [vmem:[#allocation34_spill] sm:$0xff] }
 0x5a0   :  { %v13642_v17 = vadd.f32 %v13533_v41, %v2953_v59  ;;  %v16089_v45 = vpack.c.bf16 %v16087_v10, %v16088_v6 }
 0x5a3   :  { %v3265_v19 = vpop.f32.mrf.mxu0  ;;  %4366 = vmatpush.bf16.msra.mxu2 %v10441_v58 }
 0x5a4   :  { %v13654_v33 = vpop.f32.mrf.mxu2 }
 0x5a5   :  { %v2954_v41 = vpop.f32.mrf.mxu3 }
 0x5a6   :  { %v2955_v63 = vadd.f32 %v2954_v41, %v2652_v48  ;;  %v13659_v59 = vpop.f32.mrf.mxu1  ;;  %8815 = vmatmul.msk.bf16.gmra.mxu0 %vm1920_vm2, %v8757_v50  ;;  %v779_v50 = vld [vmem:[%s15805_s2 + $0x748] sm:$0xff] }
 0x5a7   :  { %16085 = vst [vmem:[#allocation28_spill] sm:$0xff] %v13659_v59  ;;  %v1506_v58 = vunpack.c.h.b16 %v779_v50  ;;  %v16096_v59 = vld [vmem:[#allocation8_spill] sm:$0xff] }
 0x5a8   :  { %v13677_v6 = vadd.f32 %v13559_v39, %v2955_v63  ;;  %v10425_v63 = vld [vmem:[%s15806_s3 + $0x80] sm:$0xff] }
 0x5a9   :  { %4263 = vmatmul.bf16.gmra.mxu2 %v16089_v45  ;;  %4354 = vmatmul.bf16.gmra.mxu1 %v3605_v5  ;;  %v16092_v5 = vld [vmem:[#allocation74_spill] sm:$0xff] }
 0x5aa   :  { %2996 = vmatmul.bf16.gmra.mxu3 %v8737_v2  ;;  %16091 = vst [vmem:[#allocation56_spill] sm:$0xff] %v13677_v6  ;;  %v1742_v2 = vpack.c.b16 %v1506_v58, %v1506_v58  ;;  %v2657_v45 = vadd.f32 %v13339_v13, %v16092_v5  ;;  %v16095_v13 = vpack.c.bf16 %v13301_v43, %v13276_v31  ;;  %v16145_v31 = vld [vmem:[#allocation20_spill] sm:$0xff] }
 0x5ab   :  { %v3267_v52 = vpop.f32.mrf.mxu0  ;;  %4280 = vmatpush.bf16.msrb.mxu3 %v10425_v63  ;;  %v2660_v6 = vadd.f32 %v13355_v15, %v16096_v59  ;;  %v16097_v63 = vld [vmem:[#allocation77_spill] sm:$0xff] }
 0x5ac   :  { %v13669_v48 = vpop.f32.mrf.mxu2 }
 0x5ad   :  { %v2957_v41 = vpop.f32.mrf.mxu3 }
 0x5ae   :  { %v2958_v36 = vadd.f32 %v2957_v41, %v2655_v14  ;;  %v13674_v46 = vpop.f32.mrf.mxu1  ;;  %v10408_v14 = vld [vmem:[%s15805_s2 + $0x734] sm:$0xf0] }
 0x5af   :  { %16090 = vst [vmem:[#allocation57_spill] sm:$0xff] %v13674_v46  ;;  %v8753_v58 = vor.u32 %v10408_v14, %v8752_v7  ;;  %v3603_v46 = vpack.c.bf16 %v16094_v47, %v16094_v47 }
 0x5b0   :  { %v13679_v10 = vadd.f32 %v3260_v1, %v2958_v36 }
 0x5b3   :  { %v3270_v55 = vpop.f32.mrf.mxu0 }
 0x5b4   :  { %v13691_v39 = vpop.f32.mrf.mxu2 }
 0x5b5   :  { %v2959_v1 = vpop.f32.mrf.mxu3 }
 0x5b6   :  { %v2960_v41 = vadd.f32 %v2959_v1, %v2657_v45  ;;  %v13696_v36 = vpop.f32.mrf.mxu1  ;;  %8816 = vmatmul.msk.bf16.gmra.mxu0 %vm1920_vm2, %v1742_v2 }
 0x5b7   :  { %16093 = vst [vmem:[#allocation69_spill] sm:$0xff] %v13696_v36 }
 0x5b8   :  { %v13709_v2 = vadd.f32 %v13621_v25, %v2960_v41  ;;  %v16099_v25 = vld [vmem:[#allocation63_spill] sm:$0xff] }
 0x5b9   :  { %4268 = vmatmul.bf16.gmra.mxu2 %v3603_v46  ;;  %4453 = vmatmul.bf16.vlgmr.msrb.gmra.mxu1 %v16095_v13  ;;  %v1505_v46 = vunpack.c.l.b16 %v779_v50 }
 0x5ba   :  { %3001 = vmatmul.bf16.gmra.mxu3 %v8753_v58  ;;  %v2662_v58 = vadd.f32 %v13376_v20, %v16097_v63  ;;  %v2665_v20 = vadd.f32 %v13390_v16, %v13023_v56 }
 0x5bb   :  { %v3272_v5 = vpop.f32.mrf.mxu0 }
 0x5bc   :  { %v13706_v45 = vpop.f32.mrf.mxu2 }
 0x5bd   :  { %v2962_v1 = vpop.f32.mrf.mxu3 }
 0x5be   :  { %v2963_v7 = vadd.f32 %v2962_v1, %v2660_v6  ;;  %v4228_v14 = vpop.f32.mrf.mxu1  ;;  %v1741_v6 = vpack.c.b16 %v1505_v46, %v1505_v46  ;;  %v16098_v1 = vld [vmem:[#allocation64_spill] sm:$0xff] }
 0x5bf   :  { %v16100_v41 = vpack.c.bf16 %v16098_v1, %v16099_v25 }
 0x5c0   :  { %v13711_v47 = vadd.f32 %v3265_v19, %v2963_v7  ;;  %v16101_v19 = vpack.c.bf16 %v13349_v24, %v13323_v3 }
 0x5c3   :  { %v3275_v43 = vpop.f32.mrf.mxu0 }
 0x5c4   :  { %v13717_v13 = vpop.f32.mrf.mxu2 }
 0x5c5   :  { %v2964_v15 = vpop.f32.mrf.mxu3 }
 0x5c6   :  { %v2965_v59 = vadd.f32 %v2964_v15, %v2662_v58  ;;  %v13719_v36 = vpop.f32.mrf.mxu1 }
 0x5c8   :  { %v13735_v46 = vadd.f32 %v3267_v52, %v2965_v59  ;;  %v16106_v52 = vpack.c.bf16 %v13381_v61, %v13365_v32  ;;  %v16108_v59 = vld [vmem:[#allocation38_spill] sm:$0xff] }
 0x5c9   :  { %4367 = vmatmul.bf16.vlgmr.msra.gmra.mxu2 %v16100_v41  ;;  %4458 = vmatmul.bf16.gmra.mxu1 %v16101_v19  ;;  %v16103_v19 = vld [vmem:[#allocation66_spill] sm:$0xff] }
 0x5ca   :  { %3006 = vmatmul.bf16.gmra.mxu3 %v1741_v6  ;;  %v16102_v6 = vld [vmem:[#allocation79_spill] sm:$0xff] }
 0x5cb   :  { %v13727_v50 = vpop.f32.mrf.mxu0  ;;  %v2667_v1 = vadd.f32 %v13408_v22, %v16102_v6  ;;  %v2670_v22 = vadd.f32 %v13425_v62, %v13061_v27 }
 0x5cc   :  { %v13731_v7 = vpop.f32.mrf.mxu2 }
 0x5cd   :  { %v2967_v14 = vpop.f32.mrf.mxu3 }
 0x5ce   :  { %v2968_v63 = vadd.f32 %v2967_v14, %v2665_v20  ;;  %v13733_v58 = vpop.f32.mrf.mxu1  ;;  %v16104_v20 = vld [vmem:[#allocation65_spill] sm:$0xff] }
 0x5cf   :  { %v16105_v14 = vpack.c.bf16 %v16103_v19, %v16104_v20 }
 0x5d0   :  { %v13737_v15 = vadd.f32 %v3270_v55, %v2968_v63  ;;  %v16107_v55 = vld [vmem:[#allocation39_spill] sm:$0xff] }
 0x5d1   :  { %v16109_v63 = vpack.c.bf16 %v16107_v55, %v16108_v59  ;;  %v16110_v59 = vld [vmem:[#allocation68_spill] sm:$0xff] }
 0x5d3   :  { %v3280_v3 = vpop.f32.mrf.mxu0 }
 0x5d4   :  { %v2706_v25 = vpop.f32.mrf.mxu2 }
 0x5d5   :  { %v2969_v41 = vpop.f32.mrf.mxu3 }
 0x5d6   :  { %v2970_v56 = vadd.f32 %v2969_v41, %v2667_v1  ;;  %v13743_v16 = vpop.f32.mrf.mxu1 }
 0x5d8   :  { %v13760_v19 = vadd.f32 %v3272_v5, %v2970_v56  ;;  %v16114_v56 = vld [vmem:[#allocation41_spill] sm:$0xff] }
 0x5d9   :  { %4372 = vmatmul.bf16.gmra.mxu2 %v16105_v14  ;;  %4463 = vmatmul.bf16.gmra.mxu1 %v16106_v52  ;;  %v2672_v14 = vadd.f32 %v13445_v51, %v13073_v8  ;;  %v2675_v51 = vadd.f32 %v13462_v23, %v13101_v34  ;;  %v16118_v34 = vld [vmem:[#allocation37_spill] sm:$0xff]  ;;  %v16119_v23 = vld [vmem:[#allocation70_spill] sm:$0xff] }
 0x5da   :  { %4281 = vmatmul.bf16.vlgmr.msrb.gmra.mxu3 %v16109_v63  ;;  %v16111_v63 = vld [vmem:[#allocation67_spill] sm:$0xff] }
 0x5db   :  { %v3282_v24 = vpop.f32.mrf.mxu0  ;;  %v16112_v5 = vpack.c.bf16 %v16110_v59, %v16111_v63 }
 0x5dc   :  { %v13756_v6 = vpop.f32.mrf.mxu2 }
 0x5dd   :  { %v2972_v1 = vpop.f32.mrf.mxu3 }
 0x5de   :  { %v2973_v25 = vadd.f32 %v2972_v1, %v2670_v22  ;;  %v13758_v41 = vpop.f32.mrf.mxu1  ;;  %v16115_v22 = vld [vmem:[#allocation40_spill] sm:$0xff] }
 0x5df   :  { %v16116_v1 = vpack.c.bf16 %v16114_v56, %v16115_v22 }
 0x5e0   :  { %v13762_v20 = vadd.f32 %v3275_v43, %v2973_v25  ;;  %v16113_v43 = vpack.c.bf16 %v13413_v60, %v13398_v11  ;;  %v2677_v11 = vadd.f32 %v13484_v37, %v13113_v21  ;;  %v10472_v21 = vld [vmem:[%s15806_s3 + $0x1f8] sm:$0xff] }
 0x5e1   :  { %v16122_v37 = vld [vmem:[#allocation7_spill] sm:$0xff]  ;;  %4488 = vmatpush.bf16.msrb.mxu2 %v10472_v21 }
 0x5e3   :  { %v3285_v61 = vpop.f32.mrf.mxu0 }
 0x5e4   :  { %v13768_v52 = vpop.f32.mrf.mxu2 }
 0x5e5   :  { %v2974_v27 = vpop.f32.mrf.mxu3 }
 0x5e6   :  { %v13770_v62 = vadd.f32 %v2974_v27, %v2672_v14  ;;  %v13772_v55 = vpop.f32.mrf.mxu1 }
 0x5e9   :  { %4377 = vmatmul.bf16.gmra.mxu2 %v16112_v5  ;;  %4468 = vmatmul.bf16.gmra.mxu1 %v16113_v43 }
 0x5ea   :  { %4286 = vmatmul.bf16.gmra.mxu3 %v16116_v1  ;;  %v16120_v1 = vpack.c.bf16 %v16118_v34, %v16119_v23  ;;  %v10470_v23 = vld [vmem:[%s15806_s3 + $0x1e8] sm:$0xff] }
 0x5eb   :  { %v3287_v8 = vpop.f32.mrf.mxu0 }
 0x5ec   :  { %v13785_v25 = vpop.f32.mrf.mxu2 }
 0x5ed   :  { %v2977_v14 = vpop.f32.mrf.mxu3 }
 0x5ee   :  { %v2978_v27 = vadd.f32 %v2977_v14, %v2675_v51  ;;  %v13787_v32 = vpop.f32.mrf.mxu1  ;;  %v16123_v51 = vld [vmem:[#allocation42_spill] sm:$0xff] }
 0x5ef   :  { %16117 = vst [vmem:[#allocation31_spill] sm:$0xff] %v13787_v32  ;;  %v16124_v14 = vpack.c.bf16 %v16122_v37, %v16123_v51  ;;  %v10469_v37 = vld [vmem:[%s15806_s3 + $0x1e0] sm:$0xff] }
 0x5f0   :  { %v13789_v59 = vadd.f32 %v3280_v3, %v2978_v27  ;;  %v16121_v3 = vpack.c.bf16 %v13450_v49, %v13435_v44  ;;  %v10471_v49 = vld [vmem:[%s15806_s3 + $0x1f0] sm:$0xff] }
 0x5f1   :  { %4489 = vmatpush.bf16.msrb.mxu2 %v10471_v49 }
 0x5f3   :  { %v3290_v63 = vpop.f32.mrf.mxu0 }
 0x5f4   :  { %v13793_v60 = vpop.f32.mrf.mxu2 }
 0x5f5   :  { %v2979_v5 = vpop.f32.mrf.mxu3  ;;  %4490 = vmatpush.bf16.msrb.mxu2 %v10470_v23  ;;  %v16130_v23 = vld [vmem:[#allocation9_spill] sm:$0xff] }
 0x5f6   :  { %v2980_v43 = vadd.f32 %v2979_v5, %v2677_v11  ;;  %v13795_v56 = vpop.f32.mrf.mxu1  ;;  %v2680_v11 = vadd.f32 %v13506_v42, %v13141_v53  ;;  %v2682_v53 = vadd.f32 %v13537_v54, %v13155_v18  ;;  %v16129_v18 = vpack.c.bf16 %v13489_v30, %v13472_v35  ;;  %v10456_v54 = vld [vmem:[%s15806_s3 + $0x178] sm:$0xff] }
 0x5f7   :  { %4402 = vmatpush.bf16.msra.mxu3 %v10456_v54  ;;  %v2685_v35 = vadd.f32 %v13563_v40, %v13185_v29  ;;  %v10454_v29 = vld [vmem:[%s15806_s3 + $0x168] sm:$0xff] }
 0x5f8   :  { %v13797_v22 = vadd.f32 %v3282_v24, %v2980_v43  ;;  %v10466_v40 = vld [vmem:[%s15806_s3 + $0x1c8] sm:$0xff] }
 0x5f9   :  { %4382 = vmatmul.bf16.gmra.mxu2 %v16120_v1  ;;  %4473 = vmatmul.bf16.gmra.mxu1 %v16121_v3 }
 0x5fa   :  { %4291 = vmatmul.bf16.gmra.mxu3 %v16124_v14  ;;  %4491 = vmatpush.bf16.msrb.mxu2 %v10469_v37 }
 0x5fb   :  { %v3292_v27 = vpop.f32.mrf.mxu0 }
 0x5fc   :  { %v13815_v5 = vpop.f32.mrf.mxu2 }
 0x5fd   :  { %v2982_v44 = vpop.f32.mrf.mxu3 }
 0x5fe   :  { %v2983_v43 = vadd.f32 %v2982_v44, %v2680_v11  ;;  %v13820_v34 = vpop.f32.mrf.mxu1  ;;  %v16127_v44 = vld [vmem:[#allocation72_spill] sm:$0xff] }
 0x5ff   :  { %16125 = vst [vmem:[#allocation30_spill] sm:$0xff] %v13820_v34  ;;  %v16147_v34 = vld [vmem:[#allocation49_spill] sm:$0xff] }
 0x600   :  { %v13825_v1 = vadd.f32 %v3285_v61, %v2983_v43  ;;  %v16126_v61 = vld [vmem:[#allocation4_spill] sm:$0xff]  ;;  %v10468_v43 = vld [vmem:[%s15806_s3 + $0x1d8] sm:$0xff] }
 0x601   :  { %v16128_v49 = vpack.c.bf16 %v16126_v61, %v16127_v44  ;;  %4492 = vmatpush.bf16.msrb.mxu2 %v10468_v43  ;;  %v10455_v61 = vld [vmem:[%s15806_s3 + $0x170] sm:$0xff] }
 0x602   :  { %v10467_v44 = vld [vmem:[%s15806_s3 + $0x1d0] sm:$0xff]  ;;  %4403 = vmatpush.bf16.msra.mxu3 %v10455_v61 }
 0x603   :  { %v3295_v3 = vpop.f32.mrf.mxu0 }
 0x604   :  { %v13829_v42 = vpop.f32.mrf.mxu2 }
 0x605   :  { %v2984_v21 = vpop.f32.mrf.mxu3  ;;  %4493 = vmatpush.bf16.msrb.mxu2 %v10467_v44  ;;  %v3608_v44 = vpack.c.bf16 %v13525_v38, %v13525_v38 }
 0x606   :  { %v2985_v51 = vadd.f32 %v2984_v21, %v2682_v53  ;;  %v13834_v14 = vpop.f32.mrf.mxu1  ;;  %v16131_v53 = vld [vmem:[#allocation43_spill] sm:$0xff]  ;;  %4404 = vmatpush.bf16.msra.mxu3 %v10454_v29  ;;  %v16137_v21 = vld [vmem:[#allocation46_spill] sm:$0xff] }
 0x608   :  { %v13836_v11 = vadd.f32 %v3287_v8, %v2985_v51  ;;  %v16132_v8 = vpack.c.bf16 %v16130_v23, %v16131_v53  ;;  %v2687_v23 = vadd.f32 %v13598_v9, %v13211_v57  ;;  %v16134_v9 = vld [vmem:[#allocation6_spill] sm:$0xff] }
 0x609   :  { %4387 = vmatmul.bf16.gmra.mxu2 %v16128_v49  ;;  %4478 = vmatmul.bf16.gmra.mxu1 %v16129_v18 }
 0x60a   :  { %4296 = vmatmul.bf16.gmra.mxu3 %v16132_v8  ;;  %4494 = vmatpush.bf16.msrb.mxu2 %v10466_v40  ;;  %v10452_v40 = vld [vmem:[%s15806_s3 + $0x158] sm:$0xff] }
 0x60b   :  { %v3297_v37 = vpop.f32.mrf.mxu0 }
 0x60c   :  { %v13857_v30 = vpop.f32.mrf.mxu2 }
 0x60d   :  { %v2987_v51 = vpop.f32.mrf.mxu3 }
 0x60e   :  { %v2988_v49 = vadd.f32 %v2987_v51, %v2685_v35  ;;  %v13865_v18 = vpop.f32.mrf.mxu1  ;;  %v10453_v35 = vld [vmem:[%s15806_s3 + $0x160] sm:$0xff] }
 0x60f   :  { %16133 = vst [vmem:[#allocation59_spill] sm:$0xff] %v13865_v18  ;;  %v10465_v51 = vld [vmem:[%s15806_s3 + $0x1c0] sm:$0xff]  ;;  %4405 = vmatpush.bf16.msra.mxu3 %v10453_v35 }
 0x610   :  { %v13873_v54 = vadd.f32 %v3290_v63, %v2988_v49  ;;  %4495 = vmatpush.bf16.msrb.mxu2 %v10465_v51  ;;  %v16135_v49 = vld [vmem:[#allocation73_spill] sm:$0xff] }
 0x611   :  { %v16136_v29 = vpack.c.bf16 %v16134_v9, %v16135_v49 }
 0x613   :  { %v3300_v43 = vpop.f32.mrf.mxu0  ;;  %4406 = vmatpush.bf16.msra.mxu3 %v10452_v40 }
 0x614   :  { %v13877_v53 = vpop.f32.mrf.mxu2 }
 0x615   :  { %v2989_v8 = vpop.f32.mrf.mxu3 }
 0x616   :  { %v2990_v61 = vadd.f32 %v2989_v8, %v2687_v23  ;;  %v13885_v63 = vpop.f32.mrf.mxu1  ;;  %v16138_v23 = vld [vmem:[#allocation45_spill] sm:$0xff] }
 0x617   :  { %v16139_v8 = vpack.c.bf16 %v16137_v21, %v16138_v23  ;;  %v10450_v21 = vld [vmem:[%s15806_s3 + $0x148] sm:$0xff] }
 0x618   :  { %v13889_v57 = vadd.f32 %v3292_v27, %v2990_v61  ;;  %v2690_v27 = vadd.f32 %v13625_v28, %v13245_v0  ;;  %v2692_v0 = vadd.f32 %v13654_v33, %v13264_v26 }
 0x619   :  { %4392 = vmatmul.bf16.gmra.mxu2 %v16136_v29  ;;  %4483 = vmatmul.bf16.gmra.mxu1 %v3608_v44  ;;  %v10451_v44 = vld [vmem:[%s15806_s3 + $0x150] sm:$0xff] }
 0x61a   :  { %4301 = vmatmul.bf16.gmra.mxu3 %v16139_v8  ;;  %v10449_v8 = vld [vmem:[%s15806_s3 + $0x140] sm:$0xff] }
 0x61b   :  { %v3302_v35 = vpop.f32.mrf.mxu0  ;;  %4407 = vmatpush.bf16.msra.mxu3 %v10451_v44  ;;  %v16141_v44 = vld [vmem:[#allocation75_spill] sm:$0xff] }
 0x61c   :  { %v13904_v51 = vpop.f32.mrf.mxu2  ;;  %v3606_v38 = vpack.c.bf16 %v16141_v44, %v16141_v44 }
 0x61d   :  { %v2992_v61 = vpop.f32.mrf.mxu3 }
 0x61e   :  { %v2993_v9 = vadd.f32 %v2992_v61, %v2690_v27  ;;  %v13909_v49 = vpop.f32.mrf.mxu1 }
 0x61f   :  { %16140 = vst [vmem:[#allocation58_spill] sm:$0xff] %v13909_v49  ;;  %4408 = vmatpush.bf16.msra.mxu3 %v10450_v21  ;;  %v16143_v21 = vld [vmem:[#allocation48_spill] sm:$0xff] }
 0x620   :  { %v13914_v29 = vadd.f32 %v3295_v3, %v2993_v9  ;;  %v16142_v9 = vld [vmem:[#allocation14_spill] sm:$0xff] }
 0x621   :  { %v16144_v26 = vpack.c.bf16 %v16142_v9, %v16143_v21 }
 0x623   :  { %v3305_v40 = vpop.f32.mrf.mxu0  ;;  %4409 = vmatpush.bf16.msra.mxu3 %v10449_v8 }
 0x624   :  { %v13918_v28 = vpop.f32.mrf.mxu2 }
 0x625   :  { %v2994_v23 = vpop.f32.mrf.mxu3 }
 0x626   :  { %v2995_v27 = vadd.f32 %v2994_v23, %v2692_v0  ;;  %v13923_v61 = vpop.f32.mrf.mxu1  ;;  %v2695_v0 = vadd.f32 %v13669_v48, %v16145_v31  ;;  %v3604_v48 = vpack.c.bf16 %v16147_v34, %v16147_v34  ;;  %v10538_v34 = vld [vmem:[%s15807_s7 + $0x138] sm:$0xff] }
 0x627   :  { %5742 = vmatpush.bf16.msra.mxu0 %v10538_v34 }
 0x628   :  { %v13927_v3 = vadd.f32 %v3297_v37, %v2995_v27 }
 0x629   :  { %4397 = vmatmul.bf16.gmra.mxu2 %v3606_v38  ;;  %v16146_v38 = vld [vmem:[#allocation19_spill] sm:$0xff] }
 0x62a   :  { %4306 = vmatmul.bf16.gmra.mxu3 %v16144_v26  ;;  %v2697_v27 = vadd.f32 %v13691_v39, %v16146_v38 }
 0x62b   :  { %v3307_v24 = vpop.f32.mrf.mxu0 }
 0x62c   :  { %v13936_v23 = vpop.f32.mrf.mxu2 }
 0x62d   :  { %v2997_v49 = vpop.f32.mrf.mxu3 }
 0x62e   :  { %v2998_v18 = vadd.f32 %v2997_v49, %v2695_v0  ;;  %v4357_v44 = vpop.f32.mrf.mxu1  ;;  %v16148_v49 = vld [vmem:[#allocation26_spill] sm:$0xff] }
 0x62f   :  { %v16149_v0 = vpack.c.bf16 %v13586_v12, %v16148_v49 }
 0x630   :  { %v13938_v8 = vadd.f32 %v3300_v43, %v2998_v18  ;;  %v16150_v43 = vld [vmem:[#allocation22_spill] sm:$0xff] }
 0x631   :  { %v2700_v44 = vadd.f32 %v13706_v45, %v16150_v43  ;;  %v16153_v43 = vpack.c.bf16 %v13642_v17, %v13610_v4 }
 0x633   :  { %v3310_v37 = vpop.f32.mrf.mxu0 }
 0x634   :  { %v13942_v9 = vpop.f32.mrf.mxu2 }
 0x635   :  { %v2999_v21 = vpop.f32.mrf.mxu3 }
 0x636   :  { %v3000_v26 = vadd.f32 %v2999_v21, %v2697_v27  ;;  %v13944_v33 = vpop.f32.mrf.mxu1 }
 0x638   :  { %v13948_v31 = vadd.f32 %v3302_v35, %v3000_v26  ;;  %v16152_v35 = vld [vmem:[#allocation21_spill] sm:$0xff] }
 0x639   :  { %4496 = vmatmul.bf16.vlgmr.msrb.gmra.mxu2 %v16149_v0  ;;  %v2702_v26 = vadd.f32 %v13717_v13, %v16152_v35 }
 0x63a   :  { %4311 = vmatmul.bf16.gmra.mxu3 %v3604_v48 }
 0x63b   :  { %v3312_v39 = vpop.f32.mrf.mxu0 }
 0x63c   :  { %v13957_v38 = vpop.f32.mrf.mxu2 }
 0x63d   :  { %v3002_v27 = vpop.f32.mrf.mxu3 }
 0x63e   :  { %v3003_v21 = vadd.f32 %v3002_v27, %v2700_v44  ;;  %v13959_v32 = vpop.f32.mrf.mxu1  ;;  %v16154_v44 = vld [vmem:[#allocation78_spill] sm:$0xff]  ;;  %v16155_v27 = vld [vmem:[#allocation76_spill] sm:$0xff] }
 0x63f   :  { %16151 = vst [vmem:[#allocation71_spill] sm:$0xff] %v13959_v32  ;;  %v16156_v18 = vpack.c.bf16 %v16154_v44, %v16155_v27  ;;  %v16162_v44 = vld [vmem:[#allocation44_spill] sm:$0xff] }
 0x640   :  { %v13964_v12 = vadd.f32 %v3305_v40, %v3003_v21  ;;  %v16157_v21 = vld [vmem:[#allocation23_spill] sm:$0xff] }
 0x641   :  { %v2705_v13 = vadd.f32 %v13731_v7, %v16157_v21  ;;  %v16164_v7 = vld [vmem:[#allocation51_spill] sm:$0xff] }
 0x642   :  { %v4240_v21 = vadd.f32 %v13756_v6, %v16164_v7  ;;  %v16166_v6 = vpack.c.bf16 %v13711_v47, %v13709_v2  ;;  %v16168_v7 = vld [vmem:[#allocation47_spill] sm:$0xff]  ;;  %v16171_v2 = vld [vmem:[#allocation24_spill] sm:$0xff] }
 0x643   :  { %v4247_v47 = vadd.f32 %v13793_v60, %v16171_v2 }
 0x644   :  { %v4271_v48 = vpop.f32.mrf.mxu2 }
 0x645   :  { %v3004_v49 = vpop.f32.mrf.mxu3 }
 0x646   :  { %v3005_v0 = vadd.f32 %v3004_v49, %v2702_v26  ;;  %v13968_v45 = vpop.f32.mrf.mxu1 }
 0x648   :  { %v13970_v39 = vadd.f32 %v3307_v24, %v3005_v0  ;;  %v16159_v0 = vld [vmem:[#allocation56_spill] sm:$0xff] }
 0x649   :  { %4501 = vmatmul.bf16.gmra.mxu2 %v16153_v43  ;;  %v16161_v43 = vld [vmem:[#allocation80_spill] sm:$0xff] }
 0x64a   :  { %4410 = vmatmul.bf16.vlgmr.msra.gmra.mxu3 %v16156_v18  ;;  %v16160_v18 = vpack.c.bf16 %v13679_v10, %v16159_v0  ;;  %v16163_v27 = vpack.c.bf16 %v16161_v43, %v16162_v44 }
 0x64c   :  { %v4368_v34 = vpop.f32.mrf.mxu2 }
 0x64d   :  { %v3007_v35 = vpop.f32.mrf.mxu3 }
 0x64e   :  { %v3008_v26 = vadd.f32 %v3007_v35, %v2705_v13  ;;  %v13982_v48 = vpop.f32.mrf.mxu1 }
 0x64f   :  { %16158 = vst [vmem:[#allocation33_spill] sm:$0xff] %v13982_v48  ;;  %v16165_v48 = vld [vmem:[#allocation50_spill] sm:$0xff] }
 0x650   :  { %v13984_v24 = vadd.f32 %v3310_v37, %v3008_v26  ;;  %v4242_v10 = vadd.f32 %v13768_v52, %v16165_v48 }
 0x654   :  { %v4370_v49 = vpop.f32.mrf.mxu2 }
 0x655   :  { %v3009_v4 = vpop.f32.mrf.mxu3 }
 0x656   :  { %v13986_v17 = vpop.f32.mrf.mxu1 }
 0x659   :  { %4506 = vmatmul.bf16.gmra.mxu2 %v16160_v18 }
 0x65a   :  { %4415 = vmatmul.bf16.gmra.mxu3 %v16163_v27  ;;  %v16167_v27 = vld [vmem:[#allocation11_spill] sm:$0xff] }
 0x65c   :  { %v4373_v13 = vpop.f32.mrf.mxu2 }
 0x65d   :  { %v4282_v35 = vpop.f32.mrf.mxu3 }
 0x65e   :  { %v4283_v40 = vadd.f32 %v4282_v35, %v4240_v21  ;;  %v13996_v37 = vpop.f32.mrf.mxu1  ;;  %v16169_v21 = vpack.c.bf16 %v16167_v27, %v16168_v7  ;;  %v16174_v27 = vld [vmem:[#allocation10_spill] sm:$0xff] }
 0x660   :  { %v4326_v26 = vadd.f32 %v13719_v36, %v4283_v40  ;;  %v16170_v40 = vld [vmem:[#allocation25_spill] sm:$0xff] }
 0x661   :  { %v4245_v52 = vadd.f32 %v13785_v25, %v16170_v40 }
 0x662   :  { %v13999_v4 = vadd.f32 %v4368_v34, %v4326_v26 }
 0x664   :  { %v4375_v0 = vpop.f32.mrf.mxu2 }
 0x665   :  { %v4284_v18 = vpop.f32.mrf.mxu3 }
 0x666   :  { %v4285_v32 = vadd.f32 %v4284_v18, %v4242_v10  ;;  %v14003_v43 = vpop.f32.mrf.mxu1 }
 0x668   :  { %v4328_v44 = vadd.f32 %v13733_v58, %v4285_v32 }
 0x669   :  { %4511 = vmatmul.bf16.gmra.mxu2 %v16166_v6  ;;  %v16172_v6 = vpack.c.bf16 %v13737_v15, %v13735_v46  ;;  %v10479_v46 = vld [vmem:[%s15806_s3 + $0x230] sm:$0xff] }
 0x66a   :  { %4420 = vmatmul.bf16.gmra.mxu3 %v16169_v21  ;;  %v14012_v36 = vadd.f32 %v4370_v49, %v4328_v44  ;;  %v16176_v21 = vld [vmem:[#allocation53_spill] sm:$0xff] }
 0x66b   :  { %v4250_v40 = vadd.f32 %v13815_v5, %v16176_v21  ;;  %v16177_v5 = vld [vmem:[#allocation52_spill] sm:$0xff] }
 0x66c   :  { %v4378_v34 = vpop.f32.mrf.mxu2  ;;  %v4252_v2 = vadd.f32 %v13829_v42, %v16177_v5  ;;  %v10476_v42 = vld [vmem:[%s15806_s3 + $0x218] sm:$0xff] }
 0x66d   :  { %v4287_v48 = vpop.f32.mrf.mxu3 }
 0x66e   :  { %v4288_v35 = vadd.f32 %v4287_v48, %v4245_v52  ;;  %v14016_v26 = vpop.f32.mrf.mxu1 }
 0x670   :  { %v4331_v58 = vadd.f32 %v13743_v16, %v4288_v35  ;;  %v10480_v16 = vld [vmem:[%s15806_s3 + $0x238] sm:$0xff] }
 0x671   :  { %4531 = vmatpush.bf16.msrb.mxu3 %v10480_v16  ;;  %v16180_v16 = vld [vmem:[#allocation12_spill] sm:$0xff] }
 0x672   :  { %v14019_v32 = vadd.f32 %v4373_v13, %v4331_v58  ;;  %v16173_v13 = vld [vmem:[#allocation13_spill] sm:$0xff] }
 0x673   :  { %v16175_v7 = vpack.c.bf16 %v16173_v13, %v16174_v27  ;;  %v16182_v27 = vld [vmem:[#allocation27_spill] sm:$0xff] }
 0x674   :  { %v14023_v10 = vpop.f32.mrf.mxu2 }
 0x675   :  { %v4289_v18 = vpop.f32.mrf.mxu3  ;;  %4532 = vmatpush.bf16.msrb.mxu3 %v10479_v46 }
 0x676   :  { %v4290_v49 = vadd.f32 %v4289_v18, %v4247_v47  ;;  %v14025_v44 = vpop.f32.mrf.mxu1 }
 0x678   :  { %v4333_v25 = vadd.f32 %v13758_v41, %v4290_v49  ;;  %v10477_v49 = vld [vmem:[%s15806_s3 + $0x220] sm:$0xff] }
 0x679   :  { %4516 = vmatmul.bf16.gmra.mxu2 %v16172_v6  ;;  %v16179_v6 = vld [vmem:[#allocation16_spill] sm:$0xff] }
 0x67a   :  { %4425 = vmatmul.bf16.gmra.mxu3 %v16175_v7  ;;  %v14037_v60 = vadd.f32 %v4375_v0, %v4333_v25  ;;  %v10478_v0 = vld [vmem:[%s15806_s3 + $0x228] sm:$0xff]  ;;  %v16181_v13 = vpack.c.bf16 %v16179_v6, %v16180_v16  ;;  %v4255_v7 = vadd.f32 %v13857_v30, %v16182_v27  ;;  %v3278_v30 = vadd.f32 %v13727_v50, %v13770_v62  ;;  %v16185_v50 = vld [vmem:[#allocation15_spill] sm:$0xff]  ;;  %v16187_v6 = vld [vmem:[#allocation54_spill] sm:$0xff] }
 0x67b   :  { %4533 = vmatpush.bf16.msrb.mxu3 %v10478_v0  ;;  %v16183_v0 = vld [vmem:[#allocation55_spill] sm:$0xff] }
 0x67c   :  { %v4383_v52 = vpop.f32.mrf.mxu2  ;;  %v4257_v5 = vadd.f32 %v13877_v53, %v16183_v0  ;;  %v4260_v53 = vadd.f32 %v13904_v51, %v16187_v6  ;;  %v16190_v51 = vld [vmem:[#allocation28_spill] sm:$0xff] }
 0x67d   :  { %v4292_v41 = vpop.f32.mrf.mxu3 }
 0x67e   :  { %v4293_v15 = vadd.f32 %v4292_v41, %v4250_v40  ;;  %v14044_v48 = vpop.f32.mrf.mxu1  ;;  %v10475_v41 = vld [vmem:[%s15806_s3 + $0x210] sm:$0xff] }
 0x67f   :  { %4534 = vmatpush.bf16.msrb.mxu3 %v10477_v49 }
 0x680   :  { %v4336_v35 = vadd.f32 %v13772_v55, %v4293_v15  ;;  %v10474_v15 = vld [vmem:[%s15806_s3 + $0x208] sm:$0xff] }
 0x682   :  { %v14050_v58 = vadd.f32 %v4378_v34, %v4336_v35  ;;  %v16178_v34 = vpack.c.bf16 %v13762_v20, %v13760_v19 }
 0x683   :  { %4535 = vmatpush.bf16.msrb.mxu3 %v10476_v42  ;;  %v16184_v42 = vld [vmem:[#allocation18_spill] sm:$0xff] }
 0x684   :  { %v14054_v47 = vpop.f32.mrf.mxu2  ;;  %v16186_v62 = vpack.c.bf16 %v16184_v42, %v16185_v50 }
 0x685   :  { %v4294_v18 = vpop.f32.mrf.mxu3 }
 0x686   :  { %v14059_v25 = vadd.f32 %v4294_v18, %v4252_v2  ;;  %v14061_v55 = vpop.f32.mrf.mxu1 }
 0x687   :  { %4536 = vmatpush.bf16.msrb.mxu3 %v10475_v41 }
 0x689   :  { %4521 = vmatmul.bf16.gmra.mxu2 %v16178_v34 }
 0x68a   :  { %4430 = vmatmul.bf16.gmra.mxu3 %v16181_v13 }
 0x68b   :  { %4537 = vmatpush.bf16.msrb.mxu3 %v10474_v15 }
 0x68c   :  { %v4388_v21 = vpop.f32.mrf.mxu2 }
 0x68d   :  { %v4297_v40 = vpop.f32.mrf.mxu3 }
 0x68e   :  { %v4298_v19 = vadd.f32 %v4297_v40, %v4255_v7  ;;  %v14077_v20 = vpop.f32.mrf.mxu1 }
 0x690   :  { %v4341_v46 = vadd.f32 %v13795_v56, %v4298_v19  ;;  %v10473_v56 = vld [vmem:[%s15806_s3 + $0x200] sm:$0xff]  ;;  %v16188_v19 = vld [vmem:[#allocation29_spill] sm:$0xff] }
 0x691   :  { %4538 = vmatpush.bf16.msrb.mxu3 %v10473_v56  ;;  %v4265_v56 = vadd.f32 %v13936_v23, %v16190_v51  ;;  %v16192_v23 = vpack.c.bf16 %v13797_v22, %v13789_v59 }
 0x692   :  { %v14083_v35 = vadd.f32 %v4383_v52, %v4341_v46  ;;  %v3609_v52 = vpack.c.bf16 %v3278_v30, %v3278_v30  ;;  %v4262_v46 = vadd.f32 %v13918_v28, %v16188_v19 }
 0x694   :  { %v14089_v2 = vpop.f32.mrf.mxu2 }
 0x695   :  { %v4299_v18 = vpop.f32.mrf.mxu3 }
 0x696   :  { %v14094_v49 = vadd.f32 %v4299_v18, %v4257_v5  ;;  %v14096_v34 = vpop.f32.mrf.mxu1  ;;  %v16189_v5 = vld [vmem:[#allocation17_spill] sm:$0xff] }
 0x697   :  { %v3607_v18 = vpack.c.bf16 %v16189_v5, %v16189_v5 }
 0x699   :  { %4526 = vmatmul.bf16.gmra.mxu2 %v3609_v52 }
 0x69a   :  { %4435 = vmatmul.bf16.gmra.mxu3 %v16186_v62  ;;  %v16191_v62 = vld [vmem:[#allocation57_spill] sm:$0xff] }
 0x69b   :  { %v4267_v28 = vadd.f32 %v13942_v9, %v16191_v62 }
 0x69c   :  { %v4393_v16 = vpop.f32.mrf.mxu2 }
 0x69d   :  { %v4302_v13 = vpop.f32.mrf.mxu3 }
 0x69e   :  { %v4303_v27 = vadd.f32 %v4302_v13, %v4260_v53  ;;  %v4486_v7 = vpop.f32.mrf.mxu1 }
 0x69f   :  { %v16193_v7 = vld [vmem:[#allocation69_spill] sm:$0xff] }
 0x6a0   :  { %v4346_v40 = vadd.f32 %v13834_v14, %v4303_v27  ;;  %v10537_v27 = vld [vmem:[%s15807_s7 + $0x130] sm:$0xff] }
 0x6a1   :  { %5743 = vmatpush.bf16.msra.mxu0 %v10537_v27 }
 0x6a2   :  { %v14104_v41 = vadd.f32 %v4388_v21, %v4346_v40 }
 0x6a4   :  { %v14108_v15 = vpop.f32.mrf.mxu2 }
 0x6a5   :  { %v4304_v30 = vpop.f32.mrf.mxu3 }
 0x6a6   :  { %v14110_v0 = vadd.f32 %v4304_v30, %v4262_v46 }
 0x6aa   :  { %4440 = vmatmul.bf16.gmra.mxu3 %v3607_v18  ;;  %v16194_v18 = vpack.c.bf16 %v13836_v11, %v13825_v1 }
 0x6ac   :  { %v4398_v52 = vpop.f32.mrf.mxu2 }
 0x6ad   :  { %v4307_v42 = vpop.f32.mrf.mxu3 }
 0x6ae   :  { %v4308_v14 = vadd.f32 %v4307_v42, %v4265_v56 }
 0x6b0   :  { %v4351_v21 = vadd.f32 %v13885_v63, %v4308_v14  ;;  %v4270_v63 = vadd.f32 %v13957_v38, %v16193_v7  ;;  %v16197_v7 = vpack.c.bf16 %v13948_v31, %v13938_v8 }
 0x6b2   :  { %v4394_v50 = vadd.f32 %v4393_v16, %v4351_v21 }
 0x6b4   :  { %v4400_v6 = vpop.f32.mrf.mxu2 }
 0x6b5   :  { %v4309_v53 = vpop.f32.mrf.mxu3 }
 0x6b6   :  { %v14119_v13 = vadd.f32 %v4309_v53, %v4267_v28 }
 0x6ba   :  { %4539 = vmatmul.bf16.vlgmr.msrb.gmra.mxu3 %v16192_v23 }
 0x6bc   :  { %v4497_v16 = vpop.f32.mrf.mxu2 }
 0x6bd   :  { %v4312_v40 = vpop.f32.mrf.mxu3 }
 0x6be   :  { %v4313_v19 = vadd.f32 %v4312_v40, %v4270_v63  ;;  %v16198_v40 = vpack.c.bf16 %v13970_v39, %v13964_v12 }
 0x6c0   :  { %v4356_v9 = vadd.f32 %v13923_v61, %v4313_v19 }
 0x6c2   :  { %v4399_v46 = vadd.f32 %v4398_v52, %v4356_v9  ;;  %v16195_v52 = vpack.c.bf16 %v13889_v57, %v13873_v54 }
 0x6c4   :  { %v14130_v30 = vpop.f32.mrf.mxu2 }
 0x6c5   :  { %v4314_v5 = vpop.f32.mrf.mxu3 }
 0x6ca   :  { %4544 = vmatmul.bf16.gmra.mxu3 %v16194_v18  ;;  %v3610_v18 = vpack.c.bf16 %v13984_v24, %v13984_v24 }
 0x6cc   :  { %v4502_v51 = vpop.f32.mrf.mxu2 }
 0x6cd   :  { %v4411_v59 = vpop.f32.mrf.mxu3 }
 0x6ce   :  { %v4412_v22 = vadd.f32 %v4411_v59, %v13999_v4 }
 0x6d0   :  { %v4455_v56 = vadd.f32 %v13944_v33, %v4412_v22 }
 0x6d2   :  { %v4498_v38 = vadd.f32 %v4497_v16, %v4455_v56 }
 0x6d4   :  { %v14137_v42 = vpop.f32.mrf.mxu2 }
 0x6d5   :  { %v4413_v14 = vpop.f32.mrf.mxu3 }
 0x6d6   :  { %v4414_v61 = vadd.f32 %v4413_v14, %v14012_v36  ;;  %v16196_v36 = vpack.c.bf16 %v13927_v3, %v13914_v29 }
 0x6da   :  { %4549 = vmatmul.bf16.gmra.mxu3 %v16195_v52 }
 0x6dc   :  { %v4507_v21 = vpop.f32.mrf.mxu2 }
 0x6dd   :  { %v4416_v62 = vpop.f32.mrf.mxu3 }
 0x6de   :  { %v4417_v1 = vadd.f32 %v4416_v62, %v14019_v32 }
 0x6e0   :  { %v4460_v11 = vadd.f32 %v13968_v45, %v4417_v1 }
 0x6e2   :  { %v14145_v28 = vadd.f32 %v4502_v51, %v4460_v11 }
 0x6e4   :  { %v14147_v4 = vpop.f32.mrf.mxu2 }
 0x6e5   :  { %v4418_v33 = vpop.f32.mrf.mxu3 }
 0x6e6   :  { %v4419_v6 = vadd.f32 %v4418_v33, %v14037_v60 }
 0x6ea   :  { %4554 = vmatmul.bf16.gmra.mxu3 %v16196_v36 }
 0x6ec   :  { %v4512_v53 = vpop.f32.mrf.mxu2 }
 0x6ed   :  { %v4421_v54 = vpop.f32.mrf.mxu3 }
 0x6ee   :  { %v4422_v57 = vadd.f32 %v4421_v54, %v14050_v58 }
 0x6f0   :  { %v4465_v27 = vadd.f32 %v13986_v17, %v4422_v57 }
 0x6f2   :  { %v14155_v32 = vadd.f32 %v4507_v21, %v4465_v27  ;;  %v10536_v21 = vld [vmem:[%s15807_s7 + $0x128] sm:$0xff]  ;;  %v16201_v27 = vld [vmem:[#allocation30_spill] sm:$0xff] }
 0x6f3   :  { %5744 = vmatpush.bf16.msra.mxu0 %v10536_v21 }
 0x6f4   :  { %v14157_v45 = vpop.f32.mrf.mxu2 }
 0x6f5   :  { %v4423_v23 = vpop.f32.mrf.mxu3 }
 0x6fa   :  { %4559 = vmatmul.bf16.gmra.mxu3 %v16197_v7  ;;  %v4343_v7 = vadd.f32 %v16201_v27, %v14094_v49 }
 0x6fc   :  { %v4517_v60 = vpop.f32.mrf.mxu2 }
 0x6fd   :  { %v4426_v63 = vpop.f32.mrf.mxu3 }
 0x6fe   :  { %v4427_v29 = vadd.f32 %v4426_v63, %v14083_v35 }
 0x700   :  { %v4470_v3 = vadd.f32 %v14003_v43, %v4427_v29  ;;  %v16202_v29 = vld [vmem:[#allocation33_spill] sm:$0xff] }
 0x702   :  { %v14164_v16 = vadd.f32 %v4512_v53, %v4470_v3  ;;  %v16199_v53 = vld [vmem:[#allocation31_spill] sm:$0xff]  ;;  %v4462_v3 = vadd.f32 %v16202_v29, %v4419_v6  ;;  %v16204_v29 = vld [vmem:[#allocation58_spill] sm:$0xff] }
 0x704   :  { %v14166_v58 = vpop.f32.mrf.mxu2  ;;  %v4505_v49 = vadd.f32 %v14137_v42, %v4462_v3  ;;  %v4353_v3 = vadd.f32 %v16204_v29, %v14119_v13 }
 0x705   :  { %v4428_v17 = vpop.f32.mrf.mxu3 }
 0x70a   :  { %4564 = vmatmul.bf16.gmra.mxu3 %v16198_v40  ;;  %v4386_v40 = vadd.f32 %v14054_v47, %v4343_v7 }
 0x70c   :  { %v4522_v19 = vpop.f32.mrf.mxu2 }
 0x70d   :  { %v4431_v9 = vpop.f32.mrf.mxu3 }
 0x70e   :  { %v4432_v8 = vadd.f32 %v4431_v9, %v14104_v41 }
 0x710   :  { %v4475_v31 = vadd.f32 %v14025_v44, %v4432_v8 }
 0x712   :  { %v14173_v5 = vadd.f32 %v4517_v60, %v4475_v31 }
 0x714   :  { %v14175_v35 = vpop.f32.mrf.mxu2 }
 0x715   :  { %v14177_v43 = vpop.f32.mrf.mxu3 }
 0x71a   :  { %4569 = vmatmul.bf16.gmra.mxu3 %v3610_v18 }
 0x71c   :  { %v4527_v51 = vpop.f32.mrf.mxu2 }
 0x71d   :  { %v4436_v59 = vpop.f32.mrf.mxu3 }
 0x71e   :  { %v4437_v12 = vadd.f32 %v4436_v59, %v4394_v50 }
 0x720   :  { %v4480_v39 = vadd.f32 %v14061_v55, %v4437_v12 }
 0x722   :  { %v14182_v22 = vadd.f32 %v4522_v19, %v4480_v39 }
 0x724   :  { %v4529_v41 = vpop.f32.mrf.mxu2 }
 0x725   :  { %v14184_v56 = vpop.f32.mrf.mxu3 }
 0x72d   :  { %v4441_v44 = vpop.f32.mrf.mxu3 }
 0x72e   :  { %v4442_v14 = vadd.f32 %v4441_v44, %v4399_v46  ;;  %v4338_v46 = vadd.f32 %v16199_v53, %v14059_v25  ;;  %v4429_v25 = vadd.f32 %v4428_v17, %v4386_v40  ;;  %v4396_v40 = vadd.f32 %v14108_v15, %v4353_v3 }
 0x730   :  { %v4485_v52 = vadd.f32 %v14096_v34, %v4442_v14  ;;  %v16200_v34 = vld [vmem:[#allocation71_spill] sm:$0xff]  ;;  %v4381_v60 = vadd.f32 %v14023_v10, %v4338_v46 }
 0x731   :  { %v4457_v57 = vadd.f32 %v16200_v34, %v4414_v61 }
 0x732   :  { %v14190_v24 = vadd.f32 %v4527_v51, %v4485_v52  ;;  %v4424_v63 = vadd.f32 %v4423_v23, %v4381_v60 }
 0x734   :  { %v4467_v9 = vadd.f32 %v13996_v37, %v4424_v63 }
 0x735   :  { %v4443_v62 = vpop.f32.mrf.mxu3 }
 0x736   :  { %v4510_v47 = vadd.f32 %v14147_v4, %v4467_v9  ;;  %v16203_v4 = vld [vmem:[#allocation59_spill] sm:$0xff] }
 0x737   :  { %v4348_v51 = vadd.f32 %v16203_v4, %v14110_v0 }
 0x739   :  { %v4391_v0 = vadd.f32 %v14089_v2, %v4348_v51 }
 0x73d   :  { %v4540_v50 = vpop.f32.mrf.mxu3 }
 0x73e   :  { %v14192_v1 = vadd.f32 %v4540_v50, %v4498_v38  ;;  %v4500_v38 = vadd.f32 %v14130_v30, %v4457_v57  ;;  %v4472_v30 = vadd.f32 %v14016_v26, %v4429_v25  ;;  %v4439_v25 = vadd.f32 %v14184_v56, %v4396_v40 }
 0x740   :  { %v4593_v6 = vmul.f32 %v14192_v1, %v14192_v1  ;;  %v4515_v59 = vadd.f32 %v14157_v45, %v4472_v30 }
 0x745   :  { %v4542_v55 = vpop.f32.mrf.mxu3 }
 0x746   :  { %v14203_v19 = vadd.f32 %v4542_v55, %v4500_v38 }
 0x748   :  { %v4594_v10 = vmul.f32 %v14203_v19, %v14203_v19  ;;  %v4574_v37 = vadd.f32 %v14203_v19, %v14192_v1 }
 0x74a   :  { %v4606_v17 = vadd.f32 %v4594_v10, %v4593_v6 }
 0x74d   :  { %v4545_v11 = vpop.f32.mrf.mxu3 }
 0x74e   :  { %v14207_v61 = vadd.f32 %v4545_v11, %v14145_v28  ;;  %v4434_v11 = vadd.f32 %v14177_v43, %v4391_v0 }
 0x750   :  { %v4595_v28 = vmul.f32 %v14207_v61, %v14207_v61  ;;  %v4575_v31 = vadd.f32 %v4574_v37, %v14207_v61  ;;  %v4477_v34 = vadd.f32 %v14044_v48, %v4434_v11 }
 0x752   :  { %v4607_v39 = vadd.f32 %v4606_v17, %v4595_v28  ;;  %v4520_v60 = vadd.f32 %v14166_v58, %v4477_v34  ;;  %v4482_v58 = vadd.f32 %v14077_v20, %v4439_v25 }
 0x755   :  { %v4547_v33 = vpop.f32.mrf.mxu3 }
 0x756   :  { %v14212_v23 = vadd.f32 %v4547_v33, %v4505_v49 }
 0x758   :  { %v4596_v26 = vmul.f32 %v14212_v23, %v14212_v23  ;;  %v4576_v41 = vadd.f32 %v4575_v31, %v14212_v23 }
 0x75a   :  { %v4608_v14 = vadd.f32 %v4607_v39, %v4596_v26 }
 0x75d   :  { %v4550_v36 = vpop.f32.mrf.mxu3 }
 0x75e   :  { %v14223_v42 = vadd.f32 %v4550_v36, %v14155_v32 }
 0x760   :  { %v4597_v32 = vmul.f32 %v14223_v42, %v14223_v42  ;;  %v4577_v52 = vadd.f32 %v4576_v41, %v14223_v42 }
 0x762   :  { %v4609_v45 = vadd.f32 %v4608_v14, %v4597_v32 }
 0x765   :  { %v4552_v54 = vpop.f32.mrf.mxu3 }
 0x766   :  { %v14228_v18 = vadd.f32 %v4552_v54, %v4510_v47  ;;  %v4525_v47 = vadd.f32 %v14175_v35, %v4482_v58 }
 0x768   :  { %v4598_v21 = vmul.f32 %v14228_v18, %v14228_v18  ;;  %v4578_v50 = vadd.f32 %v4577_v52, %v14228_v18 }
 0x76d   :  { %v4555_v8 = vpop.f32.mrf.mxu3 }
 0x76e   :  { %v14237_v44 = vadd.f32 %v4555_v8, %v14164_v16  ;;  %v4610_v16 = vadd.f32 %v4609_v45, %v4598_v21  ;;  %v10535_v45 = vld [vmem:[%s15807_s7 + $0x120] sm:$0xff] }
 0x76f   :  { %5745 = vmatpush.bf16.msra.mxu0 %v10535_v45 }
 0x770   :  { %v4599_v55 = vmul.f32 %v14237_v44, %v14237_v44  ;;  %v4579_v33 = vadd.f32 %v4578_v50, %v14237_v44 }
 0x772   :  { %v4611_v46 = vadd.f32 %v4610_v16, %v4599_v55 }
 0x775   :  { %v4557_v12 = vpop.f32.mrf.mxu3 }
 0x776   :  { %v14242_v62 = vadd.f32 %v4557_v12, %v4515_v59 }
 0x778   :  { %v4600_v36 = vmul.f32 %v14242_v62, %v14242_v62  ;;  %v4580_v54 = vadd.f32 %v4579_v33, %v14242_v62 }
 0x77a   :  { %v4612_v57 = vadd.f32 %v4611_v46, %v4600_v36 }
 0x77d   :  { %v4560_v53 = vpop.f32.mrf.mxu3 }
 0x77e   :  { %v14254_v2 = vadd.f32 %v4560_v53, %v14173_v5 }
 0x780   :  { %v4581_v27 = vadd.f32 %v4580_v54, %v14254_v2  ;;  %v4601_v43 = vmul.f32 %v14254_v2, %v14254_v2 }
 0x782   :  { %v4613_v7 = vadd.f32 %v4612_v57, %v4601_v43 }
 0x785   :  { %v4562_v63 = vpop.f32.mrf.mxu3 }
 0x786   :  { %v14263_v38 = vadd.f32 %v4562_v63, %v4520_v60 }
 0x788   :  { %v4582_v5 = vadd.f32 %v4581_v27, %v14263_v38  ;;  %v4602_v48 = vmul.f32 %v14263_v38, %v14263_v38 }
 0x78a   :  { %v4614_v9 = vadd.f32 %v4613_v7, %v4602_v48 }
 0x78d   :  { %v4565_v8 = vpop.f32.mrf.mxu3 }
 0x78e   :  { %v14271_v49 = vadd.f32 %v4565_v8, %v14182_v22 }
 0x790   :  { %v4583_v13 = vadd.f32 %v4582_v5, %v14271_v49  ;;  %v4603_v10 = vmul.f32 %v14271_v49, %v14271_v49 }
 0x792   :  { %v4615_v30 = vadd.f32 %v4614_v9, %v4603_v10 }
 0x795   :  { %v4567_v6 = vpop.f32.mrf.mxu3 }
 0x796   :  { %v4568_v37 = vadd.f32 %v4567_v6, %v4525_v47 }
 0x798   :  { %v4584_v15 = vadd.f32 %v4583_v13, %v4568_v37  ;;  %v4604_v28 = vmul.f32 %v4568_v37, %v4568_v37 }
 0x79a   :  { %v4616_v17 = vadd.f32 %v4615_v30, %v4604_v28 }
 0x79d   :  { %v4570_v56 = vpop.f32.mrf.mxu3 }
 0x79e   :  { %v4571_v31 = vadd.f32 %v4570_v56, %v14190_v24 }
 0x7a0   :  { %v4585_v22 = vadd.f32 %v4584_v15, %v4571_v31  ;;  %v4605_v26 = vmul.f32 %v4571_v31, %v4571_v31 }
 0x7a2   :  { %v4586_v4 = vrot.slane %v4585_v22, 4  ;;  %v4617_v20 = vadd.f32 %v4616_v17, %v4605_v26 }
 0x7a4   :  { %v4587_v51 = vadd.f32 %v4586_v4, %v4585_v22  ;;  %v4618_v59 = vrot.slane %v4617_v20, 4 }
 0x7a5   :  { %v4572_v12 = vpop.f32.mrf.mxu3 }
 0x7a6   :  { %v4588_v39 = vrot.slane %v4587_v51, 2  ;;  %v4619_v41 = vadd.f32 %v4618_v59, %v4617_v20 }
 0x7a8   :  { %v4589_v32 = vadd.f32 %v4588_v39, %v4587_v51  ;;  %v4620_v14 = vrot.slane %v4619_v41, 2 }
 0x7aa   :  { %v4590_v35 = vrot.slane %v4589_v32, 1  ;;  %v4621_v52 = vadd.f32 %v4620_v14, %v4619_v41 }
 0x7ac   :  { %v4591_v21 = vadd.f32 %v4590_v35, %v4589_v32  ;;  %v4622_v0 = vrot.slane %v4621_v52, 1 }
 0x7ae   :  { %v14282_v24 = vmul.f32 0.010204081, %v4591_v21  ;;  %v4623_v50 = vadd.f32 %v4622_v0, %v4621_v52 }
 0x7b0   :  { %v4624_v55 = vmul.f32 0.010204081, %v4623_v50  ;;  %v4625_v11 = vmul.f32 %v14282_v24, %v14282_v24  ;;  %v4652_v16 = vsub.f32 %v4571_v31, %v14282_v24  ;;  %v4650_v33 = vsub.f32 %v14271_v49, %v14282_v24 }
 0x7b1   :  { %v4651_v36 = vsub.f32 %v4568_v37, %v14282_v24  ;;  %v4648_v53 = vsub.f32 %v14254_v2, %v14282_v24  ;;  %v4649_v46 = vsub.f32 %v14263_v38, %v14282_v24  ;;  %v4647_v34 = vsub.f32 %v14242_v62, %v14282_v24  ;;  %v4638_v2 = vld [vmem:[%s15809_s4] sm:$0x1] }
 0x7b2   :  { %v4626_v54 = vsub.f32 %v4624_v55, %v4625_v11  ;;  %v10741_v62 = vld [vmem:[%s15808_s5] ss:$0 sm:$0xff]  ;;  %v4646_v48 = vsub.f32 %v14237_v44, %v14282_v24  ;;  %v4644_v40 = vsub.f32 %v14223_v42, %v14282_v24  ;;  %v4645_v9 = vsub.f32 %v14228_v18, %v14282_v24 }
 0x7b3   :  { %v4642_v25 = vsub.f32 %v14207_v61, %v14282_v24  ;;  %v4643_v8 = vsub.f32 %v14212_v23, %v14282_v24  ;;  %v4640_v49 = vsub.f32 %v14192_v1, %v14282_v24  ;;  %v4641_v58 = vsub.f32 %v14203_v19, %v14282_v24 }
 0x7b4   :  { %v4627_v57 = vadd.f32 1e-05, %v4626_v54 }
 0x7b6   :  { %10744 = vrsqrt.f32 %v4627_v57  ;;  %vm4634_vm4 = vweird.f32 %v4627_v57 }
 0x7bc   :  { %v10745_v27 = vpop.eup %10744 }
 0x7bd   :  { %v4629_v43 = vmul.f32 %v10745_v27, %v4627_v57  ;;  %vm4635_vm3 = vweird.f32 %v10745_v27 }
 0x7be   :  { %vm4636_vm5 = vmor %vm4634_vm4, %vm4635_vm3 }
 0x7bf   :  { %v4630_v7 = vmul.f32 %v10745_v27, %v4629_v43 }
 0x7c1   :  { %v4631_v60 = vmul.f32 0.5, %v4630_v7 }
 0x7c3   :  { %v4632_v63 = vsub.f32 1.5, %v4631_v60 }
 0x7c5   :  { %v4633_v29 = vmul.f32 %v10745_v27, %v4632_v63 }
 0x7c7   :  { %v4637_v3 = vsel %vm4636_vm5, %v10745_v27, %v4633_v29  ;;  %vm7699_vm5 = vcmask 1024  }
 0x7c8   :  { %v4639_v38 = vmul.f32 %v4638_v2, %v4637_v3 }
 0x7ca   :  { %v4653_v5 = vperm.slane %v4639_v38, 0 }
 0x7cc   :  { %v4666_v13 = vmul.f32 %v4653_v5, %v4652_v16  ;;  %v4664_v44 = vmul.f32 %v4653_v5, %v4650_v33  ;;  %v4665_v10 = vmul.f32 %v4653_v5, %v4651_v36  ;;  %v4662_v30 = vmul.f32 %v4653_v5, %v4648_v53 }
 0x7cd   :  { %v4663_v42 = vmul.f32 %v4653_v5, %v4649_v46  ;;  %v4660_v47 = vmul.f32 %v4653_v5, %v4646_v48  ;;  %v4661_v6 = vmul.f32 %v4653_v5, %v4647_v34  ;;  %v4658_v18 = vmul.f32 %v4653_v5, %v4644_v40 }
 0x7ce   :  { %v4683_v37 = vadd.f32 %v10741_v62, %v4666_v13  ;;  %v4681_v15 = vadd.f32 %v10741_v62, %v4664_v44  ;;  %v4682_v61 = vadd.f32 %v10741_v62, %v4665_v10  ;;  %v4679_v28 = vadd.f32 %v10741_v62, %v4662_v30  ;;  %v10484_v13 = vld [vmem:[%s15810_s6 + $0x18] sm:$0xff]  ;;  %v10485_v44 = vld [vmem:[%s15810_s6 + $0x20] sm:$0xff]  ;;  %v10486_v10 = vld [vmem:[%s15810_s6 + $0x28] sm:$0xff] }
 0x7cf   :  { %v4680_v17 = vadd.f32 %v10741_v62, %v4663_v42  ;;  %v4677_v23 = vadd.f32 %v10741_v62, %v4660_v47  ;;  %v4678_v56 = vadd.f32 %v10741_v62, %v4661_v6  ;;  %v4659_v31 = vmul.f32 %v4653_v5, %v4645_v9  ;;  %v10506_v30 = vld [vmem:[%s15807_s7 + $0x38] sm:$0xff]  ;;  %v10505_v42 = vld [vmem:[%s15807_s7 + $0x30] sm:$0xff]  ;;  %v10504_v47 = vld [vmem:[%s15807_s7 + $0x28] sm:$0xff] }
 0x7d0   :  { %v4696_v1 = vmul.f32 0.2, %v4683_v37  ;;  %v4694_v22 = vmul.f32 0.2, %v4681_v15  ;;  %v4695_v26 = vmul.f32 0.2, %v4682_v61  ;;  %v4675_v19 = vadd.f32 %v10741_v62, %v4658_v18  ;;  %5666 = vmatpush.bf16.msra.mxu2 %v10506_v30 }
 0x7d1   :  { %v4692_v4 = vmul.f32 0.2, %v4679_v28  ;;  %v4693_v20 = vmul.f32 0.2, %v4680_v17  ;;  %v4690_v51 = vmul.f32 0.2, %v4677_v23  ;;  %v4676_v59 = vadd.f32 %v10741_v62, %v4659_v31 }
 0x7d2   :  { %v4709_v12 = vmax.f32 %v4683_v37, %v4696_v1  ;;  %v4707_v39 = vmax.f32 %v4681_v15, %v4694_v22  ;;  %v4708_v41 = vmax.f32 %v4682_v61, %v4695_v26  ;;  %v4691_v32 = vmul.f32 0.2, %v4678_v56  ;;  %v10487_v6 = vld [vmem:[%s15810_s6 + $0x30] sm:$0xff]  ;;  %v10503_v18 = vld [vmem:[%s15807_s7 + $0x20] sm:$0xff]  ;;  %v10502_v37 = vld [vmem:[%s15807_s7 + $0x18] sm:$0xff] }
 0x7d3   :  { %v4705_v14 = vmax.f32 %v4679_v28, %v4692_v4  ;;  %v4706_v35 = vmax.f32 %v4680_v17, %v4693_v20  ;;  %v4703_v52 = vmax.f32 %v4677_v23, %v4690_v51  ;;  %v4688_v21 = vmul.f32 0.2, %v4675_v19  ;;  %v10501_v15 = vld [vmem:[%s15807_s7 + $0x10] sm:$0xff]  ;;  %v10500_v61 = vld [vmem:[%s15807_s7 + $0x8] sm:$0xff]  ;;  %v10488_v28 = vld [vmem:[%s15810_s6 + $0x38] sm:$0xff] }
 0x7d4   :  { %v4752_v0 = vpack.c.bf16 %v4709_v12, %v4709_v12  ;;  %v4751_v45 = vpack.c.bf16 %v4708_v41, %v4707_v39  ;;  %v4704_v24 = vmax.f32 %v4678_v56, %v4691_v32  ;;  %v4689_v50 = vmul.f32 0.2, %v4676_v59  ;;  %5667 = vmatpush.bf16.msra.mxu2 %v10505_v42  ;;  %v10499_v17 = vld [vmem:[%s15807_s7] sm:$0xff]  ;;  %v10514_v23 = vld [vmem:[%s15807_s7 + $0x78] sm:$0xff]  ;;  %v10513_v56 = vld [vmem:[%s15807_s7 + $0x70] sm:$0xff] }
 0x7d5   :  { %v4750_v55 = vpack.c.bf16 %v4706_v35, %v4705_v14  ;;  %v4701_v11 = vmax.f32 %v4675_v19, %v4688_v21  ;;  %v4656_v16 = vmul.f32 %v4653_v5, %v4642_v25  ;;  %v4657_v33 = vmul.f32 %v4653_v5, %v4643_v8  ;;  %5685 = vmatpush.bf16.msra.mxu3 %v10514_v23  ;;  %v10512_v31 = vld [vmem:[%s15807_s7 + $0x68] sm:$0xff]  ;;  %v10489_v1 = vld [vmem:[%s15810_s6 + $0x40] sm:$0xff]  ;;  %v10510_v19 = vld [vmem:[%s15807_s7 + $0x58] sm:$0xff] }
 0x7d6   :  { %v4899_v36 = vsel %vm2098_vm1, %v4752_v0, 0  ;;  %v4749_v53 = vpack.c.bf16 %v4704_v24, %v4703_v52  ;;  %v4702_v46 = vmax.f32 %v4676_v59, %v4689_v50  ;;  %v4654_v54 = vmul.f32 %v4653_v5, %v4640_v49  ;;  %v10483_v49 = vld [vmem:[%s15810_s6 + $0x10] sm:$0xff]  ;;  %v10511_v26 = vld [vmem:[%s15807_s7 + $0x60] sm:$0xff]  ;;  %v10508_v59 = vld [vmem:[%s15807_s7 + $0x48] sm:$0xff] }
 0x7d7   :  { %4902 = vmatpush.bf16.msra.mxu1 %v4899_v36  ;;  %v4673_v34 = vadd.f32 %v10741_v62, %v4656_v16  ;;  %v4674_v57 = vadd.f32 %v10741_v62, %v4657_v33  ;;  %v4655_v27 = vmul.f32 %v4653_v5, %v4641_v58  ;;  %v10481_v5 = vld [vmem:[%s15810_s6] sm:$0xff]  ;;  %v10534_v58 = vld [vmem:[%s15807_s7 + $0x118] sm:$0xff]  ;;  %v10509_v51 = vld [vmem:[%s15807_s7 + $0x50] sm:$0xff]  ;;  %vm7669_vm1 = vcmask 1041408  }
 0x7d8   :  { %v4748_v43 = vpack.c.bf16 %v4702_v46, %v4701_v11  ;;  %v4671_v7 = vadd.f32 %v10741_v62, %v4654_v54  ;;  %5746 = vmatpush.bf16.msra.mxu0 %v10534_v58  ;;  %5668 = vmatpush.bf16.msra.mxu2 %v10504_v47  ;;  %v10490_v12 = vld [vmem:[%s15810_s6 + $0x48] sm:$0xff]  ;;  %v10507_v41 = vld [vmem:[%s15807_s7 + $0x40] sm:$0xff]  ;;  %v10522_v32 = vld [vmem:[%s15807_s7 + $0xb8] sm:$0xff] }
 0x7d9   :  { %v4686_v60 = vmul.f32 0.2, %v4673_v34  ;;  %v4687_v63 = vmul.f32 0.2, %v4674_v57  ;;  %v4672_v29 = vadd.f32 %v10741_v62, %v4655_v27  ;;  %v10482_v62 = vld [vmem:[%s15810_s6 + $0x8] sm:$0xff]  ;;  %5686 = vmatpush.bf16.msra.mxu3 %v10513_v56  ;;  %v10521_v52 = vld [vmem:[%s15807_s7 + $0xb0] sm:$0xff] }
 0x7da   :  { %v4684_v2 = vmul.f32 0.2, %v4671_v7  ;;  %v10520_v21 = vld [vmem:[%s15807_s7 + $0xa8] sm:$0xff]  ;;  %v10491_v0 = vld [vmem:[%s15810_s6 + $0x50] sm:$0xff]  ;;  %v10519_v50 = vld [vmem:[%s15807_s7 + $0xa0] sm:$0xff] }
 0x7db   :  { %4903 = vmatpush.bf16.msra.mxu1 %v4751_v45  ;;  %v4699_v3 = vmax.f32 %v4673_v34, %v4686_v60  ;;  %v4700_v38 = vmax.f32 %v4674_v57, %v4687_v63  ;;  %v4685_v48 = vmul.f32 0.2, %v4672_v29  ;;  %v10533_v24 = vld [vmem:[%s15807_s7 + $0x110] sm:$0xff]  ;;  %v10516_v36 = vld [vmem:[%s15807_s7 + $0x88] sm:$0xff]  ;;  %v10515_v54 = vld [vmem:[%s15807_s7 + $0x80] sm:$0xff] }
 0x7dc   :  { %v4697_v40 = vmax.f32 %v4671_v7, %v4684_v2  ;;  %5669 = vmatpush.bf16.msra.mxu2 %v10503_v18  ;;  %5747 = vmatpush.bf16.msra.mxu0 %v10533_v24  ;;  %v10517_v33 = vld [vmem:[%s15807_s7 + $0x90] sm:$0xff]  ;;  %v10530_v34 = vld [vmem:[%s15807_s7 + $0xf8] sm:$0xff]  ;;  %v10528_v7 = vld [vmem:[%s15807_s7 + $0xe8] sm:$0xff] }
 0x7dd   :  { %v4747_v9 = vpack.c.bf16 %v4700_v38, %v4699_v3  ;;  %v4698_v25 = vmax.f32 %v4672_v29, %v4685_v48  ;;  %5687 = vmatpush.bf16.msra.mxu3 %v10512_v31  ;;  %v10493_v60 = vld [vmem:[%s15810_s6 + $0x60] sm:$0xff]  ;;  %v10526_v2 = vld [vmem:[%s15807_s7 + $0xd8] sm:$0xff]  ;;  %v10525_v48 = vld [vmem:[%s15807_s7 + $0xd0] sm:$0xff] }
 0x7de   :  { %v10527_v29 = vld [vmem:[%s15807_s7 + $0xe0] sm:$0xff]  ;;  %v10532_v30 = vld [vmem:[%s15807_s7 + $0x108] sm:$0xff]  ;;  %v10496_v42 = vld [vmem:[%s15810_s6 + $0x78] sm:$0xff] }
 0x7df   :  { %4904 = vmatpush.bf16.msra.mxu1 %v4750_v55  ;;  %v4746_v8 = vpack.c.bf16 %v4698_v25, %v4697_v40  ;;  %v10518_v55 = vld [vmem:[%s15807_s7 + $0x98] sm:$0xff]  ;;  %v10524_v40 = vld [vmem:[%s15807_s7 + $0xc8] sm:$0xff]  ;;  %v10531_v18 = vld [vmem:[%s15807_s7 + $0x100] sm:$0xff] }
 0x7e0   :  { %5670 = vmatpush.bf16.msra.mxu2 %v10502_v37  ;;  %5748 = vmatpush.bf16.msra.mxu0 %v10532_v30  ;;  %v10544_v37 = vld [vmem:[%s15807_s7 + $0x168] sm:$0xff]  ;;  %v10497_v23 = vld [vmem:[%s15810_s6 + $0x80] sm:$0xff]  ;;  %v10541_v31 = vld [vmem:[%s15807_s7 + $0x150] sm:$0xff] }
 0x7e1   :  { %5688 = vmatpush.bf16.msra.mxu3 %v10511_v26  ;;  %v10564_v30 = vld [vmem:[%s15807_s7 + $0x208] sm:$0xff] }
 0x7e3   :  { %4905 = vmatpush.bf16.msra.mxu1 %v4749_v53  ;;  %v10492_v53 = vld [vmem:[%s15810_s6 + $0x58] sm:$0xff] }
 0x7e4   :  { %5671 = vmatpush.bf16.msra.mxu2 %v10501_v15  ;;  %5749 = vmatpush.bf16.msra.mxu0 %v10531_v18 }
 0x7e5   :  { %5689 = vmatpush.bf16.msra.mxu3 %v10510_v19  ;;  %v10539_v19 = vld [vmem:[%s15807_s7 + $0x140] sm:$0xff] }
 0x7e7   :  { %4906 = vmatpush.bf16.msra.mxu1 %v4748_v43  ;;  %v10529_v43 = vld [vmem:[%s15807_s7 + $0xf0] sm:$0xff] }
 0x7e8   :  { %5672 = vmatpush.bf16.msra.mxu2 %v10500_v61 }
 0x7e9   :  { %5690 = vmatpush.bf16.msra.mxu3 %v10509_v51 }
 0x7eb   :  { %4907 = vmatpush.bf16.msra.mxu1 %v4747_v9  ;;  %v10494_v9 = vld [vmem:[%s15810_s6 + $0x68] sm:$0xff] }
 0x7ec   :  { %5673 = vmatpush.bf16.msra.mxu2 %v10499_v17  ;;  %v10542_v17 = vld [vmem:[%s15807_s7 + $0x158] sm:$0xff] }
 0x7ed   :  { %5691 = vmatpush.bf16.msra.mxu3 %v10508_v59  ;;  %v10553_v59 = vld [vmem:[%s15807_s7 + $0x1b0] sm:$0xff] }
 0x7ef   :  { %4908 = vmatpush.bf16.msra.mxu1 %v4746_v8  ;;  %v10523_v8 = vld [vmem:[%s15807_s7 + $0xc0] sm:$0xff] }
 0x7f0   :  { %5704 = vmatpush.bf16.msrb.mxu2 %v10522_v32  ;;  %v10551_v32 = vld [vmem:[%s15807_s7 + $0x1a0] sm:$0xff] }
 0x7f1   :  { %5692 = vmatpush.bf16.msra.mxu3 %v10507_v41 }
 0x7f2   :  { %9177 = vmatmul.msk.bf16.vlgmr.msra.gmra.mxu1 %vm4843_vm6, %v10481_v5 }
 0x7f4   :  { %5705 = vmatpush.bf16.msrb.mxu2 %v10521_v52  ;;  %v10549_v52 = vld [vmem:[%s15807_s7 + $0x190] sm:$0xff] }
 0x7f5   :  { %5723 = vmatpush.bf16.msrb.mxu3 %v10530_v34 }
 0x7f8   :  { %5706 = vmatpush.bf16.msrb.mxu2 %v10520_v21  ;;  %v10548_v21 = vld [vmem:[%s15807_s7 + $0x188] sm:$0xff] }
 0x7f9   :  { %5724 = vmatpush.bf16.msrb.mxu3 %v10529_v43 }
 0x7fc   :  { %5707 = vmatpush.bf16.msrb.mxu2 %v10519_v50  ;;  %v10547_v50 = vld [vmem:[%s15807_s7 + $0x180] sm:$0xff] }
 0x7fd   :  { %5725 = vmatpush.bf16.msrb.mxu3 %v10528_v7 }
 0x800   :  { %5708 = vmatpush.bf16.msrb.mxu2 %v10518_v55  ;;  %v10562_v55 = vld [vmem:[%s15807_s7 + $0x1f8] sm:$0xff] }
 0x801   :  { %5726 = vmatpush.bf16.msrb.mxu3 %v10527_v29  ;;  %5799 = vmatpush.bf16.msrb.mxu0 %v10562_v55 }
 0x802   :  { %9178 = vmatmul.msk.bf16.gmra.mxu1 %vm4843_vm6, %v10482_v62 }
 0x804   :  { %5709 = vmatpush.bf16.msrb.mxu2 %v10517_v33 }
 0x805   :  { %5727 = vmatpush.bf16.msrb.mxu3 %v10526_v2 }
 0x808   :  { %5710 = vmatpush.bf16.msrb.mxu2 %v10516_v36  ;;  %v10561_v36 = vld [vmem:[%s15807_s7 + $0x1f0] sm:$0xff] }
 0x809   :  { %5728 = vmatpush.bf16.msrb.mxu3 %v10525_v48  ;;  %5800 = vmatpush.bf16.msrb.mxu0 %v10561_v36  ;;  %v10570_v48 = vld [vmem:[%s15807_s7 + $0x238] sm:$0xff] }
 0x80c   :  { %5711 = vmatpush.bf16.msrb.mxu2 %v10515_v54 }
 0x80d   :  { %5729 = vmatpush.bf16.msrb.mxu3 %v10524_v40 }
 0x811   :  { %5730 = vmatpush.bf16.msrb.mxu3 %v10523_v8  ;;  %v10569_v8 = vld [vmem:[%s15807_s7 + $0x230] sm:$0xff] }
 0x812   :  { %9179 = vmatmul.msk.bf16.gmra.mxu1 %vm4843_vm6, %v10483_v49  ;;  %v10495_v49 = vld [vmem:[%s15810_s6 + $0x70] sm:$0xff] }
 0x822   :  { %9180 = vmatmul.msk.bf16.gmra.mxu1 %vm4843_vm6, %v10484_v13 }
 0x832   :  { %9181 = vmatmul.msk.bf16.gmra.mxu1 %vm4843_vm6, %v10485_v44 }
 0x842   :  { %9182 = vmatmul.msk.bf16.gmra.mxu1 %vm4843_vm6, %v10486_v10  ;;  %v10546_v10 = vld [vmem:[%s15807_s7 + $0x178] sm:$0xff] }
 0x852   :  { %9183 = vmatmul.msk.bf16.gmra.mxu1 %vm4843_vm6, %v10487_v6  ;;  %v10545_v6 = vld [vmem:[%s15807_s7 + $0x170] sm:$0xff] }
 0x862   :  { %9184 = vmatmul.msk.bf16.gmra.mxu1 %vm4843_vm6, %v10488_v28  ;;  %v10543_v28 = vld [vmem:[%s15807_s7 + $0x160] sm:$0xff] }
 0x86f   :  { %v4910_v22 = vpop.f32.mrf.mxu1 }
 0x872   :  { %9185 = vmatmul.msk.bf16.gmra.mxu1 %vm4843_vm6, %v10489_v1  ;;  %v10540_v1 = vld [vmem:[%s15807_s7 + $0x148] sm:$0xff] }
 0x877   :  { %v4912_v4 = vpop.f32.mrf.mxu1 }
 0x878   :  { %v5072_v20 = vpack.c.bf16 %v4912_v4, %v4910_v22  ;;  %v10554_v4 = vld [vmem:[%s15807_s7 + $0x1b8] sm:$0xff] }
 0x87a   :  { %5674 = vmatmul.bf16.vlgmr.msra.gmra.mxu2 %v5072_v20  ;;  %v10498_v20 = vld [vmem:[%s15810_s6 + $0x88] sm:$0xff] }
 0x87b   :  { %5761 = vmatpush.bf16.msra.mxu2 %v10546_v10  ;;  %v10565_v10 = vld [vmem:[%s15807_s7 + $0x210] sm:$0xff] }
 0x87f   :  { %v4915_v39 = vpop.f32.mrf.mxu1  ;;  %5762 = vmatpush.bf16.msra.mxu2 %v10545_v6  ;;  %v10563_v6 = vld [vmem:[%s15807_s7 + $0x200] sm:$0xff] }
 0x882   :  { %9186 = vmatmul.msk.bf16.gmra.mxu1 %vm4843_vm6, %v10490_v12  ;;  %v10552_v12 = vld [vmem:[%s15807_s7 + $0x1a8] sm:$0xff] }
 0x883   :  { %5763 = vmatpush.bf16.msra.mxu2 %v10544_v37 }
 0x887   :  { %v4917_v14 = vpop.f32.mrf.mxu1  ;;  %5764 = vmatpush.bf16.msra.mxu2 %v10543_v28 }
 0x888   :  { %v5081_v35 = vpack.c.bf16 %v4917_v14, %v4915_v39  ;;  %v10550_v14 = vld [vmem:[%s15807_s7 + $0x198] sm:$0xff] }
 0x88a   :  { %5679 = vmatmul.bf16.gmra.mxu2 %v5081_v35 }
 0x88b   :  { %5765 = vmatpush.bf16.msra.mxu2 %v10542_v17 }
 0x88f   :  { %v4920_v45 = vpop.f32.mrf.mxu1  ;;  %5766 = vmatpush.bf16.msra.mxu2 %v10541_v31 }
 0x892   :  { %9187 = vmatmul.msk.bf16.gmra.mxu1 %vm4843_vm6, %v10491_v0 }
 0x893   :  { %5767 = vmatpush.bf16.msra.mxu2 %v10540_v1 }
 0x897   :  { %v4922_v11 = vpop.f32.mrf.mxu1  ;;  %5768 = vmatpush.bf16.msra.mxu2 %v10539_v19 }
 0x898   :  { %v5073_v16 = vpack.c.bf16 %v4922_v11, %v4920_v45 }
 0x89a   :  { %5693 = vmatmul.bf16.vlgmr.msra.gmra.mxu3 %v5073_v16 }
 0x89b   :  { %5780 = vmatpush.bf16.msra.mxu3 %v10554_v4 }
 0x89f   :  { %v4925_v46 = vpop.f32.mrf.mxu1  ;;  %5781 = vmatpush.bf16.msra.mxu3 %v10553_v59 }
 0x8a2   :  { %9188 = vmatmul.msk.bf16.gmra.mxu1 %vm4843_vm6, %v10492_v53  ;;  %v10560_v53 = vld [vmem:[%s15807_s7 + $0x1e8] sm:$0xff] }
 0x8a3   :  { %5782 = vmatpush.bf16.msra.mxu3 %v10552_v12  ;;  %5801 = vmatpush.bf16.msrb.mxu0 %v10560_v53 }
 0x8a7   :  { %v4927_v57 = vpop.f32.mrf.mxu1  ;;  %5783 = vmatpush.bf16.msra.mxu3 %v10551_v32 }
 0x8a8   :  { %v5082_v27 = vpack.c.bf16 %v4927_v57, %v4925_v46  ;;  %v10559_v57 = vld [vmem:[%s15807_s7 + $0x1e0] sm:$0xff] }
 0x8a9   :  { %5802 = vmatpush.bf16.msrb.mxu0 %v10559_v57 }
 0x8aa   :  { %5698 = vmatmul.bf16.gmra.mxu3 %v5082_v27  ;;  %v10558_v27 = vld [vmem:[%s15807_s7 + $0x1d8] sm:$0xff] }
 0x8ab   :  { %5784 = vmatpush.bf16.msra.mxu3 %v10550_v14 }
 0x8ad   :  { %5803 = vmatpush.bf16.msrb.mxu0 %v10558_v27 }
 0x8af   :  { %v4930_v63 = vpop.f32.mrf.mxu1  ;;  %5785 = vmatpush.bf16.msra.mxu3 %v10549_v52 }
 0x8b2   :  { %9189 = vmatmul.msk.bf16.gmra.mxu1 %vm4843_vm6, %v10493_v60  ;;  %v10557_v60 = vld [vmem:[%s15807_s7 + $0x1d0] sm:$0xff] }
 0x8b3   :  { %5786 = vmatpush.bf16.msra.mxu3 %v10548_v21  ;;  %5804 = vmatpush.bf16.msrb.mxu0 %v10557_v60 }
 0x8b7   :  { %v4932_v3 = vpop.f32.mrf.mxu1  ;;  %5787 = vmatpush.bf16.msra.mxu3 %v10547_v50 }
 0x8b8   :  { %v5074_v38 = vpack.c.bf16 %v4932_v3, %v4930_v63  ;;  %v10556_v63 = vld [vmem:[%s15807_s7 + $0x1c8] sm:$0xff] }
 0x8b9   :  { %5805 = vmatpush.bf16.msrb.mxu0 %v10556_v63 }
 0x8ba   :  { %5712 = vmatmul.bf16.vlgmr.msrb.gmra.mxu2 %v5074_v38  ;;  %v10555_v38 = vld [vmem:[%s15807_s7 + $0x1c0] sm:$0xff] }
 0x8bb   :  { %5818 = vmatpush.bf16.msrb.mxu2 %v10570_v48 }
 0x8bd   :  { %5806 = vmatpush.bf16.msrb.mxu0 %v10555_v38 }
 0x8bf   :  { %v4935_v25 = vpop.f32.mrf.mxu1  ;;  %5819 = vmatpush.bf16.msrb.mxu2 %v10569_v8 }
 0x8c2   :  { %9190 = vmatmul.msk.bf16.gmra.mxu1 %vm4843_vm6, %v10494_v9 }
 0x8c7   :  { %v4937_v5 = vpop.f32.mrf.mxu1 }
 0x8c8   :  { %v5083_v62 = vpack.c.bf16 %v4937_v5, %v4935_v25  ;;  %v10568_v5 = vld [vmem:[%s15807_s7 + $0x228] sm:$0xff] }
 0x8c9   :  { %5820 = vmatpush.bf16.msrb.mxu2 %v10568_v5 }
 0x8ca   :  { %5717 = vmatmul.bf16.gmra.mxu2 %v5083_v62 }
 0x8cf   :  { %v4940_v58 = vpop.f32.mrf.mxu1 }
 0x8d2   :  { %9191 = vmatmul.msk.bf16.gmra.mxu1 %vm4843_vm6, %v10495_v49 }
 0x8d7   :  { %v4942_v13 = vpop.f32.mrf.mxu1 }
 0x8d8   :  { %v5075_v44 = vpack.c.bf16 %v4942_v13, %v4940_v58  ;;  %v10567_v58 = vld [vmem:[%s15807_s7 + $0x220] sm:$0xff]  ;;  %v10566_v13 = vld [vmem:[%s15807_s7 + $0x218] sm:$0xff] }
 0x8d9   :  { %5821 = vmatpush.bf16.msrb.mxu2 %v10567_v58 }
 0x8da   :  { %5731 = vmatmul.bf16.vlgmr.msrb.gmra.mxu3 %v5075_v44 }
 0x8dd   :  { %5822 = vmatpush.bf16.msrb.mxu2 %v10566_v13 }
 0x8df   :  { %v4945_v47 = vpop.f32.mrf.mxu1 }
 0x8e1   :  { %5823 = vmatpush.bf16.msrb.mxu2 %v10565_v10 }
 0x8e2   :  { %9192 = vmatmul.msk.bf16.gmra.mxu1 %vm4843_vm6, %v10496_v42 }
 0x8e5   :  { %5824 = vmatpush.bf16.msrb.mxu2 %v10564_v30 }
 0x8e7   :  { %v4947_v15 = vpop.f32.mrf.mxu1 }
 0x8e8   :  { %v5084_v61 = vpack.c.bf16 %v4947_v15, %v4945_v47 }
 0x8e9   :  { %5825 = vmatpush.bf16.msrb.mxu2 %v10563_v6 }
 0x8ea   :  { %5736 = vmatmul.bf16.gmra.mxu3 %v5084_v61 }
 0x8ef   :  { %v4950_v56 = vpop.f32.mrf.mxu1 }
 0x8f2   :  { %9193 = vmatmul.msk.bf16.gmra.mxu1 %vm4843_vm6, %v10497_v23 }
 0x8f7   :  { %v4952_v22 = vpop.f32.mrf.mxu1 }
 0x8f8   :  { %v5076_v26 = vpack.c.bf16 %v4952_v22, %v4950_v56 }
 0x8fa   :  { %5750 = vmatmul.bf16.vlgmr.msra.gmra.mxu0 %v5076_v26 }
 0x8fd   :  { %v5675_v45 = vpop.f32.mrf.mxu2 }
 0x8ff   :  { %v4955_v51 = vpop.f32.mrf.mxu1 }
 0x902   :  { %9194 = vmatmul.msk.bf16.gmra.mxu1 %vm4843_vm6, %v10498_v20 }
 0x905   :  { %v14554_v46 = vpop.f32.mrf.mxu2 }
 0x907   :  { %v4957_v39 = vpop.f32.mrf.mxu1 }
 0x908   :  { %v5085_v41 = vpack.c.bf16 %v4957_v39, %v4955_v51 }
 0x90a   :  { %5755 = vmatmul.bf16.gmra.mxu0 %v5085_v41 }
 0x90d   :  { %v14562_v43 = vpop.f32.mrf.mxu2 }
 0x90f   :  { %v4960_v35 = vpop.f32.mrf.mxu1 }
 0x915   :  { %v14570_v29 = vpop.f32.mrf.mxu2 }
 0x917   :  { %v4962_v0 = vpop.f32.mrf.mxu1 }
 0x918   :  { %v5077_v24 = vpack.c.bf16 %v4962_v0, %v4960_v35 }
 0x91a   :  { %5769 = vmatmul.bf16.vlgmr.msra.gmra.mxu2 %v5077_v24 }
 0x91d   :  { %v5694_v11 = vpop.f32.mrf.mxu3 }
 0x91e   :  { %v5695_v16 = vadd.f32 %v5694_v11, %v5675_v45 }
 0x91f   :  { %v4965_v33 = vpop.f32.mrf.mxu1 }
 0x925   :  { %v5696_v1 = vpop.f32.mrf.mxu3 }
 0x926   :  { %v5697_v55 = vadd.f32 %v5696_v1, %v14554_v46 }
 0x927   :  { %v4967_v54 = vpop.f32.mrf.mxu1 }
 0x928   :  { %v5086_v34 = vpack.c.bf16 %v4967_v54, %v4965_v33 }
 0x92a   :  { %5774 = vmatmul.bf16.gmra.mxu2 %v5086_v34 }
 0x92d   :  { %v5699_v22 = vpop.f32.mrf.mxu3 }
 0x92e   :  { %v5700_v54 = vadd.f32 %v5699_v22, %v14562_v43 }
 0x92f   :  { %v4970_v7 = vpop.f32.mrf.mxu1 }
 0x935   :  { %v5701_v19 = vpop.f32.mrf.mxu3 }
 0x936   :  { %v5702_v5 = vadd.f32 %v5701_v19, %v14570_v29 }
 0x937   :  { %v4972_v2 = vpop.f32.mrf.mxu1 }
 0x938   :  { %v5078_v3 = vpack.c.bf16 %v4972_v2, %v4970_v7 }
 0x93a   :  { %5788 = vmatmul.bf16.vlgmr.msra.gmra.mxu3 %v5078_v3 }
 0x93d   :  { %v5713_v40 = vpop.f32.mrf.mxu2 }
 0x93e   :  { %v14578_v9 = vadd.f32 %v5713_v40, %v5695_v16 }
 0x93f   :  { %v4975_v25 = vpop.f32.mrf.mxu1 }
 0x945   :  { %v5715_v26 = vpop.f32.mrf.mxu2 }
 0x946   :  { %v5716_v16 = vadd.f32 %v5715_v26, %v5697_v55 }
 0x947   :  { %v4977_v62 = vpop.f32.mrf.mxu1 }
 0x948   :  { %v5087_v49 = vpack.c.bf16 %v4977_v62, %v4975_v25 }
 0x94a   :  { %5793 = vmatmul.bf16.gmra.mxu3 %v5087_v49 }
 0x94d   :  { %v5718_v4 = vpop.f32.mrf.mxu2 }
 0x94e   :  { %v5719_v27 = vadd.f32 %v5718_v4, %v5700_v54 }
 0x94f   :  { %v4980_v44 = vpop.f32.mrf.mxu1 }
 0x955   :  { %v5720_v59 = vpop.f32.mrf.mxu2 }
 0x957   :  { %v4982_v42 = vpop.f32.mrf.mxu1 }
 0x958   :  { %v5079_v47 = vpack.c.bf16 %v4982_v42, %v4980_v44 }
 0x95a   :  { %5807 = vmatmul.bf16.vlgmr.msrb.gmra.mxu0 %v5079_v47 }
 0x95d   :  { %v5732_v20 = vpop.f32.mrf.mxu3 }
 0x95e   :  { %v5733_v34 = vadd.f32 %v5732_v20, %v14578_v9  ;;  %v5721_v9 = vadd.f32 %v5720_v59, %v5702_v5 }
 0x95f   :  { %v4985_v18 = vpop.f32.mrf.mxu1 }
 0x965   :  { %v5734_v12 = vpop.f32.mrf.mxu3 }
 0x966   :  { %v5735_v53 = vadd.f32 %v5734_v12, %v5716_v16 }
 0x967   :  { %v4987_v37 = vpop.f32.mrf.mxu1 }
 0x968   :  { %v5088_v15 = vpack.c.bf16 %v4987_v37, %v4985_v18 }
 0x96a   :  { %5812 = vmatmul.bf16.gmra.mxu0 %v5088_v15 }
 0x96d   :  { %v5737_v32 = vpop.f32.mrf.mxu3 }
 0x96e   :  { %v5738_v63 = vadd.f32 %v5737_v32, %v5719_v27 }
 0x96f   :  { %v4990_v61 = vpop.f32.mrf.mxu1 }
 0x975   :  { %v5739_v52 = vpop.f32.mrf.mxu3 }
 0x976   :  { %v5740_v44 = vadd.f32 %v5739_v52, %v5721_v9 }
 0x977   :  { %v4992_v28 = vpop.f32.mrf.mxu1  ;;  %v5751_v51 = vpop.f32.mrf.mxu0 }
 0x978   :  { %v5080_v17 = vpack.c.bf16 %v4992_v28, %v4990_v61  ;;  %v5752_v7 = vadd.f32 %v5751_v51, %v5733_v34 }
 0x97a   :  { %5826 = vmatmul.bf16.vlgmr.msrb.gmra.mxu2 %v5080_v17 }
 0x97f   :  { %v4995_v23 = vpop.f32.mrf.mxu1  ;;  %v5753_v39 = vpop.f32.mrf.mxu0 }
 0x980   :  { %v5754_v57 = vadd.f32 %v5753_v39, %v5735_v53 }
 0x987   :  { %v4997_v56 = vpop.f32.mrf.mxu1  ;;  %v5756_v14 = vpop.f32.mrf.mxu0 }
 0x988   :  { %v5089_v31 = vpack.c.bf16 %v4997_v56, %v4995_v23  ;;  %v5757_v40 = vadd.f32 %v5756_v14, %v5738_v63 }
 0x98a   :  { %5831 = vmatmul.bf16.gmra.mxu2 %v5089_v31 }
 0x98f   :  { %v5758_v21 = vpop.f32.mrf.mxu0 }
 0x990   :  { %v5759_v47 = vadd.f32 %v5758_v21, %v5740_v44 }
 0x99d   :  { %v5770_v41 = vpop.f32.mrf.mxu2 }
 0x99e   :  { %v5771_v2 = vadd.f32 %v5770_v41, %v5752_v7 }
 0x9a5   :  { %v5772_v35 = vpop.f32.mrf.mxu2 }
 0x9a6   :  { %v5773_v60 = vadd.f32 %v5772_v35, %v5754_v57 }
 0x9ad   :  { %v5775_v0 = vpop.f32.mrf.mxu2 }
 0x9ae   :  { %v5776_v62 = vadd.f32 %v5775_v0, %v5757_v40 }
 0x9b5   :  { %v5777_v50 = vpop.f32.mrf.mxu2 }
 0x9b6   :  { %v5778_v15 = vadd.f32 %v5777_v50, %v5759_v47 }
 0x9bd   :  { %v5789_v45 = vpop.f32.mrf.mxu3 }
 0x9be   :  { %v5790_v46 = vadd.f32 %v5789_v45, %v5771_v2 }
 0x9c5   :  { %v5791_v11 = vpop.f32.mrf.mxu3 }
 0x9c6   :  { %v5792_v3 = vadd.f32 %v5791_v11, %v5773_v60  ;;  %v5874_v60 = vld [vmem:[%s15812_s8] sm:$0x1] }
 0x9cd   :  { %v5794_v38 = vpop.f32.mrf.mxu3 }
 0x9ce   :  { %v5795_v58 = vadd.f32 %v5794_v38, %v5776_v62 }
 0x9d5   :  { %v5796_v37 = vpop.f32.mrf.mxu3 }
 0x9d6   :  { %v5797_v56 = vadd.f32 %v5796_v37, %v5778_v15  ;;  %v10572_v15 = vld [vmem:[%s15813_s10 + $0x8] sm:$0xff] }
 0x9d7   :  { %v5808_v24 = vpop.f32.mrf.mxu0 }
 0x9d8   :  { %v5809_v49 = vadd.f32 %v5808_v24, %v5790_v46 }
 0x9df   :  { %v5810_v33 = vpop.f32.mrf.mxu0 }
 0x9e0   :  { %v5811_v25 = vadd.f32 %v5810_v33, %v5792_v3 }
 0x9e7   :  { %v5813_v8 = vpop.f32.mrf.mxu0 }
 0x9e8   :  { %v5814_v10 = vadd.f32 %v5813_v8, %v5795_v58 }
 0x9ef   :  { %v5815_v23 = vpop.f32.mrf.mxu0 }
 0x9f0   :  { %v5816_v1 = vadd.f32 %v5815_v23, %v5797_v56  ;;  %v10576_v23 = vld [vmem:[%s15813_s10 + $0x28] sm:$0xff]  ;;  %v9631_v56 = vld [vmem:[%s15814_s11 + $0x70] sm:$0xf] }
 0x9fd   :  { %v5827_v36 = vpop.f32.mrf.mxu2 }
 0x9fe   :  { %v14607_v13 = vadd.f32 %v5827_v36, %v5809_v49 }
 0xa00   :  { %v5847_v6 = vmul.f32 %v14607_v13, %v14607_v13 }
 0xa05   :  { %v5829_v48 = vpop.f32.mrf.mxu2 }
 0xa06   :  { %v14605_v43 = vadd.f32 %v5829_v48, %v5811_v25  ;;  %v10742_v48 = vld [vmem:[%s15811_s9] ss:$0 sm:$0xff] }
 0xa08   :  { %v5848_v30 = vmul.f32 %v14605_v43, %v14605_v43  ;;  %v5837_v29 = vadd.f32 %v14605_v43, %v14607_v13 }
 0xa0a   :  { %v5851_v61 = vadd.f32 %v5848_v30, %v5847_v6 }
 0xa0d   :  { %v5832_v42 = vpop.f32.mrf.mxu2 }
 0xa0e   :  { %v5833_v18 = vadd.f32 %v5832_v42, %v5814_v10 }
 0xa10   :  { %v5838_v28 = vadd.f32 %v5837_v29, %v5833_v18  ;;  %v5849_v17 = vmul.f32 %v5833_v18, %v5833_v18 }
 0xa12   :  { %v5852_v31 = vadd.f32 %v5851_v61, %v5849_v17  ;;  %v10573_v61 = vld [vmem:[%s15813_s10 + $0x10] sm:$0xff]  ;;  %v10575_v17 = vld [vmem:[%s15813_s10 + $0x20] sm:$0xff] }
 0xa15   :  { %v5834_v22 = vpop.f32.mrf.mxu2 }
 0xa16   :  { %v5835_v26 = vadd.f32 %v5834_v22, %v5816_v1  ;;  %v9623_v22 = vld [vmem:[%s15814_s11 + $0x60] sm:$0xf] }
 0xa18   :  { %v5839_v19 = vadd.f32 %v5838_v28, %v5835_v26  ;;  %v5850_v4 = vmul.f32 %v5835_v26, %v5835_v26  ;;  %v10574_v28 = vld [vmem:[%s15813_s10 + $0x18] sm:$0xff] }
 0xa1a   :  { %v5840_v20 = vrot.slane %v5839_v19, 4  ;;  %v5853_v51 = vadd.f32 %v5852_v31, %v5850_v4  ;;  %v10604_v31 = vld [vmem:[%s15814_s11 + $0x74] sm:$0xf0] }
 0xa1b   :  { %v9632_v1 = vor.u32 %v10604_v31, %v9631_v56  ;;  %v10634_v56 = vld [vmem:[%s15814_s11 + $0x164] sm:$0xf0]  ;;  %v10633_v31 = vld [vmem:[%s15814_s11 + $0x164] sm:$0xf] }
 0xa1c   :  { %v5841_v59 = vadd.f32 %v5840_v20, %v5839_v19  ;;  %v5854_v12 = vrot.slane %v5853_v51, 4  ;;  %v10577_v19 = vld [vmem:[%s15813_s10 + $0x30] sm:$0xff] }
 0xa1d   :  { %7137 = vmatpush.bf16.msra.mxu0 %v9632_v1  ;;  %v9615_v20 = vld [vmem:[%s15814_s11 + $0x50] sm:$0xf] }
 0xa1e   :  { %v5842_v39 = vrot.slane %v5841_v59, 2  ;;  %v5855_v41 = vadd.f32 %v5854_v12, %v5853_v51  ;;  %v10600_v51 = vld [vmem:[%s15814_s11 + $0x54] sm:$0xf0]  ;;  %v9607_v12 = vld [vmem:[%s15814_s11 + $0x40] sm:$0xf] }
 0xa20   :  { %v5843_v32 = vadd.f32 %v5842_v39, %v5841_v59  ;;  %v5856_v14 = vrot.slane %v5855_v41, 2  ;;  %v9616_v59 = vor.u32 %v10600_v51, %v9615_v20  ;;  %v10598_v39 = vld [vmem:[%s15814_s11 + $0x44] sm:$0xf0]  ;;  %v9743_v20 = vld [vmem:[%s15814_s11 + $0x150] sm:$0xf] }
 0xa21   :  { %v10632_v51 = vld [vmem:[%s15814_s11 + $0x154] sm:$0xf0] }
 0xa22   :  { %v5844_v35 = vrot.slane %v5843_v32, 1  ;;  %v5857_v52 = vadd.f32 %v5856_v14, %v5855_v41  ;;  %v9608_v41 = vor.u32 %v10598_v39, %v9607_v12  ;;  %v10596_v14 = vld [vmem:[%s15814_s11 + $0x34] sm:$0xf0]  ;;  %v9744_v12 = vor.u32 %v10632_v51, %v9743_v20  ;;  %v9745_v39 = vld [vmem:[%s15814_s11 + $0x158] sm:$0xf0] }
 0xa23   :  { %v10642_v20 = vld [vmem:[%s15814_s11 + $0x1a4] sm:$0xf0] }
 0xa24   :  { %v5845_v21 = vadd.f32 %v5844_v35, %v5843_v32  ;;  %v5858_v0 = vrot.slane %v5857_v52, 1  ;;  %v9599_v32 = vld [vmem:[%s15814_s11 + $0x30] sm:$0xf] }
 0xa25   :  { %v9600_v35 = vor.u32 %v10596_v14, %v9599_v32  ;;  %v9735_v14 = vld [vmem:[%s15814_s11 + $0x140] sm:$0xf] }
 0xa26   :  { %v5846_v45 = vmul.f32 0.03125, %v5845_v21  ;;  %v5859_v24 = vadd.f32 %v5858_v0, %v5857_v52  ;;  %v9591_v52 = vld [vmem:[%s15814_s11 + $0x20] sm:$0xf]  ;;  %v10594_v21 = vld [vmem:[%s15814_s11 + $0x24] sm:$0xf0]  ;;  %v10578_v0 = vld [vmem:[%s15813_s10 + $0x38] sm:$0xff] }
 0xa28   :  { %v5860_v50 = vmul.f32 0.03125, %v5859_v24  ;;  %v5861_v55 = vmul.f32 %v5846_v45, %v5846_v45  ;;  %v5878_v11 = vsub.f32 %v5833_v18, %v5846_v45  ;;  %v5876_v16 = vsub.f32 %v14607_v13, %v5846_v45  ;;  %v9583_v24 = vld [vmem:[%s15814_s11 + $0x10] sm:$0xf] }
 0xa29   :  { %v5879_v3 = vsub.f32 %v5835_v26, %v5846_v45  ;;  %v5877_v40 = vsub.f32 %v14605_v43, %v5846_v45  ;;  %v10571_v43 = vld [vmem:[%s15813_s10] sm:$0xff]  ;;  %v10602_v26 = vld [vmem:[%s15814_s11 + $0x64] sm:$0xf0]  ;;  %v9592_v45 = vor.u32 %v10594_v21, %v9591_v52 }
 0xa2a   :  { %v5862_v33 = vsub.f32 %v5860_v50, %v5861_v55  ;;  %v9624_v4 = vor.u32 %v10602_v26, %v9623_v22  ;;  %v10592_v50 = vld [vmem:[%s15814_s11 + $0x14] sm:$0xf0]  ;;  %v10581_v22 = vld [vmem:[%s15813_s10 + $0x50] sm:$0xff]  ;;  %v10629_v52 = vld [vmem:[%s15814_s11 + $0x144] sm:$0xf] }
 0xa2b   :  { %v9584_v55 = vor.u32 %v10592_v50, %v9583_v24  ;;  %v9727_v24 = vld [vmem:[%s15814_s11 + $0x130] sm:$0xf]  ;;  %v10628_v50 = vld [vmem:[%s15814_s11 + $0x134] sm:$0xf0] }
 0xa2c   :  { %v5863_v36 = vadd.f32 1e-05, %v5862_v33  ;;  %7138 = vmatpush.bf16.msra.mxu0 %v9624_v4 }
 0xa2e   :  { %10746 = vrsqrt.f32 %v5863_v36  ;;  %vm5870_vm8 = vweird.f32 %v5863_v36 }
 0xa30   :  { %7139 = vmatpush.bf16.msra.mxu0 %v9616_v59  ;;  %v10631_v59 = vld [vmem:[%s15814_s11 + $0x154] sm:$0xf] }
 0xa34   :  { %v10747_v53 = vpop.eup %10746  ;;  %7140 = vmatpush.bf16.msra.mxu0 %v9608_v41  ;;  %v9748_v41 = vor.u32 %v10631_v59, %v9745_v39  ;;  %v10584_v59 = vld [vmem:[%s15813_s10 + $0x68] sm:$0xff]  ;;  %v9775_v39 = vld [vmem:[%s15814_s11 + $0x190] sm:$0xf] }
 0xa35   :  { %v5865_v54 = vmul.f32 %v10747_v53, %v5863_v36  ;;  %vm5871_vm7 = vweird.f32 %v10747_v53  ;;  %v9695_v36 = vld [vmem:[%s15814_s11 + $0xf0] sm:$0xf] }
 0xa36   :  { %vm5872_vm9 = vmor %vm5870_vm8, %vm5871_vm7 }
 0xa37   :  { %v5866_v34 = vmul.f32 %v10747_v53, %v5865_v54 }
 0xa38   :  { %7141 = vmatpush.bf16.msra.mxu0 %v9600_v35  ;;  %v10630_v35 = vld [vmem:[%s15814_s11 + $0x144] sm:$0xf0] }
 0xa39   :  { %v5867_v57 = vmul.f32 0.5, %v5866_v34  ;;  %v9687_v34 = vld [vmem:[%s15814_s11 + $0xe0] sm:$0xf]  ;;  %v9736_v21 = vor.u32 %v10630_v35, %v9735_v14 }
 0xa3a   :  { %v9767_v35 = vld [vmem:[%s15814_s11 + $0x180] sm:$0xf] }
 0xa3b   :  { %v5868_v27 = vsub.f32 1.5, %v5867_v57  ;;  %v10618_v57 = vld [vmem:[%s15814_s11 + $0xe4] sm:$0xf0] }
 0xa3c   :  { %7142 = vmatpush.bf16.msra.mxu0 %v9592_v45 }
 0xa3d   :  { %v5869_v7 = vmul.f32 %v10747_v53, %v5868_v27  ;;  %v10579_v27 = vld [vmem:[%s15813_s10 + $0x40] sm:$0xff] }
 0xa3f   :  { %v5873_v63 = vsel %vm5872_vm9, %v10747_v53, %v5869_v7  ;;  %v10620_v53 = vld [vmem:[%s15814_s11 + $0xf4] sm:$0xf0]  ;;  %v9688_v7 = vor.u32 %v10618_v57, %v9687_v34  ;;  %v10625_v34 = vld [vmem:[%s15814_s11 + $0x124] sm:$0xf] }
 0xa40   :  { %v5875_v2 = vmul.f32 %v5874_v60, %v5873_v63  ;;  %7143 = vmatpush.bf16.msra.mxu0 %v9584_v55  ;;  %v9696_v54 = vor.u32 %v10620_v53, %v9695_v36  ;;  %v9679_v60 = vld [vmem:[%s15814_s11 + $0xd0] sm:$0xf]  ;;  %v10616_v63 = vld [vmem:[%s15814_s11 + $0xd4] sm:$0xf0]  ;;  %v10627_v55 = vld [vmem:[%s15814_s11 + $0x134] sm:$0xf] }
 0xa41   :  { %v9719_v53 = vld [vmem:[%s15814_s11 + $0x120] sm:$0xf] }
 0xa42   :  { %v5880_v38 = vperm.slane %v5875_v2, 0  ;;  %7156 = vmatpush.bf16.msra.mxu2 %v9696_v54  ;;  %v9680_v2 = vor.u32 %v10616_v63, %v9679_v60  ;;  %v10626_v54 = vld [vmem:[%s15814_s11 + $0x124] sm:$0xf0]  ;;  %v9721_v60 = vld [vmem:[%s15814_s11 + $0x128] sm:$0xf0] }
 0xa43   :  { %v9724_v63 = vor.u32 %v10625_v34, %v9721_v60  ;;  %v10662_v60 = vld [vmem:[%s15814_s11 + $0x244] sm:$0xf0] }
 0xa44   :  { %v5884_v46 = vmul.f32 %v5880_v38, %v5879_v3  ;;  %v5883_v25 = vmul.f32 %v5880_v38, %v5878_v11  ;;  %v5881_v8 = vmul.f32 %v5880_v38, %v5876_v16  ;;  %v5882_v5 = vmul.f32 %v5880_v38, %v5877_v40  ;;  %v9575_v11 = vld [vmem:[%s15814_s11] sm:$0xf]  ;;  %v10590_v16 = vld [vmem:[%s15814_s11 + $0x4] sm:$0xf0] }
 0xa45   :  { %v9576_v33 = vor.u32 %v10590_v16, %v9575_v11  ;;  %v9671_v38 = vld [vmem:[%s15814_s11 + $0xc0] sm:$0xf]  ;;  %v9728_v11 = vor.u32 %v10628_v50, %v9727_v24  ;;  %v9729_v16 = vld [vmem:[%s15814_s11 + $0x138] sm:$0xf0] }
 0xa46   :  { %v5892_v62 = vadd.f32 %v10742_v48, %v5884_v46  ;;  %v5891_v49 = vadd.f32 %v10742_v48, %v5883_v25  ;;  %v5889_v9 = vadd.f32 %v10742_v48, %v5881_v8  ;;  %v5890_v58 = vadd.f32 %v10742_v48, %v5882_v5  ;;  %7157 = vmatpush.bf16.msra.mxu2 %v9688_v7  ;;  %v10614_v48 = vld [vmem:[%s15814_s11 + $0xc4] sm:$0xf0]  ;;  %v9663_v46 = vld [vmem:[%s15814_s11 + $0xb0] sm:$0xf]  ;;  %v10612_v25 = vld [vmem:[%s15814_s11 + $0xb4] sm:$0xf0] }
 0xa47   :  { %7144 = vmatpush.bf16.msra.mxu0 %v9576_v33  ;;  %v9672_v40 = vor.u32 %v10614_v48, %v9671_v38  ;;  %v9664_v8 = vor.u32 %v10612_v25, %v9663_v46  ;;  %v9732_v33 = vor.u32 %v10627_v55, %v9729_v16  ;;  %v9720_v7 = vor.u32 %v10626_v54, %v9719_v53  ;;  %v10623_v38 = vld [vmem:[%s15814_s11 + $0x114] sm:$0xf]  ;;  %v9879_v55 = vld [vmem:[%s15814_s11 + $0x260] sm:$0xf]  ;;  %v9871_v53 = vld [vmem:[%s15814_s11 + $0x250] sm:$0xf] }
 0xa48   :  { %v5895_v13 = vmul.f32 0.2, %v5891_v49  ;;  %v5896_v44 = vmul.f32 0.2, %v5892_v62  ;;  %v5893_v10 = vmul.f32 0.2, %v5889_v9 }
 0xa49   :  { %v5894_v30 = vmul.f32 0.2, %v5890_v58  ;;  %v10664_v54 = vld [vmem:[%s15814_s11 + $0x254] sm:$0xf0] }
 0xa4a   :  { %v5899_v42 = vmax.f32 %v5891_v49, %v5895_v13  ;;  %v5900_v47 = vmax.f32 %v5892_v62, %v5896_v44  ;;  %v5897_v6 = vmax.f32 %v5889_v9, %v5893_v10  ;;  %7158 = vmatpush.bf16.msra.mxu2 %v9680_v2  ;;  %v9655_v62 = vld [vmem:[%s15814_s11 + $0xa0] sm:$0xf]  ;;  %v10610_v49 = vld [vmem:[%s15814_s11 + $0xa4] sm:$0xf0]  ;;  %v9647_v44 = vld [vmem:[%s15814_s11 + $0x90] sm:$0xf]  ;;  %v9872_v34 = vor.u32 %v10664_v54, %v9871_v53 }
 0xa4b   :  { %v5898_v29 = vmax.f32 %v5890_v58, %v5894_v30  ;;  %v10580_v58 = vld [vmem:[%s15813_s10 + $0x48] sm:$0xff]  ;;  %v9656_v13 = vor.u32 %v10610_v49, %v9655_v62  ;;  %v10608_v10 = vld [vmem:[%s15814_s11 + $0x94] sm:$0xf0]  ;;  %v9711_v2 = vld [vmem:[%s15814_s11 + $0x110] sm:$0xf] }
 0xa4c   :  { %v5938_v18 = vpack.c.bf16 %v5900_v47, %v5899_v42  ;;  %v9648_v30 = vor.u32 %v10608_v10, %v9647_v44  ;;  %v9639_v47 = vld [vmem:[%s15814_s11 + $0x80] sm:$0xf]  ;;  %v10621_v62 = vld [vmem:[%s15814_s11 + $0x104] sm:$0xf]  ;;  %v9823_v44 = vld [vmem:[%s15814_s11 + $0x1f0] sm:$0xf] }
 0xa4d   :  { %v5937_v37 = vpack.c.bf16 %v5898_v29, %v5897_v6  ;;  %v10606_v6 = vld [vmem:[%s15814_s11 + $0x84] sm:$0xf0]  ;;  %v10652_v10 = vld [vmem:[%s15814_s11 + $0x1f4] sm:$0xf0]  ;;  %v10675_v53 = vld [vmem:[%s15814_s11 + $0x2b4] sm:$0xf] }
 0xa4e   :  { %6090 = vmatpush.bf16.msrb.mxu3 %v5938_v18  ;;  %7159 = vmatpush.bf16.msra.mxu2 %v9672_v40  ;;  %v9640_v29 = vor.u32 %v10606_v6, %v9639_v47  ;;  %v9759_v18 = vld [vmem:[%s15814_s11 + $0x170] sm:$0xf]  ;;  %v9713_v40 = vld [vmem:[%s15814_s11 + $0x118] sm:$0xf0]  ;;  %v9815_v47 = vld [vmem:[%s15814_s11 + $0x1e0] sm:$0xf] }
 0xa4f   :  { %v9716_v46 = vor.u32 %v10623_v38, %v9713_v40  ;;  %v10650_v6 = vld [vmem:[%s15814_s11 + $0x1e4] sm:$0xf0]  ;;  %v9847_v40 = vld [vmem:[%s15814_s11 + $0x220] sm:$0xf]  ;;  %v9921_v54 = vld [vmem:[%s15814_s11 + $0x2b8] sm:$0xf0] }
 0xa52   :  { %6091 = vmatpush.bf16.msrb.mxu3 %v5937_v37  ;;  %7160 = vmatpush.bf16.msra.mxu2 %v9664_v8  ;;  %v10636_v37 = vld [vmem:[%s15814_s11 + $0x174] sm:$0xf0]  ;;  %v9703_v8 = vld [vmem:[%s15814_s11 + $0x100] sm:$0xf] }
 0xa55   :  { %9555 = vmatmul.msk.bf16.vlgmr.msrb.gmra.mxu3 %vm6029_vm10, %v10571_v43  ;;  %v10635_v43 = vld [vmem:[%s15814_s11 + $0x174] sm:$0xf] }
 0xa56   :  { %7161 = vmatpush.bf16.msra.mxu2 %v9656_v13 }
 0xa5a   :  { %7162 = vmatpush.bf16.msra.mxu2 %v9648_v30  ;;  %v9824_v30 = vor.u32 %v10652_v10, %v9823_v44  ;;  %v10656_v44 = vld [vmem:[%s15814_s11 + $0x214] sm:$0xf0] }
 0xa5e   :  { %7163 = vmatpush.bf16.msra.mxu2 %v9640_v29 }
 0xa62   :  { %7194 = vmatpush.bf16.msrb.mxu2 %v9824_v30 }
 0xa65   :  { %9556 = vmatmul.msk.bf16.gmra.mxu3 %vm6029_vm10, %v10572_v15  ;;  %v9760_v15 = vor.u32 %v10636_v37, %v9759_v18  ;;  %v10583_v18 = vld [vmem:[%s15813_s10 + $0x60] sm:$0xff]  ;;  %v9816_v37 = vor.u32 %v10650_v6, %v9815_v47  ;;  %v10682_v47 = vld [vmem:[%s15814_s11 + $0x2e4] sm:$0xf0]  ;;  %v9935_v6 = vld [vmem:[%s15814_s11 + $0x2d0] sm:$0xf] }
 0xa67   :  { %7175 = vmatpush.bf16.msrb.mxu0 %v9760_v15  ;;  %7195 = vmatpush.bf16.msrb.mxu2 %v9816_v37  ;;  %v10648_v15 = vld [vmem:[%s15814_s11 + $0x1d4] sm:$0xf0] }
 0xa68   :  { %v10680_v37 = vld [vmem:[%s15814_s11 + $0x2d4] sm:$0xf0] }
 0xa75   :  { %9557 = vmatmul.msk.bf16.gmra.mxu3 %vm6029_vm10, %v10573_v61  ;;  %v9761_v61 = vld [vmem:[%s15814_s11 + $0x178] sm:$0xf0] }
 0xa85   :  { %9558 = vmatmul.msk.bf16.gmra.mxu3 %vm6029_vm10, %v10574_v28  ;;  %v9764_v28 = vor.u32 %v10635_v43, %v9761_v61  ;;  %v9807_v43 = vld [vmem:[%s15814_s11 + $0x1d0] sm:$0xf] }
 0xa86   :  { %v9808_v61 = vor.u32 %v10648_v15, %v9807_v43  ;;  %v9831_v43 = vld [vmem:[%s15814_s11 + $0x200] sm:$0xf]  ;;  %v10654_v15 = vld [vmem:[%s15814_s11 + $0x204] sm:$0xf0] }
 0xa87   :  { %7346 = vmatpush.bf16.msrb.mxu1 %v9764_v28 }
 0xa88   :  { %7196 = vmatpush.bf16.msrb.mxu2 %v9808_v61  ;;  %v9832_v61 = vor.u32 %v10654_v15, %v9831_v43 }
 0xa95   :  { %9559 = vmatmul.msk.bf16.gmra.mxu3 %vm6029_vm10, %v10575_v17 }
 0xaa5   :  { %9560 = vmatmul.msk.bf16.gmra.mxu3 %vm6029_vm10, %v10576_v23  ;;  %v9751_v23 = vld [vmem:[%s15814_s11 + $0x160] sm:$0xf] }
 0xaa6   :  { %v9752_v26 = vor.u32 %v10634_v56, %v9751_v23  ;;  %v10646_v23 = vld [vmem:[%s15814_s11 + $0x1c4] sm:$0xf0] }
 0xaa8   :  { %7176 = vmatpush.bf16.msrb.mxu0 %v9752_v26 }
 0xaac   :  { %7177 = vmatpush.bf16.msrb.mxu0 %v9744_v12 }
 0xab0   :  { %7178 = vmatpush.bf16.msrb.mxu0 %v9736_v21 }
 0xab4   :  { %7179 = vmatpush.bf16.msrb.mxu0 %v9728_v11  ;;  %v10666_v11 = vld [vmem:[%s15814_s11 + $0x264] sm:$0xf0] }
 0xab5   :  { %9561 = vmatmul.msk.bf16.gmra.mxu3 %vm6029_vm10, %v10577_v19  ;;  %v9753_v19 = vld [vmem:[%s15814_s11 + $0x168] sm:$0xf0] }
 0xab6   :  { %v9756_v4 = vor.u32 %v10633_v31, %v9753_v19  ;;  %v9791_v31 = vld [vmem:[%s15814_s11 + $0x1b0] sm:$0xf] }
 0xab8   :  { %7347 = vmatpush.bf16.msrb.mxu1 %v9756_v4  ;;  %7180 = vmatpush.bf16.msrb.mxu0 %v9720_v7  ;;  %v9783_v4 = vld [vmem:[%s15814_s11 + $0x1a0] sm:$0xf] }
 0xab9   :  { %v9784_v12 = vor.u32 %v10642_v20, %v9783_v4  ;;  %v9863_v7 = vld [vmem:[%s15814_s11 + $0x240] sm:$0xf] }
 0xaba   :  { %v9927_v20 = vld [vmem:[%s15814_s11 + $0x2c0] sm:$0xf] }
 0xabc   :  { %7348 = vmatpush.bf16.msrb.mxu1 %v9748_v41  ;;  %v10640_v41 = vld [vmem:[%s15814_s11 + $0x194] sm:$0xf0] }
 0xac5   :  { %9562 = vmatmul.msk.bf16.gmra.mxu3 %vm6029_vm10, %v10578_v0  ;;  %v9737_v0 = vld [vmem:[%s15814_s11 + $0x148] sm:$0xf0] }
 0xac6   :  { %v9740_v45 = vor.u32 %v10629_v52, %v9737_v0  ;;  %v10638_v52 = vld [vmem:[%s15814_s11 + $0x184] sm:$0xf0]  ;;  %v9887_v0 = vld [vmem:[%s15814_s11 + $0x270] sm:$0xf] }
 0xac7   :  { %v9768_v21 = vor.u32 %v10638_v52, %v9767_v35  ;;  %v9937_v35 = vld [vmem:[%s15814_s11 + $0x2d8] sm:$0xf0] }
 0xac8   :  { %7349 = vmatpush.bf16.msrb.mxu1 %v9740_v45  ;;  %v10668_v45 = vld [vmem:[%s15814_s11 + $0x274] sm:$0xf0] }
 0xac9   :  { %v9888_v24 = vor.u32 %v10668_v45, %v9887_v0  ;;  %v9911_v0 = vld [vmem:[%s15814_s11 + $0x2a0] sm:$0xf]  ;;  %v10674_v45 = vld [vmem:[%s15814_s11 + $0x2a4] sm:$0xf0] }
 0xacc   :  { %7350 = vmatpush.bf16.msrb.mxu1 %v9732_v33  ;;  %v10585_v33 = vld [vmem:[%s15813_s10 + $0x70] sm:$0xff] }
 0xad0   :  { %7351 = vmatpush.bf16.msrb.mxu1 %v9724_v63  ;;  %v9864_v63 = vor.u32 %v10662_v60, %v9863_v7  ;;  %v10673_v7 = vld [vmem:[%s15814_s11 + $0x2a4] sm:$0xf]  ;;  %v9913_v60 = vld [vmem:[%s15814_s11 + $0x2a8] sm:$0xf0] }
 0xad4   :  { %7352 = vmatpush.bf16.msrb.mxu1 %v9716_v46  ;;  %v10658_v46 = vld [vmem:[%s15814_s11 + $0x224] sm:$0xf0] }
 0xad5   :  { %9563 = vmatmul.msk.bf16.gmra.mxu3 %vm6029_vm10, %v10579_v27  ;;  %v10582_v27 = vld [vmem:[%s15813_s10 + $0x58] sm:$0xff] }
 0xad8   :  { %v6093_v3 = vpop.f32.mrf.mxu3 }
 0xae0   :  { %v6095_v5 = vpop.f32.mrf.mxu3 }
 0xae1   :  { %v14743_v9 = vpack.c.bf16 %v6095_v5, %v6093_v3  ;;  %v10624_v3 = vld [vmem:[%s15814_s11 + $0x114] sm:$0xf0]  ;;  %v10622_v5 = vld [vmem:[%s15814_s11 + $0x104] sm:$0xf0] }
 0xae2   :  { %v9712_v48 = vor.u32 %v10624_v3, %v9711_v2  ;;  %v9704_v49 = vor.u32 %v10622_v5, %v9703_v8  ;;  %v9855_v2 = vld [vmem:[%s15814_s11 + $0x230] sm:$0xf]  ;;  %v10660_v3 = vld [vmem:[%s15814_s11 + $0x234] sm:$0xf0] }
 0xae3   :  { %7145 = vmatmul.bf16.vlgmr.msra.gmra.mxu0 %v14743_v9  ;;  %v9856_v38 = vor.u32 %v10660_v3, %v9855_v2  ;;  %v10586_v8 = vld [vmem:[%s15813_s10 + $0x78] sm:$0xff]  ;;  %v9951_v5 = vld [vmem:[%s15814_s11 + $0x2f0] sm:$0xf]  ;;  %v10588_v2 = vld [vmem:[%s15813_s10 + $0x88] sm:$0xff] }
 0xae4   :  { %7181 = vmatpush.bf16.msrb.mxu0 %v9712_v48  ;;  %v9895_v3 = vld [vmem:[%s15814_s11 + $0x280] sm:$0xf] }
 0xae5   :  { %9564 = vmatmul.msk.bf16.gmra.mxu3 %vm6029_vm10, %v10580_v58  ;;  %v9705_v58 = vld [vmem:[%s15814_s11 + $0x108] sm:$0xf0] }
 0xae6   :  { %v9708_v13 = vor.u32 %v10621_v62, %v9705_v58  ;;  %v10684_v62 = vld [vmem:[%s15814_s11 + $0x2f4] sm:$0xf0] }
 0xae7   :  { %v9952_v58 = vor.u32 %v10684_v62, %v9951_v5  ;;  %v10671_v62 = vld [vmem:[%s15814_s11 + $0x294] sm:$0xf] }
 0xae8   :  { %v6098_v42 = vpop.f32.mrf.mxu3  ;;  %7182 = vmatpush.bf16.msrb.mxu0 %v9704_v49  ;;  %7353 = vmatpush.bf16.msrb.mxu1 %v9708_v13  ;;  %v9848_v49 = vor.u32 %v10658_v46, %v9847_v40  ;;  %v9839_v13 = vld [vmem:[%s15814_s11 + $0x210] sm:$0xf] }
 0xae9   :  { %v9840_v10 = vor.u32 %v10656_v44, %v9839_v13  ;;  %v10015_v46 = vld [vmem:[%s15814_s11 + $0x370] sm:$0xf]  ;;  %v10007_v44 = vld [vmem:[%s15814_s11 + $0x360] sm:$0xf] }
 0xaec   :  { %7213 = vmatpush.bf16.msra.mxu0 %v9888_v24  ;;  %v9903_v24 = vld [vmem:[%s15814_s11 + $0x290] sm:$0xf] }
 0xaf0   :  { %v6100_v17 = vpop.f32.mrf.mxu3 }
 0xaf1   :  { %v14783_v1 = vpack.c.bf16 %v6100_v17, %v6098_v42  ;;  %v9799_v17 = vld [vmem:[%s15814_s11 + $0x1c0] sm:$0xf] }
 0xaf2   :  { %v9800_v56 = vor.u32 %v10646_v23, %v9799_v17  ;;  %v10683_v17 = vld [vmem:[%s15814_s11 + $0x2f4] sm:$0xf]  ;;  %v9953_v23 = vld [vmem:[%s15814_s11 + $0x2f8] sm:$0xf0] }
 0xaf3   :  { %7150 = vmatmul.bf16.gmra.mxu0 %v14783_v1 }
 0xaf4   :  { %7197 = vmatpush.bf16.msrb.mxu2 %v9800_v56  ;;  %v9956_v56 = vor.u32 %v10683_v17, %v9953_v23  ;;  %v10694_v17 = vld [vmem:[%s15814_s11 + $0x344] sm:$0xf0] }
 0xaf5   :  { %9565 = vmatmul.msk.bf16.gmra.mxu3 %vm6029_vm10, %v10581_v22  ;;  %v10644_v22 = vld [vmem:[%s15814_s11 + $0x1b4] sm:$0xf0] }
 0xaf6   :  { %v9792_v26 = vor.u32 %v10644_v22, %v9791_v31  ;;  %7403 = vmatpush.bf16.msra.mxu1 %v9956_v56  ;;  %v10587_v22 = vld [vmem:[%s15813_s10 + $0x80] sm:$0xff]  ;;  %v9983_v56 = vld [vmem:[%s15814_s11 + $0x330] sm:$0xf]  ;;  %s16205_s10 = sld [smem:[#allocation83_spill]] }
 0xaf8   :  { %v6103_v32 = vpop.f32.mrf.mxu3  ;;  %7198 = vmatpush.bf16.msrb.mxu2 %v9792_v26  ;;  %v10681_v26 = vld [vmem:[%s15814_s11 + $0x2e4] sm:$0xf] }
 0xafc   :  { %7199 = vmatpush.bf16.msrb.mxu2 %v9784_v12 }
 0xb00   :  { %v6105_v36 = vpop.f32.mrf.mxu3 }
 0xb01   :  { %v14838_v57 = vpack.c.bf16 %v6105_v36, %v6103_v32  ;;  %v9776_v32 = vor.u32 %v10640_v41, %v9775_v39  ;;  %v9880_v36 = vor.u32 %v10666_v11, %v9879_v55  ;;  %v10676_v41 = vld [vmem:[%s15814_s11 + $0x2b4] sm:$0xf0]  ;;  %v10677_v11 = vld [vmem:[%s15814_s11 + $0x2c4] sm:$0xf] }
 0xb02   :  { %v10672_v55 = vld [vmem:[%s15814_s11 + $0x294] sm:$0xf0] }
 0xb03   :  { %7164 = vmatmul.bf16.vlgmr.msra.gmra.mxu2 %v14838_v57  ;;  %7214 = vmatpush.bf16.msra.mxu0 %v9880_v36  ;;  %v9904_v36 = vor.u32 %v10672_v55, %v9903_v24 }
 0xb04   :  { %7200 = vmatpush.bf16.msrb.mxu2 %v9776_v32 }
 0xb05   :  { %9566 = vmatmul.msk.bf16.gmra.mxu3 %vm6029_vm10, %v10582_v27 }
 0xb07   :  { %7215 = vmatpush.bf16.msra.mxu0 %v9872_v34  ;;  %v9924_v34 = vor.u32 %v10675_v53, %v9921_v54  ;;  %v10063_v53 = vld [vmem:[%s15814_s11 + $0x3d0] sm:$0xf] }
 0xb08   :  { %v6108_v25 = vpop.f32.mrf.mxu3  ;;  %7201 = vmatpush.bf16.msrb.mxu2 %v9768_v21 }
 0xb0b   :  { %7216 = vmatpush.bf16.msra.mxu0 %v9864_v63 }
 0xb0c   :  { %7232 = vmatpush.bf16.msra.mxu2 %v9952_v58 }
 0xb0f   :  { %7217 = vmatpush.bf16.msra.mxu0 %v9856_v38  ;;  %v10670_v38 = vld [vmem:[%s15814_s11 + $0x284] sm:$0xf0] }
 0xb10   :  { %v6110_v42 = vpop.f32.mrf.mxu3  ;;  %v9896_v40 = vor.u32 %v10670_v38, %v9895_v3  ;;  %v10055_v38 = vld [vmem:[%s15814_s11 + $0x3c0] sm:$0xf] }
 0xb11   :  { %v14884_v29 = vpack.c.bf16 %v6110_v42, %v6108_v25  ;;  %v9943_v42 = vld [vmem:[%s15814_s11 + $0x2e0] sm:$0xf] }
 0xb13   :  { %7169 = vmatmul.bf16.gmra.mxu2 %v14884_v29  ;;  %7218 = vmatpush.bf16.msra.mxu0 %v9848_v49  ;;  %v9905_v49 = vld [vmem:[%s15814_s11 + $0x298] sm:$0xf0] }
 0xb14   :  { %v9908_v58 = vor.u32 %v10671_v62, %v9905_v49 }
 0xb15   :  { %9567 = vmatmul.msk.bf16.gmra.mxu3 %vm6029_vm10, %v10583_v18  ;;  %v9944_v18 = vor.u32 %v10682_v47, %v9943_v42  ;;  %v10696_v47 = vld [vmem:[%s15814_s11 + $0x354] sm:$0xf0] }
 0xb17   :  { %7219 = vmatpush.bf16.msra.mxu0 %v9840_v10  ;;  %7233 = vmatpush.bf16.msra.mxu2 %v9944_v18  ;;  %v10698_v10 = vld [vmem:[%s15814_s11 + $0x364] sm:$0xf0]  ;;  %v9897_v18 = vld [vmem:[%s15814_s11 + $0x288] sm:$0xf0] }
 0xb18   :  { %v6113_v28 = vpop.f32.mrf.mxu3  ;;  %v10008_v42 = vor.u32 %v10698_v10, %v10007_v44 }
 0xb1b   :  { %7220 = vmatpush.bf16.msra.mxu0 %v9832_v61 }
 0xb20   :  { %v6115_v19 = vpop.f32.mrf.mxu3 }
 0xb21   :  { %v6257_v51 = vpack.c.bf16 %v6115_v19, %v6113_v28  ;;  %v9936_v28 = vor.u32 %v10680_v37, %v9935_v6  ;;  %v9945_v19 = vld [vmem:[%s15814_s11 + $0x2e8] sm:$0xf0]  ;;  %v10669_v6 = vld [vmem:[%s15814_s11 + $0x284] sm:$0xf] }
 0xb22   :  { %v9948_v12 = vor.u32 %v10681_v26, %v9945_v19  ;;  %v9900_v37 = vor.u32 %v10669_v6, %v9897_v18  ;;  %v9975_v19 = vld [vmem:[%s15814_s11 + $0x320] sm:$0xf] }
 0xb23   :  { %7183 = vmatmul.bf16.vlgmr.msrb.gmra.mxu0 %v6257_v51  ;;  %7354 = vmatmul.bf16.vlgmr.msrb.gmra.mxu1 %v6257_v51  ;;  %v10678_v51 = vld [vmem:[%s15814_s11 + $0x2c4] sm:$0xf0] }
 0xb24   :  { %7234 = vmatpush.bf16.msra.mxu2 %v9936_v28  ;;  %v9928_v39 = vor.u32 %v10678_v51, %v9927_v20  ;;  %7404 = vmatpush.bf16.msra.mxu1 %v9948_v12  ;;  %v9991_v28 = vld [vmem:[%s15814_s11 + $0x340] sm:$0xf]  ;;  %v10690_v20 = vld [vmem:[%s15814_s11 + $0x324] sm:$0xf0]  ;;  %v10688_v12 = vld [vmem:[%s15814_s11 + $0x314] sm:$0xf0] }
 0xb25   :  { %9568 = vmatmul.msk.bf16.gmra.mxu3 %vm6029_vm10, %v10584_v59  ;;  %v9919_v59 = vld [vmem:[%s15814_s11 + $0x2b0] sm:$0xf]  ;;  %v9992_v23 = vor.u32 %v10694_v17, %v9991_v28  ;;  %v9976_v51 = vor.u32 %v10690_v20, %v9975_v19  ;;  %v10702_v28 = vld [vmem:[%s15814_s11 + $0x384] sm:$0xf0]  ;;  %v9633_v19 = vld [vmem:[%s15814_s11 + $0x78] sm:$0xf0] }
 0xb26   :  { %v9920_v32 = vor.u32 %v10676_v41, %v9919_v59  ;;  %v9967_v59 = vld [vmem:[%s15814_s11 + $0x310] sm:$0xf] }
 0xb27   :  { %v9968_v41 = vor.u32 %v10688_v12, %v9967_v59  ;;  %v10135_v59 = vld [vmem:[%s15814_s11 + $0x460] sm:$0xf]  ;;  %v10730_v12 = vld [vmem:[%s15814_s11 + $0x464] sm:$0xf0] }
 0xb28   :  { %v6118_v14 = vpop.f32.mrf.mxu3  ;;  %7235 = vmatpush.bf16.msra.mxu2 %v9928_v39 }
 0xb2c   :  { %7236 = vmatpush.bf16.msra.mxu2 %v9920_v32 }
 0xb30   :  { %v6120_v50 = vpop.f32.mrf.mxu3 }
 0xb31   :  { %v6266_v16 = vpack.c.bf16 %v6120_v50, %v6118_v14  ;;  %v10679_v14 = vld [vmem:[%s15814_s11 + $0x2d4] sm:$0xf]  ;;  %v9912_v50 = vor.u32 %v10674_v45, %v9911_v0  ;;  %v10079_v0 = vld [vmem:[%s15814_s11 + $0x3f0] sm:$0xf]  ;;  %v10716_v45 = vld [vmem:[%s15814_s11 + $0x3f4] sm:$0xf0] }
 0xb32   :  { %v9940_v52 = vor.u32 %v10679_v14, %v9937_v35  ;;  %v9959_v35 = vld [vmem:[%s15814_s11 + $0x300] sm:$0xf]  ;;  %v10080_v24 = vor.u32 %v10716_v45, %v10079_v0  ;;  %v10599_v0 = vld [vmem:[%s15814_s11 + $0x54] sm:$0xf]  ;;  %v9617_v45 = vld [vmem:[%s15814_s11 + $0x58] sm:$0xf0] }
 0xb33   :  { %7188 = vmatmul.bf16.gmra.mxu0 %v6266_v16  ;;  %7359 = vmatmul.bf16.gmra.mxu1 %v6266_v16  ;;  %v9929_v16 = vld [vmem:[%s15814_s11 + $0x2c8] sm:$0xf0] }
 0xb34   :  { %7405 = vmatpush.bf16.msra.mxu1 %v9940_v52  ;;  %7237 = vmatpush.bf16.msra.mxu2 %v9912_v50  ;;  %v10686_v52 = vld [vmem:[%s15814_s11 + $0x304] sm:$0xf0] }
 0xb35   :  { %9569 = vmatmul.msk.bf16.gmra.mxu3 %vm6029_vm10, %v10585_v33  ;;  %v9932_v33 = vor.u32 %v10677_v11, %v9929_v16 }
 0xb38   :  { %v6123_v27 = vpop.f32.mrf.mxu3  ;;  %7406 = vmatpush.bf16.msra.mxu1 %v9932_v33  ;;  %7238 = vmatpush.bf16.msra.mxu2 %v9904_v36  ;;  %v10071_v33 = vld [vmem:[%s15814_s11 + $0x3e0] sm:$0xf]  ;;  %v10714_v36 = vld [vmem:[%s15814_s11 + $0x3e4] sm:$0xf0] }
 0xb39   :  { %v10072_v54 = vor.u32 %v10714_v36, %v10071_v33 }
 0xb3c   :  { %7407 = vmatpush.bf16.msra.mxu1 %v9924_v34  ;;  %7239 = vmatpush.bf16.msra.mxu2 %v9896_v40  ;;  %v10712_v34 = vld [vmem:[%s15814_s11 + $0x3d4] sm:$0xf0] }
 0xb40   :  { %v6125_v48 = vpop.f32.mrf.mxu3 }
 0xb41   :  { %v14971_v25 = vpack.c.bf16 %v6125_v48, %v6123_v27  ;;  %v9916_v48 = vor.u32 %v10673_v7, %v9913_v60 }
 0xb43   :  { %7202 = vmatmul.bf16.vlgmr.msrb.gmra.mxu2 %v14971_v25  ;;  %7408 = vmatpush.bf16.msra.mxu1 %v9916_v48  ;;  %v10710_v48 = vld [vmem:[%s15814_s11 + $0x3c4] sm:$0xf0] }
 0xb44   :  { %7270 = vmatpush.bf16.msrb.mxu2 %v10080_v24  ;;  %v10056_v40 = vor.u32 %v10710_v48, %v10055_v38 }
 0xb45   :  { %9570 = vmatmul.msk.bf16.gmra.mxu3 %vm6029_vm10, %v10586_v8  ;;  %v10700_v8 = vld [vmem:[%s15814_s11 + $0x374] sm:$0xf0] }
 0xb46   :  { %v10016_v5 = vor.u32 %v10700_v8, %v10015_v46  ;;  %v10047_v46 = vld [vmem:[%s15814_s11 + $0x3b0] sm:$0xf]  ;;  %v10708_v8 = vld [vmem:[%s15814_s11 + $0x3b4] sm:$0xf0] }
 0xb47   :  { %7409 = vmatpush.bf16.msra.mxu1 %v9908_v58  ;;  %v10039_v58 = vld [vmem:[%s15814_s11 + $0x3a0] sm:$0xf] }
 0xb48   :  { %v6128_v30 = vpop.f32.mrf.mxu3  ;;  %7251 = vmatpush.bf16.msrb.mxu0 %v10016_v5  ;;  %7271 = vmatpush.bf16.msrb.mxu2 %v10072_v54  ;;  %v10048_v5 = vor.u32 %v10708_v8, %v10047_v46  ;;  %v10137_v54 = vld [vmem:[%s15814_s11 + $0x468] sm:$0xf0] }
 0xb4b   :  { %7410 = vmatpush.bf16.msra.mxu1 %v9900_v37 }
 0xb4c   :  { %7252 = vmatpush.bf16.msrb.mxu0 %v10008_v42  ;;  %v10031_v42 = vld [vmem:[%s15814_s11 + $0x390] sm:$0xf] }
 0xb50   :  { %v6130_v31 = vpop.f32.mrf.mxu3 }
 0xb51   :  { %v15023_v4 = vpack.c.bf16 %v6130_v31, %v6128_v30  ;;  %v9999_v30 = vld [vmem:[%s15814_s11 + $0x350] sm:$0xf]  ;;  %v10692_v31 = vld [vmem:[%s15814_s11 + $0x334] sm:$0xf0] }
 0xb52   :  { %v10000_v43 = vor.u32 %v10696_v47, %v9999_v30  ;;  %v10704_v47 = vld [vmem:[%s15814_s11 + $0x394] sm:$0xf0] }
 0xb53   :  { %7207 = vmatmul.bf16.gmra.mxu2 %v15023_v4  ;;  %v10032_v6 = vor.u32 %v10704_v47, %v10031_v42 }
 0xb54   :  { %7253 = vmatpush.bf16.msrb.mxu0 %v10000_v43 }
 0xb55   :  { %9571 = vmatmul.msk.bf16.gmra.mxu3 %vm6029_vm10, %v10587_v22  ;;  %v9984_v22 = vor.u32 %v10692_v31, %v9983_v56  ;;  %v10143_v56 = vld [vmem:[%s15814_s11 + $0x470] sm:$0xf]  ;;  %v10732_v31 = vld [vmem:[%s15814_s11 + $0x474] sm:$0xf0] }
 0xb58   :  { %v6133_v21 = vpop.f32.mrf.mxu3  ;;  %7254 = vmatpush.bf16.msrb.mxu0 %v9992_v23 }
 0xb5c   :  { %7255 = vmatpush.bf16.msrb.mxu0 %v9984_v22  ;;  %v10603_v22 = vld [vmem:[%s15814_s11 + $0x74] sm:$0xf] }
 0xb5d   :  { %v9636_v20 = vor.u32 %v10603_v22, %v9633_v19  ;;  %v9585_v19 = vld [vmem:[%s15814_s11 + $0x18] sm:$0xf0] }
 0xb60   :  { %v6135_v27 = vpop.f32.mrf.mxu3  ;;  %v7146_v39 = vpop.f32.mrf.mxu0  ;;  %7256 = vmatpush.bf16.msrb.mxu0 %v9976_v51 }
 0xb61   :  { %v15075_v63 = vpack.c.bf16 %v6135_v27, %v6133_v21  ;;  %v9960_v21 = vor.u32 %v10686_v52, %v9959_v35  ;;  %v10064_v27 = vor.u32 %v10712_v34, %v10063_v53  ;;  %v10127_v35 = vld [vmem:[%s15814_s11 + $0x450] sm:$0xf]  ;;  %v10728_v52 = vld [vmem:[%s15814_s11 + $0x454] sm:$0xf0]  ;;  %v10729_v53 = vld [vmem:[%s15814_s11 + $0x464] sm:$0xf] }
 0xb62   :  { %v10128_v24 = vor.u32 %v10728_v52, %v10127_v35  ;;  %v15274_v38 = vor.u32 %v10729_v53, %v10137_v54  ;;  %v9577_v53 = vld [vmem:[%s15814_s11 + $0x8] sm:$0xf0] }
 0xb63   :  { %7221 = vmatmul.bf16.vlgmr.msra.gmra.mxu0 %v15075_v63  ;;  %7272 = vmatpush.bf16.msrb.mxu2 %v10064_v27  ;;  %v10119_v27 = vld [vmem:[%s15814_s11 + $0x440] sm:$0xf] }
 0xb64   :  { %7257 = vmatpush.bf16.msrb.mxu0 %v9968_v41 }
 0xb65   :  { %9572 = vmatmul.msk.bf16.gmra.mxu3 %vm6029_vm10, %v10588_v2 }
 0xb67   :  { %7273 = vmatpush.bf16.msrb.mxu2 %v10056_v40  ;;  %v9609_v40 = vld [vmem:[%s15814_s11 + $0x48] sm:$0xf0] }
 0xb68   :  { %v6138_v13 = vpop.f32.mrf.mxu3  ;;  %7258 = vmatpush.bf16.msrb.mxu0 %v9960_v21  ;;  %v15157_v50 = vpop.f32.mrf.mxu0 }
 0xb6b   :  { %7274 = vmatpush.bf16.msrb.mxu2 %v10048_v5  ;;  %v10111_v5 = vld [vmem:[%s15814_s11 + $0x430] sm:$0xf] }
 0xb70   :  { %v6140_v15 = vpop.f32.mrf.mxu3  ;;  %v7151_v7 = vpop.f32.mrf.mxu0 }
 0xb71   :  { %v15118_v61 = vpack.c.bf16 %v6140_v15, %v6138_v13  ;;  %v10706_v13 = vld [vmem:[%s15814_s11 + $0x3a4] sm:$0xf0]  ;;  %v10023_v15 = vld [vmem:[%s15814_s11 + $0x380] sm:$0xf] }
 0xb72   :  { %v10040_v30 = vor.u32 %v10706_v13, %v10039_v58  ;;  %v10024_v23 = vor.u32 %v10702_v28, %v10023_v15  ;;  %v9601_v13 = vld [vmem:[%s15814_s11 + $0x38] sm:$0xf0]  ;;  %v10593_v15 = vld [vmem:[%s15814_s11 + $0x24] sm:$0xf] }
 0xb73   :  { %7226 = vmatmul.bf16.gmra.mxu0 %v15118_v61 }
 0xb74   :  { %7275 = vmatpush.bf16.msrb.mxu2 %v10040_v30  ;;  %v10129_v30 = vld [vmem:[%s15814_s11 + $0x458] sm:$0xf0] }
 0xb78   :  { %v6143_v26 = vpop.f32.mrf.mxu3  ;;  %v15191_v44 = vpop.f32.mrf.mxu0  ;;  %7276 = vmatpush.bf16.msrb.mxu2 %v10032_v6 }
 0xb7c   :  { %7277 = vmatpush.bf16.msrb.mxu2 %v10024_v23  ;;  %v9593_v23 = vld [vmem:[%s15814_s11 + $0x28] sm:$0xf0] }
 0xb7d   :  { %v9596_v22 = vor.u32 %v10593_v15, %v9593_v23  ;;  %v9681_v15 = vld [vmem:[%s15814_s11 + $0xd8] sm:$0xf0]  ;;  %v10647_v23 = vld [vmem:[%s15814_s11 + $0x1d4] sm:$0xf] }
 0xb80   :  { %v6145_v32 = vpop.f32.mrf.mxu3 }
 0xb81   :  { %v6260_v14 = vpack.c.bf16 %v6145_v32, %v6143_v26  ;;  %v10144_v26 = vor.u32 %v10732_v31, %v10143_v56  ;;  %v10136_v32 = vor.u32 %v10730_v12, %v10135_v59  ;;  %v10095_v56 = vld [vmem:[%s15814_s11 + $0x410] sm:$0xf]  ;;  %v10720_v31 = vld [vmem:[%s15814_s11 + $0x414] sm:$0xf0] }
 0xb82   :  { %v10096_v59 = vor.u32 %v10720_v31, %v10095_v56  ;;  %v9809_v56 = vld [vmem:[%s15814_s11 + $0x1d8] sm:$0xf0]  ;;  %v10717_v31 = vld [vmem:[%s15814_s11 + $0x404] sm:$0xf] }
 0xb83   :  { %7240 = vmatmul.bf16.vlgmr.msra.gmra.mxu2 %v6260_v14  ;;  %7411 = vmatmul.bf16.vlgmr.msra.gmra.mxu1 %v6260_v14  ;;  %v9625_v14 = vld [vmem:[%s15814_s11 + $0x68] sm:$0xf0] }
 0xb84   :  { %7289 = vmatpush.bf16.msra.mxu0 %v10144_v26  ;;  %7308 = vmatpush.bf16.msra.mxu2 %v9636_v20  ;;  %v10591_v26 = vld [vmem:[%s15814_s11 + $0x14] sm:$0xf]  ;;  %v10725_v20 = vld [vmem:[%s15814_s11 + $0x444] sm:$0xf] }
 0xb86   :  { %v7165_v55 = vpop.f32.mrf.mxu2 }
 0xb87   :  { %v7166_v11 = vadd.f32 %v7165_v55, %v7146_v39  ;;  %v10601_v39 = vld [vmem:[%s15814_s11 + $0x64] sm:$0xf]  ;;  %v9620_v55 = vor.u32 %v10599_v0, %v9617_v45  ;;  %v10105_v45 = vld [vmem:[%s15814_s11 + $0x428] sm:$0xf0] }
 0xb88   :  { %v6148_v16 = vpop.f32.mrf.mxu3  ;;  %v9628_v21 = vor.u32 %v10601_v39, %v9625_v14  ;;  %7290 = vmatpush.bf16.msra.mxu0 %v10136_v32  ;;  %v10723_v39 = vld [vmem:[%s15814_s11 + $0x434] sm:$0xf]  ;;  %v10113_v32 = vld [vmem:[%s15814_s11 + $0x438] sm:$0xf0]  ;;  %v9588_v14 = vor.u32 %v10591_v26, %v9585_v19  ;;  %v10721_v0 = vld [vmem:[%s15814_s11 + $0x424] sm:$0xf]  ;;  %v9812_v19 = vor.u32 %v10647_v23, %v9809_v56 }
 0xb89   :  { %v15345_v52 = vor.u32 %v10723_v39, %v10113_v32  ;;  %v15368_v54 = vor.u32 %v10721_v0, %v10105_v45  ;;  %v10089_v26 = vld [vmem:[%s15814_s11 + $0x408] sm:$0xf0]  ;;  %v10613_v39 = vld [vmem:[%s15814_s11 + $0xc4] sm:$0xf] }
 0xb8a   :  { %7309 = vmatpush.bf16.msra.mxu2 %v9628_v21  ;;  %v9673_v32 = vld [vmem:[%s15814_s11 + $0xc8] sm:$0xf0] }
 0xb8b   :  { %v9801_v0 = vld [vmem:[%s15814_s11 + $0x1c8] sm:$0xf0] }
 0xb8c   :  { %7291 = vmatpush.bf16.msra.mxu0 %v10128_v24 }
 0xb8e   :  { %v15171_v60 = vpop.f32.mrf.mxu2  ;;  %7310 = vmatpush.bf16.msra.mxu2 %v9620_v55  ;;  %v10087_v55 = vld [vmem:[%s15814_s11 + $0x400] sm:$0xf] }
 0xb90   :  { %v6150_v2 = vpop.f32.mrf.mxu3 }
 0xb91   :  { %v6269_v3 = vpack.c.bf16 %v6150_v2, %v6148_v16  ;;  %v10145_v16 = vld [vmem:[%s15814_s11 + $0x478] sm:$0xf0]  ;;  %v10597_v2 = vld [vmem:[%s15814_s11 + $0x44] sm:$0xf] }
 0xb92   :  { %v9612_v8 = vor.u32 %v10597_v2, %v9609_v40  ;;  %v9697_v2 = vld [vmem:[%s15814_s11 + $0xf8] sm:$0xf0] }
 0xb93   :  { %7245 = vmatmul.bf16.gmra.mxu2 %v6269_v3  ;;  %7416 = vmatmul.bf16.gmra.mxu1 %v6269_v3  ;;  %v9825_v40 = vld [vmem:[%s15814_s11 + $0x1f8] sm:$0xf0] }
 0xb94   :  { %7311 = vmatpush.bf16.msra.mxu2 %v9612_v8  ;;  %v10719_v8 = vld [vmem:[%s15814_s11 + $0x414] sm:$0xf] }
 0xb96   :  { %v7170_v62 = vpop.f32.mrf.mxu2 }
 0xb97   :  { %v7171_v10 = vadd.f32 %v7170_v62, %v7151_v7  ;;  %v10726_v7 = vld [vmem:[%s15814_s11 + $0x444] sm:$0xf0]  ;;  %v10724_v62 = vld [vmem:[%s15814_s11 + $0x434] sm:$0xf0] }
 0xb98   :  { %v6153_v49 = vpop.f32.mrf.mxu3  ;;  %v10120_v48 = vor.u32 %v10726_v7, %v10119_v27  ;;  %v10112_v58 = vor.u32 %v10724_v62, %v10111_v5  ;;  %v10619_v7 = vld [vmem:[%s15814_s11 + $0xf4] sm:$0xf]  ;;  %v10097_v5 = vld [vmem:[%s15814_s11 + $0x418] sm:$0xf0] }
 0xb9a   :  { %7292 = vmatpush.bf16.msra.mxu0 %v10120_v48  ;;  %v9700_v48 = vor.u32 %v10619_v7, %v9697_v2  ;;  %v10609_v7 = vld [vmem:[%s15814_s11 + $0xa4] sm:$0xf]  ;;  %v9657_v2 = vld [vmem:[%s15814_s11 + $0xa8] sm:$0xf0] }
 0xb9e   :  { %7293 = vmatpush.bf16.msra.mxu0 %v10112_v58  ;;  %v15342_v35 = vpop.f32.mrf.mxu2  ;;  %v15390_v58 = vor.u32 %v10719_v8, %v10097_v5  ;;  %v9660_v8 = vor.u32 %v10609_v7, %v9657_v2 }
 0xba0   :  { %v6155_v18 = vpop.f32.mrf.mxu3  ;;  %v7184_v37 = vpop.f32.mrf.mxu0 }
 0xba1   :  { %v15199_v43 = vpack.c.bf16 %v6155_v18, %v6153_v49  ;;  %v15207_v17 = vadd.f32 %v7184_v37, %v7166_v11  ;;  %v10731_v11 = vld [vmem:[%s15814_s11 + $0x474] sm:$0xf]  ;;  %v10103_v18 = vld [vmem:[%s15814_s11 + $0x420] sm:$0xf]  ;;  %v10722_v37 = vld [vmem:[%s15814_s11 + $0x424] sm:$0xf0] }
 0xba2   :  { %v15254_v33 = vor.u32 %v10731_v11, %v10145_v16  ;;  %v10595_v49 = vld [vmem:[%s15814_s11 + $0x34] sm:$0xf]  ;;  %v10104_v28 = vor.u32 %v10722_v37, %v10103_v18  ;;  %v10718_v11 = vld [vmem:[%s15814_s11 + $0x404] sm:$0xf0]  ;;  %v10589_v16 = vld [vmem:[%s15814_s11 + $0x4] sm:$0xf] }
 0xba3   :  { %7259 = vmatmul.bf16.vlgmr.msrb.gmra.mxu0 %v15199_v43  ;;  %v9604_v42 = vor.u32 %v10595_v49, %v9601_v13  ;;  %v9580_v27 = vor.u32 %v10589_v16, %v9577_v53  ;;  %v9817_v37 = vld [vmem:[%s15814_s11 + $0x1e8] sm:$0xf0]  ;;  %v10643_v16 = vld [vmem:[%s15814_s11 + $0x1b4] sm:$0xf]  ;;  %v9793_v53 = vld [vmem:[%s15814_s11 + $0x1b8] sm:$0xf0] }
 0xba4   :  { %7460 = vmatpush.bf16.msrb.mxu1 %v15254_v33  ;;  %7294 = vmatpush.bf16.msra.mxu0 %v10104_v28 }
 0xba5   :  { %7312 = vmatpush.bf16.msra.mxu2 %v9604_v42  ;;  %v9689_v42 = vld [vmem:[%s15814_s11 + $0xe8] sm:$0xf0] }
 0xba8   :  { %v6158_v51 = vpop.f32.mrf.mxu3  ;;  %v15231_v41 = vpop.f32.mrf.mxu0  ;;  %7461 = vmatpush.bf16.msrb.mxu1 %v15274_v38  ;;  %7295 = vmatpush.bf16.msra.mxu0 %v10096_v59 }
 0xba9   :  { %7313 = vmatpush.bf16.msra.mxu2 %v9596_v22 }
 0xbad   :  { %7314 = vmatpush.bf16.msra.mxu2 %v9588_v14  ;;  %v10645_v14 = vld [vmem:[%s15814_s11 + $0x1c4] sm:$0xf] }
 0xbae   :  { %v9804_v45 = vor.u32 %v10645_v14, %v9801_v0  ;;  %v9881_v14 = vld [vmem:[%s15814_s11 + $0x268] sm:$0xf0] }
 0xbb0   :  { %v6160_v36 = vpop.f32.mrf.mxu3  ;;  %v7189_v3 = vpop.f32.mrf.mxu0 }
 0xbb1   :  { %v15263_v34 = vpack.c.bf16 %v6160_v36, %v6158_v51  ;;  %v15279_v46 = vadd.f32 %v7189_v3, %v7171_v10  ;;  %v10727_v10 = vld [vmem:[%s15814_s11 + $0x454] sm:$0xf]  ;;  %v10121_v51 = vld [vmem:[%s15814_s11 + $0x448] sm:$0xf0]  ;;  %v10088_v36 = vor.u32 %v10718_v11, %v10087_v55  ;;  %7315 = vmatpush.bf16.msra.mxu2 %v9580_v27  ;;  %v9665_v11 = vld [vmem:[%s15814_s11 + $0xb8] sm:$0xf0]  ;;  %v9796_v27 = vor.u32 %v10643_v16, %v9793_v53 }
 0xbb2   :  { %v15301_v47 = vor.u32 %v10727_v10, %v10129_v30  ;;  %v15334_v12 = vor.u32 %v10725_v20, %v10121_v51  ;;  %v10651_v3 = vld [vmem:[%s15814_s11 + $0x1f4] sm:$0xf]  ;;  %v10617_v30 = vld [vmem:[%s15814_s11 + $0xe4] sm:$0xf]  ;;  %v15426_v20 = vor.u32 %v10717_v31, %v10089_v26  ;;  %v9889_v26 = vld [vmem:[%s15814_s11 + $0x278] sm:$0xf0] }
 0xbb3   :  { %7264 = vmatmul.bf16.gmra.mxu0 %v15263_v34  ;;  %v9828_v62 = vor.u32 %v10651_v3, %v9825_v40  ;;  %v9692_v18 = vor.u32 %v10617_v30, %v9689_v42  ;;  %v10611_v55 = vld [vmem:[%s15814_s11 + $0xb4] sm:$0xf]  ;;  %v10641_v3 = vld [vmem:[%s15814_s11 + $0x1a4] sm:$0xf]  ;;  %v9777_v30 = vld [vmem:[%s15814_s11 + $0x198] sm:$0xf0] }
 0xbb4   :  { %7462 = vmatpush.bf16.msrb.mxu1 %v15301_v47  ;;  %7296 = vmatpush.bf16.msra.mxu0 %v10088_v36  ;;  %v9668_v36 = vor.u32 %v10611_v55, %v9665_v11  ;;  %v10009_v55 = vld [vmem:[%s15814_s11 + $0x368] sm:$0xf0]  ;;  %v10663_v11 = vld [vmem:[%s15814_s11 + $0x254] sm:$0xf]  ;;  %v9873_v16 = vld [vmem:[%s15814_s11 + $0x258] sm:$0xf0] }
 0xbb5   :  { %v10695_v53 = vld [vmem:[%s15814_s11 + $0x354] sm:$0xf]  ;;  %v9876_v7 = vor.u32 %v10663_v11, %v9873_v16  ;;  %v10081_v16 = vld [vmem:[%s15814_s11 + $0x3f8] sm:$0xf0] }
 0xbb6   :  { %v10715_v11 = vld [vmem:[%s15814_s11 + $0x3f4] sm:$0xf] }
 0xbb8   :  { %v6163_v6 = vpop.f32.mrf.mxu3  ;;  %7463 = vmatpush.bf16.msrb.mxu1 %v15334_v12  ;;  %7327 = vmatpush.bf16.msrb.mxu0 %v9700_v48  ;;  %v9785_v48 = vld [vmem:[%s15814_s11 + $0x1a8] sm:$0xf0] }
 0xbb9   :  { %v9788_v5 = vor.u32 %v10641_v3, %v9785_v48  ;;  %v10661_v3 = vld [vmem:[%s15814_s11 + $0x244] sm:$0xf]  ;;  %v9865_v48 = vld [vmem:[%s15814_s11 + $0x248] sm:$0xf0] }
 0xbbc   :  { %7464 = vmatpush.bf16.msrb.mxu1 %v15345_v52  ;;  %7328 = vmatpush.bf16.msrb.mxu0 %v9692_v18  ;;  %v10605_v18 = vld [vmem:[%s15814_s11 + $0x84] sm:$0xf] }
 0xbc0   :  { %v6165_v21 = vpop.f32.mrf.mxu3  ;;  %7465 = vmatpush.bf16.msrb.mxu1 %v15368_v54 }
 0xbc1   :  { %v15353_v24 = vpack.c.bf16 %v6165_v21, %v6163_v6  ;;  %v10649_v6 = vld [vmem:[%s15814_s11 + $0x1e4] sm:$0xf]  ;;  %v9676_v21 = vor.u32 %v10613_v39, %v9673_v32  ;;  %v10017_v39 = vld [vmem:[%s15814_s11 + $0x378] sm:$0xf0] }
 0xbc2   :  { %v9820_v28 = vor.u32 %v10649_v6, %v9817_v37  ;;  %v9641_v37 = vld [vmem:[%s15814_s11 + $0x88] sm:$0xf0]  ;;  %v10665_v32 = vld [vmem:[%s15814_s11 + $0x264] sm:$0xf] }
 0xbc3   :  { %7278 = vmatmul.bf16.vlgmr.msrb.gmra.mxu2 %v15353_v24  ;;  %v9644_v23 = vor.u32 %v10605_v18, %v9641_v37  ;;  %v9985_v37 = vld [vmem:[%s15814_s11 + $0x338] sm:$0xf0] }
 0xbc4   :  { %7365 = vmatpush.bf16.msrb.mxu2 %v9828_v62  ;;  %7466 = vmatpush.bf16.msrb.mxu1 %v15390_v58  ;;  %v10607_v62 = vld [vmem:[%s15814_s11 + $0x94] sm:$0xf] }
 0xbc6   :  { %v7203_v49 = vpop.f32.mrf.mxu2 }
 0xbc7   :  { %v15393_v13 = vadd.f32 %v7203_v49, %v15207_v17  ;;  %v10615_v17 = vld [vmem:[%s15814_s11 + $0xd4] sm:$0xf]  ;;  %v9649_v49 = vld [vmem:[%s15814_s11 + $0x98] sm:$0xf0] }
 0xbc8   :  { %v6168_v10 = vpop.f32.mrf.mxu3  ;;  %v9684_v22 = vor.u32 %v10615_v17, %v9681_v15  ;;  %7366 = vmatpush.bf16.msrb.mxu2 %v9820_v28  ;;  %7467 = vmatpush.bf16.msrb.mxu1 %v15426_v20  ;;  %v9652_v42 = vor.u32 %v10607_v62, %v9649_v49  ;;  %v10637_v17 = vld [vmem:[%s15814_s11 + $0x184] sm:$0xf]  ;;  %v9769_v15 = vld [vmem:[%s15814_s11 + $0x188] sm:$0xf0] }
 0xbc9   :  { %v9772_v31 = vor.u32 %v10637_v17, %v9769_v15  ;;  %v9993_v62 = vld [vmem:[%s15814_s11 + $0x348] sm:$0xf0] }
 0xbca   :  { %7329 = vmatpush.bf16.msrb.mxu0 %v9684_v22  ;;  %v10667_v22 = vld [vmem:[%s15814_s11 + $0x274] sm:$0xf]  ;;  %v9849_v15 = vld [vmem:[%s15814_s11 + $0x228] sm:$0xf0] }
 0xbcc   :  { %7367 = vmatpush.bf16.msrb.mxu2 %v9812_v19  ;;  %v10699_v19 = vld [vmem:[%s15814_s11 + $0x374] sm:$0xf] }
 0xbce   :  { %7330 = vmatpush.bf16.msrb.mxu0 %v9676_v21  ;;  %v10697_v21 = vld [vmem:[%s15814_s11 + $0x364] sm:$0xf] }
 0xbd0   :  { %v6170_v51 = vpop.f32.mrf.mxu3  ;;  %7368 = vmatpush.bf16.msrb.mxu2 %v9804_v45  ;;  %v9884_v45 = vor.u32 %v10665_v32, %v9881_v14  ;;  %v10653_v32 = vld [vmem:[%s15814_s11 + $0x204] sm:$0xf]  ;;  %v9833_v14 = vld [vmem:[%s15814_s11 + $0x208] sm:$0xf0] }
 0xbd1   :  { %v15429_v59 = vpack.c.bf16 %v6170_v51, %v6168_v10  ;;  %v10639_v10 = vld [vmem:[%s15814_s11 + $0x194] sm:$0xf]  ;;  %v9892_v51 = vor.u32 %v10667_v22, %v9889_v26  ;;  %v9841_v22 = vld [vmem:[%s15814_s11 + $0x218] sm:$0xf0] }
 0xbd2   :  { %7331 = vmatpush.bf16.msrb.mxu0 %v9668_v36  ;;  %v9780_v6 = vor.u32 %v10639_v10, %v9777_v30  ;;  %v10012_v36 = vor.u32 %v10697_v21, %v10009_v55  ;;  %v10659_v30 = vld [vmem:[%s15814_s11 + $0x234] sm:$0xf]  ;;  %v10685_v21 = vld [vmem:[%s15814_s11 + $0x304] sm:$0xf] }
 0xbd3   :  { %7283 = vmatmul.bf16.gmra.mxu2 %v15429_v59 }
 0xbd4   :  { %7369 = vmatpush.bf16.msrb.mxu2 %v9796_v27  ;;  %v10001_v27 = vld [vmem:[%s15814_s11 + $0x358] sm:$0xf0] }
 0xbd5   :  { %v10004_v2 = vor.u32 %v10695_v53, %v10001_v27  ;;  %v10084_v53 = vor.u32 %v10715_v11, %v10081_v16  ;;  %v10711_v27 = vld [vmem:[%s15814_s11 + $0x3d4] sm:$0xf] }
 0xbd6   :  { %7332 = vmatpush.bf16.msrb.mxu0 %v9660_v8 }
 0xbd8   :  { %v6173_v40 = vpop.f32.mrf.mxu3  ;;  %7370 = vmatpush.bf16.msrb.mxu2 %v9788_v5  ;;  %v9868_v5 = vor.u32 %v10661_v3, %v9865_v48 }
 0xbda   :  { %7333 = vmatpush.bf16.msrb.mxu0 %v9652_v42  ;;  %v9857_v42 = vld [vmem:[%s15814_s11 + $0x238] sm:$0xf0] }
 0xbdb   :  { %v9860_v18 = vor.u32 %v10659_v30, %v9857_v42 }
 0xbdc   :  { %7371 = vmatpush.bf16.msrb.mxu2 %v9780_v6  ;;  %v10691_v6 = vld [vmem:[%s15814_s11 + $0x334] sm:$0xf] }
 0xbdd   :  { %v9988_v17 = vor.u32 %v10691_v6, %v9985_v37  ;;  %v10025_v37 = vld [vmem:[%s15814_s11 + $0x388] sm:$0xf0] }
 0xbde   :  { %7334 = vmatpush.bf16.msrb.mxu0 %v9644_v23 }
 0xbe0   :  { %v6175_v28 = vpop.f32.mrf.mxu3  ;;  %7372 = vmatpush.bf16.msrb.mxu2 %v9772_v31  ;;  %v10655_v31 = vld [vmem:[%s15814_s11 + $0x214] sm:$0xf] }
 0xbe1   :  { %v6263_v56 = vpack.c.bf16 %v6175_v28, %v6173_v40  ;;  %v10693_v40 = vld [vmem:[%s15814_s11 + $0x344] sm:$0xf] }
 0xbe2   :  { %v9996_v10 = vor.u32 %v10693_v40, %v9993_v62  ;;  %v10689_v28 = vld [vmem:[%s15814_s11 + $0x324] sm:$0xf] }
 0xbe3   :  { %7297 = vmatmul.bf16.vlgmr.msra.gmra.mxu0 %v6263_v56  ;;  %7316 = vmatmul.bf16.vlgmr.msra.gmra.mxu2 %v14743_v9  ;;  %v10020_v9 = vor.u32 %v10699_v19, %v10017_v39  ;;  %v10687_v19 = vld [vmem:[%s15814_s11 + $0x314] sm:$0xf]  ;;  %v9844_v39 = vor.u32 %v10655_v31, %v9841_v22  ;;  %v10709_v40 = vld [vmem:[%s15814_s11 + $0x3c4] sm:$0xf] }
 0xbe4   :  { %7468 = vmatmul.bf16.vlgmr.msrb.gmra.mxu1 %v6263_v56  ;;  %7384 = vmatpush.bf16.msra.mxu0 %v9892_v51  ;;  %v9977_v56 = vld [vmem:[%s15814_s11 + $0x328] sm:$0xf0]  ;;  %v9969_v51 = vld [vmem:[%s15814_s11 + $0x318] sm:$0xf0] }
 0xbe5   :  { %7422 = vmatpush.bf16.msra.mxu2 %v10020_v9  ;;  %v9980_v26 = vor.u32 %v10689_v28, %v9977_v56  ;;  %v9972_v9 = vor.u32 %v10687_v19, %v9969_v51 }
 0xbe8   :  { %v6178_v0 = vpop.f32.mrf.mxu3  ;;  %7385 = vmatpush.bf16.msra.mxu0 %v9884_v45  ;;  %v9961_v45 = vld [vmem:[%s15814_s11 + $0x308] sm:$0xf0] }
 0xbe9   :  { %7423 = vmatpush.bf16.msra.mxu2 %v10012_v36  ;;  %v9964_v55 = vor.u32 %v10685_v21, %v9961_v45  ;;  %v15601_v36 = vpop.f32.mrf.mxu2 }
 0xbec   :  { %7386 = vmatpush.bf16.msra.mxu0 %v9876_v7 }
 0xbed   :  { %7424 = vmatpush.bf16.msra.mxu2 %v10004_v2  ;;  %v10065_v2 = vld [vmem:[%s15814_s11 + $0x3d8] sm:$0xf0] }
 0xbee   :  { %v10068_v3 = vor.u32 %v10711_v27, %v10065_v2 }
 0xbf0   :  { %v6180_v8 = vpop.f32.mrf.mxu3  ;;  %7387 = vmatpush.bf16.msra.mxu0 %v9868_v5 }
 0xbf1   :  { %v15541_v49 = vpack.c.bf16 %v6180_v8, %v6178_v0  ;;  %7425 = vmatpush.bf16.msra.mxu2 %v9996_v10  ;;  %v9836_v0 = vor.u32 %v10653_v32, %v9833_v14  ;;  %v15619_v48 = vpop.f32.mrf.mxu2  ;;  %v10057_v8 = vld [vmem:[%s15814_s11 + $0x3c8] sm:$0xf0] }
 0xbf2   :  { %v10060_v5 = vor.u32 %v10709_v40, %v10057_v8 }
 0xbf3   :  { %7302 = vmatmul.bf16.gmra.mxu0 %v15541_v49  ;;  %7321 = vmatmul.bf16.gmra.mxu2 %v14783_v1  ;;  %v10657_v1 = vld [vmem:[%s15814_s11 + $0x224] sm:$0xf] }
 0xbf4   :  { %7388 = vmatpush.bf16.msra.mxu0 %v9860_v18  ;;  %v9852_v23 = vor.u32 %v10657_v1, %v9849_v15  ;;  %v10701_v18 = vld [vmem:[%s15814_s11 + $0x384] sm:$0xf] }
 0xbf5   :  { %7426 = vmatpush.bf16.msra.mxu2 %v9988_v17  ;;  %v10028_v15 = vor.u32 %v10701_v18, %v10025_v37 }
 0xbf8   :  { %7389 = vmatpush.bf16.msra.mxu0 %v9852_v23 }
 0xbf9   :  { %7427 = vmatpush.bf16.msra.mxu2 %v9980_v26  ;;  %v15638_v30 = vpop.f32.mrf.mxu2 }
 0xbfc   :  { %7390 = vmatpush.bf16.msra.mxu0 %v9844_v39 }
 0xbfd   :  { %7428 = vmatpush.bf16.msra.mxu2 %v9972_v9 }
 0xc00   :  { %7391 = vmatpush.bf16.msra.mxu0 %v9836_v0 }
 0xc01   :  { %7429 = vmatpush.bf16.msra.mxu2 %v9964_v55  ;;  %v7209_v55 = vadd.f32 %v15619_v48, %v15279_v46 }
 0xc03   :  { %7335 = vmatmul.bf16.vlgmr.msrb.gmra.mxu0 %v14838_v57  ;;  %7373 = vmatmul.bf16.vlgmr.msrb.gmra.mxu2 %v14971_v25  ;;  %v10713_v57 = vld [vmem:[%s15814_s11 + $0x3e4] sm:$0xf]  ;;  %v10073_v25 = vld [vmem:[%s15814_s11 + $0x3e8] sm:$0xf0] }
 0xc04   :  { %7441 = vmatpush.bf16.msrb.mxu0 %v10084_v53  ;;  %v10076_v7 = vor.u32 %v10713_v57, %v10073_v25 }
 0xc05   :  { %10733 = vmatpush.bf16.msrb.mxu2 %v15254_v33  ;;  %v15617_v33 = vpop.f32.mrf.mxu0 }
 0xc06   :  { %v7241_v1 = vpop.f32.mrf.mxu2 }
 0xc08   :  { %7442 = vmatpush.bf16.msrb.mxu0 %v10076_v7 }
 0xc09   :  { %10734 = vmatpush.bf16.msrb.mxu2 %v15274_v38  ;;  %v10707_v38 = vld [vmem:[%s15814_s11 + $0x3b4] sm:$0xf] }
 0xc0c   :  { %7443 = vmatpush.bf16.msrb.mxu0 %v10068_v3 }
 0xc0d   :  { %10735 = vmatpush.bf16.msrb.mxu2 %v15301_v47  ;;  %v10049_v47 = vld [vmem:[%s15814_s11 + $0x3b8] sm:$0xf0]  ;;  %v7222_v62 = vpop.f32.mrf.mxu0 }
 0xc0e   :  { %v10052_v10 = vor.u32 %v10707_v38, %v10049_v47  ;;  %v7243_v28 = vpop.f32.mrf.mxu2  ;;  %v15694_v47 = vpop.f32.mrf.mxu1 }
 0xc10   :  { %7444 = vmatpush.bf16.msrb.mxu0 %v10060_v5 }
 0xc11   :  { %10736 = vmatpush.bf16.msrb.mxu2 %v15334_v12  ;;  %v10703_v12 = vld [vmem:[%s15814_s11 + $0x394] sm:$0xf] }
 0xc13   :  { %7340 = vmatmul.bf16.gmra.mxu0 %v14884_v29  ;;  %7378 = vmatmul.bf16.gmra.mxu2 %v15023_v4  ;;  %v10705_v29 = vld [vmem:[%s15814_s11 + $0x3a4] sm:$0xf]  ;;  %v10041_v4 = vld [vmem:[%s15814_s11 + $0x3a8] sm:$0xf0] }
 0xc14   :  { %7445 = vmatpush.bf16.msrb.mxu0 %v10052_v10  ;;  %v10044_v42 = vor.u32 %v10705_v29, %v10041_v4 }
 0xc15   :  { %10737 = vmatpush.bf16.msrb.mxu2 %v15345_v52  ;;  %v10033_v52 = vld [vmem:[%s15814_s11 + $0x398] sm:$0xf0]  ;;  %v7224_v17 = vpop.f32.mrf.mxu0 }
 0xc16   :  { %v10036_v6 = vor.u32 %v10703_v12, %v10033_v52  ;;  %v7246_v56 = vpop.f32.mrf.mxu2  ;;  %v15698_v18 = vpop.f32.mrf.mxu1 }
 0xc18   :  { %7446 = vmatpush.bf16.msrb.mxu0 %v10044_v42 }
 0xc19   :  { %10738 = vmatpush.bf16.msrb.mxu2 %v15368_v54 }
 0xc1c   :  { %7447 = vmatpush.bf16.msrb.mxu0 %v10036_v6 }
 0xc1d   :  { %10739 = vmatpush.bf16.msrb.mxu2 %v15390_v58  ;;  %v7227_v54 = vpop.f32.mrf.mxu0 }
 0xc1e   :  { %v7248_v58 = vpop.f32.mrf.mxu2 }
 0xc20   :  { %7448 = vmatpush.bf16.msrb.mxu0 %v10028_v15 }
 0xc21   :  { %10740 = vmatpush.bf16.msrb.mxu2 %v15426_v20 }
 0xc23   :  { %7392 = vmatmul.bf16.vlgmr.msra.gmra.mxu0 %v15075_v63  ;;  %7430 = vmatmul.bf16.vlgmr.msra.gmra.mxu2 %v15199_v43 }
 0xc25   :  { %v7229_v23 = vpop.f32.mrf.mxu0 }
 0xc2d   :  { %v7260_v31 = vpop.f32.mrf.mxu0 }
 0xc33   :  { %7397 = vmatmul.bf16.gmra.mxu0 %v15118_v61  ;;  %7435 = vmatmul.bf16.gmra.mxu2 %v15263_v34  ;;  %v7168_v61 = vadd.f32 %v15171_v60, %v15157_v50 }
 0xc35   :  { %v7262_v20 = vpop.f32.mrf.mxu0  ;;  %v7187_v34 = vadd.f32 %v15231_v41, %v7168_v61  ;;  %v7228_v41 = vadd.f32 %v7227_v54, %v7209_v55 }
 0xc37   :  { %v7206_v39 = vadd.f32 %v15601_v36, %v7187_v34  ;;  %v7247_v36 = vadd.f32 %v7246_v56, %v7228_v41 }
 0xc3d   :  { %v7265_v63 = vpop.f32.mrf.mxu0 }
 0xc3e   :  { %v7266_v27 = vadd.f32 %v7265_v63, %v7247_v36 }
 0xc43   :  { %7449 = vmatmul.bf16.vlgmr.msrb.gmra.mxu0 %v15353_v24  ;;  %7473 = vmatmul.bf16.vlgmr.msrb.gmra.mxu2 %v15541_v49  ;;  %v7223_v24 = vadd.f32 %v7222_v62, %v15393_v13  ;;  %v7225_v49 = vadd.f32 %v7224_v17, %v7206_v39  ;;  %v7173_v13 = vadd.f32 %v15342_v35, %v15191_v44 }
 0xc45   :  { %v7267_v19 = vpop.f32.mrf.mxu0  ;;  %v7242_v32 = vadd.f32 %v7241_v1, %v7223_v24  ;;  %v7244_v14 = vadd.f32 %v7243_v28, %v7225_v49  ;;  %v7192_v25 = vadd.f32 %v15617_v33, %v7173_v13 }
 0xc46   :  { %v7279_v22 = vpop.f32.mrf.mxu2 }
 0xc47   :  { %v7261_v21 = vadd.f32 %v7260_v31, %v7242_v32  ;;  %v7263_v0 = vadd.f32 %v7262_v20, %v7244_v14  ;;  %v7211_v3 = vadd.f32 %v15638_v30, %v7192_v25 }
 0xc49   :  { %v7280_v45 = vadd.f32 %v7279_v22, %v7261_v21  ;;  %v7230_v44 = vadd.f32 %v7229_v23, %v7211_v3  ;;  %v15736_v3 = vld [vmem:[%s15816_s13] sm:$0x3] }
 0xc4b   :  { %v7249_v8 = vadd.f32 %v7248_v58, %v7230_v44 }
 0xc4d   :  { %v7268_v62 = vadd.f32 %v7267_v19, %v7249_v8 }
 0xc4e   :  { %v7281_v26 = vpop.f32.mrf.mxu2 }
 0xc4f   :  { %v7282_v11 = vadd.f32 %v7281_v26, %v7263_v0 }
 0xc53   :  { %7454 = vmatmul.bf16.gmra.mxu0 %v15429_v59 }
 0xc56   :  { %v7284_v43 = vpop.f32.mrf.mxu2 }
 0xc57   :  { %v7285_v48 = vadd.f32 %v7284_v43, %v7266_v27  ;;  %v15706_v43 = vpop.f32.mrf.mxu1 }
 0xc5e   :  { %v7286_v51 = vpop.f32.mrf.mxu2 }
 0xc5f   :  { %v7287_v29 = vadd.f32 %v7286_v51, %v7268_v62  ;;  %v15717_v55 = vpop.f32.mrf.mxu1 }
 0xc60   :  { %v7298_v9 = vpop.f32.mrf.mxu0 }
 0xc61   :  { %v15675_v50 = vadd.f32 %v7298_v9, %v7280_v45 }
 0xc63   :  { %v7499_v53 = vmul.f32 %v15675_v50, %v15675_v50 }
 0xc66   :  { %v7317_v59 = vpop.f32.mrf.mxu2 }
 0xc68   :  { %v7300_v60 = vpop.f32.mrf.mxu0 }
 0xc69   :  { %v15677_v16 = vadd.f32 %v7300_v60, %v7282_v11 }
 0xc6b   :  { %v7479_v57 = vadd.f32 %v15677_v16, %v15675_v50  ;;  %v7501_v46 = vmul.f32 %v15677_v16, %v15677_v16 }
 0xc6d   :  { %v7507_v7 = vadd.f32 %v7501_v46, %v7499_v53  ;;  %v15723_v53 = vpop.f32.mrf.mxu1 }
 0xc6e   :  { %v7319_v2 = vpop.f32.mrf.mxu2 }
 0xc70   :  { %v7303_v40 = vpop.f32.mrf.mxu0 }
 0xc71   :  { %v15689_v35 = vadd.f32 %v7303_v40, %v7285_v48 }
 0xc73   :  { %v7480_v5 = vadd.f32 %v7479_v57, %v15689_v35  ;;  %v7503_v38 = vmul.f32 %v15689_v35, %v15689_v35 }
 0xc75   :  { %v7508_v33 = vadd.f32 %v7507_v7, %v7503_v38  ;;  %v7414_v40 = vpop.f32.mrf.mxu1 }
 0xc76   :  { %v15696_v10 = vpop.f32.mrf.mxu2 }
 0xc78   :  { %v7305_v4 = vpop.f32.mrf.mxu0 }
 0xc79   :  { %v7306_v30 = vadd.f32 %v7305_v4, %v7287_v29 }
 0xc7b   :  { %v7481_v12 = vadd.f32 %v7480_v5, %v7306_v30  ;;  %v7505_v42 = vmul.f32 %v7306_v30, %v7306_v30 }
 0xc7d   :  { %v7482_v52 = vrot.slane %v7481_v12, 4  ;;  %v7509_v6 = vadd.f32 %v7508_v33, %v7505_v42 }
 0xc7e   :  { %v15700_v37 = vpop.f32.mrf.mxu2 }
 0xc7f   :  { %v7483_v17 = vadd.f32 %v7482_v52, %v7481_v12  ;;  %v7510_v1 = vrot.slane %v7509_v6, 4 }
 0xc80   :  { %v7336_v15 = vpop.f32.mrf.mxu0 }
 0xc81   :  { %v7484_v54 = vrot.slane %v7483_v17, 2  ;;  %v7511_v28 = vadd.f32 %v7510_v1, %v7509_v6  ;;  %v15702_v23 = vadd.f32 %v7336_v15, %v7317_v59  ;;  %v7615_v1 = vld [vmem:[%s15817_s14 + $0x30] sm:$0xff] }
 0xc83   :  { %v7485_v56 = vadd.f32 %v7484_v54, %v7483_v17  ;;  %v7512_v31 = vrot.slane %v7511_v28, 2 }
 0xc85   :  { %v7486_v58 = vrot.slane %v7485_v56, 1  ;;  %v7513_v20 = vadd.f32 %v7512_v31, %v7511_v28  ;;  %v7613_v31 = vld [vmem:[%s15817_s14 + $0x20] sm:$0xff] }
 0xc86   :  { %v15704_v22 = vpop.f32.mrf.mxu2 }
 0xc87   :  { %v7487_v63 = vadd.f32 %v7486_v58, %v7485_v56  ;;  %v7514_v26 = vrot.slane %v7513_v20, 1  ;;  %v7417_v56 = vpop.f32.mrf.mxu1 }
 0xc88   :  { %v7338_v19 = vpop.f32.mrf.mxu0 }
 0xc89   :  { %v7497_v61 = vmul.f32 0.03125, %v7487_v63  ;;  %v7515_v34 = vadd.f32 %v7514_v26, %v7513_v20  ;;  %v15708_v51 = vadd.f32 %v7338_v19, %v7319_v2  ;;  %v7611_v26 = vld [vmem:[%s15817_s14 + $0x10] sm:$0xff] }
 0xc8b   :  { %v7525_v39 = vmul.f32 0.03125, %v7515_v34  ;;  %v7527_v24 = vmul.f32 %v7497_v61, %v7497_v61  ;;  %v7567_v9 = vsub.f32 %v7306_v30, %v7497_v61  ;;  %v7565_v49 = vsub.f32 %v15689_v35, %v7497_v61 }
 0xc8c   :  { %v7563_v32 = vsub.f32 %v15677_v16, %v7497_v61  ;;  %v7561_v14 = vsub.f32 %v15675_v50, %v7497_v61  ;;  %v15728_v50 = vld [vmem:[%s16205_s10] sm:$0x3]  ;;  %v7581_v35 = vperm.slane %v15736_v3, 0 }
 0xc8d   :  { %v7529_v21 = vsub.f32 %v7525_v39, %v7527_v24  ;;  %v7555_v25 = vperm.slane %v15728_v50, 0  ;;  %v7609_v39 = vld [vmem:[%s15817_s14] sm:$0xff] }
 0xc8e   :  { %v15713_v0 = vpop.f32.mrf.mxu2 }
 0xc8f   :  { %v7531_v45 = vadd.f32 1e-05, %v7529_v21 }
 0xc90   :  { %v15715_v59 = vpop.f32.mrf.mxu0 }
 0xc91   :  { %10748 = vrsqrt.f32 %v7531_v45  ;;  %vm7539_vm12 = vweird.f32 %v7531_v45 }
 0xc96   :  { %v15719_v11 = vpop.f32.mrf.mxu2 }
 0xc97   :  { %v10749_v60 = vpop.eup %10748 }
 0xc98   :  { %v7534_v41 = vmul.f32 %v10749_v60, %v7531_v45  ;;  %v15721_v13 = vpop.f32.mrf.mxu0  ;;  %vm7540_vm11 = vweird.f32 %v10749_v60 }
 0xc99   :  { %vm7541_vm13 = vmor %vm7539_vm12, %vm7540_vm11 }
 0xc9a   :  { %v7535_v36 = vmul.f32 %v10749_v60, %v7534_v41 }
 0xc9c   :  { %v7536_v16 = vmul.f32 0.5, %v7535_v36 }
 0xc9e   :  { %v7537_v57 = vsub.f32 1.5, %v7536_v16  ;;  %v15730_v46 = vpop.f32.mrf.mxu2 }
 0xca0   :  { %v7538_v27 = vmul.f32 %v10749_v60, %v7537_v57  ;;  %v7393_v7 = vpop.f32.mrf.mxu0 }
 0xca2   :  { %v7542_v2 = vsel %vm7541_vm13, %v10749_v60, %v7538_v27  ;;  %v7358_v60 = vadd.f32 %v15698_v18, %v15708_v51  ;;  %v7344_v51 = vadd.f32 %v15721_v13, %v15700_v37 }
 0xca3   :  { %v7559_v48 = vmul.f32 %v7555_v25, %v7542_v2  ;;  %v7342_v25 = vadd.f32 %v15715_v59, %v15696_v10 }
 0xca4   :  { %v7377_v36 = vadd.f32 %v15713_v0, %v7358_v60 }
 0xca5   :  { %v7569_v44 = vperm.slane %v7559_v48, 0 }
 0xca6   :  { %v7431_v62 = vpop.f32.mrf.mxu2 }
 0xca7   :  { %v7577_v8 = vmul.f32 %v7569_v44, %v7567_v9  ;;  %v7575_v5 = vmul.f32 %v7569_v44, %v7565_v49  ;;  %v7573_v38 = vmul.f32 %v7569_v44, %v7563_v32  ;;  %v7571_v29 = vmul.f32 %v7569_v44, %v7561_v14  ;;  %v7419_v49 = vpop.f32.mrf.mxu1 }
 0xca8   :  { %v7395_v33 = vpop.f32.mrf.mxu0  ;;  %v7356_v14 = vadd.f32 %v15694_v47, %v15702_v23  ;;  %v7361_v47 = vadd.f32 %v15706_v43, %v7342_v25 }
 0xca9   :  { %v7591_v4 = vadd.f32 %v7581_v35, %v7577_v8  ;;  %v7589_v30 = vadd.f32 %v7581_v35, %v7575_v5  ;;  %v7587_v12 = vadd.f32 %v7581_v35, %v7573_v38  ;;  %v7585_v42 = vadd.f32 %v7581_v35, %v7571_v29 }
 0xcaa   :  { %v7375_v21 = vadd.f32 %v15704_v22, %v7356_v14  ;;  %v7396_v2 = vadd.f32 %v7395_v33, %v7377_v36  ;;  %v7380_v35 = vadd.f32 %v15719_v11, %v7361_v47  ;;  %v7363_v5 = vadd.f32 %v15717_v55, %v7344_v51 }
 0xcab   :  { %v7599_v52 = vmul.f32 0.2, %v7591_v4  ;;  %v7597_v6 = vmul.f32 0.2, %v7589_v30  ;;  %v7595_v17 = vmul.f32 0.2, %v7587_v12 }
 0xcac   :  { %v7593_v28 = vmul.f32 0.2, %v7585_v42  ;;  %v7394_v41 = vadd.f32 %v7393_v7, %v7375_v21  ;;  %v7415_v23 = vadd.f32 %v7414_v40, %v7396_v2  ;;  %v7382_v13 = vadd.f32 %v15730_v46, %v7363_v5  ;;  %v7625_v2 = vld [vmem:[%s15818_s15] sm:$0x3] }
 0xcad   :  { %v7607_v15 = vmax.f32 %v7591_v4, %v7599_v52  ;;  %v7605_v54 = vmax.f32 %v7589_v30, %v7597_v6  ;;  %v7603_v20 = vmax.f32 %v7587_v12, %v7595_v17 }
 0xcae   :  { %v7601_v61 = vmax.f32 %v7585_v42, %v7593_v28  ;;  %v7433_v34 = vpop.f32.mrf.mxu2  ;;  %v7413_v27 = vadd.f32 %v15723_v53, %v7394_v41 }
 0xcaf   :  { %v7623_v58 = vmul.f32 %v7615_v1, %v7607_v15  ;;  %v7621_v19 = vmul.f32 %v7613_v31, %v7605_v54  ;;  %v7619_v24 = vmul.f32 %v7611_v26, %v7603_v20  ;;  %v7469_v57 = vpop.f32.mrf.mxu1  ;;  %v7434_v18 = vadd.f32 %v7433_v34, %v7415_v23 }
 0xcb0   :  { %v7398_v63 = vpop.f32.mrf.mxu0  ;;  %v7617_v9 = vmul.f32 %v7609_v39, %v7601_v61  ;;  %v7432_v48 = vadd.f32 %v7431_v62, %v7413_v27 }
 0xcb1   :  { %7641 = vmatpush.msra.mxu2 %v7623_v58  ;;  %v7399_v7 = vadd.f32 %v7398_v63, %v7380_v35 }
 0xcb3   :  { %7642 = vmatpush.msra.mxu2 %v7621_v19  ;;  %v7418_v43 = vadd.f32 %v7417_v56, %v7399_v7  ;;  %v7582_v7 = vperm.slane %v15736_v3, 1  ;;  %v7614_v3 = vld [vmem:[%s15817_s14 + $0x28] sm:$0xff] }
 0xcb5   :  { %7643 = vmatpush.msra.mxu2 %v7619_v24 }
 0xcb6   :  { %v7436_v45 = vpop.f32.mrf.mxu2 }
 0xcb7   :  { %7644 = vmatpush.msra.mxu2 %v7617_v9  ;;  %v7471_v59 = vpop.f32.mrf.mxu1  ;;  %v7437_v38 = vadd.f32 %v7436_v45, %v7418_v43 }
 0xcb8   :  { %v7400_v32 = vpop.f32.mrf.mxu0  ;;  %10149 = vmatmul.msk.f32.vlgmr.msra.gmra.mxu2 %vm6029_vm10, %v7625_v2 }
 0xcb9   :  { %v7401_v4 = vadd.f32 %v7400_v32, %v7382_v13 }
 0xcbb   :  { %v7420_v55 = vadd.f32 %v7419_v49, %v7401_v4 }
 0xcbe   :  { %v7438_v44 = vpop.f32.mrf.mxu2 }
 0xcbf   :  { %v7439_v6 = vadd.f32 %v7438_v44, %v7420_v55  ;;  %v7556_v44 = vperm.slane %v15728_v50, 1  ;;  %v7616_v50 = vld [vmem:[%s15817_s14 + $0x38] sm:$0xff] }
 0xcc0   :  { %v7450_v16 = vpop.f32.mrf.mxu0 }
 0xcc1   :  { %v7451_v22 = vadd.f32 %v7450_v16, %v7432_v48 }
 0xcc3   :  { %v15764_v8 = vadd.f32 %v7469_v57, %v7451_v22 }
 0xcc5   :  { %v7500_v40 = vmul.f32 %v15764_v8, %v15764_v8 }
 0xcc6   :  { %v7474_v29 = vpop.f32.mrf.mxu2 }
 0xcc8   :  { %v7452_v0 = vpop.f32.mrf.mxu0 }
 0xcc9   :  { %v7453_v10 = vadd.f32 %v7452_v0, %v7434_v18 }
 0xccb   :  { %v15766_v53 = vadd.f32 %v7471_v59, %v7453_v10 }
 0xccd   :  { %v7488_v11 = vadd.f32 %v15766_v53, %v15764_v8  ;;  %v7502_v37 = vmul.f32 %v15766_v53, %v15766_v53 }
 0xcce   :  { %v7476_v54 = vpop.f32.mrf.mxu2 }
 0xccf   :  { %v7516_v62 = vadd.f32 %v7502_v37, %v7500_v40 }
 0xcd0   :  { %v7455_v33 = vpop.f32.mrf.mxu0 }
 0xcd1   :  { %v7456_v30 = vadd.f32 %v7455_v33, %v7437_v38 }
 0xcd3   :  { %v7475_v12 = vadd.f32 %v7474_v29, %v7456_v30 }
 0xcd5   :  { %v7489_v42 = vadd.f32 %v7488_v11, %v7475_v12  ;;  %v7504_v52 = vmul.f32 %v7475_v12, %v7475_v12 }
 0xcd7   :  { %v7517_v17 = vadd.f32 %v7516_v62, %v7504_v52  ;;  %v7610_v52 = vld [vmem:[%s15817_s14 + $0x8] sm:$0xff] }
 0xcd8   :  { %v7457_v1 = vpop.f32.mrf.mxu0 }
 0xcd9   :  { %v7458_v15 = vadd.f32 %v7457_v1, %v7439_v6  ;;  %v22_v1 = vstv %s15819_s16 }
 0xcda   :  { %23 = vst [vmem:[#allocation3] sm:$0x1] %v22_v1 }
 0xcdb   :  { %v7477_v28 = vadd.f32 %v7476_v54, %v7458_v15 }
 0xcdd   :  { %v7490_v56 = vadd.f32 %v7489_v42, %v7477_v28  ;;  %v7506_v31 = vmul.f32 %v7477_v28, %v7477_v28 }
 0xcdf   :  { %v7491_v58 = vrot.slane %v7490_v56, 4  ;;  %v7518_v46 = vadd.f32 %v7517_v17, %v7506_v31 }
 0xce1   :  { %v7492_v20 = vadd.f32 %v7491_v58, %v7490_v56  ;;  %v7519_v63 = vrot.slane %v7518_v46, 4  ;;  %v10743_v58 = vld [vmem:[#allocation3] ss:$0 sm:$0xff] }
 0xce3   :  { %v7493_v26 = vrot.slane %v7492_v20, 2  ;;  %v7520_v19 = vadd.f32 %v7519_v63, %v7518_v46 }
 0xce5   :  { %v7494_v61 = vadd.f32 %v7493_v26, %v7492_v20  ;;  %v7521_v34 = vrot.slane %v7520_v19, 2 }
 0xce7   :  { %v7495_v39 = vrot.slane %v7494_v61, 1  ;;  %v7522_v24 = vadd.f32 %v7521_v34, %v7520_v19 }
 0xce9   :  { %v7496_v9 = vadd.f32 %v7495_v39, %v7494_v61  ;;  %v7523_v49 = vrot.slane %v7522_v24, 1 }
 0xceb   :  { %v7498_v32 = vmul.f32 0.03125, %v7496_v9  ;;  %v7524_v14 = vadd.f32 %v7523_v49, %v7522_v24 }
 0xced   :  { %v7526_v21 = vmul.f32 0.03125, %v7524_v14  ;;  %v7528_v45 = vmul.f32 %v7498_v32, %v7498_v32  ;;  %v7568_v60 = vsub.f32 %v7477_v28, %v7498_v32  ;;  %v7566_v41 = vsub.f32 %v7475_v12, %v7498_v32  ;;  %v7612_v12 = vld [vmem:[%s15817_s14 + $0x18] sm:$0xff] }
 0xcee   :  { %v7564_v36 = vsub.f32 %v15766_v53, %v7498_v32  ;;  %v7562_v16 = vsub.f32 %v15764_v8, %v7498_v32 }
 0xcef   :  { %v7530_v57 = vsub.f32 %v7526_v21, %v7528_v45 }
 0xcf1   :  { %v7532_v25 = vadd.f32 1e-05, %v7530_v57 }
 0xcf3   :  { %10750 = vrsqrt.f32 %v7532_v25  ;;  %vm7549_vm15 = vweird.f32 %v7532_v25 }
 0xcf9   :  { %v10751_v27 = vpop.eup %10750 }
 0xcfa   :  { %v7544_v48 = vmul.f32 %v10751_v27, %v7532_v25  ;;  %vm7550_vm14 = vweird.f32 %v10751_v27 }
 0xcfb   :  { %vm7551_vm0 = vmor %vm7549_vm15, %vm7550_vm14 }
 0xcfc   :  { %v7545_v47 = vmul.f32 %v10751_v27, %v7544_v48 }
 0xcfe   :  { %v7546_v23 = vmul.f32 0.5, %v7545_v47 }
 0xd00   :  { %v7547_v22 = vsub.f32 1.5, %v7546_v23 }
 0xd02   :  { %v7548_v35 = vmul.f32 %v10751_v27, %v7547_v22 }
 0xd04   :  { %v7552_v18 = vsel %vm7551_vm0, %v10751_v27, %v7548_v35 }
 0xd05   :  { %v7560_v51 = vmul.f32 %v7556_v44, %v7552_v18 }
 0xd07   :  { %v7570_v0 = vperm.slane %v7560_v51, 0 }
 0xd09   :  { %v7578_v8 = vmul.f32 %v7570_v0, %v7568_v60  ;;  %v7576_v10 = vmul.f32 %v7570_v0, %v7566_v41  ;;  %v7574_v59 = vmul.f32 %v7570_v0, %v7564_v36  ;;  %v7572_v53 = vmul.f32 %v7570_v0, %v7562_v16 }
 0xd0b   :  { %v7592_v5 = vadd.f32 %v7582_v7, %v7578_v8  ;;  %v7590_v43 = vadd.f32 %v7582_v7, %v7576_v10  ;;  %v7588_v40 = vadd.f32 %v7582_v7, %v7574_v59  ;;  %v7586_v11 = vadd.f32 %v7582_v7, %v7572_v53 }
 0xd0d   :  { %v7600_v37 = vmul.f32 0.2, %v7592_v5  ;;  %v7598_v13 = vmul.f32 0.2, %v7590_v43  ;;  %v7596_v38 = vmul.f32 0.2, %v7588_v40 }
 0xd0e   :  { %v7594_v29 = vmul.f32 0.2, %v7586_v11 }
 0xd0f   :  { %v7608_v62 = vmax.f32 %v7592_v5, %v7600_v37  ;;  %v7606_v33 = vmax.f32 %v7590_v43, %v7598_v13  ;;  %v7604_v30 = vmax.f32 %v7588_v40, %v7596_v38 }
 0xd10   :  { %v7602_v42 = vmax.f32 %v7586_v11, %v7594_v29 }
 0xd11   :  { %v7624_v4 = vmul.f32 %v7616_v50, %v7608_v62  ;;  %v7622_v55 = vmul.f32 %v7614_v3, %v7606_v33  ;;  %v7620_v6 = vmul.f32 %v7612_v12, %v7604_v30 }
 0xd12   :  { %v7618_v17 = vmul.f32 %v7610_v52, %v7602_v42 }
 0xd13   :  { %7661 = vmatpush.msra.mxu0 %v7624_v4 }
 0xd15   :  { %7662 = vmatpush.msra.mxu0 %v7622_v55 }
 0xd17   :  { %7663 = vmatpush.msra.mxu0 %v7620_v6 }
 0xd19   :  { %7664 = vmatpush.msra.mxu0 %v7618_v17 }
 0xd1a   :  { %10150 = vmatmul.msk.f32.vlgmr.msra.gmra.mxu0 %vm6029_vm10, %v7625_v2 }
 0xd3b   :  { %v7646_v15 = vpop.f32.mrf.mxu2 }
 0xd3c   :  { %v7670_v54 = vsel %vm7669_vm1, %v7646_v15, 0.0 }
 0xd97   :  { %v7666_v28 = vpop.f32.mrf.mxu0 }
 0xd98   :  { %v7671_v56 = vsel %vm7669_vm1, %v7666_v28, 0.0 }
 0xd99   :  { %v7672_v31 = vadd.f32 %v7671_v56, %v7670_v54 }
 0xd9b   :  { %7673 = vadd.xlane.f32.xlu0 %v7672_v31 }
 0xe0e   :  { %v7674_v46 = vpop.xlane.xlu0 %7673 }
 0xe0f   :  { %v7679_v20 = vadd.f32 %v10743_v58, %v7674_v46 }
 0xe11   :  { %v10151_v63 = vmul.f32 -1.442695, %v7679_v20 }
 0xe13   :  { %10752 = vpow2.f32 %v10151_v63 }
 0xe19   :  { %v10753_v26 = vpop.eup %10752 }
 0xe1a   :  { %v7683_v19 = vadd.f32 1.0, %v10753_v26 }
 0xe1c   :  { %10754 = vrcp.f32 %v7683_v19  ;;  %v7695_v24 = vand.u32 2147483648, %v7683_v19  ;;  %v7693_v49 = vand.u32 2147483647, %v7683_v19  ;;  %vm7689_vm3 = vweird.f32 %v7683_v19 }
 0xe1e   :  { %v7696_v14 = vor.u32 1.1754944e-38, %v7695_v24  ;;  %vm7694_vm6 = vcmp.eq.f32.partialorder %v7693_v49, 8.507059e+37 }
 0xe22   :  { %v10755_v61 = vpop.eup %10754 }
 0xe23   :  { %v7685_v34 = vmul.f32 %v10755_v61, %v7683_v19  ;;  %vm7690_vm2 = vweird.f32 %v10755_v61 }
 0xe24   :  { %vm7691_vm4 = vmor %vm7689_vm3, %vm7690_vm2 }
 0xe25   :  { %v7686_v39 = vsub.f32 1.0, %v7685_v34 }
 0xe27   :  { %v7687_v9 = vmul.f32 %v10755_v61, %v7686_v39 }
 0xe29   :  { %v7688_v32 = vadd.f32 %v10755_v61, %v7687_v9 }
 0xe2b   :  { %v7692_v21 = vsel %vm7691_vm4, %v10755_v61, %v7688_v32 }
 0xe2c   :  { %v7697_v45 = vsel %vm7694_vm6, %v7696_v14, %v7692_v21 }
 0xe2d   :  { %7700 = vst.msk [vmem:[%s15820_s17] sm:$0x3] %vm7699_vm5, %v7697_v45 }

</bundles_post_ra>
